<compile_context>
chip_gen: v7x
topology: tpu7x:2x2x1
jax: 0.10.0
libtpu: 0.0.40
codegen_flags: <defaults>
</compile_context>

<pallas_src>
import jax
import jax.numpy as jnp
from jax.experimental import pallas as pl
from jax.experimental.pallas import tpu as pltpu

C = 2048          # channel count fixed by the module (Linear(2048, .), A_front)
H, W = 8, 6       # spatial size fixed by MaxPool2d((8, 6)) / A_front
HW = H * W        # 48  (divisible by 8 -> sublane-aligned second-minor dim)
HID = 128         # hidden width of the w1 bottleneck
BN_EPS = 1e-5


# ----------------------- Kernel 1: A_operation + avg-pool -----------------------
# Lane-dense layout: body/face blocks are (TB, HW, C); spatial reductions are
# over the second-minor (sublane) axis.  Output is the pooled (TB, C) block.
def a_op_kernel(blk_gate_ref, face_fetch_ref, body_ref, face_ref, a_ref, gate_ref,
                w1_ref, b1_ref, w2_ref, b2_ref, feat_ref):
    i = pl.program_id(0)

    # AdaptiveAvgPool2d(1) of the un-gated path, folded with the residual:
    #   mean(body + gate*s) = mean(body) + gate*s   (s constant over spatial)
    feat_ref[...] = jnp.mean(body_ref[...].astype(jnp.float32), axis=1)      # (TB, C)

    @pl.when(blk_gate_ref[i] == 1)                 # single SMEM read per step
    def _():
        # batch_body * A_front * batch_face  (A broadcast over the TB samples)
        # TODO(synk): verify in the Mosaic dump that prod fuses into the max-
        # reduce; even materialized it is <= 6 MiB with this layout.
        prod = (body_ref[...].astype(jnp.float32)
                * a_ref[...].astype(jnp.float32)
                * face_ref[...].astype(jnp.float32))                          # (TB, HW, C)
        # w1 branch: MaxPool2d((8,6)) -> Flatten -> Linear(2048,128) -> ReLU
        #            -> Linear(128,2048) -> Sigmoid, batched over TB samples.
        mx = jnp.max(prod, axis=1)                                            # (TB, C)
        h = jnp.dot(mx, w1_ref[...], preferred_element_type=jnp.float32) + b1_ref[...]
        h = jnp.maximum(h, 0.0)                                               # (TB, HID)
        s = jnp.dot(h, w2_ref[...], preferred_element_type=jnp.float32) + b2_ref[...]
        s = jax.nn.sigmoid(s)                                                 # (TB, C)
        # pose==1 : feat = mean(body) + s ;  pose!=1 : feat = mean(body)
        feat_ref[...] = feat_ref[...] + gate_ref[...] * s


# --------------------- Kernel 2: Linear(2048, nattr) + BN1d ---------------------
# Tiled over the nattr dimension; BN statistics are per-column over the full
# batch, so each N-tile is independent.
def logits_bn_kernel(feat_ref, wl_ref, bl_ref, gamma_ref, beta_ref, out_ref):
    y = jnp.dot(feat_ref[...], wl_ref[...],
                preferred_element_type=jnp.float32) + bl_ref[...]             # (B, TN)
    mu = jnp.mean(y, axis=0, keepdims=True)
    var = jnp.mean(jnp.square(y - mu), axis=0, keepdims=True)
    out_ref[...] = gamma_ref[...] * (y - mu) * jax.lax.rsqrt(var + BN_EPS) + beta_ref[...]


# -------- Fused kernel (single-block regime): A_op + pool + Linear + BN ---------
def fused_kernel(blk_gate_ref, body_ref, face_ref, a_ref, gate_ref,
                 w1_ref, b1_ref, w2_ref, b2_ref,
                 wl_ref, bl_ref, gamma_ref, beta_ref, out_ref, feat_sc):
    j = pl.program_id(0)                           # N-tile index

    @pl.when(j == 0)
    def _():
        feat_sc[...] = jnp.mean(body_ref[...].astype(jnp.float32), axis=1)    # (B, C)

    @pl.when(jnp.logical_and(j == 0, blk_gate_ref[0] == 1))
    def _():
        prod = (body_ref[...].astype(jnp.float32)
                * a_ref[...].astype(jnp.float32)
                * face_ref[...].astype(jnp.float32))
        mx = jnp.max(prod, axis=1)
        h = jnp.maximum(
            jnp.dot(mx, w1_ref[...], preferred_element_type=jnp.float32) + b1_ref[...], 0.0)
        s = jax.nn.sigmoid(
            jnp.dot(h, w2_ref[...], preferred_element_type=jnp.float32) + b2_ref[...])
        feat_sc[...] = feat_sc[...] + gate_ref[...] * s

    # per-N-tile Linear + training-mode BatchNorm1d (full batch is resident)
    y = jnp.dot(feat_sc[...], wl_ref[...],
                preferred_element_type=jnp.float32) + bl_ref[...]
    mu = jnp.mean(y, axis=0, keepdims=True)
    var = jnp.mean(jnp.square(y - mu), axis=0, keepdims=True)
    out_ref[...] = gamma_ref[...] * (y - mu) * jax.lax.rsqrt(var + BN_EPS) + beta_ref[...]


# --------------------------------- Wrapper --------------------------------------
def _vmem_capacity_bytes():
    """Best-effort per-core VMEM query; falls back to the smallest part (v7x, 64 MiB)."""
    try:
        return int(pltpu.get_tpu_info().vmem_capacity_bytes)
    except Exception:
        return 64 * 1024 * 1024


def meta_base_classifier(x_body, x_face, pose, params, *, tb_max=None, vmem_limit=None):
    """Forward pass.

    x_body, x_face: (B, H, W, C) channels-last (NHWC) activations — the layout
    the upstream producer should emit.  pose: (B,) ints, pose==1 gates the
    A_front branch for that sample.
    """
    B = x_body.shape[0]
    assert x_body.shape == (B, H, W, C) and x_face.shape == (B, H, W, C)
    nattr = params["wl_t"].shape[1]

    # ---- per-generation tiling / VMEM budget -----------------------------------
    cap = _vmem_capacity_bytes()
    if cap >= 100 * 1024 * 1024:                  # v5e / v6e: 128 MiB VMEM
        tb_max = 16 if tb_max is None else tb_max
        vmem_limit = 64 * 1024 * 1024 if vmem_limit is None else vmem_limit
    else:                                         # v7x: 64 MiB per TensorCore
        tb_max = 8 if tb_max is None else tb_max
        vmem_limit = 40 * 1024 * 1024 if vmem_limit is None else vmem_limit

    # ---- lane-dense views: (B,H,W,C) -> (B,HW,C), contiguous reshape only -------
    body = x_body.reshape(B, HW, C)
    face = x_face.reshape(B, HW, C)
    a_hwc = params["a_hwc"]                       # (HW, C)

    TB = B if B <= tb_max else tb_max
    B_pad = ((B + TB - 1) // TB) * TB
    nblk = B_pad // TB

    pose_i = pose.astype(jnp.int32)
    if B_pad != B:
        pad = B_pad - B
        body = jnp.pad(body, ((0, pad), (0, 0), (0, 0)))
        face = jnp.pad(face, ((0, pad), (0, 0), (0, 0)))
        pose_i = jnp.pad(pose_i, (0, pad))        # padded pose=0 -> gate off
    gated = (pose_i == 1)
    gate = gated.astype(jnp.float32).reshape(B_pad, 1)

    # Per-block scalars: "any gated sample in block i" + the face fetch index.
    # fetch[i] == i for gated blocks, otherwise it repeats the previous gated
    # index so the pipeline elides the face DMA for ungated blocks.
    blk_gate = jnp.any(gated.reshape(nblk, TB), axis=1).astype(jnp.int32)     # (nblk,)
    blk_idx = jnp.arange(nblk, dtype=jnp.int32)
    face_fetch = jnp.maximum(
        jax.lax.cummax(jnp.where(blk_gate == 1, blk_idx, -1), axis=0), 0
    ).astype(jnp.int32)

    # nattr padded to a full lane-dense MXU tile (unmasked stores).
    if nattr <= 128:
        nattr_pad, TN = 128, 128
    else:
        nattr_pad = ((nattr + 255) // 256) * 256
        TN = 256
    pad_n = nattr_pad - nattr
    wl, bl = params["wl_t"], params["bl"]
    gamma, beta = params["gamma"], params["beta"]
    if pad_n:
        # zero padding keeps the padded BN columns finite (y=0, beta=0)
        wl = jnp.pad(wl, ((0, 0), (0, pad_n)))
        bl = jnp.pad(bl, ((0, 0), (0, pad_n)))
        gamma = jnp.pad(gamma, ((0, 0), (0, pad_n)))
        beta = jnp.pad(beta, ((0, 0), (0, pad_n)))

    common_w = (params["w1_t"], params["b1"], params["w2_t"], params["b2"])

    if nblk == 1:
        # ---- single-block regime: fuse everything into one pallas_call ---------
        out = pl.pallas_call(
            fused_kernel,
            out_shape=jax.ShapeDtypeStruct((B, nattr_pad), jnp.float32),
            grid_spec=pltpu.PrefetchScalarGridSpec(
                num_scalar_prefetch=1,                     # blk_gate in SMEM
                grid=(nattr_pad // TN,),
                in_specs=[
                    pl.BlockSpec((B, HW, C), lambda j, g: (0, 0, 0)),   # body (NHWC)
                    pl.BlockSpec((B, HW, C), lambda j, g: (0, 0, 0)),   # face (NHWC)
                    pl.BlockSpec((HW, C),    lambda j, g: (0, 0)),      # A_front
                    pl.BlockSpec((B, 1),     lambda j, g: (0, 0)),      # gate
                    pl.BlockSpec((C, HID),   lambda j, g: (0, 0)),      # W1^T
                    pl.BlockSpec((1, HID),   lambda j, g: (0, 0)),      # b1
                    pl.BlockSpec((HID, C),   lambda j, g: (0, 0)),      # W2^T
                    pl.BlockSpec((1, C),     lambda j, g: (0, 0)),      # b2
                    pl.BlockSpec((C, TN),    lambda j, g: (0, j)),      # Wl^T tile
                    pl.BlockSpec((1, TN),    lambda j, g: (0, j)),      # bl
                    pl.BlockSpec((1, TN),    lambda j, g: (0, j)),      # gamma
                    pl.BlockSpec((1, TN),    lambda j, g: (0, j)),      # beta
                ],
                out_specs=pl.BlockSpec((B, TN), lambda j, g: (0, j)),
                scratch_shapes=[pltpu.VMEM((B, C), jnp.float32)],       # feat
            ),
            compiler_params=pltpu.CompilerParams(
                dimension_semantics=("arbitrary",),   # feat scratch carried over N tiles
                vmem_limit_bytes=vmem_limit,
            ),
        )(blk_gate, body, face, a_hwc, gate, *common_w, wl, bl, gamma, beta)
        return out[:, :nattr]

    # ---- multi-block path: kernel 1 (A_operation + pooled features) ------------
    feat = pl.pallas_call(
        a_op_kernel,
        out_shape=jax.ShapeDtypeStruct((B_pad, C), jnp.float32),
        grid_spec=pltpu.PrefetchScalarGridSpec(
            num_scalar_prefetch=2,                         # blk_gate, face_fetch
            grid=(nblk,),
            in_specs=[
                pl.BlockSpec((TB, HW, C), lambda i, g, f: (i, 0, 0)),      # body
                pl.BlockSpec((TB, HW, C), lambda i, g, f: (f[i], 0, 0)),   # face: DMA
                #   elided for ungated blocks (repeated block index)
                pl.BlockSpec((HW, C),     lambda i, g, f: (0, 0)),         # A_front
                pl.BlockSpec((TB, 1),     lambda i, g, f: (i, 0)),         # gate
                pl.BlockSpec((C, HID),    lambda i, g, f: (0, 0)),         # W1^T
                pl.BlockSpec((1, HID),    lambda i, g, f: (0, 0)),         # b1
                pl.BlockSpec((HID, C),    lambda i, g, f: (0, 0)),         # W2^T
                pl.BlockSpec((1, C),      lambda i, g, f: (0, 0)),         # b2
            ],
            out_specs=pl.BlockSpec((TB, C), lambda i, g, f: (i, 0)),
        ),
        compiler_params=pltpu.CompilerParams(
            dimension_semantics=("parallel",),             # shard batch blocks on v7x
            vmem_limit_bytes=vmem_limit,
        ),
    )(blk_gate, face_fetch, body, face, a_hwc, gate, *common_w)

    if B_pad != B:
        feat = feat[:B]            # keep BatchNorm batch statistics exact

    # ---- kernel 2: Linear(2048, nattr) + training-mode BatchNorm1d -------------
    out = pl.pallas_call(
        logits_bn_kernel,
        out_shape=jax.ShapeDtypeStruct((B, nattr_pad), jnp.float32),
        grid_spec=pltpu.PrefetchScalarGridSpec(
            num_scalar_prefetch=0,
            grid=(nattr_pad // TN,),
            in_specs=[
                pl.BlockSpec((B, C),  lambda j: (0, 0)),   # pooled features (full batch)
                pl.BlockSpec((C, TN), lambda j: (0, j)),   # Wl^T tile
                pl.BlockSpec((1, TN), lambda j: (0, j)),   # bl
                pl.BlockSpec((1, TN), lambda j: (0, j)),   # gamma
                pl.BlockSpec((1, TN), lambda j: (0, j)),   # beta
            ],
            out_specs=pl.BlockSpec((B, TN), lambda j: (0, j)),
        ),
        compiler_params=pltpu.CompilerParams(
            dimension_semantics=("parallel",),
            vmem_limit_bytes=vmem_limit,
        ),
    )(feat, wl, bl, gamma, beta)
    return out[:, :nattr]


# ----------------------------- Param initialization -----------------------------
def init_params(key, nattr):
    ks = jax.random.split(key, 7)
    # shapes follow the PyTorch module __init__ (weights stored (out,in), then
    # transposed once for the row-major matmuls in the kernels)
    A_front = jax.random.normal(ks[0], (C, H, W), jnp.float32)          # torch.randn(2048,8,6)
    w1 = jax.random.normal(ks[1], (HID, C), jnp.float32) * 0.02          # Linear(2048,128).weight
    b1 = jax.random.normal(ks[2], (HID,), jnp.float32) * 0.02
    w2 = jax.random.normal(ks[3], (C, HID), jnp.float32) * 0.02          # Linear(128,2048).weight
    b2 = jax.random.normal(ks[4], (C,), jnp.float32) * 0.02
    wl = jax.random.normal(ks[5], (nattr, C), jnp.float32) * 0.02        # Linear(2048,nattr).weight
    bl = jax.random.normal(ks[6], (nattr,), jnp.float32) * 0.02
    gamma = jnp.ones((nattr,), jnp.float32)                              # BatchNorm1d defaults
    beta = jnp.zeros((nattr,), jnp.float32)
    return {
        "A_front": A_front,                                              # (C,H,W), as in PyTorch
        "a_hwc": jnp.transpose(A_front.reshape(C, HW), (1, 0)),          # (HW,C) lane-dense copy
        "w1_t": w1.T, "b1": b1.reshape(1, HID),
        "w2_t": w2.T, "b2": b2.reshape(1, C),
        "wl_t": wl.T, "bl": bl.reshape(1, nattr),
        "gamma": gamma.reshape(1, nattr), "beta": beta.reshape(1, nattr),
    }


# ------------------------------ Pure-JAX reference -------------------------------
# Operates on NCHW inputs, mirroring the PyTorch forward exactly.
def reference(x_body_nchw, x_face_nchw, pose, params):
    hp = jax.lax.Precision.HIGHEST
    B = x_body_nchw.shape[0]
    A = params["A_front"]
    feats = []
    for i in range(B):
        body = x_body_nchw[i]
        if int(pose[i]) == 1:
            prod = body * A * x_face_nchw[i]
            mx = jnp.max(prod.reshape(C, HW), axis=1)
            h = jnp.maximum(jnp.dot(mx, params["w1_t"], precision=hp) + params["b1"][0], 0.0)
            s = jax.nn.sigmoid(jnp.dot(h, params["w2_t"], precision=hp) + params["b2"][0])
            comb = body + s[:, None, None]
        else:
            comb = body
        feats.append(jnp.mean(comb.reshape(C, HW), axis=1))
    feat = jnp.stack(feats)
    y = jnp.dot(feat, params["wl_t"], precision=hp) + params["bl"][0]
    mu = jnp.mean(y, axis=0, keepdims=True)
    var = jnp.mean((y - mu) ** 2, axis=0, keepdims=True)
    return params["gamma"] * (y - mu) / jnp.sqrt(var + BN_EPS) + params["beta"]


if __name__ == "__main__":
    NATTR = 32
    key = jax.random.PRNGKey(0)
    k_b1, k_f1, k_param, k_b2, k_f2 = jax.random.split(key, 5)
    params = init_params(k_param, NATTR)

    # ---- case 1: small batch -> fused single-block path -------------------------
    B1 = 2
    xb1_nchw = jax.random.normal(k_b1, (B1, C, H, W), jnp.float32)   # NCHW, as in PyTorch
    xf1_nchw = jax.random.normal(k_f1, (B1, C, H, W), jnp.float32)
    pose1 = jnp.array([1, 0], dtype=jnp.int32)                       # exercise both branches
    # The kernels consume channels-last; in a real pipeline the upstream
    # backbone emits NHWC directly — here we convert once in the test harness.
    xb1 = jnp.transpose(xb1_nchw, (0, 2, 3, 1))
    xf1 = jnp.transpose(xf1_nchw, (0, 2, 3, 1))
    out1 = jax.block_until_ready(meta_base_classifier(xb1, xf1, pose1, params))
    ref1 = reference(xb1_nchw, xf1_nchw, pose1, params)
    assert out1.shape == (B1, NATTR)
    assert jnp.allclose(out1, ref1, rtol=1e-3, atol=1e-3)

    # ---- case 2: multi-block path (batch padding + face-DMA skip) ---------------
    B2 = 10
    xb2_nchw = jax.random.normal(k_b2, (B2, C, H, W), jnp.float32)
    xf2_nchw = jax.random.normal(k_f2, (B2, C, H, W), jnp.float32)
    pose2 = jnp.array([1, 0, 0, 1, 0, 0, 0, 0, 0, 0], dtype=jnp.int32)  # block 1 fully ungated
    xb2 = jnp.transpose(xb2_nchw, (0, 2, 3, 1))
    xf2 = jnp.transpose(xf2_nchw, (0, 2, 3, 1))
    out2 = jax.block_until_ready(
        meta_base_classifier(xb2, xf2, pose2, params,
                             tb_max=8, vmem_limit=40 * 1024 * 1024))
    ref2 = reference(xb2_nchw, xf2_nchw, pose2, params)
    assert out2.shape == (B2, NATTR)
    assert jnp.allclose(out2, ref2, rtol=1e-3, atol=1e-3)

    print("KERNEL_OK")
</pallas_src>

<mosaic_0001>
module attributes {stable_mosaic.version = 11 : i64} {
  func.func @fused_kernel(%arg0: i32, %arg1: memref<1xi32, #tpu.memory_space<smem>>, %arg2: memref<2x48x2048xf32, #tpu.memory_space<vmem>>, %arg3: memref<2x48x2048xf32, #tpu.memory_space<vmem>>, %arg4: memref<48x2048xf32, #tpu.memory_space<vmem>>, %arg5: memref<2x1xf32, #tpu.memory_space<vmem>>, %arg6: memref<2048x128xf32, #tpu.memory_space<vmem>>, %arg7: memref<1x128xf32, #tpu.memory_space<vmem>>, %arg8: memref<128x2048xf32, #tpu.memory_space<vmem>>, %arg9: memref<1x2048xf32, #tpu.memory_space<vmem>>, %arg10: memref<2048x128xf32, #tpu.memory_space<vmem>>, %arg11: memref<1x128xf32, #tpu.memory_space<vmem>>, %arg12: memref<1x128xf32, #tpu.memory_space<vmem>>, %arg13: memref<1x128xf32, #tpu.memory_space<vmem>>, %arg14: memref<2x128xf32, #tpu.memory_space<vmem>>, %arg15: memref<2x2048xf32, #tpu.memory_space<vmem>>) attributes {dimension_semantics = [#tpu.dimension_semantics<arbitrary>], iteration_bounds = array<i64: 1>, scalar_prefetch = 1 : i64, scratch_operands = 1 : i64, tpu.core_type = #tpu.core_type<tc>, window_params = [{pipeline_mode = #tpu.pipeline_mode<synchronous>, transform_indices = @transform_0, window_bounds = array<i64: 2, 48, 2048>}, {pipeline_mode = #tpu.pipeline_mode<synchronous>, transform_indices = @transform_1, window_bounds = array<i64: 2, 48, 2048>}, {pipeline_mode = #tpu.pipeline_mode<synchronous>, transform_indices = @transform_2, window_bounds = array<i64: 48, 2048>}, {pipeline_mode = #tpu.pipeline_mode<synchronous>, transform_indices = @transform_3, window_bounds = array<i64: 2, 1>}, {pipeline_mode = #tpu.pipeline_mode<synchronous>, transform_indices = @transform_4, window_bounds = array<i64: 2048, 128>}, {pipeline_mode = #tpu.pipeline_mode<synchronous>, transform_indices = @transform_5, window_bounds = array<i64: 1, 128>}, {pipeline_mode = #tpu.pipeline_mode<synchronous>, transform_indices = @transform_6, window_bounds = array<i64: 128, 2048>}, {pipeline_mode = #tpu.pipeline_mode<synchronous>, transform_indices = @transform_7, window_bounds = array<i64: 1, 2048>}, {transform_indices = @transform_8, window_bounds = array<i64: 2048, 128>}, {transform_indices = @transform_9, window_bounds = array<i64: 1, 128>}, {transform_indices = @transform_10, window_bounds = array<i64: 1, 128>}, {transform_indices = @transform_11, window_bounds = array<i64: 1, 128>}, {transform_indices = @transform_12, window_bounds = array<i64: 2, 128>}]} {
    %c0_i32 = arith.constant 0 : i32
    %0 = arith.cmpi eq, %arg0, %c0_i32 : i32
    %1 = arith.extui %0 : i1 to i32
    %c0_i32_0 = arith.constant 0 : i32
    %2 = arith.cmpi ne, %1, %c0_i32_0 : i32
    scf.if %2 {
      %c0_20 = arith.constant 0 : index
      %c0_21 = arith.constant 0 : index
      %c0_22 = arith.constant 0 : index
      %40 = vector.load %arg2[%c0_20, %c0_21, %c0_22] : memref<2x48x2048xf32, #tpu.memory_space<vmem>>, vector<2x48x2048xf32>
      %cst_23 = arith.constant dense<0.000000e+00> : vector<2x2048xf32>
      %41 = vector.multi_reduction <add>, %40, %cst_23 [1] : vector<2x48x2048xf32> to vector<2x2048xf32>
      %cst_24 = arith.constant 4.800000e+01 : f32
      %42 = vector.broadcast %cst_24 : f32 to vector<2x2048xf32>
      %43 = arith.divf %41, %42 : vector<2x2048xf32>
      %c0_25 = arith.constant 0 : index
      %c0_26 = arith.constant 0 : index
      %44 = vector.load %arg15[%c0_25, %c0_26] : memref<2x2048xf32, #tpu.memory_space<vmem>>, vector<2x2048xf32>
      tpu.vector_store %arg15[%c0_25, %c0_26], %43 {strides = array<i32>} : memref<2x2048xf32, #tpu.memory_space<vmem>>, vector<2x2048xf32>,
    } else {
    }
    %c0_i32_1 = arith.constant 0 : i32
    %3 = arith.cmpi eq, %arg0, %c0_i32_1 : i32
    %c0 = arith.constant 0 : index
    %4 = memref.load %arg1[%c0] : memref<1xi32, #tpu.memory_space<smem>>
    %c1_i32 = arith.constant 1 : i32
    %5 = arith.cmpi eq, %4, %c1_i32 : i32
    %6 = arith.andi %3, %5 : i1
    %7 = arith.extui %6 : i1 to i32
    %c0_i32_2 = arith.constant 0 : i32
    %8 = arith.cmpi ne, %7, %c0_i32_2 : i32
    scf.if %8 {
      %c0_20 = arith.constant 0 : index
      %c0_21 = arith.constant 0 : index
      %c0_22 = arith.constant 0 : index
      %40 = vector.load %arg2[%c0_20, %c0_21, %c0_22] : memref<2x48x2048xf32, #tpu.memory_space<vmem>>, vector<2x48x2048xf32>
      %c0_23 = arith.constant 0 : index
      %c0_24 = arith.constant 0 : index
      %41 = vector.load %arg4[%c0_23, %c0_24] : memref<48x2048xf32, #tpu.memory_space<vmem>>, vector<48x2048xf32>
      %42 = vector.shape_cast %41 : vector<48x2048xf32> to vector<1x48x2048xf32>
      %43 = vector.broadcast %42 : vector<1x48x2048xf32> to vector<2x48x2048xf32>
      %44 = arith.mulf %40, %43 : vector<2x48x2048xf32>
      %c0_25 = arith.constant 0 : index
      %c0_26 = arith.constant 0 : index
      %c0_27 = arith.constant 0 : index
      %45 = vector.load %arg3[%c0_25, %c0_26, %c0_27] : memref<2x48x2048xf32, #tpu.memory_space<vmem>>, vector<2x48x2048xf32>
      %46 = arith.mulf %44, %45 : vector<2x48x2048xf32>
      %cst_28 = arith.constant dense<0xFF800000> : vector<2x2048xf32>
      %47 = vector.multi_reduction <maximumf>, %46, %cst_28 [1] : vector<2x48x2048xf32> to vector<2x2048xf32>
      %c0_29 = arith.constant 0 : index
      %c0_30 = arith.constant 0 : index
      %48 = vector.load %arg6[%c0_29, %c0_30] : memref<2048x128xf32, #tpu.memory_space<vmem>>, vector<2048x128xf32>
      %cst_31 = arith.constant dense<0.000000e+00> : vector<2x128xf32>
      %49 = tpu.matmul %47, %48, %cst_31 {dimension_numbers = #tpu.dot_dimension_numbers<[1], [0], [0], [1], [0, 0, 1, 1], [], []>} : vector<2x2048xf32>, vector<2048x128xf32>, vector<2x128xf32> -> vector<2x128xf32>
      %c0_32 = arith.constant 0 : index
      %c0_33 = arith.constant 0 : index
      %50 = vector.load %arg7[%c0_32, %c0_33] : memref<1x128xf32, #tpu.memory_space<vmem>>, vector<1x128xf32>
      %51 = vector.broadcast %50 : vector<1x128xf32> to vector<2x128xf32>
      %52 = arith.addf %49, %51 : vector<2x128xf32>
      %cst_34 = arith.constant 0.000000e+00 : f32
      %53 = vector.broadcast %cst_34 : f32 to vector<2x128xf32>
      %54 = arith.maximumf %52, %53 : vector<2x128xf32>
      %c0_35 = arith.constant 0 : index
      %c0_36 = arith.constant 0 : index
      %55 = vector.load %arg8[%c0_35, %c0_36] : memref<128x2048xf32, #tpu.memory_space<vmem>>, vector<128x2048xf32>
      %cst_37 = arith.constant dense<0.000000e+00> : vector<2x2048xf32>
      %56 = tpu.matmul %54, %55, %cst_37 {dimension_numbers = #tpu.dot_dimension_numbers<[1], [0], [0], [1], [0, 0, 1, 1], [], []>} : vector<2x128xf32>, vector<128x2048xf32>, vector<2x2048xf32> -> vector<2x2048xf32>
      %c0_38 = arith.constant 0 : index
      %c0_39 = arith.constant 0 : index
      %57 = vector.load %arg9[%c0_38, %c0_39] : memref<1x2048xf32, #tpu.memory_space<vmem>>, vector<1x2048xf32>
      %58 = vector.broadcast %57 : vector<1x2048xf32> to vector<2x2048xf32>
      %59 = arith.addf %56, %58 : vector<2x2048xf32>
      %60 = arith.negf %59 : vector<2x2048xf32>
      %61 = math.exp %60 : vector<2x2048xf32>
      %cst_40 = arith.constant 1.000000e+00 : f32
      %62 = vector.broadcast %cst_40 : f32 to vector<2x2048xf32>
      %63 = arith.addf %62, %61 : vector<2x2048xf32>
      %64 = arith.divf %62, %63 : vector<2x2048xf32>
      %c0_41 = arith.constant 0 : index
      %c0_42 = arith.constant 0 : index
      %65 = vector.load %arg15[%c0_41, %c0_42] : memref<2x2048xf32, #tpu.memory_space<vmem>>, vector<2x2048xf32>
      %c0_43 = arith.constant 0 : index
      %c0_44 = arith.constant 0 : index
      %66 = vector.load %arg5[%c0_43, %c0_44] : memref<2x1xf32, #tpu.memory_space<vmem>>, vector<2x1xf32>
      %67 = vector.broadcast %66 : vector<2x1xf32> to vector<2x2048xf32>
      %68 = arith.mulf %67, %64 : vector<2x2048xf32>
      %69 = arith.addf %65, %68 : vector<2x2048xf32>
      %c0_45 = arith.constant 0 : index
      %c0_46 = arith.constant 0 : index
      %70 = vector.load %arg15[%c0_45, %c0_46] : memref<2x2048xf32, #tpu.memory_space<vmem>>, vector<2x2048xf32>
      tpu.vector_store %arg15[%c0_45, %c0_46], %69 {strides = array<i32>} : memref<2x2048xf32, #tpu.memory_space<vmem>>, vector<2x2048xf32>,
    } else {
    }
    %c0_3 = arith.constant 0 : index
    %c0_4 = arith.constant 0 : index
    %9 = vector.load %arg15[%c0_3, %c0_4] : memref<2x2048xf32, #tpu.memory_space<vmem>>, vector<2x2048xf32>
    %c0_5 = arith.constant 0 : index
    %c0_6 = arith.constant 0 : index
    %10 = vector.load %arg10[%c0_5, %c0_6] : memref<2048x128xf32, #tpu.memory_space<vmem>>, vector<2048x128xf32>
    %cst = arith.constant dense<0.000000e+00> : vector<2x128xf32>
    %11 = tpu.matmul %9, %10, %cst {dimension_numbers = #tpu.dot_dimension_numbers<[1], [0], [0], [1], [0, 0, 1, 1], [], []>} : vector<2x2048xf32>, vector<2048x128xf32>, vector<2x128xf32> -> vector<2x128xf32>
    %c0_7 = arith.constant 0 : index
    %c0_8 = arith.constant 0 : index
    %12 = vector.load %arg11[%c0_7, %c0_8] : memref<1x128xf32, #tpu.memory_space<vmem>>, vector<1x128xf32>
    %13 = vector.broadcast %12 : vector<1x128xf32> to vector<2x128xf32>
    %14 = arith.addf %11, %13 : vector<2x128xf32>
    %cst_9 = arith.constant dense<0.000000e+00> : vector<128xf32>
    %15 = vector.multi_reduction <add>, %14, %cst_9 [0] : vector<2x128xf32> to vector<128xf32>
    %16 = vector.shape_cast %15 : vector<128xf32> to vector<1x128xf32>
    %cst_10 = arith.constant 2.000000e+00 : f32
    %17 = vector.broadcast %cst_10 : f32 to vector<1x128xf32>
    %18 = arith.divf %16, %17 : vector<1x128xf32>
    %19 = vector.broadcast %18 : vector<1x128xf32> to vector<2x128xf32>
    %20 = arith.subf %14, %19 : vector<2x128xf32>
    %21 = arith.mulf %20, %20 : vector<2x128xf32>
    %cst_11 = arith.constant dense<0.000000e+00> : vector<128xf32>
    %22 = vector.multi_reduction <add>, %21, %cst_11 [0] : vector<2x128xf32> to vector<128xf32>
    %23 = vector.shape_cast %22 : vector<128xf32> to vector<1x128xf32>
    %cst_12 = arith.constant 2.000000e+00 : f32
    %24 = vector.broadcast %cst_12 : f32 to vector<1x128xf32>
    %25 = arith.divf %23, %24 : vector<1x128xf32>
    %c0_13 = arith.constant 0 : index
    %c0_14 = arith.constant 0 : index
    %26 = vector.load %arg12[%c0_13, %c0_14] : memref<1x128xf32, #tpu.memory_space<vmem>>, vector<1x128xf32>
    %27 = vector.broadcast %18 : vector<1x128xf32> to vector<2x128xf32>
    %28 = arith.subf %14, %27 : vector<2x128xf32>
    %29 = vector.broadcast %26 : vector<1x128xf32> to vector<2x128xf32>
    %30 = arith.mulf %29, %28 : vector<2x128xf32>
    %cst_15 = arith.constant 9.99999974E-6 : f32
    %31 = vector.broadcast %cst_15 : f32 to vector<1x128xf32>
    %32 = arith.addf %25, %31 : vector<1x128xf32>
    %33 = math.rsqrt %32 : vector<1x128xf32>
    %34 = vector.broadcast %33 : vector<1x128xf32> to vector<2x128xf32>
    %35 = arith.mulf %30, %34 : vector<2x128xf32>
    %c0_16 = arith.constant 0 : index
    %c0_17 = arith.constant 0 : index
    %36 = vector.load %arg13[%c0_16, %c0_17] : memref<1x128xf32, #tpu.memory_space<vmem>>, vector<1x128xf32>
    %37 = vector.broadcast %36 : vector<1x128xf32> to vector<2x128xf32>
    %38 = arith.addf %35, %37 : vector<2x128xf32>
    %c0_18 = arith.constant 0 : index
    %c0_19 = arith.constant 0 : index
    %39 = vector.load %arg14[%c0_18, %c0_19] : memref<2x128xf32, #tpu.memory_space<vmem>>, vector<2x128xf32>
    tpu.vector_store %arg14[%c0_18, %c0_19], %38 {strides = array<i32>} : memref<2x128xf32, #tpu.memory_space<vmem>>, vector<2x128xf32>,
    return
  }
  func.func @transform_0(%arg0: i32, %arg1: memref<1xi32, #tpu.memory_space<smem>>) -> (i32, i32, i32) {
    %c0_i32 = arith.constant 0 : i32
    %c0_i32_0 = arith.constant 0 : i32
    %c0_i32_1 = arith.constant 0 : i32
    %c0_i32_2 = arith.constant 0 : i32
    return %c0_i32, %c0_i32_0, %c0_i32_1 : i32, i32, i32
  }
  func.func @transform_1(%arg0: i32, %arg1: memref<1xi32, #tpu.memory_space<smem>>) -> (i32, i32, i32) {
    %c0_i32 = arith.constant 0 : i32
    %c0_i32_0 = arith.constant 0 : i32
    %c0_i32_1 = arith.constant 0 : i32
    %c0_i32_2 = arith.constant 0 : i32
    return %c0_i32, %c0_i32_0, %c0_i32_1 : i32, i32, i32
  }
  func.func @transform_2(%arg0: i32, %arg1: memref<1xi32, #tpu.memory_space<smem>>) -> (i32, i32) {
    %c0_i32 = arith.constant 0 : i32
    %c0_i32_0 = arith.constant 0 : i32
    %c0_i32_1 = arith.constant 0 : i32
    return %c0_i32, %c0_i32_0 : i32, i32
  }
  func.func @transform_3(%arg0: i32, %arg1: memref<1xi32, #tpu.memory_space<smem>>) -> (i32, i32) {
    %c0_i32 = arith.constant 0 : i32
    %c0_i32_0 = arith.constant 0 : i32
    %c0_i32_1 = arith.constant 0 : i32
    return %c0_i32, %c0_i32_0 : i32, i32
  }
  func.func @transform_4(%arg0: i32, %arg1: memref<1xi32, #tpu.memory_space<smem>>) -> (i32, i32) {
    %c0_i32 = arith.constant 0 : i32
    %c0_i32_0 = arith.constant 0 : i32
    %c0_i32_1 = arith.constant 0 : i32
    return %c0_i32, %c0_i32_0 : i32, i32
  }
  func.func @transform_5(%arg0: i32, %arg1: memref<1xi32, #tpu.memory_space<smem>>) -> (i32, i32) {
    %c0_i32 = arith.constant 0 : i32
    %c0_i32_0 = arith.constant 0 : i32
    %c0_i32_1 = arith.constant 0 : i32
    return %c0_i32, %c0_i32_0 : i32, i32
  }
  func.func @transform_6(%arg0: i32, %arg1: memref<1xi32, #tpu.memory_space<smem>>) -> (i32, i32) {
    %c0_i32 = arith.constant 0 : i32
    %c0_i32_0 = arith.constant 0 : i32
    %c0_i32_1 = arith.constant 0 : i32
    return %c0_i32, %c0_i32_0 : i32, i32
  }
  func.func @transform_7(%arg0: i32, %arg1: memref<1xi32, #tpu.memory_space<smem>>) -> (i32, i32) {
    %c0_i32 = arith.constant 0 : i32
    %c0_i32_0 = arith.constant 0 : i32
    %c0_i32_1 = arith.constant 0 : i32
    return %c0_i32, %c0_i32_0 : i32, i32
  }
  func.func @transform_8(%arg0: i32, %arg1: memref<1xi32, #tpu.memory_space<smem>>) -> (i32, i32) {
    %c0_i32 = arith.constant 0 : i32
    %c0_i32_0 = arith.constant 0 : i32
    return %c0_i32, %arg0 : i32, i32
  }
  func.func @transform_9(%arg0: i32, %arg1: memref<1xi32, #tpu.memory_space<smem>>) -> (i32, i32) {
    %c0_i32 = arith.constant 0 : i32
    %c0_i32_0 = arith.constant 0 : i32
    return %c0_i32, %arg0 : i32, i32
  }
  func.func @transform_10(%arg0: i32, %arg1: memref<1xi32, #tpu.memory_space<smem>>) -> (i32, i32) {
    %c0_i32 = arith.constant 0 : i32
    %c0_i32_0 = arith.constant 0 : i32
    return %c0_i32, %arg0 : i32, i32
  }
  func.func @transform_11(%arg0: i32, %arg1: memref<1xi32, #tpu.memory_space<smem>>) -> (i32, i32) {
    %c0_i32 = arith.constant 0 : i32
    %c0_i32_0 = arith.constant 0 : i32
    return %c0_i32, %arg0 : i32, i32
  }
  func.func @transform_12(%arg0: i32, %arg1: memref<1xi32, #tpu.memory_space<smem>>) -> (i32, i32) {
    %c0_i32 = arith.constant 0 : i32
    %c0_i32_0 = arith.constant 0 : i32
    return %c0_i32, %arg0 : i32, i32
  }
}

</mosaic_0001>

<bundles_post_ra>
// kernel: tpu_custom_call.1
= control target key start
LH: loop header
LB: loop body
LE: loop exit
PB: predicated region body
PF: predicated region fallthrough
CT: control target
= control target key end

     0   :  { %19 = vsyncpa [#allocation6], 0  ;;  %s7759_s0 = inlined_call_operand.<no memory space> [shape: s32[1], index: 0, kind: input, shape index: {}]   ;;  %s7760_s1 = inlined_call_operand.hbm [shape: f32[2,48,2048], index: 1, kind: input, shape index: {}]   ;;  %s7761_s2 = inlined_call_operand.hbm [shape: f32[2,48,2048], index: 2, kind: input, shape index: {}]   ;;  %s7762_s3 = inlined_call_operand.hbm [shape: f32[48,2048], index: 3, kind: input, shape index: {}]   ;;  %s7763_s4 = inlined_call_operand.vmem [shape: f32[2,1], index: 4, kind: input, shape index: {}]   ;;  %s7764_s5 = inlined_call_operand.hbm [shape: f32[2048,128], index: 5, kind: input, shape index: {}]   ;;  %s7765_s6 = inlined_call_operand.vmem [shape: f32[1,128], index: 6, kind: input, shape index: {}]   ;;  %s7766_s7 = inlined_call_operand.hbm [shape: f32[128,2048], index: 7, kind: input, shape index: {}]   ;;  %s7767_s8 = inlined_call_operand.vmem [shape: f32[1,2048], index: 8, kind: input, shape index: {}]   ;;  %s7768_s9 = inlined_call_operand.hbm [shape: f32[2048,128], index: 9, kind: input, shape index: {}]   ;;  %s7769_s10 = inlined_call_operand.vmem [shape: f32[1,128], index: 10, kind: input, shape index: {}]   ;;  %s7770_s11 = inlined_call_operand.vmem [shape: f32[1,128], index: 11, kind: input, shape index: {}]   ;;  %s7771_s12 = inlined_call_operand.vmem [shape: f32[1,128], index: 12, kind: input, shape index: {}]   ;;  %s7772_s13 = inlined_call_operand.hbm [shape: f32[2,128], index: 13, kind: output, shape index: {}]  }
   0x1   :  { %20 = vsyncpa [#allocation9], 0 }
   0x2   :  { %21 = vsyncpa [#allocation12], 0 }
   0x3   :  { %22 = vsyncpa [#allocation15], 0 }
   0x4   :  { %23 = vsyncpa [#allocation7], 0  ;;  %s6725_s25 = smov [#allocation8]   ;;  %s6726_s27 = smov [#allocation11]  }
   0x5   :  { %s41_s26 = sshll.u32 %s6725_s25, 4  ;;  %s67_s28 = sshll.u32 %s6726_s27, 4  ;;  %s42_s26 = int_to_ptr.vmem [resolvable:$true] %s41_s26  ;;  %s6808_s28 = int_to_ptr.vmem [resolvable:$true] %s67_s28 }
   0x6   :  { %s6561_s14 = scalar_lea.hbm %s7761_s2, 24576 }
   0x7   :  { %p6562_p0 = scmp.ne.s32.totalorder %s7761_s2, %s6561_s14  ;;  %p6565_p1 = scmp.lt.u32.totalorder %s6561_s14, %s7761_s2 }
   0x9   :  { %p6567_p2 = pnand %p6565_p1, %p6562_p0 }
   0xb   :  { %6570 = shalt.err (!%p6567_p2)
}
   0xc   :  { %s6571_s19 = scalar_lea.vmem %s42_s26, 24576  ;;  %p6576_p4 = scmp.lt.s32.totalorder %s42_s26, %s42_s26 }
   0xd   :  { %p6572_p3 = scmp.ne.s32.totalorder %s42_s26, %s6571_s19  ;;  %p6577_p5 = scmp.lt.s32.totalorder %s6571_s19, %s6571_s19 }
   0xf   :  { %p6578_p6 = por %p6577_p5, %p6576_p4 }
  0x11   :  { %p6579_p7 = pnand %p6578_p6, %p6572_p3 }
  0x13   :  { %6582 = shalt.err (!%p6579_p7)
}
  0x14   :  { %s6727_s20 = smov 2048   ;;  %s6728_s21 = smov 128  }
  0x15   :  { %47 = dma.hbm_to_vmem [thread:$0]  %s7761_s2, 24576, %s42_s26, [#allocation9], %s6727_s20, %s6727_s20, %s6728_s21  }
  0x16   :  { %s6583_s27 = scalar_lea.hbm %s7764_s5, 32768 }
  0x17   :  { %p6584_p8 = scmp.ne.s32.totalorder %s7764_s5, %s6583_s27  ;;  %p6587_p9 = scmp.lt.u32.totalorder %s6583_s27, %s7764_s5 }
  0x19   :  { %p6589_p10 = pnand %p6587_p9, %p6584_p8 }
  0x1b   :  { %6592 = shalt.err (!%p6589_p10)
}
  0x1c   :  { %s6593_s16 = scalar_lea.vmem %s6808_s28, 32768  ;;  %p6598_p12 = scmp.lt.s32.totalorder %s6808_s28, %s6808_s28 }
  0x1d   :  { %p6594_p11 = scmp.ne.s32.totalorder %s6808_s28, %s6593_s16  ;;  %p6599_p13 = scmp.lt.s32.totalorder %s6593_s16, %s6593_s16 }
  0x1f   :  { %p6600_p0 = por %p6599_p13, %p6598_p12 }
  0x21   :  { %p6601_p1 = pnand %p6600_p0, %p6594_p11 }
  0x23   :  { %6604 = shalt.err (!%p6601_p1)
}
  0x24   :  { %s6729_s2 = smov 8   ;;  %s6730_s18 = smov [#allocation5]  }
  0x25   :  { %73 = dma.hbm_to_vmem [thread:$0]  %s7764_s5, 32768, %s6808_s28, [#allocation12], %s6728_s21, %s6728_s21, %s6729_s2  }
  0x26   :  { %s29_s19 = sshll.u32 %s6730_s18, 4  ;;  %s6731_s22 = smov [#allocation10]   ;;  %s30_s19 = int_to_ptr.vmem [resolvable:$true] %s29_s19 }
  0x27   :  { %s53_s23 = sshll.u32 %s6731_s22, 4  ;;  %s6605_s27 = scalar_lea.hbm %s7760_s1, 24576  ;;  %s54_s23 = int_to_ptr.vmem [resolvable:$true] %s53_s23 }
  0x28   :  { %p6606_p2 = scmp.ne.s32.totalorder %s7760_s1, %s6605_s27  ;;  %p6609_p3 = scmp.lt.u32.totalorder %s6605_s27, %s7760_s1 }
  0x2a   :  { %p6611_p4 = pnand %p6609_p3, %p6606_p2 }
  0x2c   :  { %6614 = shalt.err (!%p6611_p4)
}
  0x2d   :  { %s6615_s5 = scalar_lea.vmem %s30_s19, 24576  ;;  %p6620_p6 = scmp.lt.s32.totalorder %s30_s19, %s30_s19 }
  0x2e   :  { %p6616_p5 = scmp.ne.s32.totalorder %s30_s19, %s6615_s5  ;;  %p6621_p7 = scmp.lt.s32.totalorder %s6615_s5, %s6615_s5 }
  0x30   :  { %p6622_p8 = por %p6621_p7, %p6620_p6 }
  0x32   :  { %p6623_p9 = pnand %p6622_p8, %p6616_p5 }
  0x34   :  { %6626 = shalt.err (!%p6623_p9)
}
  0x35   :  { %35 = dma.hbm_to_vmem [thread:$0]  %s7760_s1, 24576, %s30_s19, [#allocation6], %s6727_s20, %s6727_s20, %s6728_s21  }
  0x36   :  { %s6627_s18 = scalar_lea.hbm %s7762_s3, 12288 }
  0x37   :  { %p6628_p10 = scmp.ne.s32.totalorder %s7762_s3, %s6627_s18  ;;  %p6631_p11 = scmp.lt.u32.totalorder %s6627_s18, %s7762_s3 }
  0x39   :  { %p6633_p12 = pnand %p6631_p11, %p6628_p10 }
  0x3b   :  { %6636 = shalt.err (!%p6633_p12)
}
  0x3c   :  { %s6637_s29 = scalar_lea.vmem %s54_s23, 12288  ;;  %p6642_p0 = scmp.lt.s32.totalorder %s54_s23, %s54_s23 }
  0x3d   :  { %p6638_p13 = scmp.ne.s32.totalorder %s54_s23, %s6637_s29  ;;  %p6643_p1 = scmp.lt.s32.totalorder %s6637_s29, %s6637_s29 }
  0x3f   :  { %p6644_p2 = por %p6643_p1, %p6642_p0 }
  0x41   :  { %p6645_p3 = pnand %p6644_p2, %p6638_p13 }
  0x43   :  { %6648 = shalt.err (!%p6645_p3)
}
  0x44   :  { %59 = dma.hbm_to_vmem [thread:$0]  %s7762_s3, 12288, %s54_s23, [#allocation9], %s6727_s20, %s6727_s20, %s6728_s21  }
  0x45   :  { %s6732_s30 = smov [#allocation13]   ;;  %s6733_s15 = smov [#allocation14]  }
  0x46   :  { %s81_s14 = sshll.u32 %s6732_s30, 4  ;;  %s95_s5 = sshll.u32 %s6733_s15, 4  ;;  %s82_s14 = int_to_ptr.vmem [resolvable:$true] %s81_s14  ;;  %s96_s5 = int_to_ptr.vmem [resolvable:$true] %s95_s5 }
  0x47   :  { %s6649_s26 = scalar_lea.hbm %s7766_s7, 32768 }
  0x48   :  { %p6650_p4 = scmp.ne.s32.totalorder %s7766_s7, %s6649_s26  ;;  %p6653_p5 = scmp.lt.u32.totalorder %s6649_s26, %s7766_s7 }
  0x4a   :  { %p6655_p6 = pnand %p6653_p5, %p6650_p4 }
  0x4c   :  { %6658 = shalt.err (!%p6655_p6)
}
  0x4d   :  { %s6659_s3 = scalar_lea.vmem %s82_s14, 32768  ;;  %p6664_p8 = scmp.lt.s32.totalorder %s82_s14, %s82_s14 }
  0x4e   :  { %p6660_p7 = scmp.ne.s32.totalorder %s82_s14, %s6659_s3  ;;  %p6665_p9 = scmp.lt.s32.totalorder %s6659_s3, %s6659_s3 }
  0x50   :  { %p6666_p10 = por %p6665_p9, %p6664_p8 }
  0x52   :  { %p6667_p11 = pnand %p6666_p10, %p6660_p7 }
  0x54   :  { %6670 = shalt.err (!%p6667_p11)
}
  0x55   :  { %87 = dma.hbm_to_vmem [thread:$0]  %s7766_s7, 32768, %s82_s14, [#allocation12], %s6727_s20, %s6727_s20, %s6728_s21  }
  0x56   :  { %s6671_s1 = scalar_lea.hbm %s7768_s9, 32768 }
  0x57   :  { %p6672_p12 = scmp.ne.s32.totalorder %s7768_s9, %s6671_s1  ;;  %p6675_p13 = scmp.lt.u32.totalorder %s6671_s1, %s7768_s9 }
  0x59   :  { %p6677_p0 = pnand %p6675_p13, %p6672_p12 }
  0x5b   :  { %6680 = shalt.err (!%p6677_p0)
}
  0x5c   :  { %s6681_s16 = scalar_lea.vmem %s96_s5, 32768  ;;  %p6686_p2 = scmp.lt.s32.totalorder %s96_s5, %s96_s5 }
  0x5d   :  { %p6682_p1 = scmp.ne.s32.totalorder %s96_s5, %s6681_s16  ;;  %p6687_p3 = scmp.lt.s32.totalorder %s6681_s16, %s6681_s16 }
  0x5f   :  { %p6688_p4 = por %p6687_p3, %p6686_p2 }
  0x61   :  { %p6689_p5 = pnand %p6688_p4, %p6682_p1 }
  0x63   :  { %6692 = shalt.err (!%p6689_p5)
}
  0x64   :  { %101 = dma.hbm_to_vmem [thread:$0]  %s7768_s9, 32768, %s96_s5, [#allocation15], %s6728_s21, %s6728_s21, %s6729_s2  }
  0x65   :  { %6715 = dma.done.wait [#allocation6], 24576  }
  0x66   :  { %6716 = vsyncadd [#allocation6], 4294942720 }
  0x67   :  { %6717 = dma.done.wait [#allocation9], 36864  }
  0x68   :  { %6718 = vsyncadd [#allocation9], 4294930432 }
  0x69   :  { %6719 = dma.done.wait [#allocation12], 65536  }
  0x6a   :  { %6720 = vsyncadd [#allocation12], 4294901760 }
  0x6b   :  { %6721 = dma.done.wait [#allocation15], 32768  }
  0x6c   :  { %6722 = vsyncadd [#allocation15], 4294934528  ;;  %p918_p6 = scmp.eq.s32.totalorder %s7759_s0, 1  ;;  %v130_v0 = vld [vmem:[#allocation5] sm:$0xff]  ;;  %v131_v1 = vld [vmem:[#allocation5 + $0x8] sm:$0xff]  ;;  %v744_v6 = vlaneseq  ;;  %vm880_vm0 = vcmask 1041409  }
  0x6d   :  { %v132_v2 = vld [vmem:[#allocation5 + $0x10] sm:$0xff]  ;;  %v133_v3 = vld [vmem:[#allocation5 + $0x18] sm:$0xff]  ;;  %v6734_v4 = vmov 1983009808   ;;  %v134_v7 = vld [vmem:[#allocation5 + $0x20] sm:$0xff]  ;;  %vm882_vm1 = vcmask 1043459  }
  0x6e   :  { %v742_v5 = vunpack.c.l.s4 %v6734_v4  ;;  %v135_v8 = vld [vmem:[#allocation5 + $0x28] sm:$0xff]  ;;  %v136_v9 = vld [vmem:[#allocation5 + $0x30] sm:$0xff]  ;;  %v146_v10 = vld [vmem:[#allocation5 + $0x80] sm:$0xff]  ;;  %v6908_v26 = vshrl.u32 %v744_v6, 7  ;;  %vm884_vm2 = vcmask 1045509   ;;  %vm886_vm3 = vcmask 1047559  }
  0x6f   :  { %v137_v11 = vld [vmem:[#allocation5 + $0x38] sm:$0xff]  ;;  %v147_v12 = vld [vmem:[#allocation5 + $0x88] sm:$0xff]  ;;  %v148_v13 = vld [vmem:[#allocation5 + $0x90] sm:$0xff]  ;;  %v322_v24 = vadd.f32 %v146_v10, %v130_v0 }
  0x70   :  { %v149_v14 = vld [vmem:[#allocation5 + $0x98] sm:$0xff]  ;;  %v138_v15 = vld [vmem:[#allocation5 + $0x40] sm:$0xff]  ;;  %v139_v16 = vld [vmem:[#allocation5 + $0x48] sm:$0xff]  ;;  %v743_v25 = vunpack.c.0.s8 %v742_v5  ;;  %7778 = vst [vmem:[#allocation22_spill] sm:$0xff] %v6908_v26  ;;  %v333_v31 = vadd.f32 %v147_v12, %v131_v1  ;;  %v344_v32 = vadd.f32 %v148_v13, %v132_v2 }
  0x71   :  { %v150_v17 = vld [vmem:[#allocation5 + $0xa0] sm:$0xff]  ;;  %v151_v18 = vld [vmem:[#allocation5 + $0xa8] sm:$0xff]  ;;  %v152_v19 = vld [vmem:[#allocation5 + $0xb0] sm:$0xff]  ;;  %v355_v33 = vadd.f32 %v149_v14, %v133_v3 }
  0x72   :  { %v140_v20 = vld [vmem:[#allocation5 + $0x50] sm:$0xff]  ;;  %v153_v21 = vld [vmem:[#allocation5 + $0xb8] sm:$0xff]  ;;  %v154_v22 = vld [vmem:[#allocation5 + $0xc0] sm:$0xff]  ;;  %v366_v43 = vadd.f32 %v150_v17, %v134_v7  ;;  %v377_v44 = vadd.f32 %v151_v18, %v135_v8  ;;  %v388_v45 = vadd.f32 %v152_v19, %v136_v9  ;;  %v6911_v58 = vsub.s32 %v743_v25, %v6908_v26 }
  0x73   :  { %v155_v23 = vld [vmem:[#allocation5 + $0xc8] sm:$0xff]  ;;  %v141_v27 = vld [vmem:[#allocation5 + $0x58] sm:$0xff]  ;;  %v156_v28 = vld [vmem:[#allocation5 + $0xd0] sm:$0xff]  ;;  %v399_v51 = vadd.f32 %v153_v21, %v137_v11  ;;  %v410_v56 = vadd.f32 %v154_v22, %v138_v15 }
  0x74   :  { %v157_v29 = vld [vmem:[#allocation5 + $0xd8] sm:$0xff]  ;;  %v162_v30 = vld [vmem:[#allocation5 + $0x100] sm:$0xff]  ;;  %v143_v35 = vld [vmem:[#allocation5 + $0x68] sm:$0xff]  ;;  %v421_v57 = vadd.f32 %v155_v23, %v139_v16  ;;  %7779 = vst [vmem:[#allocation23_spill] sm:$0xff] %v6911_v58  ;;  %v432_v1 = vadd.f32 %v156_v28, %v140_v20 }
  0x75   :  { %v142_v34 = vld [vmem:[#allocation5 + $0x60] sm:$0xff]  ;;  %v144_v36 = vld [vmem:[#allocation5 + $0x70] sm:$0xff]  ;;  %v159_v38 = vld [vmem:[#allocation5 + $0xe8] sm:$0xff]  ;;  %v323_v55 = vadd.f32 %v322_v24, %v162_v30  ;;  %v443_v11 = vadd.f32 %v157_v29, %v141_v27 }
  0x76   :  { %v158_v37 = vld [vmem:[#allocation5 + $0xe0] sm:$0xff]  ;;  %v160_v39 = vld [vmem:[#allocation5 + $0xf0] sm:$0xff]  ;;  %v163_v40 = vld [vmem:[#allocation5 + $0x108] sm:$0xff]  ;;  %v465_v17 = vadd.f32 %v159_v38, %v143_v35 }
  0x77   :  { %v164_v41 = vld [vmem:[#allocation5 + $0x110] sm:$0xff]  ;;  %v165_v42 = vld [vmem:[#allocation5 + $0x118] sm:$0xff]  ;;  %v166_v48 = vld [vmem:[#allocation5 + $0x120] sm:$0xff]  ;;  %v334_v62 = vadd.f32 %v333_v31, %v163_v40  ;;  %v454_v16 = vadd.f32 %v158_v37, %v142_v34  ;;  %v476_v18 = vadd.f32 %v160_v39, %v144_v36 }
  0x78   :  { %v145_v46 = vld [vmem:[#allocation5 + $0x78] sm:$0xff]  ;;  %v167_v49 = vld [vmem:[#allocation5 + $0x128] sm:$0xff]  ;;  %v168_v50 = vld [vmem:[#allocation5 + $0x130] sm:$0xff]  ;;  %v345_v63 = vadd.f32 %v344_v32, %v164_v41  ;;  %v356_v0 = vadd.f32 %v355_v33, %v165_v42  ;;  %v367_v8 = vadd.f32 %v366_v43, %v166_v48 }
  0x79   :  { %v161_v47 = vld [vmem:[#allocation5 + $0xf8] sm:$0xff]  ;;  %v170_v53 = vld [vmem:[#allocation5 + $0x140] sm:$0xff]  ;;  %v171_v54 = vld [vmem:[#allocation5 + $0x148] sm:$0xff]  ;;  %v378_v9 = vadd.f32 %v377_v44, %v167_v49  ;;  %v389_v10 = vadd.f32 %v388_v45, %v168_v50 }
  0x7a   :  { %v169_v52 = vld [vmem:[#allocation5 + $0x138] sm:$0xff]  ;;  %v172_v59 = vld [vmem:[#allocation5 + $0x150] sm:$0xff]  ;;  %v178_v61 = vld [vmem:[#allocation5 + $0x180] sm:$0xff]  ;;  %v411_v23 = vadd.f32 %v410_v56, %v170_v53  ;;  %v422_v24 = vadd.f32 %v421_v57, %v171_v54  ;;  %v487_v25 = vadd.f32 %v161_v47, %v145_v46 }
  0x7b   :  { %v173_v60 = vld [vmem:[#allocation5 + $0x158] sm:$0xff]  ;;  %v174_v2 = vld [vmem:[#allocation5 + $0x160] sm:$0xff]  ;;  %v175_v3 = vld [vmem:[#allocation5 + $0x168] sm:$0xff]  ;;  %v400_v15 = vadd.f32 %v399_v51, %v169_v52  ;;  %v324_v22 = vadd.f32 %v323_v55, %v178_v61  ;;  %v433_v29 = vadd.f32 %v432_v1, %v172_v59 }
  0x7c   :  { %v176_v4 = vld [vmem:[#allocation5 + $0x170] sm:$0xff]  ;;  %v179_v5 = vld [vmem:[#allocation5 + $0x188] sm:$0xff]  ;;  %v181_v7 = vld [vmem:[#allocation5 + $0x198] sm:$0xff]  ;;  %v444_v39 = vadd.f32 %v443_v11, %v173_v60  ;;  %v455_v47 = vadd.f32 %v454_v16, %v174_v2  ;;  %v466_v48 = vadd.f32 %v465_v17, %v175_v3 }
  0x7d   :  { %v180_v6 = vld [vmem:[#allocation5 + $0x190] sm:$0xff]  ;;  %v182_v12 = vld [vmem:[#allocation5 + $0x1a0] sm:$0xff]  ;;  %v183_v13 = vld [vmem:[#allocation5 + $0x1a8] sm:$0xff]  ;;  %v335_v32 = vadd.f32 %v334_v62, %v179_v5  ;;  %v357_v27 = vadd.f32 %v356_v0, %v181_v7  ;;  %v477_v49 = vadd.f32 %v476_v18, %v176_v4 }
  0x7e   :  { %v184_v14 = vld [vmem:[#allocation5 + $0x1b0] sm:$0xff]  ;;  %v177_v19 = vld [vmem:[#allocation5 + $0x178] sm:$0xff]  ;;  %v186_v20 = vld [vmem:[#allocation5 + $0x1c0] sm:$0xff]  ;;  %v346_v33 = vadd.f32 %v345_v63, %v180_v6  ;;  %v368_v36 = vadd.f32 %v367_v8, %v182_v12  ;;  %v379_v37 = vadd.f32 %v378_v9, %v183_v13 }
  0x7f   :  { %v185_v21 = vld [vmem:[#allocation5 + $0x1b8] sm:$0xff]  ;;  %v187_v28 = vld [vmem:[#allocation5 + $0x1c8] sm:$0xff]  ;;  %v188_v30 = vld [vmem:[#allocation5 + $0x1d0] sm:$0xff]  ;;  %v390_v38 = vadd.f32 %v389_v10, %v184_v14  ;;  %v412_v54 = vadd.f32 %v411_v23, %v186_v20  ;;  %v488_v56 = vadd.f32 %v487_v25, %v177_v19 }
  0x80   :  { %v189_v31 = vld [vmem:[#allocation5 + $0x1d8] sm:$0xff]  ;;  %v190_v40 = vld [vmem:[#allocation5 + $0x1e0] sm:$0xff]  ;;  %v191_v41 = vld [vmem:[#allocation5 + $0x1e8] sm:$0xff]  ;;  %v401_v46 = vadd.f32 %v400_v15, %v185_v21  ;;  %v423_v55 = vadd.f32 %v422_v24, %v187_v28  ;;  %v434_v0 = vadd.f32 %v433_v29, %v188_v30 }
  0x81   :  { %v192_v42 = vld [vmem:[#allocation5 + $0x1f0] sm:$0xff]  ;;  %v194_v34 = vld [vmem:[#allocation5 + $0x200] sm:$0xff]  ;;  %v195_v35 = vld [vmem:[#allocation5 + $0x208] sm:$0xff]  ;;  %v6913_v3 = vadd.f32 %v444_v39, %v189_v31  ;;  %v6915_v8 = vadd.f32 %v455_v47, %v190_v40  ;;  %v6917_v9 = vadd.f32 %v466_v48, %v191_v41 }
  0x82   :  { %v196_v43 = vld [vmem:[#allocation5 + $0x210] sm:$0xff]  ;;  %v197_v44 = vld [vmem:[#allocation5 + $0x218] sm:$0xff]  ;;  %v198_v45 = vld [vmem:[#allocation5 + $0x220] sm:$0xff]  ;;  %v325_v53 = vadd.f32 %v324_v22, %v194_v34  ;;  %v336_v62 = vadd.f32 %v335_v32, %v195_v35  ;;  %v6919_v10 = vadd.f32 %v477_v49, %v192_v42 }
  0x83   :  { %v199_v50 = vld [vmem:[#allocation5 + $0x228] sm:$0xff]  ;;  %v200_v51 = vld [vmem:[#allocation5 + $0x230] sm:$0xff]  ;;  %v201_v52 = vld [vmem:[#allocation5 + $0x238] sm:$0xff]  ;;  %v347_v63 = vadd.f32 %v346_v33, %v196_v43  ;;  %v358_v60 = vadd.f32 %v357_v27, %v197_v44  ;;  %v369_v5 = vadd.f32 %v368_v36, %v198_v45 }
  0x84   :  { %v193_v57 = vld [vmem:[#allocation5 + $0x1f8] sm:$0xff]  ;;  %v202_v59 = vld [vmem:[#allocation5 + $0x240] sm:$0xff]  ;;  %v203_v61 = vld [vmem:[#allocation5 + $0x248] sm:$0xff]  ;;  %v380_v6 = vadd.f32 %v379_v37, %v199_v50  ;;  %v391_v2 = vadd.f32 %v390_v38, %v200_v51  ;;  %v402_v7 = vadd.f32 %v401_v46, %v201_v52 }
  0x85   :  { %v204_v1 = vld [vmem:[#allocation5 + $0x250] sm:$0xff]  ;;  %v210_v4 = vld [vmem:[#allocation5 + $0x280] sm:$0xff]  ;;  %v211_v11 = vld [vmem:[#allocation5 + $0x288] sm:$0xff]  ;;  %v6921_v15 = vadd.f32 %v412_v54, %v202_v59  ;;  %v6923_v16 = vadd.f32 %v423_v55, %v203_v61  ;;  %v489_v17 = vadd.f32 %v488_v56, %v193_v57 }
  0x86   :  { %v212_v12 = vld [vmem:[#allocation5 + $0x290] sm:$0xff]  ;;  %v213_v13 = vld [vmem:[#allocation5 + $0x298] sm:$0xff]  ;;  %v326_v14 = vadd.f32 %v325_v53, %v210_v4  ;;  %v214_v18 = vld [vmem:[#allocation5 + $0x2a0] sm:$0xff]  ;;  %v337_v20 = vadd.f32 %v336_v62, %v211_v11  ;;  %v6925_v24 = vadd.f32 %v434_v0, %v204_v1 }
  0x87   :  { %v215_v19 = vld [vmem:[#allocation5 + $0x2a8] sm:$0xff]  ;;  %v216_v21 = vld [vmem:[#allocation5 + $0x2b0] sm:$0xff]  ;;  %v348_v22 = vadd.f32 %v347_v63, %v212_v12  ;;  %v359_v23 = vadd.f32 %v358_v60, %v213_v13  ;;  %v217_v25 = vld [vmem:[#allocation5 + $0x2b8] sm:$0xff]  ;;  %v370_v30 = vadd.f32 %v369_v5, %v214_v18 }
  0x88   :  { %v327_v28 = vrot.slane %v326_v14, 4  ;;  %v381_v31 = vadd.f32 %v380_v6, %v215_v19  ;;  %v392_v32 = vadd.f32 %v391_v2, %v216_v21  ;;  %v338_v33 = vrot.slane %v337_v20, 4  ;;  %v205_v51 = vld [vmem:[#allocation5 + $0x258] sm:$0xff]  ;;  %v206_v52 = vld [vmem:[#allocation5 + $0x260] sm:$0xff]  ;;  %v207_v57 = vld [vmem:[#allocation5 + $0x268] sm:$0xff] }
  0x89   :  { %v349_v27 = vrot.slane %v348_v22, 4  ;;  %v360_v29 = vrot.slane %v359_v23, 4  ;;  %v403_v40 = vadd.f32 %v402_v7, %v217_v25  ;;  %v371_v42 = vrot.slane %v370_v30, 4  ;;  %v208_v59 = vld [vmem:[#allocation5 + $0x270] sm:$0xff]  ;;  %v209_v61 = vld [vmem:[#allocation5 + $0x278] sm:$0xff]  ;;  %v218_v4 = vld [vmem:[#allocation5 + $0x2c0] sm:$0xff] }
  0x8a   :  { %v328_v41 = vadd.f32 %v327_v28, %v326_v14  ;;  %v382_v34 = vrot.slane %v381_v31, 4  ;;  %v393_v35 = vrot.slane %v392_v32, 4  ;;  %v339_v36 = vadd.f32 %v338_v33, %v337_v20  ;;  %v219_v14 = vld [vmem:[#allocation5 + $0x2c8] sm:$0xff]  ;;  %v220_v18 = vld [vmem:[#allocation5 + $0x2d0] sm:$0xff]  ;;  %v221_v19 = vld [vmem:[#allocation5 + $0x2d8] sm:$0xff] }
  0x8b   :  { %v350_v37 = vadd.f32 %v349_v27, %v348_v22  ;;  %v361_v38 = vadd.f32 %v360_v29, %v359_v23  ;;  %v404_v39 = vrot.slane %v403_v40, 4  ;;  %v372_v44 = vadd.f32 %v371_v42, %v370_v30  ;;  %v222_v25 = vld [vmem:[#allocation5 + $0x2e0] sm:$0xff]  ;;  %v223_v28 = vld [vmem:[#allocation5 + $0x2e8] sm:$0xff]  ;;  %v224_v30 = vld [vmem:[#allocation5 + $0x2f0] sm:$0xff] }
  0x8c   :  { %v329_v43 = vrot.slane %v328_v41, 2  ;;  %v383_v45 = vadd.f32 %v382_v34, %v381_v31  ;;  %v394_v46 = vadd.f32 %v393_v35, %v392_v32  ;;  %v340_v47 = vrot.slane %v339_v36, 2  ;;  %v225_v27 = vld [vmem:[#allocation5 + $0x2f8] sm:$0xff]  ;;  %v294_v58 = vld [vmem:[#allocation5 + $0x520] sm:$0xff] }
  0x8d   :  { %v351_v48 = vrot.slane %v350_v37, 2  ;;  %v362_v49 = vrot.slane %v361_v38, 2  ;;  %v405_v50 = vadd.f32 %v404_v39, %v403_v40  ;;  %v373_v54 = vrot.slane %v372_v44, 2  ;;  %v293_v26 = vld [vmem:[#allocation5 + $0x518] sm:$0xff] }
  0x8e   :  { %v330_v53 = vadd.f32 %v329_v43, %v328_v41  ;;  %v384_v55 = vrot.slane %v383_v45, 2  ;;  %v395_v56 = vrot.slane %v394_v46, 2  ;;  %v341_v62 = vadd.f32 %v340_v47, %v339_v36 }
  0x8f   :  { %v352_v63 = vadd.f32 %v351_v48, %v350_v37  ;;  %v6927_v60 = vadd.f32 %v362_v49, %v361_v38  ;;  %v406_v0 = vrot.slane %v405_v50, 2  ;;  %v6929_v5 = vadd.f32 %v373_v54, %v372_v44 }
  0x90   :  { %v331_v1 = vrot.slane %v330_v53, 1  ;;  %v6931_v6 = vadd.f32 %v384_v55, %v383_v45  ;;  %v6933_v2 = vadd.f32 %v395_v56, %v394_v46  ;;  %v342_v7 = vrot.slane %v341_v62, 1 }
  0x91   :  { %v353_v11 = vrot.slane %v352_v63, 1  ;;  %v6935_v12 = vadd.f32 %v406_v0, %v405_v50  ;;  %v446_v13 = vadd.f32 %v6913_v3, %v205_v51  ;;  %v457_v21 = vadd.f32 %v6915_v8, %v206_v52  ;;  %v226_v0 = vld [vmem:[#allocation5 + $0x300] sm:$0xff] }
  0x92   :  { %v468_v20 = vadd.f32 %v6917_v9, %v207_v57  ;;  %v479_v22 = vadd.f32 %v6919_v10, %v208_v59  ;;  %v490_v23 = vadd.f32 %v489_v17, %v209_v61  ;;  %v6941_v31 = vadd.f32 %v331_v1, %v330_v53  ;;  %v242_v1 = vld [vmem:[#allocation5 + $0x380] sm:$0xff] }
  0x93   :  { %v364_v32 = vrot.slane %v6927_v60, 1  ;;  %v375_v33 = vrot.slane %v6929_v5, 1  ;;  %v386_v3 = vrot.slane %v6931_v6, 1  ;;  %v6946_v29 = vadd.f32 %v342_v7, %v341_v62 }
  0x94   :  { %v6948_v8 = vadd.f32 %v353_v11, %v352_v63  ;;  %v397_v9 = vrot.slane %v6933_v2, 1  ;;  %v414_v10 = vadd.f32 %v6921_v15, %v218_v4  ;;  %v408_v17 = vrot.slane %v6935_v12, 1 }
  0x95   :  { %v425_v40 = vadd.f32 %v6923_v16, %v219_v14  ;;  %v436_v41 = vadd.f32 %v6925_v24, %v220_v18  ;;  %v447_v42 = vadd.f32 %v446_v13, %v221_v19  ;;  %v458_v35 = vadd.f32 %v457_v21, %v222_v25  ;;  %v227_v14 = vld [vmem:[#allocation5 + $0x308] sm:$0xff]  ;;  %v228_v18 = vld [vmem:[#allocation5 + $0x310] sm:$0xff]  ;;  %v229_v19 = vld [vmem:[#allocation5 + $0x318] sm:$0xff] }
  0x96   :  { %v415_v34 = vrot.slane %v414_v10, 4  ;;  %v469_v36 = vadd.f32 %v468_v20, %v223_v28  ;;  %v480_v37 = vadd.f32 %v479_v22, %v224_v30  ;;  %v491_v44 = vadd.f32 %v490_v23, %v225_v27  ;;  %v243_v21 = vld [vmem:[#allocation5 + $0x388] sm:$0xff]  ;;  %v244_v20 = vld [vmem:[#allocation5 + $0x390] sm:$0xff]  ;;  %v245_v22 = vld [vmem:[#allocation5 + $0x398] sm:$0xff] }
  0x97   :  { %v426_v38 = vrot.slane %v425_v40, 4  ;;  %v437_v39 = vrot.slane %v436_v41, 4  ;;  %v448_v43 = vrot.slane %v447_v42, 4  ;;  %v459_v46 = vrot.slane %v458_v35, 4  ;;  %v230_v27 = vld [vmem:[#allocation5 + $0x320] sm:$0xff] }
  0x98   :  { %v416_v45 = vadd.f32 %v415_v34, %v414_v10  ;;  %v470_v47 = vrot.slane %v469_v36, 4  ;;  %v481_v48 = vrot.slane %v480_v37, 4  ;;  %v492_v51 = vrot.slane %v491_v44, 4  ;;  %v231_v10 = vld [vmem:[#allocation5 + $0x328] sm:$0xff]  ;;  %v248_v34 = vld [vmem:[#allocation5 + $0x3b0] sm:$0xff] }
  0x99   :  { %v427_v15 = vadd.f32 %v426_v38, %v425_v40  ;;  %v438_v49 = vadd.f32 %v437_v39, %v436_v41  ;;  %v449_v50 = vadd.f32 %v448_v43, %v447_v42  ;;  %v460_v52 = vadd.f32 %v459_v46, %v458_v35  ;;  %v232_v40 = vld [vmem:[#allocation5 + $0x330] sm:$0xff]  ;;  %v246_v41 = vld [vmem:[#allocation5 + $0x3a0] sm:$0xff]  ;;  %v247_v42 = vld [vmem:[#allocation5 + $0x3a8] sm:$0xff] }
  0x9a   :  { %v417_v16 = vrot.slane %v416_v45, 2  ;;  %v471_v24 = vadd.f32 %v470_v47, %v469_v36  ;;  %v482_v53 = vadd.f32 %v481_v48, %v480_v37  ;;  %v493_v57 = vadd.f32 %v492_v51, %v491_v44  ;;  %v258_v35 = vld [vmem:[#allocation5 + $0x400] sm:$0xff]  ;;  %v233_v43 = vld [vmem:[#allocation5 + $0x338] sm:$0xff]  ;;  %v260_v46 = vld [vmem:[#allocation5 + $0x410] sm:$0xff] }
  0x9b   :  { %v428_v54 = vrot.slane %v427_v15, 2  ;;  %v439_v55 = vrot.slane %v438_v49, 2  ;;  %v450_v56 = vrot.slane %v449_v50, 2  ;;  %v461_v61 = vrot.slane %v460_v52, 2  ;;  %v249_v44 = vld [vmem:[#allocation5 + $0x3b8] sm:$0xff]  ;;  %v264_v51 = vld [vmem:[#allocation5 + $0x430] sm:$0xff] }
  0x9c   :  { %v418_v59 = vadd.f32 %v417_v16, %v416_v45  ;;  %v472_v62 = vrot.slane %v471_v24, 2  ;;  %v483_v63 = vrot.slane %v482_v53, 2  ;;  %v494_v13 = vrot.slane %v493_v57, 2  ;;  %v259_v45 = vld [vmem:[#allocation5 + $0x408] sm:$0xff]  ;;  %v261_v47 = vld [vmem:[#allocation5 + $0x418] sm:$0xff] }
  0x9d   :  { %v429_v4 = vadd.f32 %v428_v54, %v427_v15  ;;  %v440_v7 = vadd.f32 %v439_v55, %v438_v49  ;;  %v6955_v11 = vadd.f32 %v450_v56, %v449_v50  ;;  %v6957_v25 = vadd.f32 %v461_v61, %v460_v52  ;;  %v262_v49 = vld [vmem:[#allocation5 + $0x420] sm:$0xff]  ;;  %v263_v50 = vld [vmem:[#allocation5 + $0x428] sm:$0xff]  ;;  %v265_v16 = vld [vmem:[#allocation5 + $0x438] sm:$0xff] }
  0x9e   :  { %v419_v23 = vrot.slane %v418_v59, 1  ;;  %v6959_v28 = vadd.f32 %v472_v62, %v471_v24  ;;  %v6961_v30 = vadd.f32 %v483_v63, %v482_v53  ;;  %v6966_v36 = vadd.f32 %v364_v32, %v6927_v60  ;;  %v274_v52 = vld [vmem:[#allocation5 + $0x480] sm:$0xff]  ;;  %v276_v53 = vld [vmem:[#allocation5 + $0x490] sm:$0xff]  ;;  %v277_v54 = vld [vmem:[#allocation5 + $0x498] sm:$0xff] }
  0x9f   :  { %v430_v37 = vrot.slane %v429_v4, 1  ;;  %v441_v38 = vrot.slane %v440_v7, 1  ;;  %v6968_v39 = vadd.f32 %v494_v13, %v493_v57  ;;  %v6973_v48 = vadd.f32 %v375_v33, %v6929_v5  ;;  %v278_v55 = vld [vmem:[#allocation5 + $0x4a0] sm:$0xff]  ;;  %v279_v62 = vld [vmem:[#allocation5 + $0x4a8] sm:$0xff]  ;;  %v280_v63 = vld [vmem:[#allocation5 + $0x4b0] sm:$0xff] }
  0xa0   :  { %v6978_v15 = vadd.f32 %v386_v3, %v6931_v6  ;;  %v6983_v60 = vadd.f32 %v397_v9, %v6933_v2  ;;  %v6988_v32 = vadd.f32 %v408_v17, %v6935_v12  ;;  %v6990_v5 = vadd.f32 %v419_v23, %v418_v59  ;;  %v275_v2 = vld [vmem:[#allocation5 + $0x488] sm:$0xff]  ;;  %v281_v13 = vld [vmem:[#allocation5 + $0x4b8] sm:$0xff]  ;;  %v292_v6 = vld [vmem:[#allocation5 + $0x510] sm:$0xff] }
  0xa1   :  { %v6995_v9 = vadd.f32 %v430_v37, %v429_v4  ;;  %v6997_v24 = vadd.f32 %v441_v38, %v440_v7  ;;  %v498_v17 = vadd.f32 %v242_v1, %v226_v0  ;;  %v509_v57 = vadd.f32 %v243_v21, %v227_v14  ;;  %v290_v7 = vld [vmem:[#allocation5 + $0x500] sm:$0xff]  ;;  %v291_v38 = vld [vmem:[#allocation5 + $0x508] sm:$0xff] }
  0xa2   :  { %v520_v59 = vadd.f32 %v244_v20, %v228_v18  ;;  %v531_v61 = vadd.f32 %v245_v22, %v229_v19  ;;  %v542_v3 = vadd.f32 %v246_v41, %v230_v27  ;;  %v553_v4 = vadd.f32 %v247_v42, %v231_v10  ;;  %v295_v56 = vld [vmem:[#allocation5 + $0x528] sm:$0xff]  ;;  %v296_v20 = vld [vmem:[#allocation5 + $0x530] sm:$0xff]  ;;  %v297_v22 = vld [vmem:[#allocation5 + $0x538] sm:$0xff] }
  0xa3   :  { %v499_v23 = vadd.f32 %v498_v17, %v258_v35  ;;  %v564_v37 = vadd.f32 %v248_v34, %v232_v40  ;;  %v510_v12 = vadd.f32 %v509_v57, %v259_v45  ;;  %v575_v33 = vadd.f32 %v249_v44, %v233_v43  ;;  %v306_v35 = vld [vmem:[#allocation5 + $0x580] sm:$0xff]  ;;  %v307_v42 = vld [vmem:[#allocation5 + $0x588] sm:$0xff]  ;;  %v308_v34 = vld [vmem:[#allocation5 + $0x590] sm:$0xff] }
  0xa4   :  { %v521_v0 = vadd.f32 %v520_v59, %v260_v46  ;;  %v532_v1 = vadd.f32 %v531_v61, %v261_v47  ;;  %v543_v18 = vadd.f32 %v542_v3, %v262_v49  ;;  %v554_v19 = vadd.f32 %v553_v4, %v263_v50  ;;  %v309_v45 = vld [vmem:[#allocation5 + $0x598] sm:$0xff]  ;;  %v310_v17 = vld [vmem:[#allocation5 + $0x5a0] sm:$0xff]  ;;  %v311_v57 = vld [vmem:[#allocation5 + $0x5a8] sm:$0xff] }
  0xa5   :  { %v500_v14 = vadd.f32 %v499_v23, %v274_v52  ;;  %v565_v21 = vadd.f32 %v564_v37, %v264_v51  ;;  %v511_v27 = vadd.f32 %v510_v12, %v275_v2  ;;  %v576_v41 = vadd.f32 %v575_v33, %v265_v16  ;;  %v312_v52 = vld [vmem:[#allocation5 + $0x5b0] sm:$0xff]  ;;  %v313_v59 = vld [vmem:[#allocation5 + $0x5b8] sm:$0xff] }
  0xa6   :  { %v522_v10 = vadd.f32 %v521_v0, %v276_v53  ;;  %v533_v40 = vadd.f32 %v532_v1, %v277_v54  ;;  %v544_v47 = vadd.f32 %v543_v18, %v278_v55  ;;  %v555_v43 = vadd.f32 %v554_v19, %v279_v62 }
  0xa7   :  { %v501_v46 = vadd.f32 %v500_v14, %v290_v7  ;;  %v566_v44 = vadd.f32 %v565_v21, %v280_v63  ;;  %v512_v49 = vadd.f32 %v511_v27, %v291_v38  ;;  %v577_v3 = vadd.f32 %v576_v41, %v281_v13 }
  0xa8   :  { %v523_v50 = vadd.f32 %v522_v10, %v292_v6  ;;  %v534_v51 = vadd.f32 %v533_v40, %v293_v26  ;;  %v545_v2 = vadd.f32 %v544_v47, %v294_v58  ;;  %v556_v12 = vadd.f32 %v555_v43, %v295_v56  ;;  %v250_v47 = vld [vmem:[#allocation5 + $0x3c0] sm:$0xff] }
  0xa9   :  { %v502_v61 = vadd.f32 %v501_v46, %v306_v35  ;;  %v567_v53 = vadd.f32 %v566_v44, %v296_v20  ;;  %v513_v33 = vadd.f32 %v512_v49, %v307_v42  ;;  %v578_v23 = vadd.f32 %v577_v3, %v297_v22  ;;  %v234_v46 = vld [vmem:[#allocation5 + $0x340] sm:$0xff]  ;;  %v236_v49 = vld [vmem:[#allocation5 + $0x350] sm:$0xff] }
  0xaa   :  { %v524_v16 = vadd.f32 %v523_v50, %v308_v34  ;;  %v535_v54 = vadd.f32 %v534_v51, %v309_v45  ;;  %v546_v55 = vadd.f32 %v545_v2, %v310_v17  ;;  %v557_v62 = vadd.f32 %v556_v12, %v311_v57  ;;  %v237_v50 = vld [vmem:[#allocation5 + $0x358] sm:$0xff]  ;;  %v251_v51 = vld [vmem:[#allocation5 + $0x3c8] sm:$0xff]  ;;  %v252_v3 = vld [vmem:[#allocation5 + $0x3d0] sm:$0xff] }
  0xab   :  { %v503_v4 = vrot.slane %v502_v61, 4  ;;  %v568_v63 = vadd.f32 %v567_v53, %v312_v52  ;;  %v514_v37 = vrot.slane %v513_v33, 4  ;;  %v579_v38 = vadd.f32 %v578_v23, %v313_v59  ;;  %v235_v52 = vld [vmem:[#allocation5 + $0x348] sm:$0xff]  ;;  %v253_v59 = vld [vmem:[#allocation5 + $0x3d8] sm:$0xff]  ;;  %v254_v23 = vld [vmem:[#allocation5 + $0x3e0] sm:$0xff] }
  0xac   :  { %v525_v7 = vrot.slane %v524_v16, 4  ;;  %v536_v0 = vrot.slane %v535_v54, 4  ;;  %v547_v26 = vrot.slane %v546_v55, 4  ;;  %v558_v13 = vrot.slane %v557_v62, 4 }
  0xad   :  { %v504_v6 = vadd.f32 %v503_v4, %v502_v61  ;;  %v569_v1 = vrot.slane %v568_v63, 4  ;;  %v515_v14 = vadd.f32 %v514_v37, %v513_v33  ;;  %v580_v18 = vrot.slane %v579_v38, 4  ;;  %v238_v33 = vld [vmem:[#allocation5 + $0x360] sm:$0xff]  ;;  %v255_v4 = vld [vmem:[#allocation5 + $0x3e8] sm:$0xff] }
  0xae   :  { %v526_v58 = vadd.f32 %v525_v7, %v524_v16  ;;  %v537_v56 = vadd.f32 %v536_v0, %v535_v54  ;;  %v548_v21 = vadd.f32 %v547_v26, %v546_v55  ;;  %v559_v20 = vadd.f32 %v558_v13, %v557_v62  ;;  %v239_v16 = vld [vmem:[#allocation5 + $0x368] sm:$0xff]  ;;  %v240_v54 = vld [vmem:[#allocation5 + $0x370] sm:$0xff]  ;;  %v266_v62 = vld [vmem:[#allocation5 + $0x440] sm:$0xff] }
  0xaf   :  { %v505_v19 = vrot.slane %v504_v6, 2  ;;  %v570_v22 = vadd.f32 %v569_v1, %v568_v63  ;;  %v516_v35 = vrot.slane %v515_v14, 2  ;;  %v581_v40 = vadd.f32 %v580_v18, %v579_v38  ;;  %v256_v55 = vld [vmem:[#allocation5 + $0x3f0] sm:$0xff]  ;;  %v257_v26 = vld [vmem:[#allocation5 + $0x3f8] sm:$0xff]  ;;  %v267_v13 = vld [vmem:[#allocation5 + $0x448] sm:$0xff] }
  0xb0   :  { %v527_v27 = vrot.slane %v526_v58, 2  ;;  %v538_v10 = vrot.slane %v537_v56, 2  ;;  %v549_v42 = vrot.slane %v548_v21, 2  ;;  %v560_v34 = vrot.slane %v559_v20, 2  ;;  %v268_v1 = vld [vmem:[#allocation5 + $0x450] sm:$0xff] }
  0xb1   :  { %v506_v41 = vadd.f32 %v505_v19, %v504_v6  ;;  %v571_v45 = vrot.slane %v570_v22, 2  ;;  %v517_v43 = vadd.f32 %v516_v35, %v515_v14  ;;  %v582_v57 = vrot.slane %v581_v40, 2  ;;  %v241_v6 = vld [vmem:[#allocation5 + $0x378] sm:$0xff]  ;;  %v270_v35 = vld [vmem:[#allocation5 + $0x460] sm:$0xff] }
  0xb2   :  { %v528_v44 = vadd.f32 %v527_v27, %v526_v58  ;;  %v7001_v17 = vadd.f32 %v538_v10, %v537_v56  ;;  %v7003_v2 = vadd.f32 %v549_v42, %v548_v21  ;;  %v7005_v12 = vadd.f32 %v560_v34, %v559_v20  ;;  %v269_v14 = vld [vmem:[#allocation5 + $0x458] sm:$0xff]  ;;  %v271_v27 = vld [vmem:[#allocation5 + $0x468] sm:$0xff]  ;;  %v272_v10 = vld [vmem:[#allocation5 + $0x470] sm:$0xff] }
  0xb3   :  { %v507_v61 = vrot.slane %v506_v41, 1  ;;  %v7007_v53 = vadd.f32 %v571_v45, %v570_v22  ;;  %v7780_v63 = vrot.slane %v6955_v11, 1  ;;  %v518_v7 = vrot.slane %v517_v43, 1  ;;  %v273_v34 = vld [vmem:[#allocation5 + $0x478] sm:$0xff]  ;;  %v282_v45 = vld [vmem:[#allocation5 + $0x4c0] sm:$0xff]  ;;  %v288_v42 = vld [vmem:[#allocation5 + $0x4f0] sm:$0xff] }
  0xb4   :  { %v529_v0 = vrot.slane %v528_v44, 1  ;;  %v7014_v38 = vadd.f32 %v582_v57, %v581_v40  ;;  %v7782_v58 = vrot.slane %v6957_v25, 1  ;;  %v7784_v18 = vrot.slane %v6959_v28, 1 }
  0xb5   :  { %v7012_v37 = vadd.f32 %v7780_v63, %v6955_v11  ;;  %v7786_v11 = vrot.slane %v6961_v30, 1  ;;  %v7788_v20 = vrot.slane %v6968_v39, 1  ;;  %v7041_v57 = vadd.f32 %v518_v7, %v517_v43 }
  0xb6   :  { %v7019_v56 = vadd.f32 %v7782_v58, %v6957_v25  ;;  %v7024_v19 = vadd.f32 %v7784_v18, %v6959_v28  ;;  %v7036_v25 = vadd.f32 %v507_v61, %v506_v41  ;;  %v7043_v63 = vadd.f32 %v529_v0, %v528_v44  ;;  %v284_v18 = vld [vmem:[#allocation5 + $0x4d0] sm:$0xff]  ;;  %v286_v41 = vld [vmem:[#allocation5 + $0x4e0] sm:$0xff]  ;;  %v299_v0 = vld [vmem:[#allocation5 + $0x548] sm:$0xff] }
  0xb7   :  { %7781 = vst [vmem:[#allocation24_spill] sm:$0xff] %v7012_v37  ;;  %v7029_v21 = vadd.f32 %v7786_v11, %v6961_v30  ;;  %v7034_v22 = vadd.f32 %v7788_v20, %v6968_v39  ;;  %v283_v30 = vld [vmem:[#allocation5 + $0x4c8] sm:$0xff]  ;;  %7791 = vst [vmem:[#allocation30_spill] sm:$0xff] %v7041_v57  ;;  %v586_v58 = vadd.f32 %v250_v47, %v234_v46  ;;  %v285_v11 = vld [vmem:[#allocation5 + $0x4d8] sm:$0xff] }
  0xb8   :  { %7783 = vst [vmem:[#allocation25_spill] sm:$0xff] %v7019_v56  ;;  %7785 = vst [vmem:[#allocation26_spill] sm:$0xff] %v7024_v19  ;;  %v597_v20 = vadd.f32 %v251_v51, %v235_v52  ;;  %v608_v40 = vadd.f32 %v252_v3, %v236_v49  ;;  %v619_v28 = vadd.f32 %v253_v59, %v237_v50  ;;  %v298_v44 = vld [vmem:[#allocation5 + $0x540] sm:$0xff]  ;;  %v301_v56 = vld [vmem:[#allocation5 + $0x558] sm:$0xff] }
  0xb9   :  { %7787 = vst [vmem:[#allocation27_spill] sm:$0xff] %v7029_v21  ;;  %7789 = vst [vmem:[#allocation28_spill] sm:$0xff] %v7034_v22  ;;  %v289_v22 = vld [vmem:[#allocation5 + $0x4f8] sm:$0xff]  ;;  %v587_v21 = vadd.f32 %v586_v58, %v266_v62  ;;  %v630_v19 = vadd.f32 %v254_v23, %v238_v33  ;;  %v641_v43 = vadd.f32 %v255_v4, %v239_v16  ;;  %v302_v37 = vld [vmem:[#allocation5 + $0x560] sm:$0xff] }
  0xba   :  { %7790 = vst [vmem:[#allocation29_spill] sm:$0xff] %v7036_v25  ;;  %7792 = vst [vmem:[#allocation31_spill] sm:$0xff] %v7043_v63  ;;  %v287_v25 = vld [vmem:[#allocation5 + $0x4e8] sm:$0xff]  ;;  %v652_v7 = vadd.f32 %v256_v55, %v240_v54  ;;  %v300_v63 = vld [vmem:[#allocation5 + $0x550] sm:$0xff]  ;;  %v598_v39 = vadd.f32 %v597_v20, %v267_v13  ;;  %v609_v46 = vadd.f32 %v608_v40, %v268_v1 }
  0xbb   :  { %v620_v47 = vadd.f32 %v619_v28, %v269_v14  ;;  %v663_v57 = vadd.f32 %v257_v26, %v241_v6  ;;  %v303_v61 = vld [vmem:[#allocation5 + $0x568] sm:$0xff]  ;;  %v588_v52 = vadd.f32 %v587_v21, %v282_v45  ;;  %v631_v49 = vadd.f32 %v630_v19, %v270_v35  ;;  %v304_v3 = vld [vmem:[#allocation5 + $0x570] sm:$0xff]  ;;  %v305_v59 = vld [vmem:[#allocation5 + $0x578] sm:$0xff] }
  0xbc   :  { %v642_v50 = vadd.f32 %v641_v43, %v271_v27  ;;  %v653_v51 = vadd.f32 %v652_v7, %v272_v10  ;;  %v314_v62 = vld [vmem:[#allocation5 + $0x5c0] sm:$0xff]  ;;  %v599_v33 = vadd.f32 %v598_v39, %v283_v30  ;;  %v610_v16 = vadd.f32 %v609_v46, %v284_v18  ;;  %v315_v4 = vld [vmem:[#allocation5 + $0x5c8] sm:$0xff]  ;;  %v316_v55 = vld [vmem:[#allocation5 + $0x5d0] sm:$0xff] }
  0xbd   :  { %v621_v54 = vadd.f32 %v620_v47, %v285_v11  ;;  %v664_v23 = vadd.f32 %v663_v57, %v273_v34  ;;  %v317_v13 = vld [vmem:[#allocation5 + $0x5d8] sm:$0xff]  ;;  %v589_v1 = vadd.f32 %v588_v52, %v298_v44  ;;  %v632_v14 = vadd.f32 %v631_v49, %v286_v41  ;;  %v318_v40 = vld [vmem:[#allocation5 + $0x5e0] sm:$0xff]  ;;  %v319_v28 = vld [vmem:[#allocation5 + $0x5e8] sm:$0xff] }
  0xbe   :  { %v643_v6 = vadd.f32 %v642_v50, %v287_v25  ;;  %v654_v26 = vadd.f32 %v653_v51, %v288_v42  ;;  %v320_v21 = vld [vmem:[#allocation5 + $0x5f0] sm:$0xff]  ;;  %v600_v19 = vadd.f32 %v599_v33, %v299_v0  ;;  %v611_v35 = vadd.f32 %v610_v16, %v300_v63  ;;  %v321_v45 = vld [vmem:[#allocation5 + $0x5f8] sm:$0xff] }
  0xbf   :  { %v622_v27 = vadd.f32 %v621_v54, %v301_v56  ;;  %v665_v10 = vadd.f32 %v664_v23, %v289_v22  ;;  %v590_v58 = vadd.f32 %v589_v1, %v314_v62  ;;  %v633_v30 = vadd.f32 %v632_v14, %v302_v37 }
  0xc0   :  { %v644_v39 = vadd.f32 %v643_v6, %v303_v61  ;;  %v655_v18 = vadd.f32 %v654_v26, %v304_v3  ;;  %v601_v34 = vadd.f32 %v600_v19, %v315_v4  ;;  %v612_v57 = vadd.f32 %v611_v35, %v316_v55 }
  0xc1   :  { %v623_v11 = vadd.f32 %v622_v27, %v317_v13  ;;  %v666_v20 = vadd.f32 %v665_v10, %v305_v59  ;;  %v591_v43 = vrot.slane %v590_v58, 4  ;;  %v634_v41 = vadd.f32 %v633_v30, %v318_v40 }
  0xc2   :  { %v645_v25 = vadd.f32 %v644_v39, %v319_v28  ;;  %v656_v42 = vadd.f32 %v655_v18, %v320_v21  ;;  %v602_v7 = vrot.slane %v601_v34, 4  ;;  %v613_v44 = vrot.slane %v612_v57, 4 }
  0xc3   :  { %v624_v46 = vrot.slane %v623_v11, 4  ;;  %v667_v0 = vadd.f32 %v666_v20, %v321_v45  ;;  %v592_v63 = vadd.f32 %v591_v43, %v590_v58  ;;  %v635_v56 = vrot.slane %v634_v41, 4 }
  0xc4   :  { %v646_v22 = vrot.slane %v645_v25, 4  ;;  %v657_v47 = vrot.slane %v656_v42, 4  ;;  %v603_v52 = vadd.f32 %v602_v7, %v601_v34  ;;  %v614_v37 = vadd.f32 %v613_v44, %v612_v57 }
  0xc5   :  { %v625_v61 = vadd.f32 %v624_v46, %v623_v11  ;;  %v668_v49 = vrot.slane %v667_v0, 4  ;;  %v593_v50 = vrot.slane %v592_v63, 2  ;;  %v636_v51 = vadd.f32 %v635_v56, %v634_v41 }
  0xc6   :  { %v647_v3 = vadd.f32 %v646_v22, %v645_v25  ;;  %v658_v59 = vadd.f32 %v657_v47, %v656_v42  ;;  %v604_v62 = vrot.slane %v603_v52, 2  ;;  %v615_v33 = vrot.slane %v614_v37, 2 }
  0xc7   :  { %v626_v16 = vrot.slane %v625_v61, 2  ;;  %v669_v54 = vadd.f32 %v668_v49, %v667_v0  ;;  %v594_v23 = vadd.f32 %v593_v50, %v592_v63  ;;  %v637_v4 = vrot.slane %v636_v51, 2 }
  0xc8   :  { %v648_v55 = vrot.slane %v647_v3, 2  ;;  %v659_v13 = vrot.slane %v658_v59, 2  ;;  %v605_v1 = vadd.f32 %v604_v62, %v603_v52  ;;  %v616_v14 = vadd.f32 %v615_v33, %v614_v37  ;;  %v7800_v33 = vld [vmem:[#allocation23_spill] sm:$0xff] }
  0xc9   :  { %v627_v6 = vadd.f32 %v626_v16, %v625_v61  ;;  %v670_v26 = vrot.slane %v669_v54, 2  ;;  %v595_v40 = vrot.slane %v594_v23, 1  ;;  %v638_v28 = vadd.f32 %v637_v4, %v636_v51  ;;  %v7798_v51 = vld [vmem:[#allocation24_spill] sm:$0xff]  ;;  %v7801_v16 = vld [vmem:[#allocation26_spill] sm:$0xff] }
  0xca   :  { %v649_v21 = vadd.f32 %v648_v55, %v647_v3  ;;  %v660_v19 = vadd.f32 %v659_v13, %v658_v59  ;;  %v7793_v35 = vrot.slane %v7001_v17, 1  ;;  %v606_v10 = vrot.slane %v605_v1, 1  ;;  %v7799_v59 = vld [vmem:[#allocation25_spill] sm:$0xff]  ;;  %v7805_v13 = vld [vmem:[#allocation30_spill] sm:$0xff] }
  0xcb   :  { %v617_v45 = vrot.slane %v616_v14, 1  ;;  %v628_v58 = vrot.slane %v627_v6, 1  ;;  %v639_v30 = vrot.slane %v638_v28, 1  ;;  %v671_v34 = vadd.f32 %v670_v26, %v669_v54  ;;  %v7802_v54 = vld [vmem:[#allocation27_spill] sm:$0xff]  ;;  %v7804_v55 = vld [vmem:[#allocation29_spill] sm:$0xff] }
  0xcc   :  { %v541_v27 = vadd.f32 %v7793_v35, %v7001_v17  ;;  %v650_v39 = vrot.slane %v649_v21, 1  ;;  %v661_v18 = vrot.slane %v660_v19, 1  ;;  %v7794_v57 = vrot.slane %v7003_v2, 1 }
  0xcd   :  { %v7795_v20 = vrot.slane %v7005_v12, 1  ;;  %v7796_v41 = vrot.slane %v7007_v53, 1  ;;  %v7797_v17 = vrot.slane %v7014_v38, 1  ;;  %v596_v7 = vadd.f32 %v595_v40, %v594_v23  ;;  %v7803_v23 = vld [vmem:[#allocation28_spill] sm:$0xff] }
  0xce   :  { %v552_v11 = vadd.f32 %v7794_v57, %v7003_v2  ;;  %v607_v44 = vadd.f32 %v606_v10, %v605_v1  ;;  %v618_v46 = vadd.f32 %v617_v45, %v616_v14  ;;  %v675_v0 = vmul.f32 0.020833334, %v6941_v31 }
  0xcf   :  { %v563_v43 = vadd.f32 %v7795_v20, %v7005_v12  ;;  %v574_v25 = vadd.f32 %v7796_v41, %v7007_v53  ;;  %v585_v42 = vadd.f32 %v7797_v17, %v7014_v38  ;;  %v629_v63 = vadd.f32 %v628_v58, %v627_v6 }
  0xd0   :  { %v676_v2 = vmul.f32 0.020833334, %v6946_v29  ;;  %v677_v56 = vmul.f32 0.020833334, %v6948_v8  ;;  %v678_v12 = vmul.f32 0.020833334, %v6966_v36  ;;  %v640_v22 = vadd.f32 %v639_v30, %v638_v28 }
  0xd1   :  { %v651_v47 = vadd.f32 %v650_v39, %v649_v21  ;;  %v662_v52 = vadd.f32 %v661_v18, %v660_v19  ;;  %v672_v53 = vrot.slane %v671_v34, 1  ;;  %v679_v37 = vmul.f32 0.020833334, %v6973_v48 }
  0xd2   :  { %v680_v38 = vmul.f32 0.020833334, %v6978_v15  ;;  %v681_v61 = vmul.f32 0.020833334, %v6983_v60  ;;  %v739_v49 = vcombine.low %v675_v0, %v676_v2  ;;  %v682_v31 = vmul.f32 0.020833334, %v6988_v32 }
  0xd3   :  { %v683_v50 = vmul.f32 0.020833334, %v6990_v5  ;;  %v684_v29 = vmul.f32 0.020833334, %v6995_v9  ;;  %v740_v8 = vcombine.low %v677_v56, %v678_v12  ;;  %v685_v36 = vmul.f32 0.020833334, %v6997_v24 }
  0xd4   :  { %v686_v3 = vmul.f32 0.020833334, %v7798_v51  ;;  %v687_v62 = vmul.f32 0.020833334, %v7799_v59  ;;  %v747_v48 = vrot.slane %v739_v49, %v7800_v33  ;;  %v688_v15 = vmul.f32 0.020833334, %v7801_v16 }
  0xd5   :  { %v689_v60 = vmul.f32 0.020833334, %v7802_v54  ;;  %v690_v4 = vmul.f32 0.020833334, %v7803_v23  ;;  %v754_v32 = vrot.slane %v740_v8, %v7800_v33  ;;  %v673_v5 = vadd.f32 %v672_v53, %v671_v34  ;;  %v7806_v24 = vld [vmem:[#allocation31_spill] sm:$0xff] }
  0xd6   :  { %v691_v9 = vmul.f32 0.020833334, %v7804_v55  ;;  %v692_v1 = vmul.f32 0.020833334, %v7805_v13  ;;  %v693_v14 = vmul.f32 0.020833334, %v7806_v24  ;;  %v756_v28 = vcombine.low %v679_v37, %v680_v38 }
  0xd7   :  { %v694_v6 = vmul.f32 0.020833334, %v541_v27  ;;  %v695_v26 = vmul.f32 0.020833334, %v552_v11  ;;  %v696_v40 = vmul.f32 0.020833334, %v563_v43  ;;  %v755_v10 = vcombine.low %v747_v48, %v754_v32 }
  0xd8   :  { %v697_v21 = vmul.f32 0.020833334, %v574_v25  ;;  %v698_v19 = vmul.f32 0.020833334, %v585_v42  ;;  %v699_v35 = vmul.f32 0.020833334, %v596_v7  ;;  %v757_v39 = vcombine.low %v681_v61, %v682_v31 }
  0xd9   :  { %v700_v45 = vmul.f32 0.020833334, %v607_v44  ;;  %v701_v58 = vmul.f32 0.020833334, %v618_v46  ;;  %v702_v30 = vmul.f32 0.020833334, %v629_v63  ;;  %v773_v57 = vcombine.low %v683_v50, %v684_v29 }
  0xda   :  { %v703_v18 = vmul.f32 0.020833334, %v640_v22  ;;  %v704_v34 = vmul.f32 0.020833334, %v651_v47  ;;  %v774_v20 = vcombine.low %v685_v36, %v686_v3  ;;  %v705_v41 = vmul.f32 0.020833334, %v662_v52 }
  0xdb   :  { %v790_v17 = vcombine.low %v687_v62, %v688_v15  ;;  %v807_v0 = vcombine.low %v691_v9, %v692_v1  ;;  %v808_v27 = vcombine.low %v693_v14, %v694_v6  ;;  %v706_v11 = vmul.f32 0.020833334, %v673_v5 }
  0xdc   :  { %v764_v43 = vrot.slane %v756_v28, %v7800_v33  ;;  %v791_v25 = vcombine.low %v689_v60, %v690_v4  ;;  %v824_v42 = vcombine.low %v695_v26, %v696_v40  ;;  %v771_v7 = vrot.slane %v757_v39, %v7800_v33  ;;  %v2188_v39 = vld [vmem:[#allocation11 + $0x188] sm:$0xff] (%p918_p6) }
  0xdd   :  { %v781_v44 = vrot.slane %v773_v57, %v7800_v33  ;;  %v815_v46 = vrot.slane %v807_v0, %v7800_v33  ;;  %v822_v63 = vrot.slane %v808_v27, %v7800_v33  ;;  %v788_v2 = vrot.slane %v774_v20, %v7800_v33  ;;  %v2171_v57 = vld [vmem:[#allocation11 + $0x100] sm:$0xff] (%p918_p6)  ;;  %v2172_v20 = vld [vmem:[#allocation11 + $0x108] sm:$0xff] (%p918_p6)  ;;  %v2158_v0 = vld [vmem:[#allocation11 + $0x98] sm:$0xff] (%p918_p6) }
  0xde   :  { %v825_v56 = vcombine.low %v697_v21, %v698_v19  ;;  %v832_v12 = vrot.slane %v824_v42, %v7800_v33  ;;  %v841_v22 = vcombine.low %v699_v35, %v700_v45  ;;  %v798_v47 = vrot.slane %v790_v17, %v7800_v33  ;;  %v2155_v19 = vld [vmem:[#allocation11 + $0x80] sm:$0xff] (%p918_p6)  ;;  %v2156_v35 = vld [vmem:[#allocation11 + $0x88] sm:$0xff] (%p918_p6)  ;;  %v2141_v27 = vld [vmem:[#allocation11 + $0x10] sm:$0xff] (%p918_p6) }
  0xdf   :  { %v823_v52 = vcombine.low %v815_v46, %v822_v63  ;;  %v842_v53 = vcombine.low %v701_v58, %v702_v30  ;;  %v858_v37 = vcombine.low %v703_v18, %v704_v34  ;;  %v805_v38 = vrot.slane %v791_v25, %v7800_v33  ;;  %v2140_v58 = vld [vmem:[#allocation11 + $0x8] sm:$0xff] (%p918_p6)  ;;  %v2187_v30 = vld [vmem:[#allocation11 + $0x180] sm:$0xff] (%p918_p6)  ;;  %v2189_v42 = vld [vmem:[#allocation11 + $0x190] sm:$0xff] (%p918_p6) }
  0xe0   :  { %v839_v61 = vrot.slane %v825_v56, %v7800_v33  ;;  %v849_v49 = vrot.slane %v841_v22, %v7800_v33  ;;  %v859_v31 = vcombine.low %v705_v41, %v706_v11  ;;  %v772_v36 = vcombine.low %v764_v43, %v771_v7  ;;  %v2157_v41 = vld [vmem:[#allocation11 + $0x90] sm:$0xff] (%p918_p6)  ;;  %v2142_v11 = vld [vmem:[#allocation11 + $0x18] sm:$0xff] (%p918_p6)  ;;  %v2160_v56 = vld [vmem:[#allocation11 + $0xa8] sm:$0xff] (%p918_p6) }
  0xe1   :  { %v856_v50 = vrot.slane %v842_v53, %v7800_v33  ;;  %v866_v29 = vrot.slane %v858_v37, %v7800_v33  ;;  %v879_v8 = vrot.slane %v823_v52, 7  ;;  %v789_v59 = vcombine.low %v781_v44, %v788_v2  ;;  %v2190_v7 = vld [vmem:[#allocation11 + $0x198] sm:$0xff] (%p918_p6)  ;;  %v2173_v44 = vld [vmem:[#allocation11 + $0x110] sm:$0xff] (%p918_p6)  ;;  %v2159_v2 = vld [vmem:[#allocation11 + $0xa0] sm:$0xff] (%p918_p6) }
  0xe2   :  { %v840_v51 = vcombine.low %v832_v12, %v839_v61  ;;  %v873_v3 = vrot.slane %v859_v31, %v7800_v33  ;;  %v806_v16 = vcombine.low %v798_v47, %v805_v38  ;;  %v5709_v45 = vpack.c.bf16 (%p918_p6), %v2156_v35, %v2155_v19  ;;  %v2174_v63 = vld [vmem:[#allocation11 + $0x118] sm:$0xff] (%p918_p6)  ;;  %v2143_v47 = vld [vmem:[#allocation11 + $0x20] sm:$0xff] (%p918_p6)  ;;  %v2144_v52 = vld [vmem:[#allocation11 + $0x28] sm:$0xff] (%p918_p6) }
  0xe3   :  { %v857_v62 = vcombine.low %v849_v49, %v856_v50  ;;  %v881_v48 = vsel %vm880_vm0, %v879_v8, %v755_v10  ;;  %v2139_v10 = vld [vmem:[#allocation11] sm:$0xff] (%p918_p6)  ;;  %v5741_v34 = vpack.c.bf16 (%p918_p6), %v2188_v39, %v2187_v30  ;;  %v5743_v17 = vpack.c.bf16 (%p918_p6), %v2172_v20, %v2171_v57  ;;  %v2192_v37 = vld [vmem:[#allocation11 + $0x1a8] sm:$0xff] (%p918_p6)  ;;  %v2161_v50 = vld [vmem:[#allocation11 + $0xb0] sm:$0xff] (%p918_p6) }
  0xe4   :  { %v874_v15 = vcombine.low %v866_v29, %v873_v3  ;;  %v883_v54 = vsel %vm882_vm1, %v879_v8, %v881_v48  ;;  %v890_v60 = vrot.slane %v840_v51, 7  ;;  %v5711_v18 = vpack.c.bf16 (%p918_p6), %v2140_v58, %v2139_v10  ;;  %5710 = vmatprep.subr.bf16.mxu0 (%p918_p6), %v5709_v45  ;;  %v2191_v53 = vld [vmem:[#allocation11 + $0x1a0] sm:$0xff] (%p918_p6)  ;;  %v2176_v61 = vld [vmem:[#allocation11 + $0x128] sm:$0xff] (%p918_p6)  ;;  %v2162_v29 = vld [vmem:[#allocation11 + $0xb8] sm:$0xff] (%p918_p6) }
  0xe5   :  { %v885_v23 = vsel %vm884_vm2, %v879_v8, %v883_v54  ;;  %v897_v4 = vrot.slane %v857_v62, 7  ;;  %5742 = vmatprep.subr.bf16.mxu1 (%p918_p6), %v5741_v34  ;;  %v5713_v43 = vpack.c.bf16 (%p918_p6), %v2158_v0, %v2157_v41  ;;  %v5715_v25 = vpack.c.bf16 (%p918_p6), %v2142_v11, %v2141_v27  ;;  %v2175_v38 = vld [vmem:[#allocation11 + $0x120] sm:$0xff] (%p918_p6)  ;;  %v2146_v3 = vld [vmem:[#allocation11 + $0x38] sm:$0xff] (%p918_p6)  ;;  %v2149_v35 = vld [vmem:[#allocation11 + $0x50] sm:$0xff] (%p918_p6) }
  0xe6   :  { %v887_v32 = vsel %vm886_vm3, %v879_v8, %v885_v23  ;;  %v891_v5 = vsel %vm880_vm0, %v890_v60, %v772_v36  ;;  %v904_v55 = vrot.slane %v874_v15, 7  ;;  %922 = sbr.rel (!%p918_p6) target bundleno = 1121 (0x461), region = 81  ;;  %5712 = vmatpush3.bf16.msra.mxu0 (%p918_p6), %v5711_v18  ;;  %5744 = vmatpush3.bf16.msra.mxu1 (%p918_p6), %v5743_v17  ;;  %v5745_v46 = vpack.c.bf16 (%p918_p6), %v2190_v7, %v2189_v42  ;;  %v2145_v8 = vld [vmem:[#allocation11 + $0x30] sm:$0xff] (%p918_p6)  ;;  %v2194_v62 = vld [vmem:[#allocation11 + $0x1b8] sm:$0xff] (%p918_p6)  ;;  %v2163_v54 = vld [vmem:[#allocation11 + $0xc0] sm:$0xff] (%p918_p6) }
  0xe7   :  { %v892_v33 = vsel %vm882_vm1, %v890_v60, %v891_v5  ;;  %v898_v9 = vsel %vm880_vm0, %v897_v4, %v789_v59  ;;  %913 = vst [vmem:[#allocation2] sm:$0xff] %v887_v32  ;;  %5714 = vmatprep.subr.bf16.mxu0 (%p918_p6), %v5713_v43  ;;  %v5747_v12 = vpack.c.bf16 (%p918_p6), %v2174_v63, %v2173_v44  ;;  %v2193_v59 = vld [vmem:[#allocation11 + $0x1b0] sm:$0xff] (%p918_p6)  ;;  %v2178_v15 = vld [vmem:[#allocation11 + $0x138] sm:$0xff] (%p918_p6)  ;;  %v2196_v32 = vld [vmem:[#allocation11 + $0x1c8] sm:$0xff] (%p918_p6) }
  0xe8   :  { %v893_v13 = vsel %vm884_vm2, %v890_v60, %v892_v33  ;;  %v899_v1 = vsel %vm882_vm1, %v897_v4, %v898_v9  ;;  %v905_v24 = vsel %vm880_vm0, %v904_v55, %v806_v16  ;;  %v5717_v22 = vpack.c.bf16 (%p918_p6), %v2160_v56, %v2159_v2  ;;  %5746 = vmatprep.subr.bf16.mxu1 (%p918_p6), %v5745_v46  ;;  %v2177_v16 = vld [vmem:[#allocation11 + $0x130] sm:$0xff] (%p918_p6)  ;;  %v2147_v33 = vld [vmem:[#allocation11 + $0x40] sm:$0xff] (%p918_p6)  ;;  %v2148_v9 = vld [vmem:[#allocation11 + $0x48] sm:$0xff] (%p918_p6) }
  0xe9   :  { %v894_v14 = vsel %vm886_vm3, %v890_v60, %v893_v13  ;;  %v900_v6 = vsel %vm884_vm2, %v897_v4, %v899_v1  ;;  %v906_v26 = vsel %vm882_vm1, %v904_v55, %v905_v24  ;;  %v5719_v49 = vpack.c.bf16 (%p918_p6), %v2144_v52, %v2143_v47  ;;  %v2164_v60 = vld [vmem:[#allocation11 + $0xc8] sm:$0xff] (%p918_p6)  ;;  %v2179_v13 = vld [vmem:[#allocation11 + $0x140] sm:$0xff] (%p918_p6)  ;;  %v2150_v10 = vld [vmem:[#allocation11 + $0x58] sm:$0xff] (%p918_p6) }
  0xea   :  { %v901_v40 = vsel %vm886_vm3, %v897_v4, %v900_v6  ;;  %v907_v28 = vsel %vm884_vm2, %v904_v55, %v906_v26  ;;  %914 = vst [vmem:[#allocation2 + $0x8] sm:$0xff] %v894_v14  ;;  %5716 = vmatpush3.bf16.msra.mxu0 (%p918_p6), %v5715_v25  ;;  %v5749_v31 = vpack.c.bf16 (%p918_p6), %v2192_v37, %v2191_v53  ;;  %v2195_v4 = vld [vmem:[#allocation11 + $0x1c0] sm:$0xff] (%p918_p6)  ;;  %v2180_v24 = vld [vmem:[#allocation11 + $0x148] sm:$0xff] (%p918_p6)  ;;  %v2165_v14 = vld [vmem:[#allocation11 + $0xd0] sm:$0xff] (%p918_p6) }
  0xeb   :  { %v908_v21 = vsel %vm886_vm3, %v904_v55, %v907_v28  ;;  %915 = vst [vmem:[#allocation2 + $0x10] sm:$0xff] %v901_v40  ;;  %5748 = vmatpush3.bf16.msra.mxu1 (%p918_p6), %v5747_v12  ;;  %5718 = vmatprep.subr.bf16.mxu0 (%p918_p6), %v5717_v22  ;;  %v5751_v36 = vpack.c.bf16 (%p918_p6), %v2176_v61, %v2175_v38  ;;  %v2166_v6 = vld [vmem:[#allocation11 + $0xd8] sm:$0xff] (%p918_p6)  ;;  %v2197_v26 = vld [vmem:[#allocation11 + $0x1d0] sm:$0xff] (%p918_p6)  ;;  %v2167_v39 = vld [vmem:[#allocation11 + $0xe0] sm:$0xff] (%p918_p6) }
  0xec   :  { %916 = vst [vmem:[#allocation2 + $0x18] sm:$0xff] %v908_v21  ;;  %v5721_v51 = vpack.c.bf16 (%p918_p6), %v2162_v29, %v2161_v50  ;;  %5750 = vmatprep.subr.bf16.mxu1 (%p918_p6), %v5749_v31  ;;  %v5753_v48 = vpack.c.bf16 (%p918_p6), %v2194_v62, %v2193_v59  ;;  %v5723_v23 = vpack.c.bf16 (%p918_p6), %v2146_v3, %v2145_v8  ;;  %v2198_v40 = vld [vmem:[#allocation11 + $0x1d8] sm:$0xff] (%p918_p6)  ;;  %v2181_v45 = vld [vmem:[#allocation11 + $0x150] sm:$0xff] (%p918_p6)  ;;  %v2168_v18 = vld [vmem:[#allocation11 + $0xe8] sm:$0xff] (%p918_p6) }
  0xed   :  { %v5755_v5 = vpack.c.bf16 %v2178_v15, %v2177_v16  ;;  %v5725_v55 = vpack.c.bf16 %v2164_v60, %v2163_v54  ;;  %v5757_v1 = vpack.c.bf16 %v2196_v32, %v2195_v4  ;;  %v5727_v28 = vpack.c.bf16 %v2148_v9, %v2147_v33  ;;  %v2182_v30 = vld [vmem:[#allocation11 + $0x158] sm:$0xff]  ;;  %v2199_v34 = vld [vmem:[#allocation11 + $0x1e0] sm:$0xff]  ;;  %v2200_v57 = vld [vmem:[#allocation11 + $0x1e8] sm:$0xff] }
  0xee   :  { %5720 = vmatpush3.bf16.msra.mxu0 %v5719_v49  ;;  %v5759_v21 = vpack.c.bf16 %v2180_v24, %v2179_v13  ;;  %v5729_v19 = vpack.c.bf16 %v2166_v6, %v2165_v14  ;;  %v5761_v58 = vpack.c.bf16 %v2198_v40, %v2197_v26  ;;  %v5731_v20 = vpack.c.bf16 %v2150_v10, %v2149_v35  ;;  %v2151_v41 = vld [vmem:[#allocation11 + $0x60] sm:$0xff]  ;;  %v2152_v17 = vld [vmem:[#allocation11 + $0x68] sm:$0xff]  ;;  %v2169_v25 = vld [vmem:[#allocation11 + $0xf0] sm:$0xff] }
  0xef   :  { %5752 = vmatpush3.bf16.msra.mxu1 %v5751_v36  ;;  %5722 = vmatprep.subr.bf16.mxu0 %v5721_v51  ;;  %v2183_v0 = vld [vmem:[#allocation11 + $0x160] sm:$0xff]  ;;  %v5763_v27 = vpack.c.bf16 %v2182_v30, %v2181_v45  ;;  %v5733_v11 = vpack.c.bf16 %v2168_v18, %v2167_v39  ;;  %v2184_v43 = vld [vmem:[#allocation11 + $0x168] sm:$0xff]  ;;  %v2170_v42 = vld [vmem:[#allocation11 + $0xf8] sm:$0xff]  ;;  %v5765_v7 = vpack.c.bf16 %v2200_v57, %v2199_v34 }
  0xf0   :  { %5754 = vmatprep.subr.bf16.mxu1 %v5753_v48  ;;  %v2201_v44 = vld [vmem:[#allocation11 + $0x1f0] sm:$0xff]  ;;  %v2202_v46 = vld [vmem:[#allocation11 + $0x1f8] sm:$0xff]  ;;  %v924_v63 = vld [vmem:[#allocation5 + $0x8] sm:$0xff]  ;;  %v5735_v37 = vpack.c.bf16 %v2152_v17, %v2151_v41  ;;  %v5767_v31 = vpack.c.bf16 %v2184_v43, %v2183_v0  ;;  %v5737_v50 = vpack.c.bf16 %v2170_v42, %v2169_v25 }
  0xf1   :  { %v2153_v2 = vld [vmem:[#allocation11 + $0x70] sm:$0xff]  ;;  %v2154_v56 = vld [vmem:[#allocation11 + $0x78] sm:$0xff]  ;;  %v940_v47 = vld [vmem:[#allocation5 + $0x88] sm:$0xff]  ;;  %v5769_v51 = vpack.c.bf16 %v2202_v46, %v2201_v44 }
  0xf2   :  { %5724 = vmatpush3.bf16.msra.mxu0 %v5723_v23  ;;  %v7117_v12 = vld [vmem:[#allocation11 + $0x170] sm:$0xff]  ;;  %v7119_v22 = vld [vmem:[#allocation11 + $0x178] sm:$0xff]  ;;  %v956_v52 = vld [vmem:[#allocation5 + $0x108] sm:$0xff]  ;;  %v5739_v33 = vpack.c.bf16 %v2154_v56, %v2153_v2 }
  0xf3   :  { %5756 = vmatpush3.bf16.msra.mxu1 %v5755_v5  ;;  %5726 = vmatprep.subr.bf16.mxu0 %v5725_v55  ;;  %v1020_v53 = vld [vmem:[#allocation5 + $0x308] sm:$0xff]  ;;  %v5771_v9 = vpack.c.bf16 %v7119_v22, %v7117_v12  ;;  %v923_v44 = vld [vmem:[#allocation5] sm:$0xff] }
  0xf4   :  { %5758 = vmatprep.subr.bf16.mxu1 %v5757_v1  ;;  %v972_v38 = vld [vmem:[#allocation5 + $0x188] sm:$0xff]  ;;  %v939_v46 = vld [vmem:[#allocation5 + $0x80] sm:$0xff] }
  0xf5   :  { %v1036_v61 = vld [vmem:[#allocation5 + $0x388] sm:$0xff]  ;;  %v971_v12 = vld [vmem:[#allocation5 + $0x180] sm:$0xff] }
  0xf6   :  { %5728 = vmatpush3.bf16.msra.mxu0 %v5727_v28  ;;  %v1052_v49 = vld [vmem:[#allocation5 + $0x408] sm:$0xff]  ;;  %v1019_v22 = vld [vmem:[#allocation5 + $0x300] sm:$0xff] }
  0xf7   :  { %5760 = vmatpush3.bf16.msra.mxu1 %v5759_v21  ;;  %5730 = vmatprep.subr.bf16.mxu0 %v5729_v19  ;;  %v988_v29 = vld [vmem:[#allocation5 + $0x208] sm:$0xff] }
  0xf8   :  { %5762 = vmatprep.subr.bf16.mxu1 %v5761_v58  ;;  %v1116_v8 = vld [vmem:[#allocation10 + $0x8] sm:$0xff] }
  0xf9   :  { %v1132_v36 = vld [vmem:[#allocation10 + $0x88] sm:$0xff]  ;;  %v1212_v48 = vmul.f32 %v1116_v8, %v924_v63  ;;  %v1308_v15 = vmul.f32 %v1116_v8, %v1020_v53  ;;  %v955_v63 = vld [vmem:[#allocation5 + $0x100] sm:$0xff] }
  0xfa   :  { %5732 = vmatpush3.bf16.msra.mxu0 %v5731_v20  ;;  %v1068_v3 = vld [vmem:[#allocation5 + $0x488] sm:$0xff]  ;;  %v1228_v16 = vmul.f32 %v1132_v36, %v940_v47  ;;  %v1324_v4 = vmul.f32 %v1132_v36, %v1036_v61  ;;  %v1035_v47 = vld [vmem:[#allocation5 + $0x380] sm:$0xff] }
  0xfb   :  { %5764 = vmatpush3.bf16.msra.mxu1 %v5763_v27  ;;  %5734 = vmatprep.subr.bf16.mxu0 %v5733_v11  ;;  %v1148_v59 = vld [vmem:[#allocation10 + $0x108] sm:$0xff]  ;;  %v1115_v61 = vld [vmem:[#allocation10] sm:$0xff] }
  0xfc   :  { %5766 = vmatprep.subr.bf16.mxu1 %v5765_v7  ;;  %v1164_v62 = vld [vmem:[#allocation10 + $0x188] sm:$0xff]  ;;  %v1244_v23 = vmul.f32 %v1148_v59, %v956_v52  ;;  %v1340_v32 = vmul.f32 %v1148_v59, %v1052_v49  ;;  %v1131_v49 = vld [vmem:[#allocation10 + $0x80] sm:$0xff] }
  0xfd   :  { %v1004_v54 = vld [vmem:[#allocation5 + $0x288] sm:$0xff]  ;;  %v1260_v24 = vmul.f32 %v1164_v62, %v972_v38  ;;  %v1356_v6 = vmul.f32 %v1164_v62, %v1068_v3  ;;  %v1051_v38 = vld [vmem:[#allocation5 + $0x400] sm:$0xff]  ;;  %v1211_v3 = vmul.f32 %v1115_v61, %v923_v44  ;;  %v1227_v59 = vmul.f32 %v1131_v49, %v939_v46 }
  0xfe   :  { %v1180_v60 = vld [vmem:[#allocation10 + $0x208] sm:$0xff]  ;;  %5736 = vmatpush3.bf16.msra.mxu0 %v5735_v37  ;;  %v987_v37 = vld [vmem:[#allocation5 + $0x200] sm:$0xff] }
  0xff   :  { %v1404_v5 = vld [vmem:[#allocation8 + $0x8] sm:$0xff]  ;;  %5768 = vmatpush3.bf16.msra.mxu1 %v5767_v31  ;;  %5738 = vmatprep.subr.bf16.mxu0 %v5737_v50  ;;  %v1276_v10 = vmul.f32 %v1180_v60, %v988_v29  ;;  %v1003_v29 = vld [vmem:[#allocation5 + $0x280] sm:$0xff] }
 0x100   :  { %v1420_v55 = vld [vmem:[#allocation8 + $0x88] sm:$0xff]  ;;  %v1596_v21 = vmul.f32 %v1404_v5, %v1212_v48  ;;  %5770 = vmatprep.subr.bf16.mxu1 %v5769_v51  ;;  %v1067_v8 = vld [vmem:[#allocation5 + $0x480] sm:$0xff]  ;;  %v1307_v5 = vmul.f32 %v1115_v61, %v1019_v22 }
 0x101   :  { %v1084_v13 = vld [vmem:[#allocation5 + $0x508] sm:$0xff]  ;;  %v1612_v19 = vmul.f32 %v1420_v55, %v1228_v16  ;;  %v1147_v36 = vld [vmem:[#allocation10 + $0x100] sm:$0xff]  ;;  %v1323_v55 = vmul.f32 %v1131_v49, %v1035_v47 }
 0x102   :  { %v1196_v1 = vld [vmem:[#allocation10 + $0x288] sm:$0xff]  ;;  %v1372_v18 = vmul.f32 %v1180_v60, %v1084_v13  ;;  %5740 = vmatpush3.bf16.msra.mxu0 %v5739_v33  ;;  %v1163_v51 = vld [vmem:[#allocation10 + $0x180] sm:$0xff]  ;;  %v1339_v33 = vmul.f32 %v1147_v36, %v1051_v38 }
 0x103   :  { %v1436_v14 = vld [vmem:[#allocation8 + $0x108] sm:$0xff]  ;;  %v1292_v41 = vmul.f32 %v1196_v1, %v1004_v54  ;;  %v1798_v43 = vmax.f32 %v1596_v21, %v1612_v19  ;;  %5772 = vmatpush3.bf16.msra.mxu1 %v5771_v9  ;;  %v1179_v16 = vld [vmem:[#allocation10 + $0x200] sm:$0xff] }
 0x104   :  { %v1452_v26 = vld [vmem:[#allocation8 + $0x188] sm:$0xff]  ;;  %v1628_v30 = vmul.f32 %v1436_v14, %v1244_v23  ;;  %v1403_v54 = vld [vmem:[#allocation8] sm:$0xff]  ;;  %v1355_v14 = vmul.f32 %v1163_v51, %v1067_v8  ;;  %v1150_v8 = vld [vmem:[#allocation10 + $0x118] sm:$0xff] }
 0x105   :  { %v1500_v40 = vld [vmem:[#allocation8 + $0x308] sm:$0xff]  ;;  %v1644_v11 = vmul.f32 %v1452_v26, %v1260_v24  ;;  %v1419_v60 = vld [vmem:[#allocation8 + $0x80] sm:$0xff]  ;;  %v1259_v24 = vmul.f32 %v1163_v51, %v971_v12 }
 0x106   :  { %v1516_v28 = vld [vmem:[#allocation8 + $0x388] sm:$0xff]  ;;  %v1692_v39 = vmul.f32 %v1500_v40, %v1308_v15  ;;  %v1799_v56 = vmax.f32 %v1798_v43, %v1628_v30  ;;  %v1243_v15 = vmul.f32 %v1147_v36, %v955_v63  ;;  %v1435_v9 = vld [vmem:[#allocation8 + $0x100] sm:$0xff] }
 0x107   :  { %v1100_v35 = vld [vmem:[#allocation5 + $0x588] sm:$0xff]  ;;  %v1708_v57 = vmul.f32 %v1516_v28, %v1324_v4  ;;  %v1083_v4 = vld [vmem:[#allocation5 + $0x500] sm:$0xff]  ;;  %v1275_v28 = vmul.f32 %v1179_v16, %v987_v37  ;;  %v958_v37 = vld [vmem:[#allocation5 + $0x118] sm:$0xff] }
 0x108   :  { %v1532_v45 = vld [vmem:[#allocation8 + $0x408] sm:$0xff]  ;;  %v1388_v25 = vmul.f32 %v1196_v1, %v1100_v35  ;;  %v1800_v50 = vmax.f32 %v1799_v56, %v1644_v11  ;;  %v1099_v1 = vld [vmem:[#allocation5 + $0x580] sm:$0xff] }
 0x109   :  { %v1548_v58 = vld [vmem:[#allocation8 + $0x488] sm:$0xff]  ;;  %v1724_v20 = vmul.f32 %v1532_v45, %v1340_v32  ;;  %v1974_v7 = vmax.f32 %v1692_v39, %v1708_v57  ;;  %v1195_v32 = vld [vmem:[#allocation10 + $0x280] sm:$0xff]  ;;  %v1611_v45 = vmul.f32 %v1419_v60, %v1227_v59  ;;  %v1371_v39 = vmul.f32 %v1179_v16, %v1083_v4  ;;  %v990_v59 = vld [vmem:[#allocation5 + $0x218] sm:$0xff] }
 0x10a   :  { %v1468_v34 = vld [vmem:[#allocation8 + $0x208] sm:$0xff]  ;;  %v1740_v42 = vmul.f32 %v1548_v58, %v1356_v6  ;;  %v1499_v6 = vld [vmem:[#allocation8 + $0x300] sm:$0xff]  ;;  %v1291_v30 = vmul.f32 %v1195_v32, %v1003_v29  ;;  %v1387_v43 = vmul.f32 %v1195_v32, %v1099_v1  ;;  %v1134_v29 = vld [vmem:[#allocation10 + $0x98] sm:$0xff] }
 0x10b   :  { %v1484_v17 = vld [vmem:[#allocation8 + $0x288] sm:$0xff]  ;;  %v1660_v2 = vmul.f32 %v1468_v34, %v1276_v10  ;;  %v1975_v53 = vmax.f32 %v1974_v7, %v1724_v20  ;;  %v1515_v26 = vld [vmem:[#allocation8 + $0x380] sm:$0xff]  ;;  %v1595_v10 = vmul.f32 %v1403_v54, %v1211_v3  ;;  %v974_v3 = vld [vmem:[#allocation5 + $0x198] sm:$0xff] }
 0x10c   :  { %v1564_v0 = vld [vmem:[#allocation8 + $0x508] sm:$0xff]  ;;  %v1676_v31 = vmul.f32 %v1484_v17, %v1292_v41  ;;  %v1451_v21 = vld [vmem:[#allocation8 + $0x180] sm:$0xff]  ;;  %v1691_v17 = vmul.f32 %v1499_v6, %v1307_v5  ;;  %v1022_v60 = vld [vmem:[#allocation5 + $0x318] sm:$0xff] }
 0x10d   :  { %v1580_v27 = vld [vmem:[#allocation8 + $0x588] sm:$0xff]  ;;  %v1756_v52 = vmul.f32 %v1564_v0, %v1372_v18  ;;  %v1976_v48 = vmax.f32 %v1975_v53, %v1740_v42  ;;  %v1801_v23 = vmax.f32 %v1800_v50, %v1660_v2  ;;  %v1531_v19 = vld [vmem:[#allocation8 + $0x400] sm:$0xff]  ;;  %v1627_v18 = vmul.f32 %v1435_v9, %v1243_v15  ;;  %v942_v53 = vld [vmem:[#allocation5 + $0x98] sm:$0xff] }
 0x10e   :  { %v1772_v62 = vmul.f32 %v1580_v27, %v1388_v25  ;;  %v1547_v35 = vld [vmem:[#allocation8 + $0x480] sm:$0xff]  ;;  %v2220_v57 = vld [vmem:[#allocation11 + $0x288] sm:$0xff]  ;;  %v1707_v0 = vmul.f32 %v1515_v26, %v1323_v55  ;;  %v1723_v27 = vmul.f32 %v1531_v19, %v1339_v33  ;;  %v1643_v42 = vmul.f32 %v1451_v21, %v1259_v24  ;;  %v1118_v50 = vld [vmem:[#allocation10 + $0x18] sm:$0xff] }
 0x10f   :  { %v1977_v13 = vmax.f32 %v1976_v48, %v1756_v52  ;;  %v1802_v40 = vmax.f32 %v1801_v23, %v1676_v31  ;;  %v2219_v34 = vld [vmem:[#allocation11 + $0x280] sm:$0xff]  ;;  %v1739_v7 = vmul.f32 %v1547_v35, %v1355_v14  ;;  %v1787_v2 = vmax.f32 %v1595_v10, %v1611_v45  ;;  %v926_v52 = vld [vmem:[#allocation5 + $0x18] sm:$0xff] }
 0x110   :  { %v1467_v41 = vld [vmem:[#allocation8 + $0x200] sm:$0xff]  ;;  %v1963_v56 = vmax.f32 %v1691_v17, %v1707_v0  ;;  %v5773_v12 = vpack.c.bf16 %v2220_v57, %v2219_v34  ;;  %v1038_v23 = vld [vmem:[#allocation5 + $0x398] sm:$0xff]  ;;  %v1214_v55 = vmul.f32 %v1118_v50, %v926_v52  ;;  %v1230_v33 = vmul.f32 %v1134_v29, %v942_v53  ;;  %v2252_v53 = vld [vmem:[#allocation11 + $0x388] sm:$0xff] }
 0x111   :  { %v1978_v58 = vmax.f32 %v1977_v13, %v1772_v62  ;;  %v1803_v20 = vrot.slane %v1802_v40, 4  ;;  %v1563_v25 = vld [vmem:[#allocation8 + $0x500] sm:$0xff]  ;;  %v1659_v47 = vmul.f32 %v1467_v41, %v1275_v28  ;;  %v1788_v49 = vmax.f32 %v1787_v2, %v1627_v18  ;;  %v1166_v62 = vld [vmem:[#allocation10 + $0x198] sm:$0xff] }
 0x112   :  { %v1483_v46 = vld [vmem:[#allocation8 + $0x280] sm:$0xff]  ;;  %v1755_v61 = vmul.f32 %v1563_v25, %v1371_v39  ;;  %v1964_v31 = vmax.f32 %v1963_v56, %v1723_v27  ;;  %5774 = vmatprep.subr.bf16.mxu0 %v5773_v12  ;;  %v1182_v4 = vld [vmem:[#allocation10 + $0x218] sm:$0xff]  ;;  %v1246_v9 = vmul.f32 %v1150_v8, %v958_v37  ;;  %v1262_v6 = vmul.f32 %v1166_v62, %v974_v3 }
 0x113   :  { %v1979_v11 = vrot.slane %v1978_v58, 4  ;;  %v1804_v44 = vmax.f32 %v1802_v40, %v1803_v20  ;;  %v1579_v63 = vld [vmem:[#allocation8 + $0x580] sm:$0xff]  ;;  %v1675_v51 = vmul.f32 %v1483_v46, %v1291_v30  ;;  %v1789_v15 = vmax.f32 %v1788_v49, %v1643_v42  ;;  %v1054_v5 = vld [vmem:[#allocation5 + $0x418] sm:$0xff] }
 0x114   :  { %v1771_v16 = vmul.f32 %v1579_v63, %v1387_v43  ;;  %v1965_v54 = vmax.f32 %v1964_v31, %v1739_v7  ;;  %v1070_v14 = vld [vmem:[#allocation5 + $0x498] sm:$0xff]  ;;  %v1278_v10 = vmul.f32 %v1182_v4, %v990_v59  ;;  %v1310_v45 = vmul.f32 %v1118_v50, %v1022_v60  ;;  %v2251_v52 = vld [vmem:[#allocation11 + $0x380] sm:$0xff]  ;;  %v941_v60 = vld [vmem:[#allocation5 + $0x90] sm:$0xff] }
 0x115   :  { %v1980_v22 = vmax.f32 %v1978_v58, %v1979_v11  ;;  %v1805_v38 = vrot.slane %v1804_v44, 2  ;;  %v1790_v1 = vmax.f32 %v1789_v15, %v1659_v47  ;;  %v1406_v26 = vld [vmem:[#allocation8 + $0x18] sm:$0xff]  ;;  %v1326_v58 = vmul.f32 %v1134_v29, %v1038_v23  ;;  %v1117_v23 = vld [vmem:[#allocation10 + $0x10] sm:$0xff] }
 0x116   :  { %v1966_v24 = vmax.f32 %v1965_v54, %v1755_v61  ;;  %v1422_v40 = vld [vmem:[#allocation8 + $0x98] sm:$0xff]  ;;  %v1342_v34 = vmul.f32 %v1150_v8, %v1054_v5  ;;  %v1358_v27 = vmul.f32 %v1166_v62, %v1070_v14  ;;  %v1598_v43 = vmul.f32 %v1406_v26, %v1214_v55  ;;  %v7124_v62 = vld [vmem:[#allocation11 + $0x200] sm:$0xff] }
 0x117   :  { %v1981_v36 = vrot.slane %v1980_v22, 2  ;;  %v1806_v48 = vmax.f32 %v1804_v44, %v1805_v38  ;;  %v1006_v21 = vld [vmem:[#allocation5 + $0x298] sm:$0xff]  ;;  %v1791_v39 = vmax.f32 %v1790_v1, %v1675_v51  ;;  %v1614_v25 = vmul.f32 %v1422_v40, %v1230_v33  ;;  %v1149_v1 = vld [vmem:[#allocation10 + $0x110] sm:$0xff] }
 0x118   :  { %v1086_v19 = vld [vmem:[#allocation5 + $0x518] sm:$0xff]  ;;  %v1967_v18 = vmax.f32 %v1966_v24, %v1771_v16  ;;  %v5805_v54 = vpack.c.bf16 %v2252_v53, %v2251_v52  ;;  %v973_v40 = vld [vmem:[#allocation5 + $0x190] sm:$0xff] }
 0x119   :  { %v1982_v32 = vmax.f32 %v1980_v22, %v1981_v36  ;;  %v1807_v13 = vrot.slane %v1806_v48, 1  ;;  %v1198_v35 = vld [vmem:[#allocation10 + $0x298] sm:$0xff]  ;;  %v1792_v42 = vrot.slane %v1791_v39, 4  ;;  %v1374_v46 = vmul.f32 %v1182_v4, %v1086_v19  ;;  %v1133_v4 = vld [vmem:[#allocation10 + $0x90] sm:$0xff] }
 0x11a   :  { %v1438_v57 = vld [vmem:[#allocation8 + $0x118] sm:$0xff]  ;;  %v1968_v7 = vrot.slane %v1967_v18, 4  ;;  %v1294_v44 = vmul.f32 %v1198_v35, %v1006_v21  ;;  %v1820_v3 = vmax.f32 %v1598_v43, %v1614_v25  ;;  %5806 = vmatprep.subr.bf16.mxu1 %v5805_v54  ;;  %v1165_v21 = vld [vmem:[#allocation10 + $0x190] sm:$0xff] }
 0x11b   :  { %v1983_v28 = vrot.slane %v1982_v32, 1  ;;  %v1808_v30 = vmax.f32 %v1806_v48, %v1807_v13  ;;  %v1502_v20 = vld [vmem:[#allocation8 + $0x318] sm:$0xff]  ;;  %v1630_v12 = vmul.f32 %v1438_v57, %v1246_v9  ;;  %v1793_v37 = vmax.f32 %v1791_v39, %v1792_v42  ;;  %v925_v48 = vld [vmem:[#allocation5 + $0x10] sm:$0xff]  ;;  %v2204_v9 = vld [vmem:[#allocation11 + $0x208] sm:$0xff] }
 0x11c   :  { %v1518_v41 = vld [vmem:[#allocation8 + $0x398] sm:$0xff]  ;;  %v1694_v22 = vmul.f32 %v1502_v20, %v1310_v45  ;;  %v1969_v38 = vmax.f32 %v1967_v18, %v1968_v7  ;;  %v957_v13 = vld [vmem:[#allocation5 + $0x110] sm:$0xff]  ;;  %v1229_v39 = vmul.f32 %v1133_v4, %v941_v60  ;;  %v5775_v57 = vpack.c.bf16 %v2204_v9, %v7124_v62 }
 0x11d   :  { %v1984_v17 = vmax.f32 %v1982_v32, %v1983_v28  ;;  %v1102_v0 = vld [vmem:[#allocation5 + $0x598] sm:$0xff]  ;;  %v1710_v47 = vmul.f32 %v1518_v41, %v1326_v58  ;;  %v1794_v16 = vrot.slane %v1793_v37, 2  ;;  %v1821_v55 = vmax.f32 %v1820_v3, %v1630_v12  ;;  %v1021_v28 = vld [vmem:[#allocation5 + $0x310] sm:$0xff] }
 0x11e   :  { %v1534_v11 = vld [vmem:[#allocation8 + $0x418] sm:$0xff]  ;;  %v1390_v61 = vmul.f32 %v1198_v35, %v1102_v0  ;;  %v1970_v15 = vrot.slane %v1969_v38, 2  ;;  %v989_v45 = vld [vmem:[#allocation5 + $0x210] sm:$0xff]  ;;  %v1245_v41 = vmul.f32 %v1149_v1, %v957_v13  ;;  %v1261_v7 = vmul.f32 %v1165_v21, %v973_v40  ;;  %v2224_v40 = vld [vmem:[#allocation11 + $0x2a8] sm:$0xff] }
 0x11f   :  { %v1454_v63 = vld [vmem:[#allocation8 + $0x198] sm:$0xff]  ;;  %v2436_v56 = vsel %vm880_vm0, %v1984_v17, %v1808_v30  ;;  %v1726_v29 = vmul.f32 %v1534_v11, %v1342_v34  ;;  %v1996_v59 = vmax.f32 %v1694_v22, %v1710_v47  ;;  %v1795_v24 = vmax.f32 %v1793_v37, %v1794_v16  ;;  %v1037_v58 = vld [vmem:[#allocation5 + $0x390] sm:$0xff] }
 0x120   :  { %v1550_v2 = vld [vmem:[#allocation8 + $0x498] sm:$0xff]  ;;  %2531 = vmatprep.mubr.f32.mxu0 %v2436_v56  ;;  %v1646_v36 = vmul.f32 %v1454_v63, %v1262_v6  ;;  %v1971_v14 = vmax.f32 %v1969_v38, %v1970_v15  ;;  %v1053_v30 = vld [vmem:[#allocation5 + $0x410] sm:$0xff]  ;;  %v1325_v56 = vmul.f32 %v1133_v4, %v1037_v58  ;;  %v2208_v58 = vld [vmem:[#allocation11 + $0x228] sm:$0xff] }
 0x121   :  { %v1470_v49 = vld [vmem:[#allocation8 + $0x218] sm:$0xff]  ;;  %v1742_v51 = vmul.f32 %v1550_v2, %v1358_v27  ;;  %v1997_v33 = vmax.f32 %v1996_v59, %v1726_v29  ;;  %v1796_v18 = vrot.slane %v1795_v24, 1  ;;  %v1005_v20 = vld [vmem:[#allocation5 + $0x290] sm:$0xff]  ;;  %v1341_v12 = vmul.f32 %v1149_v1, %v1053_v30 }
 0x122   :  { %v1486_v31 = vld [vmem:[#allocation8 + $0x298] sm:$0xff]  ;;  %v1662_v32 = vmul.f32 %v1470_v49, %v1278_v10  ;;  %v1822_v19 = vmax.f32 %v1821_v55, %v1646_v36  ;;  %v1213_v10 = vmul.f32 %v1117_v23, %v925_v48  ;;  %v1972_v34 = vrot.slane %v1971_v14, 1  ;;  %v1405_v17 = vld [vmem:[#allocation8 + $0x10] sm:$0xff] }
 0x123   :  { %v1566_v50 = vld [vmem:[#allocation8 + $0x518] sm:$0xff]  ;;  %v1678_v6 = vmul.f32 %v1486_v31, %v1294_v44  ;;  %v1998_v35 = vmax.f32 %v1997_v33, %v1742_v51  ;;  %v1421_v0 = vld [vmem:[#allocation8 + $0x90] sm:$0xff]  ;;  %v1309_v44 = vmul.f32 %v1117_v23, %v1021_v28 }
 0x124   :  { %v1582_v8 = vld [vmem:[#allocation8 + $0x598] sm:$0xff]  ;;  %v1758_v5 = vmul.f32 %v1566_v50, %v1374_v46  ;;  %v1823_v27 = vmax.f32 %v1822_v19, %v1662_v32  ;;  %v1069_v43 = vld [vmem:[#allocation5 + $0x490] sm:$0xff]  ;;  %v1797_v46 = vmax.f32 %v1795_v24, %v1796_v18  ;;  %v1973_v63 = vmax.f32 %v1971_v14, %v1972_v34 }
 0x125   :  { %v1774_v26 = vmul.f32 %v1582_v8, %v1390_v61  ;;  %v1181_v25 = vld [vmem:[#allocation10 + $0x210] sm:$0xff]  ;;  %v1597_v49 = vmul.f32 %v1405_v17, %v1213_v10  ;;  %v1613_v31 = vmul.f32 %v1421_v0, %v1229_v39  ;;  %v1357_v36 = vmul.f32 %v1165_v21, %v1069_v43  ;;  %v2222_v54 = vld [vmem:[#allocation11 + $0x298] sm:$0xff] }
 0x126   :  { %v1999_v11 = vmax.f32 %v1998_v35, %v1758_v5  ;;  %v1197_v42 = vld [vmem:[#allocation10 + $0x290] sm:$0xff]  ;;  %v1824_v52 = vmax.f32 %v1823_v27, %v1678_v6  ;;  %v2435_v50 = vsel %vm880_vm0, %v1973_v63, %v1797_v46  ;;  %v1277_v29 = vmul.f32 %v1181_v25, %v989_v45  ;;  %v2206_v23 = vld [vmem:[#allocation11 + $0x218] sm:$0xff]  ;;  %v2207_v45 = vld [vmem:[#allocation11 + $0x220] sm:$0xff] }
 0x127   :  { %v1085_v2 = vld [vmem:[#allocation5 + $0x510] sm:$0xff]  ;;  %v1293_v8 = vmul.f32 %v1197_v42, %v1005_v20  ;;  %2532 = vmatmul.mubr.f32.vlgmr.msra.gmra.mrb[0].mxu0 %v2435_v50  ;;  %v1809_v6 = vmax.f32 %v1597_v49, %v1613_v31  ;;  %v2226_v20 = vld [vmem:[#allocation11 + $0x2b8] sm:$0xff] }
 0x128   :  { %v1437_v22 = vld [vmem:[#allocation8 + $0x110] sm:$0xff]  ;;  %v2000_v53 = vmax.f32 %v1999_v11, %v1774_v26  ;;  %v1825_v62 = vrot.slane %v1824_v52, 4  ;;  %5776 = vmatpush3.bf16.msra.mxu0 %v5775_v57  ;;  %v1373_v4 = vmul.f32 %v1181_v25, %v1085_v2  ;;  %v2223_v26 = vld [vmem:[#allocation11 + $0x2a0] sm:$0xff]  ;;  %v2210_v2 = vld [vmem:[#allocation11 + $0x238] sm:$0xff] }
 0x129   :  { %v1501_v47 = vld [vmem:[#allocation8 + $0x310] sm:$0xff]  ;;  %v1629_v16 = vmul.f32 %v1437_v22, %v1245_v41  ;;  %v5781_v27 = vpack.c.bf16 %v2224_v40, %v2223_v26  ;;  %v2214_v26 = vld [vmem:[#allocation11 + $0x258] sm:$0xff] }
 0x12a   :  { %v1101_v37 = vld [vmem:[#allocation5 + $0x590] sm:$0xff]  ;;  %v2001_v48 = vrot.slane %v2000_v53, 4  ;;  %v1693_v15 = vmul.f32 %v1501_v47, %v1309_v44  ;;  %v1826_v13 = vmax.f32 %v1824_v52, %v1825_v62  ;;  %v2227_v47 = vld [vmem:[#allocation11 + $0x2c0] sm:$0xff]  ;;  %v2228_v52 = vld [vmem:[#allocation11 + $0x2c8] sm:$0xff] }
 0x12b   :  { %v1517_v38 = vld [vmem:[#allocation8 + $0x390] sm:$0xff]  ;;  %v1389_v32 = vmul.f32 %v1197_v42, %v1101_v37  ;;  %v1810_v34 = vmax.f32 %v1809_v6, %v1629_v16  ;;  %v5783_v42 = vpack.c.bf16 %v2208_v58, %v2207_v45  ;;  %v5789_v50 = vpack.c.bf16 %v2228_v52, %v2227_v47  ;;  %v7131_v16 = vld [vmem:[#allocation11 + $0x308] sm:$0xff]  ;;  %v7157_v58 = vld [vmem:[#allocation11 + $0x260] sm:$0xff] }
 0x12c   :  { %v1533_v61 = vld [vmem:[#allocation8 + $0x410] sm:$0xff]  ;;  %v1709_v33 = vmul.f32 %v1517_v38, %v1325_v56  ;;  %v2002_v1 = vmax.f32 %v2000_v53, %v2001_v48  ;;  %v1827_v30 = vrot.slane %v1826_v13, 2  ;;  %v7129_v48 = vld [vmem:[#allocation11 + $0x300] sm:$0xff]  ;;  %v992_v52 = vld [vmem:[#allocation5 + $0x228] sm:$0xff] }
 0x12d   :  { %v1453_v51 = vld [vmem:[#allocation8 + $0x190] sm:$0xff]  ;;  %v1725_v9 = vmul.f32 %v1533_v61, %v1341_v12 }
 0x12e   :  { %v1549_v3 = vld [vmem:[#allocation8 + $0x490] sm:$0xff]  ;;  %v1645_v14 = vmul.f32 %v1453_v51, %v1261_v7  ;;  %v1985_v21 = vmax.f32 %v1693_v15, %v1709_v33  ;;  %v2003_v10 = vrot.slane %v2002_v1, 2  ;;  %v1828_v11 = vmax.f32 %v1826_v13, %v1827_v30  ;;  %v7147_v13 = vld [vmem:[#allocation11 + $0x328] sm:$0xff] }
 0x12f   :  { %v2221_v59 = vld [vmem:[#allocation11 + $0x290] sm:$0xff]  ;;  %v1741_v28 = vmul.f32 %v1549_v3, %v1357_v36  ;;  %v7159_v30 = vld [vmem:[#allocation11 + $0x268] sm:$0xff] }
 0x130   :  { %v2205_v60 = vld [vmem:[#allocation11 + $0x210] sm:$0xff]  ;;  %v5777_v19 = vpack.c.bf16 %v2222_v54, %v2221_v59  ;;  %v1986_v0 = vmax.f32 %v1985_v21, %v1725_v9  ;;  %v2004_v43 = vmax.f32 %v2002_v1, %v2003_v10  ;;  %v1811_v25 = vmax.f32 %v1810_v34, %v1645_v14  ;;  %v2230_v59 = vld [vmem:[#allocation11 + $0x2d8] sm:$0xff]  ;;  %v7145_v9 = vld [vmem:[#allocation11 + $0x320] sm:$0xff] }
 0x131   :  { %v1469_v5 = vld [vmem:[#allocation8 + $0x210] sm:$0xff]  ;;  %v5779_v35 = vpack.c.bf16 %v2206_v23, %v2205_v60  ;;  %v1829_v56 = vrot.slane %v1828_v11, 1  ;;  %v7135_v54 = vld [vmem:[#allocation11 + $0x398] sm:$0xff]  ;;  %v928_v10 = vld [vmem:[#allocation5 + $0x28] sm:$0xff] }
 0x132   :  { %v1485_v55 = vld [vmem:[#allocation8 + $0x290] sm:$0xff]  ;;  %v1661_v18 = vmul.f32 %v1469_v5, %v1277_v29  ;;  %5778 = vmatprep.subr.bf16.mxu0 %v5777_v19  ;;  %v1987_v44 = vmax.f32 %v1986_v0, %v1741_v28  ;;  %v2005_v12 = vrot.slane %v2004_v43, 1  ;;  %v2211_v29 = vld [vmem:[#allocation11 + $0x240] sm:$0xff]  ;;  %v7143_v5 = vld [vmem:[#allocation11 + $0x3a8] sm:$0xff] }
 0x133   :  { %v1565_v24 = vld [vmem:[#allocation8 + $0x510] sm:$0xff]  ;;  %v1677_v41 = vmul.f32 %v1485_v55, %v1293_v8  ;;  %5780 = vmatpush3.bf16.msra.mxu0 %v5779_v35  ;;  %v1830_v37 = vmax.f32 %v1828_v11, %v1829_v56  ;;  %v2212_v8 = vld [vmem:[#allocation11 + $0x248] sm:$0xff]  ;;  %v7155_v21 = vld [vmem:[#allocation11 + $0x338] sm:$0xff] }
 0x134   :  { %v1581_v39 = vld [vmem:[#allocation8 + $0x590] sm:$0xff]  ;;  %v1757_v17 = vmul.f32 %v1565_v24, %v1373_v4  ;;  %5782 = vmatprep.subr.bf16.mxu0 %v5781_v27  ;;  %v1812_v22 = vmax.f32 %v1811_v25, %v1661_v18  ;;  %v2006_v38 = vmax.f32 %v2004_v43, %v2005_v12  ;;  %v7139_v4 = vld [vmem:[#allocation11 + $0x318] sm:$0xff]  ;;  %v5791_v55 = vpack.c.bf16 %v2212_v8, %v2211_v29  ;;  %v2231_v19 = vld [vmem:[#allocation11 + $0x2e0] sm:$0xff] }
 0x135   :  { %v2225_v57 = vld [vmem:[#allocation11 + $0x2b0] sm:$0xff]  ;;  %v1773_v7 = vmul.f32 %v1581_v39, %v1389_v32  ;;  %v7141_v32 = vld [vmem:[#allocation11 + $0x3a0] sm:$0xff]  ;;  %v7151_v24 = vld [vmem:[#allocation11 + $0x3b8] sm:$0xff]  ;;  %v5807_v18 = vpack.c.bf16 %v7131_v16, %v7129_v48 }
 0x136   :  { %v5785_v46 = vpack.c.bf16 %v2226_v20, %v2225_v57  ;;  %v2209_v63 = vld [vmem:[#allocation11 + $0x230] sm:$0xff]  ;;  %v1988_v53 = vmax.f32 %v1987_v44, %v1757_v17  ;;  %v1813_v61 = vmax.f32 %v1812_v22, %v1677_v41  ;;  %v2438_v36 = vsel %vm880_vm0, %v2006_v38, %v1830_v37  ;;  %v2232_v35 = vld [vmem:[#allocation11 + $0x2e8] sm:$0xff]  ;;  %v7167_v41 = vld [vmem:[#allocation11 + $0x2f8] sm:$0xff] }
 0x137   :  { %5784 = vmatpush3.bf16.msra.mxu0 %v5783_v42  ;;  %v5787_v49 = vpack.c.bf16 %v2210_v2, %v2209_v63  ;;  %v2229_v3 = vld [vmem:[#allocation11 + $0x2d0] sm:$0xff]  ;;  %2601 = vmatprep.mubr.f32.mxu1 %v2438_v36  ;;  %v7171_v0 = vld [vmem:[#allocation11 + $0x278] sm:$0xff]  ;;  %v944_v27 = vld [vmem:[#allocation5 + $0xa8] sm:$0xff]  ;;  %v5797_v44 = vpack.c.bf16 %v2232_v35, %v2231_v19 }
 0x138   :  { %v1989_v31 = vmax.f32 %v1988_v53, %v1773_v7  ;;  %5786 = vmatprep.subr.bf16.mxu0 %v5785_v46  ;;  %v1814_v51 = vrot.slane %v1813_v61, 4  ;;  %v7133_v15 = vld [vmem:[#allocation11 + $0x390] sm:$0xff]  ;;  %v5793_v14 = vpack.c.bf16 %v2230_v59, %v2229_v3  ;;  %v960_v11 = vld [vmem:[#allocation5 + $0x128] sm:$0xff]  ;;  %v7183_v59 = vld [vmem:[#allocation11 + $0x3c0] sm:$0xff] }
 0x139   :  { %v7137_v23 = vld [vmem:[#allocation11 + $0x310] sm:$0xff]  ;;  %v1024_v43 = vld [vmem:[#allocation5 + $0x328] sm:$0xff] }
 0x13a   :  { %v1990_v62 = vrot.slane %v1989_v31, 4  ;;  %v1815_v60 = vmax.f32 %v1813_v61, %v1814_v51  ;;  %v7149_v1 = vld [vmem:[#allocation11 + $0x3b0] sm:$0xff]  ;;  %v976_v46 = vld [vmem:[#allocation5 + $0x1a8] sm:$0xff] }
 0x13b   :  { %5788 = vmatpush3.bf16.msra.mxu0 %v5787_v49  ;;  %v2213_v6 = vld [vmem:[#allocation11 + $0x250] sm:$0xff]  ;;  %v1040_v63 = vld [vmem:[#allocation5 + $0x3a8] sm:$0xff] }
 0x13c   :  { %v1991_v33 = vmax.f32 %v1989_v31, %v1990_v62  ;;  %5790 = vmatprep.subr.bf16.mxu0 %v5789_v50  ;;  %v1816_v40 = vrot.slane %v1815_v60, 2  ;;  %v7153_v28 = vld [vmem:[#allocation11 + $0x330] sm:$0xff]  ;;  %v5795_v57 = vpack.c.bf16 %v2214_v26, %v2213_v6  ;;  %v1056_v2 = vld [vmem:[#allocation5 + $0x428] sm:$0xff] }
 0x13d   :  { %v7165_v20 = vld [vmem:[#allocation11 + $0x2f0] sm:$0xff]  ;;  %v1120_v56 = vld [vmem:[#allocation10 + $0x28] sm:$0xff] }
 0x13e   :  { %v1992_v45 = vrot.slane %v1991_v33, 2  ;;  %v1817_v39 = vmax.f32 %v1815_v60, %v1816_v40  ;;  %v7169_v17 = vld [vmem:[#allocation11 + $0x270] sm:$0xff]  ;;  %v1072_v53 = vld [vmem:[#allocation5 + $0x4a8] sm:$0xff]  ;;  %v1216_v61 = vmul.f32 %v1120_v56, %v928_v10  ;;  %v5799_v60 = vpack.c.bf16 %v7159_v30, %v7157_v58 }
 0x13f   :  { %5792 = vmatpush3.bf16.msra.mxu0 %v5791_v55  ;;  %v1136_v37 = vld [vmem:[#allocation10 + $0xa8] sm:$0xff]  ;;  %v5801_v19 = vpack.c.bf16 %v7167_v41, %v7165_v20  ;;  %v5803_v35 = vpack.c.bf16 %v7171_v0, %v7169_v17  ;;  %v7197_v30 = vld [vmem:[#allocation11 + $0x3d0] sm:$0xff] }
 0x140   :  { %v1993_v25 = vmax.f32 %v1991_v33, %v1992_v45  ;;  %5794 = vmatprep.subr.bf16.mxu0 %v5793_v14  ;;  %v1818_v12 = vrot.slane %v1817_v39, 1  ;;  %v1152_v38 = vld [vmem:[#allocation10 + $0x128] sm:$0xff]  ;;  %v1232_v8 = vmul.f32 %v1136_v37, %v944_v27  ;;  %v1312_v33 = vmul.f32 %v1120_v56, %v1024_v43  ;;  %v7193_v27 = vld [vmem:[#allocation11 + $0x340] sm:$0xff]  ;;  %v7201_v43 = vld [vmem:[#allocation11 + $0x350] sm:$0xff] }
 0x141   :  { %v1088_v50 = vld [vmem:[#allocation5 + $0x528] sm:$0xff]  ;;  %v1248_v36 = vmul.f32 %v1152_v38, %v960_v11  ;;  %v1328_v14 = vmul.f32 %v1136_v37, %v1040_v63  ;;  %v7199_v11 = vld [vmem:[#allocation11 + $0x3d8] sm:$0xff] }
 0x142   :  { %v1994_v49 = vrot.slane %v1993_v25, 1  ;;  %v1168_v29 = vld [vmem:[#allocation10 + $0x1a8] sm:$0xff]  ;;  %v1819_v3 = vmax.f32 %v1817_v39, %v1818_v12  ;;  %v1344_v39 = vmul.f32 %v1152_v38, %v1056_v2 }
 0x143   :  { %v1408_v51 = vld [vmem:[#allocation8 + $0x28] sm:$0xff]  ;;  %5796 = vmatpush3.bf16.msra.mxu0 %v5795_v57  ;;  %v1264_v41 = vmul.f32 %v1168_v29, %v976_v46 }
 0x144   :  { %v7185_v62 = vld [vmem:[#allocation11 + $0x3c8] sm:$0xff]  ;;  %v1995_v40 = vmax.f32 %v1993_v25, %v1994_v49  ;;  %5798 = vmatprep.subr.bf16.mxu0 %v5797_v44  ;;  %v7203_v25 = vld [vmem:[#allocation11 + $0x358] sm:$0xff]  ;;  %v1360_v44 = vmul.f32 %v1168_v29, %v1072_v53  ;;  %v1600_v63 = vmul.f32 %v1408_v51, %v1216_v61  ;;  %v927_v29 = vld [vmem:[#allocation5 + $0x20] sm:$0xff]  ;;  %v7807_v51 = vpack.c.bf16 %v7135_v54, %v7133_v15 }
 0x145   :  { %v1184_v55 = vld [vmem:[#allocation10 + $0x228] sm:$0xff]  ;;  %v5827_v15 = vpack.c.bf16 %v7203_v25, %v7201_v43  ;;  %v1490_v43 = vld [vmem:[#allocation8 + $0x2b8] sm:$0xff] }
 0x146   :  { %v1424_v6 = vld [vmem:[#allocation8 + $0xa8] sm:$0xff]  ;;  %v2437_v56 = vsel %vm880_vm0, %v1995_v40, %v1819_v3  ;;  %v1280_v12 = vmul.f32 %v1184_v55, %v992_v52  ;;  %v1376_v37 = vmul.f32 %v1184_v55, %v1088_v50  ;;  %v5821_v52 = vpack.c.bf16 %v7185_v62, %v7183_v59  ;;  %v7214_v3 = vld [vmem:[#allocation11 + $0x3e0] sm:$0xff]  ;;  %v994_v59 = vld [vmem:[#allocation5 + $0x238] sm:$0xff] }
 0x147   :  { %v1440_v26 = vld [vmem:[#allocation8 + $0x128] sm:$0xff]  ;;  %v1616_v2 = vmul.f32 %v1424_v6, %v1232_v8  ;;  %2602 = vmatmul.mubr.f32.vlgmr.msra.gmra.mrb[0].mxu1 %v2437_v56  ;;  %5800 = vmatpush3.bf16.msra.mxu0 %v5799_v60  ;;  %v943_v8 = vld [vmem:[#allocation5 + $0xa0] sm:$0xff]  ;;  %v5825_v40 = vpack.c.bf16 %v7199_v11, %v7197_v30  ;;  %v1058_v62 = vld [vmem:[#allocation5 + $0x438] sm:$0xff] }
 0x148   :  { %v1008_v45 = vld [vmem:[#allocation5 + $0x2a8] sm:$0xff]  ;;  %v1632_v47 = vmul.f32 %v1440_v26, %v1248_v36  ;;  %5808 = vmatpush3.bf16.msra.mxu1 %v5807_v18  ;;  %5802 = vmatprep.subr.bf16.mxu0 %v5801_v19  ;;  %v959_v36 = vld [vmem:[#allocation5 + $0x120] sm:$0xff]  ;;  %v1522_v30 = vld [vmem:[#allocation8 + $0x3b8] sm:$0xff] }
 0x149   :  { %v1104_v10 = vld [vmem:[#allocation5 + $0x5a8] sm:$0xff]  ;;  %5810 = vmatprep.subr.bf16.mxu1 %v7807_v51  ;;  %v1842_v16 = vmax.f32 %v1600_v63, %v1616_v2  ;;  %v1039_v6 = vld [vmem:[#allocation5 + $0x3a0] sm:$0xff]  ;;  %v7808_v63 = vpack.c.bf16 %v7139_v4, %v7137_v23  ;;  %v1570_v25 = vld [vmem:[#allocation8 + $0x538] sm:$0xff] }
 0x14a   :  { %v1504_v57 = vld [vmem:[#allocation8 + $0x328] sm:$0xff]  ;;  %v1055_v19 = vld [vmem:[#allocation5 + $0x420] sm:$0xff] }
 0x14b   :  { %v7195_v58 = vld [vmem:[#allocation11 + $0x348] sm:$0xff]  ;;  %v1696_v34 = vmul.f32 %v1504_v57, %v1312_v33  ;;  %v975_v33 = vld [vmem:[#allocation5 + $0x1a0] sm:$0xff]  ;;  %5804 = vmatpush3.bf16.msra.mxu0 %v5803_v35 }
 0x14c   :  { %v1200_v20 = vld [vmem:[#allocation10 + $0x2a8] sm:$0xff]  ;;  %v5823_v26 = vpack.c.bf16 %v7195_v58, %v7193_v27  ;;  %v991_v57 = vld [vmem:[#allocation5 + $0x220] sm:$0xff]  ;;  %5812 = vmatpush3.bf16.msra.mxu1 %v7808_v63 }
 0x14d   :  { %v1520_v17 = vld [vmem:[#allocation8 + $0x3a8] sm:$0xff]  ;;  %v1296_v61 = vmul.f32 %v1200_v20, %v1008_v45  ;;  %v1392_v50 = vmul.f32 %v1200_v20, %v1104_v10  ;;  %v1071_v45 = vld [vmem:[#allocation5 + $0x4a0] sm:$0xff] }
 0x14e   :  { %v1536_v0 = vld [vmem:[#allocation8 + $0x428] sm:$0xff]  ;;  %v1712_v46 = vmul.f32 %v1520_v17, %v1328_v14  ;;  %v1023_v14 = vld [vmem:[#allocation5 + $0x320] sm:$0xff] }
 0x14f   :  { %v1456_v38 = vld [vmem:[#allocation8 + $0x1a8] sm:$0xff]  ;;  %v1728_v53 = vmul.f32 %v1536_v0, %v1344_v39  ;;  %v1119_v10 = vld [vmem:[#allocation10 + $0x20] sm:$0xff]  ;;  %v1843_v39 = vmax.f32 %v1842_v16, %v1632_v47 }
 0x150   :  { %v1472_v49 = vld [vmem:[#allocation8 + $0x228] sm:$0xff]  ;;  %v1648_v55 = vmul.f32 %v1456_v38, %v1264_v41  ;;  %v2018_v18 = vmax.f32 %v1696_v34, %v1712_v46  ;;  %v1007_v20 = vld [vmem:[#allocation5 + $0x2a0] sm:$0xff]  ;;  %v1215_v0 = vmul.f32 %v1119_v10, %v927_v29  ;;  %v1311_v51 = vmul.f32 %v1119_v10, %v1023_v14 }
 0x151   :  { %v1552_v31 = vld [vmem:[#allocation8 + $0x4a8] sm:$0xff]  ;;  %v1664_v54 = vmul.f32 %v1472_v49, %v1280_v12  ;;  %v1135_v41 = vld [vmem:[#allocation10 + $0xa0] sm:$0xff]  ;;  %v7810_v14 = vpack.c.bf16 %v7147_v13, %v7145_v9 }
 0x152   :  { %v1488_v22 = vld [vmem:[#allocation8 + $0x2a8] sm:$0xff]  ;;  %v1744_v48 = vmul.f32 %v1552_v31, %v1360_v44  ;;  %v2019_v34 = vmax.f32 %v2018_v18, %v1728_v53  ;;  %v1151_v44 = vld [vmem:[#allocation10 + $0x120] sm:$0xff]  ;;  %v1231_v49 = vmul.f32 %v1135_v41, %v943_v8  ;;  %v1844_v47 = vmax.f32 %v1843_v39, %v1648_v55 }
 0x153   :  { %v1568_v7 = vld [vmem:[#allocation8 + $0x528] sm:$0xff]  ;;  %v1167_v17 = vld [vmem:[#allocation10 + $0x1a0] sm:$0xff]  ;;  %v1680_v2 = vmul.f32 %v1488_v22, %v1296_v61  ;;  %v1247_v46 = vmul.f32 %v1151_v44, %v959_v36  ;;  %v1327_v29 = vmul.f32 %v1135_v41, %v1039_v6  ;;  %v1343_v22 = vmul.f32 %v1151_v44, %v1055_v19 }
 0x154   :  { %v1584_v42 = vld [vmem:[#allocation8 + $0x5a8] sm:$0xff]  ;;  %v1760_v31 = vmul.f32 %v1568_v7, %v1376_v37  ;;  %v1087_v12 = vld [vmem:[#allocation5 + $0x520] sm:$0xff]  ;;  %v7809_v7 = vpack.c.bf16 %v7143_v5, %v7141_v32  ;;  %v2020_v37 = vmax.f32 %v2019_v34, %v1744_v48  ;;  %v1359_v61 = vmul.f32 %v1167_v17, %v1071_v45 }
 0x155   :  { %v7216_v60 = vld [vmem:[#allocation11 + $0x3e8] sm:$0xff]  ;;  %v1776_v56 = vmul.f32 %v1584_v42, %v1392_v50  ;;  %v1183_v38 = vld [vmem:[#allocation10 + $0x220] sm:$0xff]  ;;  %v1263_v42 = vmul.f32 %v1167_v17, %v975_v33  ;;  %v1845_v36 = vmax.f32 %v1844_v47, %v1664_v54  ;;  %v7811_v54 = vpack.c.bf16 %v7151_v24, %v7149_v1  ;;  %v7248_v47 = vld [vmem:[#allocation11 + $0x378] sm:$0xff] }
 0x156   :  { %v1407_v35 = vld [vmem:[#allocation8 + $0x20] sm:$0xff]  ;;  %5814 = vmatprep.subr.bf16.mxu1 %v7809_v7  ;;  %v5829_v23 = vpack.c.bf16 %v7216_v60, %v7214_v3  ;;  %v2021_v63 = vmax.f32 %v2020_v37, %v1760_v31  ;;  %v7237_v10 = vld [vmem:[#allocation11 + $0x368] sm:$0xff]  ;;  %v1279_v33 = vmul.f32 %v1183_v38, %v991_v57  ;;  %v1375_v45 = vmul.f32 %v1183_v38, %v1087_v12  ;;  %v7244_v7 = vld [vmem:[#allocation11 + $0x3f8] sm:$0xff] }
 0x157   :  { %v1199_v53 = vld [vmem:[#allocation10 + $0x2a0] sm:$0xff]  ;;  %v1599_v48 = vmul.f32 %v1407_v35, %v1215_v0  ;;  %5816 = vmatpush3.bf16.msra.mxu1 %v7810_v14  ;;  %v1846_v31 = vmax.f32 %v1845_v36, %v1680_v2  ;;  %v2284_v13 = vld [vmem:[#allocation11 + $0x488] sm:$0xff]  ;;  %v7242_v35 = vld [vmem:[#allocation11 + $0x3f0] sm:$0xff] }
 0x158   :  { %v1423_v16 = vld [vmem:[#allocation8 + $0xa0] sm:$0xff]  ;;  %v1295_v19 = vmul.f32 %v1199_v53, %v1007_v20  ;;  %5818 = vmatprep.subr.bf16.mxu1 %v7811_v54  ;;  %v2022_v44 = vmax.f32 %v2021_v63, %v1776_v56  ;;  %v7246_v57 = vld [vmem:[#allocation11 + $0x370] sm:$0xff]  ;;  %v1154_v54 = vld [vmem:[#allocation10 + $0x138] sm:$0xff] }
 0x159   :  { %v1439_v18 = vld [vmem:[#allocation8 + $0x120] sm:$0xff]  ;;  %v1615_v39 = vmul.f32 %v1423_v16, %v1231_v49  ;;  %v1847_v1 = vrot.slane %v1846_v31, 4  ;;  %v1586_v3 = vld [vmem:[#allocation8 + $0x5b8] sm:$0xff] }
 0x15a   :  { %v1103_v4 = vld [vmem:[#allocation5 + $0x5a0] sm:$0xff]  ;;  %v1631_v41 = vmul.f32 %v1439_v18, %v1247_v46  ;;  %v2023_v24 = vrot.slane %v2022_v44, 4 }
 0x15b   :  { %v1455_v50 = vld [vmem:[#allocation8 + $0x1a0] sm:$0xff]  ;;  %v1391_v20 = vmul.f32 %v1199_v53, %v1103_v4  ;;  %v1831_v37 = vmax.f32 %v1599_v48, %v1615_v39  ;;  %v5835_v48 = vpack.c.bf16 %v7248_v47, %v7246_v57 }
 0x15c   :  { %v1503_v8 = vld [vmem:[#allocation8 + $0x320] sm:$0xff]  ;;  %v1647_v12 = vmul.f32 %v1455_v50, %v1263_v42  ;;  %v930_v42 = vld [vmem:[#allocation5 + $0x38] sm:$0xff]  ;;  %v1848_v50 = vmax.f32 %v1846_v31, %v1847_v1 }
 0x15d   :  { %v1519_v32 = vld [vmem:[#allocation8 + $0x3a0] sm:$0xff]  ;;  %v1695_v0 = vmul.f32 %v1503_v8, %v1311_v51  ;;  %v2024_v8 = vmax.f32 %v2022_v44, %v2023_v24  ;;  %v1832_v36 = vmax.f32 %v1831_v37, %v1631_v41  ;;  %v1170_v31 = vld [vmem:[#allocation10 + $0x1b8] sm:$0xff]  ;;  %v1346_v37 = vmul.f32 %v1154_v54, %v1058_v62 }
 0x15e   :  { %v1535_v5 = vld [vmem:[#allocation8 + $0x420] sm:$0xff]  ;;  %v1711_v49 = vmul.f32 %v1519_v32, %v1327_v29  ;;  %v7812_v29 = vpack.c.bf16 %v7155_v21, %v7153_v28  ;;  %v962_v32 = vld [vmem:[#allocation5 + $0x138] sm:$0xff] }
 0x15f   :  { %v1551_v55 = vld [vmem:[#allocation8 + $0x4a0] sm:$0xff]  ;;  %v1727_v38 = vmul.f32 %v1535_v5, %v1343_v22  ;;  %v946_v22 = vld [vmem:[#allocation5 + $0xb8] sm:$0xff]  ;;  %v1250_v27 = vmul.f32 %v1154_v54, %v962_v32 }
 0x160   :  { %v7235_v6 = vld [vmem:[#allocation11 + $0x360] sm:$0xff]  ;;  %v1743_v46 = vmul.f32 %v1551_v55, %v1359_v61  ;;  %v2007_v51 = vmax.f32 %v1695_v0, %v1711_v49  ;;  %5820 = vmatpush3.bf16.msra.mxu1 %v7812_v29  ;;  %v1026_v61 = vld [vmem:[#allocation5 + $0x338] sm:$0xff]  ;;  %v5833_v55 = vpack.c.bf16 %v7244_v7, %v7242_v35  ;;  %v1057_v35 = vld [vmem:[#allocation5 + $0x430] sm:$0xff] }
 0x161   :  { %v1471_v34 = vld [vmem:[#allocation8 + $0x220] sm:$0xff]  ;;  %v5831_v16 = vpack.c.bf16 %v7237_v10, %v7235_v6  ;;  %5822 = vmatprep.subr.bf16.mxu1 %v5821_v52  ;;  %v1042_v28 = vld [vmem:[#allocation5 + $0x3b8] sm:$0xff]  ;;  %v1849_v52 = vrot.slane %v1848_v50, 2  ;;  %v1121_v6 = vld [vmem:[#allocation10 + $0x30] sm:$0xff] }
 0x162   :  { %v1567_v17 = vld [vmem:[#allocation8 + $0x520] sm:$0xff]  ;;  %v1663_v18 = vmul.f32 %v1471_v34, %v1279_v33  ;;  %v2008_v63 = vmax.f32 %v2007_v51, %v1727_v38  ;;  %v1122_v21 = vld [vmem:[#allocation10 + $0x38] sm:$0xff]  ;;  %v1833_v34 = vmax.f32 %v1832_v36, %v1647_v12  ;;  %v1137_v10 = vld [vmem:[#allocation10 + $0xb0] sm:$0xff] }
 0x163   :  { %v2283_v9 = vld [vmem:[#allocation11 + $0x480] sm:$0xff]  ;;  %v1759_v53 = vmul.f32 %v1567_v17, %v1375_v45  ;;  %v1138_v5 = vld [vmem:[#allocation10 + $0xb8] sm:$0xff]  ;;  %v2025_v45 = vrot.slane %v2024_v8, 2  ;;  %v1218_v49 = vmul.f32 %v1122_v21, %v930_v42  ;;  %v1153_v7 = vld [vmem:[#allocation10 + $0x130] sm:$0xff] }
 0x164   :  { %v1487_v2 = vld [vmem:[#allocation8 + $0x2a0] sm:$0xff]  ;;  %v5837_v4 = vpack.c.bf16 %v2284_v13, %v2283_v9  ;;  %v978_v33 = vld [vmem:[#allocation5 + $0x1b8] sm:$0xff]  ;;  %v2009_v41 = vmax.f32 %v2008_v63, %v1743_v46  ;;  %5824 = vmatpush3.bf16.msra.mxu1 %v5823_v26  ;;  %v1314_v9 = vmul.f32 %v1122_v21, %v1026_v61  ;;  %v1330_v13 = vmul.f32 %v1138_v5, %v1042_v28 }
 0x165   :  { %v1583_v56 = vld [vmem:[#allocation8 + $0x5a0] sm:$0xff]  ;;  %v1679_v39 = vmul.f32 %v1487_v2, %v1295_v19  ;;  %v1186_v44 = vld [vmem:[#allocation10 + $0x238] sm:$0xff]  ;;  %v1234_v19 = vmul.f32 %v1138_v5, %v946_v22  ;;  %5826 = vmatprep.subr.bf16.mxu1 %v5825_v40  ;;  %v2026_v12 = vmax.f32 %v2024_v8, %v2025_v45  ;;  %v1834_v38 = vmax.f32 %v1833_v34, %v1663_v18  ;;  %v2316_v34 = vld [vmem:[#allocation11 + $0x588] sm:$0xff] }
 0x166   :  { %v1775_v14 = vmul.f32 %v1583_v56, %v1391_v20  ;;  %5838 = vmatprep.subr.bf16.mxu0 %v5837_v4  ;;  %v1010_v17 = vld [vmem:[#allocation5 + $0x2b8] sm:$0xff]  ;;  %v1850_v20 = vmax.f32 %v1848_v50, %v1849_v52  ;;  %v2010_v46 = vmax.f32 %v2009_v41, %v1759_v53  ;;  %v1266_v58 = vmul.f32 %v1170_v31, %v978_v33 }
 0x167   :  { %v1074_v0 = vld [vmem:[#allocation5 + $0x4b8] sm:$0xff]  ;;  %v1282_v26 = vmul.f32 %v1186_v44, %v994_v59  ;;  %v2027_v29 = vrot.slane %v2026_v12, 1  ;;  %v1835_v4 = vmax.f32 %v1834_v38, %v1679_v39  ;;  %v1714_v59 = vmul.f32 %v1522_v30, %v1330_v13 }
 0x168   :  { %v1202_v1 = vld [vmem:[#allocation10 + $0x2b8] sm:$0xff]  ;;  %v1851_v51 = vrot.slane %v1850_v20, 1  ;;  %v2011_v42 = vmax.f32 %v2010_v46, %v1775_v14  ;;  %5828 = vmatpush3.bf16.msra.mxu1 %v5827_v15  ;;  %v1362_v40 = vmul.f32 %v1170_v31, %v1074_v0  ;;  %v929_v0 = vld [vmem:[#allocation5 + $0x30] sm:$0xff] }
 0x169   :  { %v1410_v24 = vld [vmem:[#allocation8 + $0x38] sm:$0xff]  ;;  %v1298_v11 = vmul.f32 %v1202_v1, %v1010_v17  ;;  %5830 = vmatprep.subr.bf16.mxu1 %v5829_v23  ;;  %v2028_v36 = vmax.f32 %v2026_v12, %v2027_v29  ;;  %v1836_v63 = vrot.slane %v1835_v4, 4  ;;  %v2315_v23 = vld [vmem:[#allocation11 + $0x580] sm:$0xff]  ;;  %v7280_v17 = vld [vmem:[#allocation11 + $0x408] sm:$0xff]  ;;  %v1217_v29 = vmul.f32 %v1121_v6, %v929_v0 }
 0x16a   :  { %v1426_v2 = vld [vmem:[#allocation8 + $0xb8] sm:$0xff]  ;;  %v1602_v53 = vmul.f32 %v1410_v24, %v1218_v49  ;;  %v1852_v8 = vmax.f32 %v1850_v20, %v1851_v51  ;;  %v2012_v32 = vrot.slane %v2011_v42, 4  ;;  %v945_v20 = vld [vmem:[#allocation5 + $0xb0] sm:$0xff]  ;;  %v5869_v46 = vpack.c.bf16 %v2316_v34, %v2315_v23 }
 0x16b   :  { %v1090_v56 = vld [vmem:[#allocation5 + $0x538] sm:$0xff]  ;;  %v1618_v50 = vmul.f32 %v1426_v2, %v1234_v19  ;;  %v1837_v52 = vmax.f32 %v1835_v4, %v1836_v63  ;;  %v1682_v12 = vmul.f32 %v1490_v43, %v1298_v11  ;;  %v1025_v24 = vld [vmem:[#allocation5 + $0x330] sm:$0xff]  ;;  %v1233_v4 = vmul.f32 %v1137_v10, %v945_v20 }
 0x16c   :  { %v1442_v22 = vld [vmem:[#allocation8 + $0x138] sm:$0xff]  ;;  %v1378_v39 = vmul.f32 %v1186_v44, %v1090_v56  ;;  %v2440_v62 = vsel %vm880_vm0, %v2028_v36, %v1852_v8  ;;  %v2013_v45 = vmax.f32 %v2011_v42, %v2012_v32  ;;  %5832 = vmatpush3.bf16.msra.mxu1 %v5831_v16  ;;  %v7278_v44 = vld [vmem:[#allocation11 + $0x400] sm:$0xff]  ;;  %v977_v51 = vld [vmem:[#allocation5 + $0x1b0] sm:$0xff]  ;;  %v1313_v47 = vmul.f32 %v1121_v6, %v1025_v24 }
 0x16d   :  { %v1506_v61 = vld [vmem:[#allocation8 + $0x338] sm:$0xff]  ;;  %v1634_v15 = vmul.f32 %v1442_v22, %v1250_v27  ;;  %2671 = vmatprep.mubr.f32.mxu0 %v2440_v62  ;;  %5834 = vmatprep.subr.bf16.mxu1 %v5833_v55  ;;  %v1838_v49 = vrot.slane %v1837_v52, 2  ;;  %v1169_v11 = vld [vmem:[#allocation10 + $0x1b0] sm:$0xff]  ;;  %v1345_v36 = vmul.f32 %v1153_v7, %v1057_v35 }
 0x16e   :  { %v1538_v18 = vld [vmem:[#allocation8 + $0x438] sm:$0xff]  ;;  %v1698_v33 = vmul.f32 %v1506_v61, %v1314_v9  ;;  %v2014_v19 = vrot.slane %v2013_v45, 2  ;;  %v1864_v9 = vmax.f32 %v1602_v53, %v1618_v50  ;;  %v1762_v38 = vmul.f32 %v1570_v25, %v1378_v39  ;;  %v993_v53 = vld [vmem:[#allocation5 + $0x230] sm:$0xff] }
 0x16f   :  { %v1106_v28 = vld [vmem:[#allocation5 + $0x5b8] sm:$0xff]  ;;  %v1730_v60 = vmul.f32 %v1538_v18, %v1346_v37  ;;  %v1839_v2 = vmax.f32 %v1837_v52, %v1838_v49  ;;  %v1041_v37 = vld [vmem:[#allocation5 + $0x3b0] sm:$0xff]  ;;  %v1265_v25 = vmul.f32 %v1169_v11, %v977_v51  ;;  %v2288_v51 = vld [vmem:[#allocation11 + $0x4a8] sm:$0xff] }
 0x170   :  { %v1458_v21 = vld [vmem:[#allocation8 + $0x1b8] sm:$0xff]  ;;  %v1394_v41 = vmul.f32 %v1202_v1, %v1106_v28  ;;  %v2040_v13 = vmax.f32 %v1698_v33, %v1714_v59  ;;  %v961_v1 = vld [vmem:[#allocation5 + $0x130] sm:$0xff]  ;;  %v2015_v56 = vmax.f32 %v2013_v45, %v2014_v19  ;;  %v1865_v27 = vmax.f32 %v1864_v9, %v1634_v15  ;;  %5836 = vmatpush3.bf16.msra.mxu1 %v5835_v48 }
 0x171   :  { %v1554_v5 = vld [vmem:[#allocation8 + $0x4b8] sm:$0xff]  ;;  %v1650_v54 = vmul.f32 %v1458_v21, %v1266_v58  ;;  %v1840_v42 = vrot.slane %v1839_v2, 1  ;;  %5870 = vmatprep.subr.bf16.mxu1 %v5869_v46  ;;  %v1425_v18 = vld [vmem:[#allocation8 + $0xb0] sm:$0xff]  ;;  %v1249_v57 = vmul.f32 %v1153_v7, %v961_v1  ;;  %v1329_v48 = vmul.f32 %v1137_v10, %v1041_v37 }
 0x172   :  { %v1474_v14 = vld [vmem:[#allocation8 + $0x238] sm:$0xff]  ;;  %v1746_v31 = vmul.f32 %v1554_v5, %v1362_v40  ;;  %v2041_v58 = vmax.f32 %v2040_v13, %v1730_v60  ;;  %v1778_v55 = vmul.f32 %v1586_v3, %v1394_v41  ;;  %v2016_v22 = vrot.slane %v2015_v56, 1  ;;  %v1409_v40 = vld [vmem:[#allocation8 + $0x30] sm:$0xff] }
 0x173   :  { %v1666_v16 = vmul.f32 %v1474_v14, %v1282_v26  ;;  %v5839_v26 = vpack.c.bf16 %v7280_v17, %v7278_v44  ;;  %v1866_v61 = vmax.f32 %v1865_v27, %v1650_v54  ;;  %v1073_v50 = vld [vmem:[#allocation5 + $0x4b0] sm:$0xff]  ;;  %v1841_v63 = vmax.f32 %v1839_v2, %v1840_v42  ;;  %v2286_v10 = vld [vmem:[#allocation11 + $0x498] sm:$0xff] }
 0x174   :  { %v2042_v30 = vmax.f32 %v2041_v58, %v1746_v31  ;;  %v1089_v8 = vld [vmem:[#allocation5 + $0x530] sm:$0xff]  ;;  %v2017_v32 = vmax.f32 %v2015_v56, %v2016_v22  ;;  %v1601_v59 = vmul.f32 %v1409_v40, %v1217_v29  ;;  %v1617_v62 = vmul.f32 %v1425_v18, %v1233_v4  ;;  %v2271_v22 = vld [vmem:[#allocation11 + $0x420] sm:$0xff] }
 0x175   :  { %v1867_v28 = vmax.f32 %v1866_v61, %v1666_v16  ;;  %v1185_v5 = vld [vmem:[#allocation10 + $0x230] sm:$0xff]  ;;  %v1361_v34 = vmul.f32 %v1169_v11, %v1073_v50  ;;  %v2272_v61 = vld [vmem:[#allocation11 + $0x428] sm:$0xff]  ;;  %v2290_v50 = vld [vmem:[#allocation11 + $0x4b8] sm:$0xff] }
 0x176   :  { %v2043_v21 = vmax.f32 %v2042_v30, %v1762_v38  ;;  %v1441_v39 = vld [vmem:[#allocation8 + $0x130] sm:$0xff]  ;;  %v2439_v52 = vsel %vm880_vm0, %v2017_v32, %v1841_v63  ;;  %v1281_v54 = vmul.f32 %v1185_v5, %v993_v53  ;;  %v1377_v31 = vmul.f32 %v1185_v5, %v1089_v8 }
 0x177   :  { %v1505_v14 = vld [vmem:[#allocation8 + $0x330] sm:$0xff]  ;;  %v1868_v45 = vmax.f32 %v1867_v28, %v1682_v12  ;;  %2672 = vmatmul.mubr.f32.vlgmr.msra.gmra.mrb[2].mxu0 %v2439_v52  ;;  %v1633_v0 = vmul.f32 %v1441_v39, %v1249_v57  ;;  %v2270_v12 = vld [vmem:[#allocation11 + $0x418] sm:$0xff]  ;;  %v1853_v56 = vmax.f32 %v1601_v59, %v1617_v62  ;;  %v5847_v28 = vpack.c.bf16 %v2272_v61, %v2271_v22  ;;  %v2292_v59 = vld [vmem:[#allocation11 + $0x4c8] sm:$0xff] }
 0x178   :  { %v1009_v43 = vld [vmem:[#allocation5 + $0x2b0] sm:$0xff]  ;;  %v2044_v3 = vmax.f32 %v2043_v21, %v1778_v55  ;;  %v1697_v49 = vmul.f32 %v1505_v14, %v1313_v47  ;;  %5840 = vmatpush3.bf16.msra.mxu0 %v5839_v26  ;;  %v2287_v55 = vld [vmem:[#allocation11 + $0x4a0] sm:$0xff]  ;;  %v2274_v14 = vld [vmem:[#allocation11 + $0x438] sm:$0xff] }
 0x179   :  { %v1521_v15 = vld [vmem:[#allocation8 + $0x3b0] sm:$0xff]  ;;  %v1869_v9 = vrot.slane %v1868_v45, 4  ;;  %v1854_v26 = vmax.f32 %v1853_v56, %v1633_v0  ;;  %v7294_v0 = vld [vmem:[#allocation11 + $0x508] sm:$0xff] }
 0x17a   :  { %v1537_v33 = vld [vmem:[#allocation8 + $0x430] sm:$0xff]  ;;  %v2045_v13 = vrot.slane %v2044_v3, 4  ;;  %v1713_v20 = vmul.f32 %v1521_v15, %v1329_v48  ;;  %v5845_v48 = vpack.c.bf16 %v2288_v51, %v2287_v55  ;;  %v2278_v55 = vld [vmem:[#allocation11 + $0x458] sm:$0xff]  ;;  %v7320_v51 = vld [vmem:[#allocation11 + $0x4e0] sm:$0xff] }
 0x17b   :  { %v1105_v60 = vld [vmem:[#allocation5 + $0x5b0] sm:$0xff]  ;;  %v1729_v6 = vmul.f32 %v1537_v33, %v1345_v36  ;;  %v1870_v27 = vmax.f32 %v1868_v45, %v1869_v9  ;;  %v2291_v33 = vld [vmem:[#allocation11 + $0x4c0] sm:$0xff]  ;;  %v932_v22 = vld [vmem:[#allocation5 + $0x48] sm:$0xff] }
 0x17c   :  { %v1201_v23 = vld [vmem:[#allocation10 + $0x2b0] sm:$0xff]  ;;  %v2046_v58 = vmax.f32 %v2044_v3, %v2045_v13  ;;  %v2029_v7 = vmax.f32 %v1697_v49, %v1713_v20  ;;  %v2294_v13 = vld [vmem:[#allocation11 + $0x4d8] sm:$0xff]  ;;  %v948_v61 = vld [vmem:[#allocation5 + $0xc8] sm:$0xff] }
 0x17d   :  { %v1457_v41 = vld [vmem:[#allocation8 + $0x1b0] sm:$0xff]  ;;  %v1297_v38 = vmul.f32 %v1201_v23, %v1009_v43  ;;  %v1393_v46 = vmul.f32 %v1201_v23, %v1105_v60  ;;  %v1871_v30 = vrot.slane %v1870_v27, 2 }
 0x17e   :  { %v1473_v44 = vld [vmem:[#allocation8 + $0x230] sm:$0xff]  ;;  %v1649_v2 = vmul.f32 %v1457_v41, %v1265_v25  ;;  %v2047_v11 = vrot.slane %v2046_v58, 2  ;;  %v2030_v18 = vmax.f32 %v2029_v7, %v1729_v6  ;;  %v2275_v41 = vld [vmem:[#allocation11 + $0x440] sm:$0xff] }
 0x17f   :  { %v1553_v17 = vld [vmem:[#allocation8 + $0x4b0] sm:$0xff]  ;;  %v1665_v29 = vmul.f32 %v1473_v44, %v1281_v54  ;;  %v1872_v36 = vmax.f32 %v1870_v27, %v1871_v30  ;;  %v2276_v54 = vld [vmem:[#allocation11 + $0x448] sm:$0xff] }
 0x180   :  { %v2285_v19 = vld [vmem:[#allocation11 + $0x490] sm:$0xff]  ;;  %v1745_v35 = vmul.f32 %v1553_v17, %v1361_v34  ;;  %v1855_v47 = vmax.f32 %v1854_v26, %v1649_v2  ;;  %v2048_v63 = vmax.f32 %v2046_v58, %v2047_v11  ;;  %v5853_v34 = vpack.c.bf16 %v2292_v59, %v2291_v33  ;;  %v7292_v17 = vld [vmem:[#allocation11 + $0x500] sm:$0xff]  ;;  %v7314_v2 = vld [vmem:[#allocation11 + $0x5b8] sm:$0xff] }
 0x181   :  { %v2269_v16 = vld [vmem:[#allocation11 + $0x410] sm:$0xff]  ;;  %v5841_v4 = vpack.c.bf16 %v2286_v10, %v2285_v19  ;;  %v1873_v43 = vrot.slane %v1872_v36, 1  ;;  %v7298_v19 = vld [vmem:[#allocation11 + $0x598] sm:$0xff]  ;;  %v5855_v56 = vpack.c.bf16 %v2276_v54, %v2275_v41  ;;  %v5871_v11 = vpack.c.bf16 %v7294_v0, %v7292_v17  ;;  %v996_v33 = vld [vmem:[#allocation5 + $0x248] sm:$0xff] }
 0x182   :  { %v1489_v1 = vld [vmem:[#allocation8 + $0x2b0] sm:$0xff]  ;;  %v5843_v42 = vpack.c.bf16 %v2270_v12, %v2269_v16  ;;  %v2031_v32 = vmax.f32 %v2030_v18, %v1745_v35  ;;  %v1856_v21 = vmax.f32 %v1855_v47, %v1665_v29  ;;  %v2049_v25 = vrot.slane %v2048_v63, 1  ;;  %v7302_v10 = vld [vmem:[#allocation11 + $0x518] sm:$0xff]  ;;  %v7304_v16 = vld [vmem:[#allocation11 + $0x5a0] sm:$0xff] }
 0x183   :  { %v1569_v24 = vld [vmem:[#allocation8 + $0x530] sm:$0xff]  ;;  %v1681_v8 = vmul.f32 %v1489_v1, %v1297_v38  ;;  %5842 = vmatprep.subr.bf16.mxu0 %v5841_v4  ;;  %v1874_v52 = vmax.f32 %v1872_v36, %v1873_v43  ;;  %v7306_v12 = vld [vmem:[#allocation11 + $0x5a8] sm:$0xff]  ;;  %v7318_v35 = vld [vmem:[#allocation11 + $0x538] sm:$0xff] }
 0x184   :  { %v1585_v37 = vld [vmem:[#allocation8 + $0x5b0] sm:$0xff]  ;;  %v1761_v40 = vmul.f32 %v1569_v24, %v1377_v31  ;;  %5844 = vmatpush3.bf16.msra.mxu0 %v5843_v42  ;;  %v2050_v45 = vmax.f32 %v2048_v63, %v2049_v25  ;;  %v7310_v1 = vld [vmem:[#allocation11 + $0x528] sm:$0xff]  ;;  %v7322_v4 = vld [vmem:[#allocation11 + $0x460] sm:$0xff]  ;;  %v5877_v47 = vpack.c.bf16 %v7306_v12, %v7304_v16 }
 0x185   :  { %v2289_v53 = vld [vmem:[#allocation11 + $0x4b0] sm:$0xff]  ;;  %v1777_v57 = vmul.f32 %v1585_v37, %v1393_v46  ;;  %5846 = vmatprep.subr.bf16.mxu0 %v5845_v48  ;;  %v1857_v62 = vmax.f32 %v1856_v21, %v1681_v8  ;;  %v7308_v46 = vld [vmem:[#allocation11 + $0x520] sm:$0xff]  ;;  %v2296_v29 = vld [vmem:[#allocation11 + $0x4e8] sm:$0xff] }
 0x186   :  { %v5849_v5 = vpack.c.bf16 %v2290_v50, %v2289_v53  ;;  %v2273_v39 = vld [vmem:[#allocation11 + $0x430] sm:$0xff]  ;;  %v2032_v15 = vmax.f32 %v2031_v32, %v1761_v40  ;;  %v2442_v31 = vsel %vm880_vm0, %v2050_v45, %v1874_v52  ;;  %v7324_v42 = vld [vmem:[#allocation11 + $0x468] sm:$0xff]  ;;  %v7336_v63 = vld [vmem:[#allocation11 + $0x4f8] sm:$0xff] }
 0x187   :  { %v5851_v60 = vpack.c.bf16 %v2274_v14, %v2273_v39  ;;  %v1858_v23 = vrot.slane %v1857_v62, 4  ;;  %v7296_v49 = vld [vmem:[#allocation11 + $0x590] sm:$0xff]  ;;  %2741 = vmatprep.mubr.f32.mxu1 %v2442_v31  ;;  %v964_v18 = vld [vmem:[#allocation5 + $0x148] sm:$0xff]  ;;  %v7351_v25 = vld [vmem:[#allocation11 + $0x5c0] sm:$0xff] }
 0x188   :  { %v2033_v3 = vmax.f32 %v2032_v15, %v1777_v57  ;;  %5848 = vmatpush3.bf16.msra.mxu0 %v5847_v28  ;;  %v2293_v9 = vld [vmem:[#allocation11 + $0x4d0] sm:$0xff]  ;;  %v5873_v40 = vpack.c.bf16 %v7298_v19, %v7296_v49  ;;  %v980_v53 = vld [vmem:[#allocation5 + $0x1c8] sm:$0xff]  ;;  %v7340_v28 = vld [vmem:[#allocation11 + $0x478] sm:$0xff]  ;;  %v5861_v15 = vpack.c.bf16 %v2296_v29, %v7320_v51 }
 0x189   :  { %5850 = vmatprep.subr.bf16.mxu0 %v5849_v5  ;;  %v1859_v20 = vmax.f32 %v1857_v62, %v1858_v23  ;;  %v7300_v6 = vld [vmem:[#allocation11 + $0x510] sm:$0xff]  ;;  %v5857_v7 = vpack.c.bf16 %v2294_v13, %v2293_v9  ;;  %v1028_v50 = vld [vmem:[#allocation5 + $0x348] sm:$0xff]  ;;  %v5863_v9 = vpack.c.bf16 %v7324_v42, %v7322_v4  ;;  %v7390_v19 = vld [vmem:[#allocation11 + $0x560] sm:$0xff] }
 0x18a   :  { %v2034_v44 = vrot.slane %v2033_v3, 4  ;;  %v7312_v24 = vld [vmem:[#allocation11 + $0x5b0] sm:$0xff]  ;;  %v5875_v57 = vpack.c.bf16 %v7302_v10, %v7300_v6  ;;  %v1044_v21 = vld [vmem:[#allocation5 + $0x3c8] sm:$0xff]  ;;  %v1411_v6 = vld [vmem:[#allocation8 + $0x40] sm:$0xff] }
 0x18b   :  { %v2277_v27 = vld [vmem:[#allocation11 + $0x450] sm:$0xff]  ;;  %v1860_v58 = vrot.slane %v1859_v20, 2  ;;  %v1060_v5 = vld [vmem:[#allocation5 + $0x448] sm:$0xff]  ;;  %v1427_v10 = vld [vmem:[#allocation8 + $0xc0] sm:$0xff] }
 0x18c   :  { %v2035_v38 = vmax.f32 %v2033_v3, %v2034_v44  ;;  %5852 = vmatpush3.bf16.msra.mxu0 %v5851_v60  ;;  %v7316_v37 = vld [vmem:[#allocation11 + $0x530] sm:$0xff]  ;;  %v5859_v48 = vpack.c.bf16 %v2278_v55, %v2277_v27  ;;  %v1076_v39 = vld [vmem:[#allocation5 + $0x4c8] sm:$0xff]  ;;  %v1443_v49 = vld [vmem:[#allocation8 + $0x140] sm:$0xff] }
 0x18d   :  { %5854 = vmatprep.subr.bf16.mxu0 %v5853_v34  ;;  %v1861_v30 = vmax.f32 %v1859_v20, %v1860_v58  ;;  %v7334_v36 = vld [vmem:[#allocation11 + $0x4f0] sm:$0xff]  ;;  %v1012_v59 = vld [vmem:[#allocation5 + $0x2c8] sm:$0xff] }
 0x18e   :  { %v2036_v26 = vrot.slane %v2035_v38, 2  ;;  %v7338_v32 = vld [vmem:[#allocation11 + $0x470] sm:$0xff]  ;;  %v1124_v62 = vld [vmem:[#allocation10 + $0x48] sm:$0xff] }
 0x18f   :  { %v1862_v14 = vrot.slane %v1861_v30, 1  ;;  %v1140_v52 = vld [vmem:[#allocation10 + $0xc8] sm:$0xff]  ;;  %v1220_v54 = vmul.f32 %v1124_v62, %v932_v22  ;;  %v1316_v55 = vmul.f32 %v1124_v62, %v1028_v50  ;;  %v7359_v42 = vld [vmem:[#allocation11 + $0x5d0] sm:$0xff] }
 0x190   :  { %v2037_v8 = vmax.f32 %v2035_v38, %v2036_v26  ;;  %5856 = vmatpush3.bf16.msra.mxu0 %v5855_v56  ;;  %v1156_v45 = vld [vmem:[#allocation10 + $0x148] sm:$0xff]  ;;  %v1236_v31 = vmul.f32 %v1140_v52, %v948_v61  ;;  %v1332_v51 = vmul.f32 %v1140_v52, %v1044_v21  ;;  %v7355_v61 = vld [vmem:[#allocation11 + $0x540] sm:$0xff]  ;;  %v7368_v62 = vld [vmem:[#allocation11 + $0x550] sm:$0xff] }
 0x191   :  { %5858 = vmatprep.subr.bf16.mxu0 %v5857_v7  ;;  %v1092_v23 = vld [vmem:[#allocation5 + $0x548] sm:$0xff]  ;;  %v1863_v44 = vmax.f32 %v1861_v30, %v1862_v14  ;;  %v1252_v20 = vmul.f32 %v1156_v45, %v964_v18  ;;  %v1348_v29 = vmul.f32 %v1156_v45, %v1060_v5  ;;  %v7361_v30 = vld [vmem:[#allocation11 + $0x5d8] sm:$0xff]  ;;  %v5865_v18 = vpack.c.bf16 %v7336_v63, %v7334_v36  ;;  %v7372_v36 = vld [vmem:[#allocation11 + $0x5e0] sm:$0xff] }
 0x192   :  { %v2038_v3 = vrot.slane %v2037_v8, 1  ;;  %v1172_v34 = vld [vmem:[#allocation10 + $0x1c8] sm:$0xff]  ;;  %v7370_v52 = vld [vmem:[#allocation11 + $0x558] sm:$0xff] }
 0x193   :  { %v1188_v41 = vld [vmem:[#allocation10 + $0x248] sm:$0xff]  ;;  %v1268_v38 = vmul.f32 %v1172_v34, %v980_v53  ;;  %v5867_v53 = vpack.c.bf16 %v7340_v28, %v7338_v32  ;;  %v1364_v50 = vmul.f32 %v1172_v34, %v1076_v39 }
 0x194   :  { %v1204_v13 = vld [vmem:[#allocation10 + $0x2c8] sm:$0xff]  ;;  %v2039_v58 = vmax.f32 %v2037_v8, %v2038_v3  ;;  %5860 = vmatpush3.bf16.msra.mxu0 %v5859_v48  ;;  %v1284_v45 = vmul.f32 %v1188_v41, %v996_v33  ;;  %v1380_v32 = vmul.f32 %v1188_v41, %v1092_v23 }
 0x195   :  { %v1412_v56 = vld [vmem:[#allocation8 + $0x48] sm:$0xff]  ;;  %5862 = vmatprep.subr.bf16.mxu0 %v5861_v15  ;;  %v1300_v3 = vmul.f32 %v1204_v13, %v1012_v59 }
 0x196   :  { %v1428_v27 = vld [vmem:[#allocation8 + $0xc8] sm:$0xff]  ;;  %v1604_v5 = vmul.f32 %v1412_v56, %v1220_v54  ;;  %v2441_v14 = vsel %vm880_vm0, %v2039_v58, %v1863_v44  ;;  %v931_v58 = vld [vmem:[#allocation5 + $0x40] sm:$0xff] }
 0x197   :  { %v1108_v7 = vld [vmem:[#allocation5 + $0x5c8] sm:$0xff]  ;;  %v1620_v43 = vmul.f32 %v1428_v27, %v1236_v31  ;;  %2742 = vmatmul.mubr.f32.vlgmr.msra.gmra.mrb[2].mxu1 %v2441_v14  ;;  %v1075_v14 = vld [vmem:[#allocation5 + $0x4c0] sm:$0xff] }
 0x198   :  { %v1444_v26 = vld [vmem:[#allocation8 + $0x148] sm:$0xff]  ;;  %5872 = vmatpush3.bf16.msra.mxu1 %v5871_v11  ;;  %5864 = vmatpush3.bf16.msra.mxu0 %v5863_v9  ;;  %v1396_v44 = vmul.f32 %v1204_v13, %v1108_v7  ;;  %v5889_v11 = vpack.c.bf16 %v7361_v30, %v7359_v42  ;;  %v1043_v9 = vld [vmem:[#allocation5 + $0x3c0] sm:$0xff]  ;;  %v1446_v42 = vld [vmem:[#allocation8 + $0x158] sm:$0xff]  ;;  %v7816_v30 = vpack.c.bf16 %v7370_v52, %v7368_v62 }
 0x199   :  { %v1460_v60 = vld [vmem:[#allocation8 + $0x1c8] sm:$0xff]  ;;  %v1636_v39 = vmul.f32 %v1444_v26, %v1252_v20  ;;  %5874 = vmatprep.subr.bf16.mxu1 %v5873_v40  ;;  %5866 = vmatprep.subr.bf16.mxu0 %v5865_v18  ;;  %v1886_v41 = vmax.f32 %v1604_v5, %v1620_v43  ;;  %v979_v43 = vld [vmem:[#allocation5 + $0x1c0] sm:$0xff]  ;;  %v1462_v52 = vld [vmem:[#allocation8 + $0x1d8] sm:$0xff] }
 0x19a   :  { %v7353_v22 = vld [vmem:[#allocation11 + $0x5c8] sm:$0xff]  ;;  %v1652_v31 = vmul.f32 %v1460_v60, %v1268_v38  ;;  %v1027_v60 = vld [vmem:[#allocation5 + $0x340] sm:$0xff] }
 0x19b   :  { %v7357_v4 = vld [vmem:[#allocation11 + $0x548] sm:$0xff]  ;;  %v5885_v17 = vpack.c.bf16 %v7353_v22, %v7351_v25  ;;  %v1059_v13 = vld [vmem:[#allocation5 + $0x440] sm:$0xff]  ;;  %v1158_v25 = vld [vmem:[#allocation10 + $0x158] sm:$0xff] }
 0x19c   :  { %v1508_v8 = vld [vmem:[#allocation8 + $0x348] sm:$0xff]  ;;  %v5887_v0 = vpack.c.bf16 %v7357_v4, %v7355_v61  ;;  %v995_v18 = vld [vmem:[#allocation5 + $0x240] sm:$0xff]  ;;  %5876 = vmatpush3.bf16.msra.mxu1 %v5875_v57  ;;  %5868 = vmatpush3.bf16.msra.mxu0 %v5867_v53 }
 0x19d   :  { %v1524_v48 = vld [vmem:[#allocation8 + $0x3c8] sm:$0xff]  ;;  %v1700_v34 = vmul.f32 %v1508_v8, %v1316_v55  ;;  %v947_v55 = vld [vmem:[#allocation5 + $0xc0] sm:$0xff]  ;;  %5878 = vmatprep.subr.bf16.mxu1 %v5877_v47 }
 0x19e   :  { %v1540_v21 = vld [vmem:[#allocation8 + $0x448] sm:$0xff]  ;;  %v1716_v54 = vmul.f32 %v1524_v48, %v1332_v51  ;;  %v963_v51 = vld [vmem:[#allocation5 + $0x140] sm:$0xff] }
 0x19f   :  { %v1556_v15 = vld [vmem:[#allocation8 + $0x4c8] sm:$0xff]  ;;  %v1732_v27 = vmul.f32 %v1540_v21, %v1348_v29  ;;  %v1887_v29 = vmax.f32 %v1886_v41, %v1636_v39  ;;  %v1139_v8 = vld [vmem:[#allocation10 + $0xc0] sm:$0xff] }
 0x1a0   :  { %v7374_v63 = vld [vmem:[#allocation11 + $0x5e8] sm:$0xff]  ;;  %v1748_v23 = vmul.f32 %v1556_v15, %v1364_v50  ;;  %v2062_v20 = vmax.f32 %v1700_v34, %v1716_v54  ;;  %v1123_v50 = vld [vmem:[#allocation10 + $0x40] sm:$0xff] }
 0x1a1   :  { %v1476_v28 = vld [vmem:[#allocation8 + $0x248] sm:$0xff]  ;;  %v1155_v48 = vld [vmem:[#allocation10 + $0x140] sm:$0xff]  ;;  %v1219_v34 = vmul.f32 %v1123_v50, %v931_v58  ;;  %v1888_v39 = vmax.f32 %v1887_v29, %v1652_v31  ;;  %v1315_v53 = vmul.f32 %v1123_v50, %v1027_v60 }
 0x1a2   :  { %v1492_v33 = vld [vmem:[#allocation8 + $0x2c8] sm:$0xff]  ;;  %v1668_v38 = vmul.f32 %v1476_v28, %v1284_v45  ;;  %v2063_v26 = vmax.f32 %v2062_v20, %v1732_v27  ;;  %v1011_v5 = vld [vmem:[#allocation5 + $0x2c0] sm:$0xff]  ;;  %v1235_v45 = vmul.f32 %v1139_v8, %v947_v55  ;;  %v1251_v41 = vmul.f32 %v1155_v48, %v963_v51 }
 0x1a3   :  { %v1572_v59 = vld [vmem:[#allocation8 + $0x548] sm:$0xff]  ;;  %v1171_v15 = vld [vmem:[#allocation10 + $0x1c0] sm:$0xff]  ;;  %v1331_v20 = vmul.f32 %v1139_v8, %v1043_v9  ;;  %v1347_v21 = vmul.f32 %v1155_v48, %v1059_v13  ;;  %v1603_v9 = vmul.f32 %v1411_v6, %v1219_v34  ;;  %v7414_v48 = vld [vmem:[#allocation11 + $0x570] sm:$0xff] }
 0x1a4   :  { %v1588_v56 = vld [vmem:[#allocation8 + $0x5c8] sm:$0xff]  ;;  %v1764_v7 = vmul.f32 %v1572_v59, %v1380_v32  ;;  %v1684_v32 = vmul.f32 %v1492_v33, %v1300_v3  ;;  %v2064_v54 = vmax.f32 %v2063_v26, %v1748_v23  ;;  %v1187_v59 = vld [vmem:[#allocation10 + $0x240] sm:$0xff]  ;;  %v1889_v55 = vmax.f32 %v1888_v39, %v1668_v38 }
 0x1a5   :  { %v7392_v40 = vld [vmem:[#allocation11 + $0x568] sm:$0xff]  ;;  %v1780_v28 = vmul.f32 %v1588_v56, %v1396_v44  ;;  %v1091_v57 = vld [vmem:[#allocation5 + $0x540] sm:$0xff]  ;;  %v1267_v12 = vmul.f32 %v1171_v15, %v979_v43  ;;  %v7813_v33 = vpack.c.bf16 %v7310_v1, %v7308_v46  ;;  %v7407_v56 = vld [vmem:[#allocation11 + $0x5f0] sm:$0xff]  ;;  %v1283_v23 = vmul.f32 %v1187_v59, %v995_v18 }
 0x1a6   :  { %v1203_v27 = vld [vmem:[#allocation10 + $0x2c0] sm:$0xff]  ;;  %v5895_v58 = vpack.c.bf16 %v7392_v40, %v7390_v19  ;;  %v2065_v16 = vmax.f32 %v2064_v54, %v1764_v7  ;;  %v1363_v51 = vmul.f32 %v1171_v15, %v1075_v14  ;;  %v1619_v13 = vmul.f32 %v1427_v10, %v1235_v45  ;;  %v2348_v46 = vld [vmem:[#allocation11 + $0x688] sm:$0xff]  ;;  %v7412_v1 = vld [vmem:[#allocation11 + $0x5f8] sm:$0xff] }
 0x1a7   :  { %v1507_v47 = vld [vmem:[#allocation8 + $0x340] sm:$0xff]  ;;  %5880 = vmatpush3.bf16.msra.mxu1 %v7813_v33  ;;  %v7814_v38 = vpack.c.bf16 %v7314_v2, %v7312_v24  ;;  %v1890_v43 = vmax.f32 %v1889_v55, %v1684_v32  ;;  %v1299_v29 = vmul.f32 %v1203_v27, %v1011_v5  ;;  %v1379_v26 = vmul.f32 %v1187_v59, %v1091_v57  ;;  %v7416_v18 = vld [vmem:[#allocation11 + $0x578] sm:$0xff]  ;;  %v933_v19 = vld [vmem:[#allocation5 + $0x50] sm:$0xff] }
 0x1a8   :  { %v1523_v3 = vld [vmem:[#allocation8 + $0x3c0] sm:$0xff]  ;;  %v2066_v7 = vmax.f32 %v2065_v16, %v1780_v28  ;;  %v1635_v14 = vmul.f32 %v1443_v49, %v1251_v41  ;;  %v1699_v15 = vmul.f32 %v1507_v47, %v1315_v53  ;;  %v7815_v59 = vpack.c.bf16 %v7318_v35, %v7316_v37  ;;  %v934_v49 = vld [vmem:[#allocation5 + $0x58] sm:$0xff] }
 0x1a9   :  { %v1539_v44 = vld [vmem:[#allocation8 + $0x440] sm:$0xff]  ;;  %5882 = vmatprep.subr.bf16.mxu1 %v7814_v38  ;;  %v1715_v34 = vmul.f32 %v1523_v3, %v1331_v20  ;;  %v1891_v39 = vrot.slane %v1890_v43, 4  ;;  %v1875_v57 = vmax.f32 %v1603_v9, %v1619_v13  ;;  %v950_v41 = vld [vmem:[#allocation5 + $0xd8] sm:$0xff] }
 0x1aa   :  { %v1107_v31 = vld [vmem:[#allocation5 + $0x5c0] sm:$0xff]  ;;  %v1731_v45 = vmul.f32 %v1539_v44, %v1347_v21  ;;  %v2067_v24 = vrot.slane %v2066_v7, 4  ;;  %v5897_v21 = vpack.c.bf16 %v7412_v1, %v7407_v56  ;;  %v966_v35 = vld [vmem:[#allocation5 + $0x158] sm:$0xff]  ;;  %v2332_v56 = vld [vmem:[#allocation11 + $0x608] sm:$0xff] }
 0x1ab   :  { %v1459_v60 = vld [vmem:[#allocation8 + $0x1c0] sm:$0xff]  ;;  %v1395_v2 = vmul.f32 %v1203_v27, %v1107_v31  ;;  %5884 = vmatpush3.bf16.msra.mxu1 %v7815_v59  ;;  %v2051_v55 = vmax.f32 %v1699_v15, %v1715_v34  ;;  %v5899_v27 = vpack.c.bf16 %v7416_v18, %v7414_v48  ;;  %v1892_v53 = vmax.f32 %v1890_v43, %v1891_v39  ;;  %v1030_v20 = vld [vmem:[#allocation5 + $0x358] sm:$0xff]  ;;  %v965_v1 = vld [vmem:[#allocation5 + $0x150] sm:$0xff] }
 0x1ac   :  { %v1555_v50 = vld [vmem:[#allocation8 + $0x4c0] sm:$0xff]  ;;  %v1651_v54 = vmul.f32 %v1459_v60, %v1267_v12  ;;  %5886 = vmatprep.subr.bf16.mxu1 %v5885_v17  ;;  %v2068_v37 = vmax.f32 %v2066_v7, %v2067_v24  ;;  %v1126_v12 = vld [vmem:[#allocation10 + $0x58] sm:$0xff]  ;;  %v1876_v44 = vmax.f32 %v1875_v57, %v1635_v14  ;;  %v1254_v24 = vmul.f32 %v1158_v25, %v966_v35  ;;  %v1013_v18 = vld [vmem:[#allocation5 + $0x2d0] sm:$0xff] }
 0x1ad   :  { %v2347_v8 = vld [vmem:[#allocation11 + $0x680] sm:$0xff]  ;;  %v1747_v10 = vmul.f32 %v1555_v50, %v1363_v51  ;;  %v2052_v33 = vmax.f32 %v2051_v55, %v1731_v45  ;;  %v982_v31 = vld [vmem:[#allocation5 + $0x1d8] sm:$0xff]  ;;  %v1893_v22 = vrot.slane %v1892_v53, 2 }
 0x1ae   :  { %v1475_v32 = vld [vmem:[#allocation8 + $0x240] sm:$0xff]  ;;  %v5901_v16 = vpack.c.bf16 %v2348_v46, %v2347_v8  ;;  %v1142_v51 = vld [vmem:[#allocation10 + $0xd8] sm:$0xff]  ;;  %v2069_v17 = vrot.slane %v2068_v37, 2  ;;  %v1877_v43 = vmax.f32 %v1876_v44, %v1651_v54  ;;  %v1222_v8 = vmul.f32 %v1126_v12, %v934_v49 }
 0x1af   :  { %v1491_v28 = vld [vmem:[#allocation8 + $0x2c0] sm:$0xff]  ;;  %v1667_v47 = vmul.f32 %v1475_v32, %v1283_v23  ;;  %v998_v13 = vld [vmem:[#allocation5 + $0x258] sm:$0xff]  ;;  %5888 = vmatpush3.bf16.msra.mxu1 %v5887_v0  ;;  %v2053_v23 = vmax.f32 %v2052_v33, %v1747_v10  ;;  %v1318_v46 = vmul.f32 %v1126_v12, %v1030_v20  ;;  %v1894_v14 = vmax.f32 %v1892_v53, %v1893_v22 }
 0x1b0   :  { %v1571_v5 = vld [vmem:[#allocation8 + $0x540] sm:$0xff]  ;;  %5902 = vmatprep.subr.bf16.mxu0 %v5901_v16  ;;  %v1683_v60 = vmul.f32 %v1491_v28, %v1299_v29  ;;  %v1174_v38 = vld [vmem:[#allocation10 + $0x1d8] sm:$0xff]  ;;  %5890 = vmatprep.subr.bf16.mxu1 %v5889_v11  ;;  %v2070_v29 = vmax.f32 %v2068_v37, %v2069_v17  ;;  %v1238_v39 = vmul.f32 %v1142_v51, %v950_v41 }
 0x1b1   :  { %v1587_v6 = vld [vmem:[#allocation8 + $0x5c0] sm:$0xff]  ;;  %v1763_v3 = vmul.f32 %v1571_v5, %v1379_v26  ;;  %v1190_v50 = vld [vmem:[#allocation10 + $0x258] sm:$0xff]  ;;  %v1270_v4 = vmul.f32 %v1174_v38, %v982_v31  ;;  %v1895_v5 = vrot.slane %v1894_v14, 1  ;;  %v7817_v37 = vpack.c.bf16 %v7374_v63, %v7372_v36 }
 0x1b2   :  { %v1779_v9 = vmul.f32 %v1587_v6, %v1395_v2  ;;  %v1046_v7 = vld [vmem:[#allocation5 + $0x3d8] sm:$0xff]  ;;  %v1878_v2 = vmax.f32 %v1877_v43, %v1667_v47  ;;  %v1286_v0 = vmul.f32 %v1190_v50, %v998_v13  ;;  %v2071_v54 = vrot.slane %v2070_v29, 1  ;;  %v2380_v13 = vld [vmem:[#allocation11 + $0x788] sm:$0xff] }
 0x1b3   :  { %v1062_v26 = vld [vmem:[#allocation5 + $0x458] sm:$0xff]  ;;  %v2054_v61 = vmax.f32 %v2053_v23, %v1763_v3  ;;  %v1334_v6 = vmul.f32 %v1142_v51, %v1046_v7  ;;  %5892 = vmatpush3.bf16.msra.mxu1 %v7816_v30  ;;  %v1896_v35 = vmax.f32 %v1894_v14, %v1895_v5  ;;  %v1638_v51 = vmul.f32 %v1446_v42, %v1254_v24 }
 0x1b4   :  { %v1014_v15 = vld [vmem:[#allocation5 + $0x2d8] sm:$0xff]  ;;  %v1350_v10 = vmul.f32 %v1158_v25, %v1062_v26  ;;  %v1879_v11 = vmax.f32 %v1878_v2, %v1683_v60  ;;  %5894 = vmatprep.subr.bf16.mxu1 %v7817_v37  ;;  %v2072_v20 = vmax.f32 %v2070_v29, %v2071_v54  ;;  %v1654_v26 = vmul.f32 %v1462_v52, %v1270_v4  ;;  %v7447_v29 = vld [vmem:[#allocation11 + $0x600] sm:$0xff]  ;;  %v1413_v37 = vld [vmem:[#allocation8 + $0x50] sm:$0xff] }
 0x1b5   :  { %v1078_v34 = vld [vmem:[#allocation5 + $0x4d8] sm:$0xff]  ;;  %v2055_v57 = vmax.f32 %v2054_v61, %v1779_v9  ;;  %v2379_v9 = vld [vmem:[#allocation11 + $0x780] sm:$0xff]  ;;  %v5903_v48 = vpack.c.bf16 %v2332_v56, %v7447_v29 }
 0x1b6   :  { %v1206_v45 = vld [vmem:[#allocation10 + $0x2d8] sm:$0xff]  ;;  %v1366_v16 = vmul.f32 %v1174_v38, %v1078_v34  ;;  %v1880_v44 = vrot.slane %v1879_v11, 4  ;;  %v2444_v25 = vsel %vm880_vm0, %v2072_v20, %v1896_v35  ;;  %v949_v34 = vld [vmem:[#allocation5 + $0xd0] sm:$0xff] }
 0x1b7   :  { %v1414_v32 = vld [vmem:[#allocation8 + $0x58] sm:$0xff]  ;;  %v1302_v55 = vmul.f32 %v1206_v45, %v1014_v15  ;;  %v2056_v33 = vrot.slane %v2055_v57, 4  ;;  %5896 = vmatpush3.bf16.msra.mxu1 %v5895_v58  ;;  %2811 = vmatprep.mubr.f32.mxu0 %v2444_v25  ;;  %v5933_v15 = vpack.c.bf16 %v2380_v13, %v2379_v9  ;;  %v1109_v13 = vld [vmem:[#allocation5 + $0x5d0] sm:$0xff] }
 0x1b8   :  { %v1430_v28 = vld [vmem:[#allocation8 + $0xd8] sm:$0xff]  ;;  %v1606_v47 = vmul.f32 %v1414_v32, %v1222_v8  ;;  %v1881_v36 = vmax.f32 %v1879_v11, %v1880_v44  ;;  %5898 = vmatprep.subr.bf16.mxu1 %v5897_v21  ;;  %v1157_v21 = vld [vmem:[#allocation10 + $0x150] sm:$0xff] }
 0x1b9   :  { %v1094_v59 = vld [vmem:[#allocation5 + $0x558] sm:$0xff]  ;;  %v1622_v3 = vmul.f32 %v1430_v28, %v1238_v39  ;;  %v2057_v63 = vmax.f32 %v2055_v57, %v2056_v33  ;;  %v1141_v39 = vld [vmem:[#allocation10 + $0xd0] sm:$0xff] }
 0x1ba   :  { %v1510_v49 = vld [vmem:[#allocation8 + $0x358] sm:$0xff]  ;;  %v1382_v62 = vmul.f32 %v1190_v50, %v1094_v59  ;;  %v1882_v40 = vrot.slane %v1881_v36, 2  ;;  %v981_v59 = vld [vmem:[#allocation5 + $0x1d0] sm:$0xff] }
 0x1bb   :  { %v1526_v41 = vld [vmem:[#allocation8 + $0x3d8] sm:$0xff]  ;;  %v1702_v22 = vmul.f32 %v1510_v49, %v1318_v46  ;;  %v1908_v46 = vmax.f32 %v1606_v47, %v1622_v3  ;;  %v2058_v58 = vrot.slane %v2057_v63, 2  ;;  %5900 = vmatpush3.bf16.msra.mxu1 %v5899_v27  ;;  %v1045_v11 = vld [vmem:[#allocation5 + $0x3d0] sm:$0xff]  ;;  %v1237_v49 = vmul.f32 %v1141_v39, %v949_v34 }
 0x1bc   :  { %v1542_v53 = vld [vmem:[#allocation8 + $0x458] sm:$0xff]  ;;  %v1718_v17 = vmul.f32 %v1526_v41, %v1334_v6  ;;  %v1883_v4 = vmax.f32 %v1881_v36, %v1882_v40  ;;  %v1029_v6 = vld [vmem:[#allocation5 + $0x350] sm:$0xff]  ;;  %5934 = vmatprep.subr.bf16.mxu1 %v5933_v15  ;;  %v1253_v27 = vmul.f32 %v1157_v21, %v965_v1 }
 0x1bd   :  { %v1110_v12 = vld [vmem:[#allocation5 + $0x5d8] sm:$0xff]  ;;  %v1734_v60 = vmul.f32 %v1542_v53, %v1350_v10  ;;  %v1909_v61 = vmax.f32 %v1908_v46, %v1638_v51  ;;  %v2059_v28 = vmax.f32 %v2057_v63, %v2058_v58  ;;  %v1173_v10 = vld [vmem:[#allocation10 + $0x1d0] sm:$0xff]  ;;  %v1333_v51 = vmul.f32 %v1141_v39, %v1045_v11  ;;  %v2336_v11 = vld [vmem:[#allocation11 + $0x628] sm:$0xff] }
 0x1be   :  { %v1558_v31 = vld [vmem:[#allocation8 + $0x4d8] sm:$0xff]  ;;  %v1398_v38 = vmul.f32 %v1206_v45, %v1110_v12  ;;  %v2084_v14 = vmax.f32 %v1702_v22, %v1718_v17  ;;  %v1125_v45 = vld [vmem:[#allocation10 + $0x50] sm:$0xff]  ;;  %v1884_v41 = vrot.slane %v1883_v4, 1  ;;  %v1269_v44 = vmul.f32 %v1173_v10, %v981_v59  ;;  %v2352_v59 = vld [vmem:[#allocation11 + $0x6a8] sm:$0xff] }
 0x1bf   :  { %v1478_v43 = vld [vmem:[#allocation8 + $0x258] sm:$0xff]  ;;  %v1750_v8 = vmul.f32 %v1558_v31, %v1366_v16  ;;  %v1910_v42 = vmax.f32 %v1909_v61, %v1654_v26  ;;  %v1061_v57 = vld [vmem:[#allocation5 + $0x450] sm:$0xff]  ;;  %v1221_v16 = vmul.f32 %v1125_v45, %v933_v19  ;;  %v2060_v53 = vrot.slane %v2059_v28, 1 }
 0x1c0   :  { %v1494_v50 = vld [vmem:[#allocation8 + $0x2d8] sm:$0xff]  ;;  %v1670_v24 = vmul.f32 %v1478_v43, %v1286_v0  ;;  %v2085_v32 = vmax.f32 %v2084_v14, %v1734_v60  ;;  %v997_v0 = vld [vmem:[#allocation5 + $0x250] sm:$0xff]  ;;  %v1317_v33 = vmul.f32 %v1125_v45, %v1029_v6  ;;  %v1349_v25 = vmul.f32 %v1157_v21, %v1061_v57 }
 0x1c1   :  { %v1574_v23 = vld [vmem:[#allocation8 + $0x558] sm:$0xff]  ;;  %v1686_v5 = vmul.f32 %v1494_v50, %v1302_v55  ;;  %v1429_v55 = vld [vmem:[#allocation8 + $0xd0] sm:$0xff]  ;;  %v2061_v52 = vmax.f32 %v2059_v28, %v2060_v53 }
 0x1c2   :  { %v1590_v7 = vld [vmem:[#allocation8 + $0x5d8] sm:$0xff]  ;;  %v1766_v2 = vmul.f32 %v1574_v23, %v1382_v62  ;;  %v2086_v30 = vmax.f32 %v2085_v32, %v1750_v8  ;;  %v1911_v35 = vmax.f32 %v1910_v42, %v1670_v24  ;;  %v1077_v12 = vld [vmem:[#allocation5 + $0x4d0] sm:$0xff]  ;;  %v1885_v62 = vmax.f32 %v1883_v4, %v1884_v41 }
 0x1c3   :  { %v1782_v54 = vmul.f32 %v1590_v7, %v1398_v38  ;;  %v1189_v47 = vld [vmem:[#allocation10 + $0x250] sm:$0xff]  ;;  %v1605_v38 = vmul.f32 %v1413_v37, %v1221_v16  ;;  %v1621_v43 = vmul.f32 %v1429_v55, %v1237_v49  ;;  %v1365_v26 = vmul.f32 %v1173_v10, %v1077_v12  ;;  %v2350_v15 = vld [vmem:[#allocation11 + $0x698] sm:$0xff] }
 0x1c4   :  { %v2087_v20 = vmax.f32 %v2086_v30, %v1766_v2  ;;  %v1205_v3 = vld [vmem:[#allocation10 + $0x2d0] sm:$0xff]  ;;  %v1912_v60 = vmax.f32 %v1911_v35, %v1686_v5  ;;  %v2443_v50 = vsel %vm880_vm0, %v2061_v52, %v1885_v62  ;;  %v1285_v23 = vmul.f32 %v1189_v47, %v997_v0  ;;  %v2334_v45 = vld [vmem:[#allocation11 + $0x618] sm:$0xff]  ;;  %v2335_v0 = vld [vmem:[#allocation11 + $0x620] sm:$0xff] }
 0x1c5   :  { %v1093_v31 = vld [vmem:[#allocation5 + $0x550] sm:$0xff]  ;;  %v1301_v7 = vmul.f32 %v1205_v3, %v1013_v18  ;;  %2812 = vmatmul.mubr.f32.vlgmr.msra.gmra.mrb[4].mxu0 %v2443_v50  ;;  %v1397_v24 = vmul.f32 %v1205_v3, %v1109_v13  ;;  %v1897_v5 = vmax.f32 %v1605_v38, %v1621_v43  ;;  %v2354_v18 = vld [vmem:[#allocation11 + $0x6b8] sm:$0xff]  ;;  %v5911_v3 = vpack.c.bf16 %v2336_v11, %v2335_v0  ;;  %v952_v0 = vld [vmem:[#allocation5 + $0xe8] sm:$0xff] }
 0x1c6   :  { %v1445_v22 = vld [vmem:[#allocation8 + $0x150] sm:$0xff]  ;;  %v2088_v9 = vmax.f32 %v2087_v20, %v1782_v54  ;;  %v1913_v29 = vrot.slane %v1912_v60, 4  ;;  %5904 = vmatpush3.bf16.msra.mxu0 %v5903_v48  ;;  %v1381_v39 = vmul.f32 %v1189_v47, %v1093_v31  ;;  %v2351_v54 = vld [vmem:[#allocation11 + $0x6a0] sm:$0xff]  ;;  %v2338_v31 = vld [vmem:[#allocation11 + $0x638] sm:$0xff] }
 0x1c7   :  { %v1509_v17 = vld [vmem:[#allocation8 + $0x350] sm:$0xff]  ;;  %v1637_v40 = vmul.f32 %v1445_v22, %v1253_v27  ;;  %v5909_v35 = vpack.c.bf16 %v2352_v59, %v2351_v54  ;;  %v2359_v54 = vld [vmem:[#allocation11 + $0x6e0] sm:$0xff]  ;;  %v2360_v59 = vld [vmem:[#allocation11 + $0x6e8] sm:$0xff] }
 0x1c8   :  { %v1525_v36 = vld [vmem:[#allocation8 + $0x3d0] sm:$0xff]  ;;  %v2089_v19 = vrot.slane %v2088_v9, 4  ;;  %v1701_v58 = vmul.f32 %v1509_v17, %v1317_v33  ;;  %v1914_v1 = vmax.f32 %v1912_v60, %v1913_v29  ;;  %v2355_v17 = vld [vmem:[#allocation11 + $0x6c0] sm:$0xff]  ;;  %v2356_v60 = vld [vmem:[#allocation11 + $0x6c8] sm:$0xff] }
 0x1c9   :  { %v1541_v63 = vld [vmem:[#allocation8 + $0x450] sm:$0xff]  ;;  %v1717_v32 = vmul.f32 %v1525_v36, %v1333_v51  ;;  %v1898_v53 = vmax.f32 %v1897_v5, %v1637_v40  ;;  %v5917_v50 = vpack.c.bf16 %v2356_v60, %v2355_v17  ;;  %v7457_v40 = vld [vmem:[#allocation11 + $0x708] sm:$0xff] }
 0x1ca   :  { %v1461_v8 = vld [vmem:[#allocation8 + $0x1d0] sm:$0xff]  ;;  %v1733_v56 = vmul.f32 %v1541_v63, %v1349_v25  ;;  %v2090_v21 = vmax.f32 %v2088_v9, %v2089_v19  ;;  %v1915_v57 = vrot.slane %v1914_v1, 2  ;;  %v7455_v19 = vld [vmem:[#allocation11 + $0x700] sm:$0xff]  ;;  %v7473_v5 = vld [vmem:[#allocation11 + $0x728] sm:$0xff] }
 0x1cb   :  { %v1557_v46 = vld [vmem:[#allocation8 + $0x4d0] sm:$0xff]  ;;  %v1653_v28 = vmul.f32 %v1461_v8, %v1269_v44  ;;  %v2073_v10 = vmax.f32 %v1701_v58, %v1717_v32  ;;  %v7469_v32 = vld [vmem:[#allocation11 + $0x7a8] sm:$0xff] }
 0x1cc   :  { %v2349_v14 = vld [vmem:[#allocation11 + $0x690] sm:$0xff]  ;;  %v1749_v6 = vmul.f32 %v1557_v46, %v1365_v26  ;;  %v2091_v16 = vrot.slane %v2090_v21, 2  ;;  %v1916_v20 = vmax.f32 %v1914_v1, %v1915_v57  ;;  %v968_v11 = vld [vmem:[#allocation5 + $0x168] sm:$0xff] }
 0x1cd   :  { %v2333_v34 = vld [vmem:[#allocation11 + $0x610] sm:$0xff]  ;;  %v5905_v42 = vpack.c.bf16 %v2350_v15, %v2349_v14  ;;  %v2074_v55 = vmax.f32 %v2073_v10, %v1733_v56  ;;  %v1899_v47 = vmax.f32 %v1898_v53, %v1653_v28  ;;  %v2358_v14 = vld [vmem:[#allocation11 + $0x6d8] sm:$0xff]  ;;  %v7471_v28 = vld [vmem:[#allocation11 + $0x720] sm:$0xff] }
 0x1ce   :  { %v1477_v2 = vld [vmem:[#allocation8 + $0x250] sm:$0xff]  ;;  %v5907_v30 = vpack.c.bf16 %v2334_v45, %v2333_v34  ;;  %v2092_v12 = vmax.f32 %v2090_v21, %v2091_v16  ;;  %v1917_v51 = vrot.slane %v1916_v20, 1  ;;  %v7461_v34 = vld [vmem:[#allocation11 + $0x798] sm:$0xff]  ;;  %v7475_v10 = vld [vmem:[#allocation11 + $0x660] sm:$0xff]  ;;  %v5935_v16 = vpack.c.bf16 %v7457_v40, %v7455_v19 }
 0x1cf   :  { %v1493_v61 = vld [vmem:[#allocation8 + $0x2d0] sm:$0xff]  ;;  %v1669_v41 = vmul.f32 %v1477_v2, %v1285_v23  ;;  %5906 = vmatprep.subr.bf16.mxu0 %v5905_v42  ;;  %v2075_v33 = vmax.f32 %v2074_v55, %v1749_v6  ;;  %v2339_v23 = vld [vmem:[#allocation11 + $0x640] sm:$0xff]  ;;  %v2342_v21 = vld [vmem:[#allocation11 + $0x658] sm:$0xff] }
 0x1d0   :  { %v1573_v4 = vld [vmem:[#allocation8 + $0x550] sm:$0xff]  ;;  %v1685_v27 = vmul.f32 %v1493_v61, %v1301_v7  ;;  %5908 = vmatpush3.bf16.msra.mxu0 %v5907_v30  ;;  %v2093_v25 = vrot.slane %v2092_v12, 1  ;;  %v1918_v13 = vmax.f32 %v1916_v20, %v1917_v51  ;;  %v2340_v7 = vld [vmem:[#allocation11 + $0x648] sm:$0xff]  ;;  %v7467_v61 = vld [vmem:[#allocation11 + $0x7a0] sm:$0xff] }
 0x1d1   :  { %v1589_v49 = vld [vmem:[#allocation8 + $0x5d0] sm:$0xff]  ;;  %v1765_v37 = vmul.f32 %v1573_v4, %v1381_v39  ;;  %5910 = vmatprep.subr.bf16.mxu0 %v5909_v35  ;;  %v1900_v22 = vmax.f32 %v1899_v47, %v1669_v41  ;;  %v7465_v39 = vld [vmem:[#allocation11 + $0x718] sm:$0xff]  ;;  %v7477_v42 = vld [vmem:[#allocation11 + $0x668] sm:$0xff]  ;;  %v5925_v47 = vpack.c.bf16 %v2360_v59, %v2359_v54 }
 0x1d2   :  { %v2353_v48 = vld [vmem:[#allocation11 + $0x6b0] sm:$0xff]  ;;  %v1781_v44 = vmul.f32 %v1589_v49, %v1397_v24  ;;  %v2094_v36 = vmax.f32 %v2092_v12, %v2093_v25  ;;  %v5919_v24 = vpack.c.bf16 %v2340_v7, %v2339_v23  ;;  %v936_v30 = vld [vmem:[#allocation5 + $0x68] sm:$0xff]  ;;  %v7483_v53 = vld [vmem:[#allocation11 + $0x6f8] sm:$0xff]  ;;  %v5927_v7 = vpack.c.bf16 %v7477_v42, %v7475_v10 }
 0x1d3   :  { %v5913_v62 = vpack.c.bf16 %v2354_v18, %v2353_v48  ;;  %v2337_v52 = vld [vmem:[#allocation11 + $0x630] sm:$0xff]  ;;  %v2076_v9 = vmax.f32 %v2075_v33, %v1765_v37  ;;  %v1901_v63 = vmax.f32 %v1900_v22, %v1685_v27  ;;  %v7487_v18 = vld [vmem:[#allocation11 + $0x678] sm:$0xff]  ;;  %v984_v27 = vld [vmem:[#allocation5 + $0x1e8] sm:$0xff] }
 0x1d4   :  { %5912 = vmatpush3.bf16.msra.mxu0 %v5911_v3  ;;  %v5915_v38 = vpack.c.bf16 %v2338_v31, %v2337_v52  ;;  %v2446_v26 = vsel %vm880_vm0, %v2094_v36, %v1918_v13  ;;  %v2357_v46 = vld [vmem:[#allocation11 + $0x6d0] sm:$0xff]  ;;  %v1032_v37 = vld [vmem:[#allocation5 + $0x368] sm:$0xff]  ;;  %v5941_v31 = vpack.c.bf16 %v7469_v32, %v7467_v61  ;;  %v5943_v13 = vpack.c.bf16 %v7473_v5, %v7471_v28  ;;  %v7511_v42 = vld [vmem:[#allocation11 + $0x7c0] sm:$0xff] }
 0x1d5   :  { %v2077_v43 = vmax.f32 %v2076_v9, %v1781_v44  ;;  %5914 = vmatprep.subr.bf16.mxu0 %v5913_v62  ;;  %v1902_v8 = vrot.slane %v1901_v63, 4  ;;  %2881 = vmatprep.mubr.f32.mxu1 %v2446_v26  ;;  %v7459_v15 = vld [vmem:[#allocation11 + $0x790] sm:$0xff]  ;;  %v5921_v56 = vpack.c.bf16 %v2358_v14, %v2357_v46  ;;  %v1048_v55 = vld [vmem:[#allocation5 + $0x3e8] sm:$0xff]  ;;  %v7532_v19 = vld [vmem:[#allocation11 + $0x7d8] sm:$0xff] }
 0x1d6   :  { %v7463_v45 = vld [vmem:[#allocation11 + $0x710] sm:$0xff]  ;;  %v5937_v20 = vpack.c.bf16 %v7461_v34, %v7459_v15  ;;  %v1000_v3 = vld [vmem:[#allocation5 + $0x268] sm:$0xff]  ;;  %v1047_v15 = vld [vmem:[#allocation5 + $0x3e0] sm:$0xff] }
 0x1d7   :  { %v2078_v29 = vrot.slane %v2077_v43, 4  ;;  %v1903_v58 = vmax.f32 %v1901_v63, %v1902_v8  ;;  %v2341_v1 = vld [vmem:[#allocation11 + $0x650] sm:$0xff]  ;;  %v5939_v12 = vpack.c.bf16 %v7465_v39, %v7463_v45  ;;  %v1064_v44 = vld [vmem:[#allocation5 + $0x468] sm:$0xff]  ;;  %v1447_v45 = vld [vmem:[#allocation8 + $0x160] sm:$0xff] }
 0x1d8   :  { %5916 = vmatpush3.bf16.msra.mxu0 %v5915_v38  ;;  %v5923_v49 = vpack.c.bf16 %v2342_v21, %v2341_v1  ;;  %v7481_v41 = vld [vmem:[#allocation11 + $0x6f0] sm:$0xff]  ;;  %v1128_v33 = vld [vmem:[#allocation10 + $0x68] sm:$0xff]  ;;  %v7505_v1 = vld [vmem:[#allocation11 + $0x738] sm:$0xff] }
 0x1d9   :  { %v2079_v2 = vmax.f32 %v2077_v43, %v2078_v29  ;;  %5918 = vmatprep.subr.bf16.mxu0 %v5917_v50  ;;  %v1904_v4 = vrot.slane %v1903_v58, 2  ;;  %v7485_v48 = vld [vmem:[#allocation11 + $0x670] sm:$0xff]  ;;  %v1144_v62 = vld [vmem:[#allocation10 + $0xe8] sm:$0xff]  ;;  %v1224_v17 = vmul.f32 %v1128_v33, %v936_v30  ;;  %v1320_v38 = vmul.f32 %v1128_v33, %v1032_v37  ;;  %v1527_v61 = vld [vmem:[#allocation8 + $0x3e0] sm:$0xff] }
 0x1da   :  { %v1080_v51 = vld [vmem:[#allocation5 + $0x4e8] sm:$0xff]  ;;  %v1240_v60 = vmul.f32 %v1144_v62, %v952_v0  ;;  %v1336_v46 = vmul.f32 %v1144_v62, %v1048_v55  ;;  %v5929_v21 = vpack.c.bf16 %v7483_v53, %v7481_v41  ;;  %v7515_v0 = vld [vmem:[#allocation11 + $0x740] sm:$0xff]  ;;  %v7534_v40 = vld [vmem:[#allocation11 + $0x750] sm:$0xff] }
 0x1db   :  { %v2080_v6 = vrot.slane %v2079_v2, 2  ;;  %v1905_v57 = vmax.f32 %v1903_v58, %v1904_v4  ;;  %v1160_v25 = vld [vmem:[#allocation10 + $0x168] sm:$0xff]  ;;  %v5931_v4 = vpack.c.bf16 %v7487_v18, %v7485_v48  ;;  %v7552_v32 = vld [vmem:[#allocation11 + $0x7e0] sm:$0xff] }
 0x1dc   :  { %5920 = vmatpush3.bf16.msra.mxu0 %v5919_v24  ;;  %v1176_v22 = vld [vmem:[#allocation10 + $0x1e8] sm:$0xff]  ;;  %v1256_v63 = vmul.f32 %v1160_v25, %v968_v11  ;;  %v1352_v14 = vmul.f32 %v1160_v25, %v1064_v44  ;;  %v7499_v24 = vld [vmem:[#allocation11 + $0x7b0] sm:$0xff]  ;;  %v1479_v28 = vld [vmem:[#allocation8 + $0x260] sm:$0xff] }
 0x1dd   :  { %v2081_v35 = vmax.f32 %v2079_v2, %v2080_v6  ;;  %5922 = vmatprep.subr.bf16.mxu0 %v5921_v56  ;;  %v1906_v52 = vrot.slane %v1905_v57, 1  ;;  %v1192_v36 = vld [vmem:[#allocation10 + $0x268] sm:$0xff]  ;;  %v7501_v2 = vld [vmem:[#allocation11 + $0x7b8] sm:$0xff]  ;;  %v7503_v56 = vld [vmem:[#allocation11 + $0x730] sm:$0xff]  ;;  %v1272_v59 = vmul.f32 %v1176_v22, %v984_v27 }
 0x1de   :  { %v1416_v43 = vld [vmem:[#allocation8 + $0x68] sm:$0xff] }
 0x1df   :  { %v2082_v9 = vrot.slane %v2081_v35, 1  ;;  %v1432_v50 = vld [vmem:[#allocation8 + $0xe8] sm:$0xff]  ;;  %v1907_v23 = vmax.f32 %v1905_v57, %v1906_v52  ;;  %v1288_v57 = vmul.f32 %v1192_v36, %v1000_v3 }
 0x1e0   :  { %5924 = vmatpush3.bf16.msra.mxu0 %v5923_v49  ;;  %v1016_v26 = vld [vmem:[#allocation5 + $0x2e8] sm:$0xff]  ;;  %v1368_v49 = vmul.f32 %v1176_v22, %v1080_v51  ;;  %v1624_v41 = vmul.f32 %v1432_v50, %v1240_v60  ;;  %v951_v50 = vld [vmem:[#allocation5 + $0xe0] sm:$0xff] }
 0x1e1   :  { %v1208_v8 = vld [vmem:[#allocation10 + $0x2e8] sm:$0xff]  ;;  %v2083_v58 = vmax.f32 %v2081_v35, %v2082_v9  ;;  %5926 = vmatprep.subr.bf16.mxu0 %v5925_v47  ;;  %v1608_v35 = vmul.f32 %v1416_v43, %v1224_v17  ;;  %v935_v43 = vld [vmem:[#allocation5 + $0x60] sm:$0xff] }
 0x1e2   :  { %v1448_v29 = vld [vmem:[#allocation8 + $0x168] sm:$0xff]  ;;  %v1304_v18 = vmul.f32 %v1208_v8, %v1016_v26 }
 0x1e3   :  { %v1096_v54 = vld [vmem:[#allocation5 + $0x568] sm:$0xff]  ;;  %v2445_v53 = vsel %vm880_vm0, %v2083_v58, %v1907_v23  ;;  %v1640_v44 = vmul.f32 %v1448_v29, %v1256_v63  ;;  %v1930_v9 = vmax.f32 %v1608_v35, %v1624_v41  ;;  %v967_v63 = vld [vmem:[#allocation5 + $0x160] sm:$0xff]  ;;  %v7530_v23 = vld [vmem:[#allocation11 + $0x7d0] sm:$0xff] }
 0x1e4   :  { %v1512_v6 = vld [vmem:[#allocation8 + $0x368] sm:$0xff]  ;;  %2882 = vmatmul.mubr.f32.vlgmr.msra.gmra.mrb[4].mxu1 %v2445_v53  ;;  %5928 = vmatpush3.bf16.msra.mxu0 %v5927_v7  ;;  %v1384_v62 = vmul.f32 %v1192_v36, %v1096_v54  ;;  %v5945_v36 = vpack.c.bf16 %v7501_v2, %v7499_v24  ;;  %v1063_v58 = vld [vmem:[#allocation5 + $0x460] sm:$0xff]  ;;  %v5953_v39 = vpack.c.bf16 %v7532_v19, %v7530_v23  ;;  %v1514_v23 = vld [vmem:[#allocation8 + $0x378] sm:$0xff] }
 0x1e5   :  { %v1528_v10 = vld [vmem:[#allocation8 + $0x3e8] sm:$0xff]  ;;  %v1704_v33 = vmul.f32 %v1512_v6, %v1320_v38  ;;  %5936 = vmatpush3.bf16.msra.mxu1 %v5935_v16  ;;  %5930 = vmatprep.subr.bf16.mxu0 %v5929_v21  ;;  %v5947_v38 = vpack.c.bf16 %v7505_v1, %v7503_v56  ;;  %v7536_v16 = vld [vmem:[#allocation11 + $0x758] sm:$0xff]  ;;  %v1931_v29 = vmax.f32 %v1930_v9, %v1640_v44  ;;  %v1127_v21 = vld [vmem:[#allocation10 + $0x60] sm:$0xff] }
 0x1e6   :  { %v7513_v30 = vld [vmem:[#allocation11 + $0x7c8] sm:$0xff]  ;;  %v1720_v51 = vmul.f32 %v1528_v10, %v1336_v46  ;;  %5938 = vmatprep.subr.bf16.mxu1 %v5937_v20  ;;  %v1031_v46 = vld [vmem:[#allocation5 + $0x360] sm:$0xff]  ;;  %v1146_v1 = vld [vmem:[#allocation10 + $0xf8] sm:$0xff] }
 0x1e7   :  { %v1112_v11 = vld [vmem:[#allocation5 + $0x5e8] sm:$0xff]  ;;  %v5949_v34 = vpack.c.bf16 %v7513_v30, %v7511_v42  ;;  %v1143_v54 = vld [vmem:[#allocation10 + $0xe0] sm:$0xff]  ;;  %v1034_v30 = vld [vmem:[#allocation5 + $0x378] sm:$0xff] }
 0x1e8   :  { %v1464_v37 = vld [vmem:[#allocation8 + $0x1e8] sm:$0xff]  ;;  %v1400_v17 = vmul.f32 %v1208_v8, %v1112_v11  ;;  %v2106_v26 = vmax.f32 %v1704_v33, %v1720_v51  ;;  %v983_v8 = vld [vmem:[#allocation5 + $0x1e0] sm:$0xff]  ;;  %5932 = vmatpush3.bf16.msra.mxu0 %v5931_v4  ;;  %v1319_v51 = vmul.f32 %v1127_v21, %v1031_v46  ;;  %v1530_v19 = vld [vmem:[#allocation8 + $0x3f8] sm:$0xff] }
 0x1e9   :  { %v1544_v55 = vld [vmem:[#allocation8 + $0x468] sm:$0xff]  ;;  %v1656_v60 = vmul.f32 %v1464_v37, %v1272_v59  ;;  %v999_v10 = vld [vmem:[#allocation5 + $0x260] sm:$0xff]  ;;  %v1223_v37 = vmul.f32 %v1127_v21, %v935_v43  ;;  %5940 = vmatpush3.bf16.msra.mxu1 %v5939_v12  ;;  %v5955_v12 = vpack.c.bf16 %v7536_v16, %v7534_v40 }
 0x1ea   :  { %v7518_v48 = vld [vmem:[#allocation11 + $0x748] sm:$0xff]  ;;  %v1736_v22 = vmul.f32 %v1544_v55, %v1352_v14  ;;  %v1159_v11 = vld [vmem:[#allocation10 + $0x160] sm:$0xff]  ;;  %v1239_v55 = vmul.f32 %v1143_v54, %v951_v50  ;;  %5942 = vmatprep.subr.bf16.mxu1 %v5941_v31 }
 0x1eb   :  { %v1480_v27 = vld [vmem:[#allocation8 + $0x268] sm:$0xff]  ;;  %v5951_v20 = vpack.c.bf16 %v7518_v48, %v7515_v0  ;;  %v1932_v53 = vmax.f32 %v1931_v29, %v1656_v60  ;;  %v1431_v44 = vld [vmem:[#allocation8 + $0xe0] sm:$0xff]  ;;  %v1351_v9 = vmul.f32 %v1159_v11, %v1063_v58  ;;  %v1114_v0 = vld [vmem:[#allocation5 + $0x5f8] sm:$0xff] }
 0x1ec   :  { %v1560_v47 = vld [vmem:[#allocation8 + $0x4e8] sm:$0xff]  ;;  %v1672_v14 = vmul.f32 %v1480_v27, %v1288_v57  ;;  %v2107_v6 = vmax.f32 %v2106_v26, %v1736_v22  ;;  %v1079_v57 = vld [vmem:[#allocation5 + $0x4e0] sm:$0xff]  ;;  %v1255_v27 = vmul.f32 %v1159_v11, %v967_v63  ;;  %v1335_v22 = vmul.f32 %v1143_v54, %v1047_v15 }
 0x1ed   :  { %v1496_v52 = vld [vmem:[#allocation8 + $0x2e8] sm:$0xff]  ;;  %v1752_v7 = vmul.f32 %v1560_v47, %v1368_v49  ;;  %v1175_v49 = vld [vmem:[#allocation10 + $0x1e0] sm:$0xff]  ;;  %v1623_v26 = vmul.f32 %v1431_v44, %v1239_v55  ;;  %5944 = vmatpush3.bf16.msra.mxu1 %v5943_v13  ;;  %v938_v44 = vld [vmem:[#allocation5 + $0x78] sm:$0xff] }
 0x1ee   :  { %v1576_v25 = vld [vmem:[#allocation8 + $0x568] sm:$0xff]  ;;  %v1688_v35 = vmul.f32 %v1496_v52, %v1304_v18  ;;  %v1415_v47 = vld [vmem:[#allocation8 + $0x60] sm:$0xff]  ;;  %v1933_v18 = vmax.f32 %v1932_v53, %v1672_v14  ;;  %v1367_v43 = vmul.f32 %v1175_v49, %v1079_v57  ;;  %v1639_v21 = vmul.f32 %v1447_v45, %v1255_v27  ;;  %5946 = vmatprep.subr.bf16.mxu1 %v5945_v36 }
 0x1ef   :  { %v1592_v3 = vld [vmem:[#allocation8 + $0x5e8] sm:$0xff]  ;;  %v1768_v59 = vmul.f32 %v1576_v25, %v1384_v62  ;;  %v2108_v4 = vmax.f32 %v2107_v6, %v1752_v7  ;;  %v1015_v33 = vld [vmem:[#allocation5 + $0x2e0] sm:$0xff]  ;;  %v1607_v7 = vmul.f32 %v1415_v47, %v1223_v37  ;;  %v1719_v13 = vmul.f32 %v1527_v61, %v1335_v22  ;;  %v986_v22 = vld [vmem:[#allocation5 + $0x1f8] sm:$0xff] }
 0x1f0   :  { %v1784_v41 = vmul.f32 %v1592_v3, %v1400_v17  ;;  %v1095_v62 = vld [vmem:[#allocation5 + $0x560] sm:$0xff]  ;;  %v1271_v3 = vmul.f32 %v1175_v49, %v983_v8  ;;  %v7557_v46 = vld [vmem:[#allocation11 + $0x7e8] sm:$0xff]  ;;  %v1934_v8 = vmax.f32 %v1933_v18, %v1688_v35  ;;  %v7568_v49 = vld [vmem:[#allocation11 + $0x7f8] sm:$0xff] }
 0x1f1   :  { %v1191_v25 = vld [vmem:[#allocation10 + $0x260] sm:$0xff]  ;;  %v2109_v31 = vmax.f32 %v2108_v4, %v1768_v59  ;;  %v7564_v54 = vld [vmem:[#allocation11 + $0x768] sm:$0xff]  ;;  %v7566_v59 = vld [vmem:[#allocation11 + $0x7f0] sm:$0xff]  ;;  %v1919_v36 = vmax.f32 %v1607_v7, %v1623_v26  ;;  %5948 = vmatpush3.bf16.msra.mxu1 %v5947_v38 }
 0x1f2   :  { %v1111_v52 = vld [vmem:[#allocation5 + $0x5e0] sm:$0xff]  ;;  %v1287_v14 = vmul.f32 %v1191_v25, %v999_v10  ;;  %v1383_v29 = vmul.f32 %v1191_v25, %v1095_v62  ;;  %v1935_v37 = vrot.slane %v1934_v8, 4  ;;  %v954_v4 = vld [vmem:[#allocation5 + $0xf8] sm:$0xff]  ;;  %5950 = vmatprep.subr.bf16.mxu1 %v5949_v34 }
 0x1f3   :  { %v1511_v17 = vld [vmem:[#allocation8 + $0x360] sm:$0xff]  ;;  %v2110_v6 = vmax.f32 %v2109_v31, %v1784_v41  ;;  %v5957_v41 = vpack.c.bf16 %v7557_v46, %v7552_v32  ;;  %v1162_v38 = vld [vmem:[#allocation10 + $0x178] sm:$0xff] }
 0x1f4   :  { %v1207_v60 = vld [vmem:[#allocation10 + $0x2e0] sm:$0xff]  ;;  %v1703_v5 = vmul.f32 %v1511_v17, %v1319_v51  ;;  %v1936_v62 = vmax.f32 %v1934_v8, %v1935_v37  ;;  %v1671_v25 = vmul.f32 %v1479_v28, %v1287_v14  ;;  %v970_v51 = vld [vmem:[#allocation5 + $0x178] sm:$0xff]  ;;  %v5961_v17 = vpack.c.bf16 %v7568_v49, %v7566_v59  ;;  %v1049_v59 = vld [vmem:[#allocation5 + $0x3f0] sm:$0xff] }
 0x1f5   :  { %v1463_v50 = vld [vmem:[#allocation8 + $0x1e0] sm:$0xff]  ;;  %v1303_v10 = vmul.f32 %v1207_v60, %v1015_v33  ;;  %v1399_v55 = vmul.f32 %v1207_v60, %v1111_v52  ;;  %v2111_v27 = vrot.slane %v2110_v6, 4  ;;  %v1920_v52 = vmax.f32 %v1919_v36, %v1639_v21  ;;  %v1002_v60 = vld [vmem:[#allocation5 + $0x278] sm:$0xff]  ;;  %5952 = vmatpush3.bf16.msra.mxu1 %v5951_v20  ;;  %v1065_v49 = vld [vmem:[#allocation5 + $0x470] sm:$0xff] }
 0x1f6   :  { %v1543_v63 = vld [vmem:[#allocation8 + $0x460] sm:$0xff]  ;;  %v1655_v57 = vmul.f32 %v1463_v50, %v1271_v3  ;;  %v2095_v47 = vmax.f32 %v1703_v5, %v1719_v13  ;;  %v1178_v3 = vld [vmem:[#allocation10 + $0x1f8] sm:$0xff]  ;;  %v1937_v61 = vrot.slane %v1936_v62, 2  ;;  %5954 = vmatprep.subr.bf16.mxu1 %v5953_v39 }
 0x1f7   :  { %v7559_v15 = vld [vmem:[#allocation11 + $0x760] sm:$0xff]  ;;  %v1735_v11 = vmul.f32 %v1543_v63, %v1351_v9  ;;  %v1130_v9 = vld [vmem:[#allocation10 + $0x78] sm:$0xff]  ;;  %v2112_v45 = vmax.f32 %v2110_v6, %v2111_v27  ;;  %v1274_v21 = vmul.f32 %v1178_v3, %v986_v22 }
 0x1f8   :  { %v1559_v58 = vld [vmem:[#allocation8 + $0x4e0] sm:$0xff]  ;;  %v5959_v33 = vpack.c.bf16 %v7564_v54, %v7559_v15  ;;  %v1194_v50 = vld [vmem:[#allocation10 + $0x278] sm:$0xff]  ;;  %v1921_v7 = vmax.f32 %v1920_v52, %v1655_v57  ;;  %v1226_v46 = vmul.f32 %v1130_v9, %v938_v44  ;;  %v1938_v8 = vmax.f32 %v1936_v62, %v1937_v61 }
 0x1f9   :  { %v1495_v35 = vld [vmem:[#allocation8 + $0x2e0] sm:$0xff]  ;;  %v1751_v2 = vmul.f32 %v1559_v58, %v1367_v43  ;;  %v2096_v56 = vmax.f32 %v2095_v47, %v1735_v11  ;;  %v1018_v43 = vld [vmem:[#allocation5 + $0x2f8] sm:$0xff]  ;;  %v2113_v63 = vrot.slane %v2112_v45, 2  ;;  %v1258_v58 = vmul.f32 %v1162_v38, %v970_v51  ;;  %5956 = vmatpush3.bf16.msra.mxu1 %v5955_v12 }
 0x1fa   :  { %v1575_v53 = vld [vmem:[#allocation8 + $0x560] sm:$0xff]  ;;  %v1687_v32 = vmul.f32 %v1495_v35, %v1303_v10  ;;  %v1050_v34 = vld [vmem:[#allocation5 + $0x3f8] sm:$0xff]  ;;  %v1922_v28 = vmax.f32 %v1921_v7, %v1671_v25  ;;  %v1290_v11 = vmul.f32 %v1194_v50, %v1002_v60  ;;  %v1322_v20 = vmul.f32 %v1130_v9, %v1034_v30  ;;  %5958 = vmatprep.subr.bf16.mxu1 %v5957_v41  ;;  %v2377_v25 = vld [vmem:[#allocation11 + $0x770] sm:$0xff] }
 0x1fb   :  { %v1591_v24 = vld [vmem:[#allocation8 + $0x5e0] sm:$0xff]  ;;  %v1767_v18 = vmul.f32 %v1575_v53, %v1383_v29  ;;  %v2097_v42 = vmax.f32 %v2096_v56, %v1751_v2  ;;  %v1210_v26 = vld [vmem:[#allocation10 + $0x2f8] sm:$0xff]  ;;  %v1242_v29 = vmul.f32 %v1146_v1, %v954_v4  ;;  %v2114_v6 = vmax.f32 %v2112_v45, %v2113_v63  ;;  %v953_v30 = vld [vmem:[#allocation5 + $0xf0] sm:$0xff] }
 0x1fc   :  { %v1783_v31 = vmul.f32 %v1591_v24, %v1399_v55  ;;  %v1066_v14 = vld [vmem:[#allocation5 + $0x478] sm:$0xff]  ;;  %v1939_v55 = vrot.slane %v1938_v8, 1  ;;  %v1306_v48 = vmul.f32 %v1210_v26, %v1018_v43  ;;  %v1338_v53 = vmul.f32 %v1146_v1, %v1050_v34  ;;  %v969_v34 = vld [vmem:[#allocation5 + $0x170] sm:$0xff] }
 0x1fd   :  { %v2098_v5 = vmax.f32 %v2097_v42, %v1767_v18  ;;  %v1082_v13 = vld [vmem:[#allocation5 + $0x4f8] sm:$0xff]  ;;  %v2115_v57 = vrot.slane %v2114_v6, 1  ;;  %v1923_v27 = vmax.f32 %v1922_v28, %v1687_v32  ;;  %v1354_v2 = vmul.f32 %v1162_v38, %v1066_v14  ;;  %5960 = vmatpush3.bf16.msra.mxu1 %v5959_v33  ;;  %v937_v42 = vld [vmem:[#allocation5 + $0x70] sm:$0xff] }
 0x1fe   :  { %v1418_v37 = vld [vmem:[#allocation8 + $0x78] sm:$0xff]  ;;  %v1940_v39 = vmax.f32 %v1938_v8, %v1939_v55  ;;  %v1370_v47 = vmul.f32 %v1178_v3, %v1082_v13  ;;  %v1402_v56 = vmul.f32 %v1210_v26, %v1114_v0  ;;  %v1706_v32 = vmul.f32 %v1514_v23, %v1322_v20  ;;  %5962 = vmatprep.subr.bf16.mxu1 %v5961_v17  ;;  %v1001_v0 = vld [vmem:[#allocation5 + $0x270] sm:$0xff] }
 0x1ff   :  { %v1434_v10 = vld [vmem:[#allocation8 + $0xf8] sm:$0xff]  ;;  %v2099_v24 = vmax.f32 %v2098_v5, %v1783_v31  ;;  %v1610_v4 = vmul.f32 %v1418_v37, %v1226_v46  ;;  %v2116_v22 = vmax.f32 %v2114_v6, %v2115_v57  ;;  %v1924_v9 = vrot.slane %v1923_v27, 4  ;;  %v1161_v6 = vld [vmem:[#allocation10 + $0x170] sm:$0xff] }
 0x200   :  { %v1098_v35 = vld [vmem:[#allocation5 + $0x578] sm:$0xff]  ;;  %v1626_v62 = vmul.f32 %v1434_v10, %v1242_v29  ;;  %v1722_v40 = vmul.f32 %v1530_v19, %v1338_v53  ;;  %v1129_v29 = vld [vmem:[#allocation10 + $0x70] sm:$0xff] }
 0x201   :  { %v1450_v36 = vld [vmem:[#allocation8 + $0x178] sm:$0xff]  ;;  %v2100_v45 = vrot.slane %v2099_v24, 4  ;;  %v1386_v18 = vmul.f32 %v1194_v50, %v1098_v35  ;;  %v2448_v16 = vsel %vm880_vm0, %v2116_v22, %v1940_v39  ;;  %v1925_v12 = vmax.f32 %v1923_v27, %v1924_v9  ;;  %v1177_v5 = vld [vmem:[#allocation10 + $0x1f0] sm:$0xff] }
 0x202   :  { %v1546_v44 = vld [vmem:[#allocation8 + $0x478] sm:$0xff]  ;;  %v1642_v61 = vmul.f32 %v1450_v36, %v1258_v58  ;;  %2951 = vmatprep.mubr.f32.mxu0 %v2448_v16  ;;  %v1952_v7 = vmax.f32 %v1610_v4, %v1626_v62  ;;  %v2128_v14 = vmax.f32 %v1706_v32, %v1722_v40  ;;  %v1145_v58 = vld [vmem:[#allocation10 + $0xf0] sm:$0xff]  ;;  %v1225_v53 = vmul.f32 %v1129_v29, %v937_v42 }
 0x203   :  { %v2378_v51 = vld [vmem:[#allocation11 + $0x778] sm:$0xff]  ;;  %v2101_v3 = vmax.f32 %v2099_v24, %v2100_v45  ;;  %v1738_v43 = vmul.f32 %v1546_v44, %v1354_v2  ;;  %v1926_v26 = vrot.slane %v1925_v12, 2  ;;  %v1033_v35 = vld [vmem:[#allocation5 + $0x370] sm:$0xff]  ;;  %v1241_v57 = vmul.f32 %v1145_v58, %v953_v30 }
 0x204   :  { %v1466_v52 = vld [vmem:[#allocation8 + $0x1f8] sm:$0xff]  ;;  %v5963_v50 = vpack.c.bf16 %v2378_v51, %v2377_v25  ;;  %v1953_v28 = vmax.f32 %v1952_v7, %v1642_v61  ;;  %v1193_v20 = vld [vmem:[#allocation10 + $0x270] sm:$0xff]  ;;  %v1257_v27 = vmul.f32 %v1161_v6, %v969_v34  ;;  %v1321_v4 = vmul.f32 %v1129_v29, %v1033_v35 }
 0x205   :  { %v1482_v1 = vld [vmem:[#allocation8 + $0x278] sm:$0xff]  ;;  %v1658_v63 = vmul.f32 %v1466_v52, %v1274_v21  ;;  %v2102_v46 = vrot.slane %v2101_v3, 2  ;;  %v985_v21 = vld [vmem:[#allocation5 + $0x1f0] sm:$0xff]  ;;  %v1927_v13 = vmax.f32 %v1925_v12, %v1926_v26  ;;  %v2129_v55 = vmax.f32 %v2128_v14, %v1738_v43 }
 0x206   :  { %v1562_v38 = vld [vmem:[#allocation8 + $0x4f8] sm:$0xff]  ;;  %v1674_v15 = vmul.f32 %v1482_v1, %v1290_v11  ;;  %5964 = vmatpush3.bf16.msra.mxu1 %v5963_v50  ;;  %v1081_v2 = vld [vmem:[#allocation5 + $0x4f0] sm:$0xff]  ;;  %v1273_v36 = vmul.f32 %v1177_v5, %v985_v21  ;;  %v1337_v62 = vmul.f32 %v1145_v58, %v1049_v59  ;;  %v1353_v25 = vmul.f32 %v1161_v6, %v1065_v49 }
 0x207   :  { %v1498_v31 = vld [vmem:[#allocation8 + $0x2f8] sm:$0xff]  ;;  %v1754_v8 = vmul.f32 %v1562_v38, %v1370_v47  ;;  %v2103_v37 = vmax.f32 %v2101_v3, %v2102_v46  ;;  %v1954_v17 = vmax.f32 %v1953_v28, %v1658_v63  ;;  %v1928_v11 = vrot.slane %v1927_v13, 1  ;;  %v1417_v23 = vld [vmem:[#allocation8 + $0x70] sm:$0xff] }
 0x208   :  { %v1578_v60 = vld [vmem:[#allocation8 + $0x578] sm:$0xff]  ;;  %v1690_v54 = vmul.f32 %v1498_v31, %v1306_v48  ;;  %v1433_v19 = vld [vmem:[#allocation8 + $0xf0] sm:$0xff]  ;;  %v1369_v40 = vmul.f32 %v1177_v5, %v1081_v2  ;;  %v1609_v12 = vmul.f32 %v1417_v23, %v1225_v53 }
 0x209   :  { %v1594_v41 = vld [vmem:[#allocation8 + $0x5f8] sm:$0xff]  ;;  %v1770_v33 = vmul.f32 %v1578_v60, %v1386_v18  ;;  %v2104_v48 = vrot.slane %v2103_v37, 1  ;;  %v2130_v24 = vmax.f32 %v2129_v55, %v1754_v8  ;;  %v1955_v39 = vmax.f32 %v1954_v17, %v1674_v15  ;;  %v1017_v47 = vld [vmem:[#allocation5 + $0x2f0] sm:$0xff] }
 0x20a   :  { %v1786_v10 = vmul.f32 %v1594_v41, %v1402_v56  ;;  %v1097_v44 = vld [vmem:[#allocation5 + $0x570] sm:$0xff]  ;;  %v1929_v22 = vmax.f32 %v1927_v13, %v1928_v11  ;;  %v1289_v18 = vmul.f32 %v1193_v20, %v1001_v0  ;;  %v1625_v3 = vmul.f32 %v1433_v19, %v1241_v57 }
 0x20b   :  { %v1449_v51 = vld [vmem:[#allocation8 + $0x170] sm:$0xff]  ;;  %v2105_v9 = vmax.f32 %v2103_v37, %v2104_v48  ;;  %v2131_v45 = vmax.f32 %v2130_v24, %v1770_v33  ;;  %v1956_v38 = vmax.f32 %v1955_v39, %v1690_v54  ;;  %v1385_v41 = vmul.f32 %v1193_v20, %v1097_v44 }
 0x20c   :  { %v1513_v52 = vld [vmem:[#allocation8 + $0x370] sm:$0xff]  ;;  %v1641_v50 = vmul.f32 %v1449_v51, %v1257_v27  ;;  %v1941_v54 = vmax.f32 %v1609_v12, %v1625_v3  ;;  %v3031_v12 = vld [vmem:[#allocation13 + $0x18] sm:$0xff] }
 0x20d   :  { %v1529_v56 = vld [vmem:[#allocation8 + $0x3f0] sm:$0xff]  ;;  %v2447_v31 = vsel %vm880_vm0, %v2105_v9, %v1929_v22  ;;  %v2132_v60 = vmax.f32 %v2131_v45, %v1786_v10  ;;  %v1957_v63 = vrot.slane %v1956_v38, 4  ;;  %v1705_v42 = vmul.f32 %v1513_v52, %v1321_v4 }
 0x20e   :  { %v1545_v1 = vld [vmem:[#allocation8 + $0x470] sm:$0xff]  ;;  %2952 = vmatmul.mubr.f32.vlgmr.msra.gmra.mrb[6].mxu0 %v2447_v31  ;;  %v1721_v30 = vmul.f32 %v1529_v56, %v1337_v62  ;;  %v1942_v10 = vmax.f32 %v1941_v54, %v1641_v50  ;;  %v3044_v50 = vld [vmem:[#allocation13 + $0x80] sm:$0xff] }
 0x20f   :  { %v1113_v61 = vld [vmem:[#allocation5 + $0x5f0] sm:$0xff]  ;;  %v1737_v34 = vmul.f32 %v1545_v1, %v1353_v25  ;;  %v2133_v26 = vrot.slane %v2132_v60, 4  ;;  %v1958_v58 = vmax.f32 %v1956_v38, %v1957_v63  ;;  %v5181_v1 = vpop.f32.mrb[0].mxu0  ;;  %v3060_v54 = vld [vmem:[#allocation13 + $0x100] sm:$0xff] }
 0x210   :  { %v1209_v32 = vld [vmem:[#allocation10 + $0x2f0] sm:$0xff]  ;;  %v2117_v33 = vmax.f32 %v1705_v42, %v1721_v30  ;;  %v5182_v38 = vpop.f32.mrb[1].mxu0 }
 0x211   :  { %v1465_v16 = vld [vmem:[#allocation8 + $0x1f0] sm:$0xff]  ;;  %v1305_v46 = vmul.f32 %v1209_v32, %v1017_v47  ;;  %v1401_v8 = vmul.f32 %v1209_v32, %v1113_v61  ;;  %v2134_v28 = vmax.f32 %v2132_v60, %v2133_v26  ;;  %v1959_v13 = vrot.slane %v1958_v58, 2  ;;  %v5128_v32 = vld [vmem:[%s7765_s6] ss:$0 sm:$0xff]  ;;  %v3061_v26 = vld [vmem:[#allocation13 + $0x108] sm:$0xff] }
 0x212   :  { %v1561_v43 = vld [vmem:[#allocation8 + $0x4f0] sm:$0xff]  ;;  %v1657_v29 = vmul.f32 %v1465_v16, %v1273_v36  ;;  %v2118_v55 = vmax.f32 %v2117_v33, %v1737_v34  ;;  %v5183_v61 = vadd.f32 %v5182_v38, %v5181_v1  ;;  %v3045_v16 = vld [vmem:[#allocation13 + $0x88] sm:$0xff]  ;;  %v3076_v33 = vld [vmem:[#allocation13 + $0x180] sm:$0xff] }
 0x213   :  { %v1481_v7 = vld [vmem:[#allocation8 + $0x270] sm:$0xff]  ;;  %v1753_v15 = vmul.f32 %v1561_v43, %v1369_v40  ;;  %v2135_v35 = vrot.slane %v2134_v28, 2  ;;  %v1960_v49 = vmax.f32 %v1958_v58, %v1959_v13  ;;  %v3029_v40 = vld [vmem:[#allocation13 + $0x8] sm:$0xff]  ;;  %v3028_v43 = vld [vmem:[#allocation13] sm:$0xff] }
 0x214   :  { %v1577_v14 = vld [vmem:[#allocation8 + $0x570] sm:$0xff]  ;;  %v1673_v5 = vmul.f32 %v1481_v7, %v1289_v18  ;;  %v1943_v0 = vmax.f32 %v1942_v10, %v1657_v29  ;;  %v2534_v3 = vadd.f32 %v5183_v61, %v5128_v32  ;;  %v5965_v60 = vpack.c.bf16 %v3045_v16, %v3029_v40  ;;  %v3063_v29 = vld [vmem:[#allocation13 + $0x118] sm:$0xff]  ;;  %v3109_v10 = vld [vmem:[#allocation13 + $0x288] sm:$0xff] }
 0x215   :  { %v1497_v6 = vld [vmem:[#allocation8 + $0x2f0] sm:$0xff]  ;;  %v1769_v37 = vmul.f32 %v1577_v14, %v1385_v41  ;;  %v2119_v20 = vmax.f32 %v2118_v55, %v1753_v15  ;;  %v2136_v53 = vmax.f32 %v2134_v28, %v2135_v35  ;;  %v1961_v57 = vrot.slane %v1960_v49, 1  ;;  %v3047_v41 = vld [vmem:[#allocation13 + $0x98] sm:$0xff]  ;;  %v3077_v14 = vld [vmem:[#allocation13 + $0x188] sm:$0xff] }
 0x216   :  { %v1593_v21 = vld [vmem:[#allocation8 + $0x5f0] sm:$0xff]  ;;  %v1689_v59 = vmul.f32 %v1497_v6, %v1305_v46  ;;  %v1944_v27 = vmax.f32 %v1943_v0, %v1673_v5  ;;  %v5997_v7 = vpack.c.bf16 %v3047_v41, %v3031_v12  ;;  %v5967_v42 = vpack.c.bf16 %v3044_v50, %v3028_v43  ;;  %5966 = vmatprep.subr.bf16.mxu0 %v5965_v60  ;;  %v3079_v58 = vld [vmem:[#allocation13 + $0x198] sm:$0xff]  ;;  %v3189_v32 = vld [vmem:[#allocation13 + $0x508] sm:$0xff] }
 0x217   :  { %v1785_v17 = vmul.f32 %v1593_v21, %v1401_v8  ;;  %v2120_v11 = vmax.f32 %v2119_v20, %v1769_v37  ;;  %v2137_v48 = vrot.slane %v2136_v53, 1  ;;  %v1962_v24 = vmax.f32 %v1960_v49, %v1961_v57  ;;  %v3030_v30 = vld [vmem:[#allocation13 + $0x10] sm:$0xff]  ;;  %v3093_v37 = vld [vmem:[#allocation13 + $0x208] sm:$0xff]  ;;  %v3111_v49 = vld [vmem:[#allocation13 + $0x298] sm:$0xff] }
 0x218   :  { %v1945_v2 = vmax.f32 %v1944_v27, %v1689_v59  ;;  %v3046_v34 = vld [vmem:[#allocation13 + $0x90] sm:$0xff]  ;;  %5998 = vmatprep.subr.bf16.mxu1 %v5997_v7  ;;  %5968 = vmatpush1.bf16.msra.mxu0 %v5967_v42  ;;  %v5969_v6 = vpack.c.bf16 %v3077_v14, %v3061_v26  ;;  %v6001_v15 = vpack.c.bf16 %v3079_v58, %v3063_v29  ;;  %v3095_v59 = vld [vmem:[#allocation13 + $0x218] sm:$0xff]  ;;  %v3108_v20 = vld [vmem:[#allocation13 + $0x280] sm:$0xff] }
 0x219   :  { %v2121_v36 = vmax.f32 %v2120_v11, %v1785_v17  ;;  %v2138_v23 = vmax.f32 %v2136_v53, %v2137_v48  ;;  %v5999_v8 = vpack.c.bf16 %v3046_v34, %v3030_v30  ;;  %v3062_v28 = vld [vmem:[#allocation13 + $0x110] sm:$0xff]  ;;  %v5971_v5 = vpack.c.bf16 %v3076_v33, %v3060_v54  ;;  %v3092_v17 = vld [vmem:[#allocation13 + $0x200] sm:$0xff]  ;;  %v3125_v11 = vld [vmem:[#allocation13 + $0x308] sm:$0xff] }
 0x21a   :  { %v1946_v19 = vrot.slane %v1945_v2, 4  ;;  %v5216_v31 = vpop.f32.mrb[0].mxu1  ;;  %v3078_v13 = vld [vmem:[#allocation13 + $0x190] sm:$0xff]  ;;  %5970 = vmatprep.subr.bf16.mxu0 %v5969_v6  ;;  %v5973_v35 = vpack.c.bf16 %v3109_v10, %v3093_v37  ;;  %v6005_v0 = vpack.c.bf16 %v3111_v49, %v3095_v59  ;;  %v5975_v27 = vpack.c.bf16 %v3108_v20, %v3092_v17  ;;  %v3141_v48 = vld [vmem:[#allocation13 + $0x388] sm:$0xff]  ;;  %v3191_v16 = vld [vmem:[#allocation13 + $0x518] sm:$0xff] }
 0x21b   :  { %v2122_v39 = vrot.slane %v2121_v36, 4  ;;  %v2450_v47 = vsel %vm880_vm0, %v2138_v23, %v1962_v24  ;;  %v5217_v63 = vpop.f32.mrb[1].mxu1  ;;  %v6003_v55 = vpack.c.bf16 %v3078_v13, %v3062_v28  ;;  %v3094_v53 = vld [vmem:[#allocation13 + $0x210] sm:$0xff]  ;;  %v3127_v24 = vld [vmem:[#allocation13 + $0x318] sm:$0xff]  ;;  %v3205_v40 = vld [vmem:[#allocation13 + $0x588] sm:$0xff] }
 0x21c   :  { %3021 = vmatprep.mubr.f32.mxu1 %v2450_v47  ;;  %v1947_v44 = vmax.f32 %v1945_v2, %v1946_v19  ;;  %v5218_v46 = vadd.f32 %v5217_v63, %v5216_v31  ;;  %v3110_v57 = vld [vmem:[#allocation13 + $0x290] sm:$0xff]  ;;  %5972 = vmatpush1.bf16.msra.mxu0 %v5971_v5  ;;  %v3143_v23 = vld [vmem:[#allocation13 + $0x398] sm:$0xff]  ;;  %v3124_v19 = vld [vmem:[#allocation13 + $0x300] sm:$0xff]  ;;  %v5985_v60 = vpack.c.bf16 %v3205_v40, %v3189_v32  ;;  %v6736_v40 = vmov 0  }
 0x21d   :  { %v2123_v4 = vmax.f32 %v2121_v36, %v2122_v39  ;;  %5974 = vmatprep.subr.bf16.mxu0 %v5973_v35  ;;  %v6007_v2 = vpack.c.bf16 %v3110_v57, %v3094_v53  ;;  %v5977_v36 = vpack.c.bf16 %v3141_v48, %v3125_v11  ;;  %v3140_v39 = vld [vmem:[#allocation13 + $0x380] sm:$0xff]  ;;  %v6009_v47 = vpack.c.bf16 %v3143_v23, %v3127_v24  ;;  %v3158_v1 = vld [vmem:[#allocation13 + $0x410] sm:$0xff]  ;;  %v3207_v12 = vld [vmem:[#allocation13 + $0x598] sm:$0xff] }
 0x21e   :  { %v1948_v62 = vrot.slane %v1947_v44, 2  ;;  %v7604_v21 = vadd.f32 %v5218_v46, %v2534_v3  ;;  %v3174_v61 = vld [vmem:[#allocation13 + $0x490] sm:$0xff]  ;;  %v3188_v41 = vld [vmem:[#allocation13 + $0x500] sm:$0xff]  ;;  %v6017_v50 = vpack.c.bf16 %v3207_v12, %v3191_v16  ;;  %v3221_v14 = vld [vmem:[#allocation13 + $0x608] sm:$0xff]  ;;  %6490 = vset.pattern.permute.xlu0 %v6736_v40 }
 0x21f   :  { %v2124_v25 = vrot.slane %v2123_v4, 2  ;;  %v6015_v31 = vpack.c.bf16 %v3174_v61, %v3158_v1  ;;  %v3204_v43 = vld [vmem:[#allocation13 + $0x580] sm:$0xff]  ;;  %v3190_v63 = vld [vmem:[#allocation13 + $0x510] sm:$0xff]  ;;  %v3237_v29 = vld [vmem:[#allocation13 + $0x688] sm:$0xff] }
 0x220   :  { %v1949_v51 = vmax.f32 %v1947_v44, %v1948_v62  ;;  %v3126_v44 = vld [vmem:[#allocation13 + $0x310] sm:$0xff]  ;;  %v3157_v62 = vld [vmem:[#allocation13 + $0x408] sm:$0xff]  ;;  %5976 = vmatpush1.bf16.msra.mxu0 %v5975_v27  ;;  %v5987_v42 = vpack.c.bf16 %v3204_v43, %v3188_v41  ;;  %v3223_v58 = vld [vmem:[#allocation13 + $0x618] sm:$0xff]  ;;  %v5989_v6 = vpack.c.bf16 %v3237_v29, %v3221_v14 }
 0x221   :  { %v2125_v22 = vmax.f32 %v2123_v4, %v2124_v25  ;;  %v3142_v4 = vld [vmem:[#allocation13 + $0x390] sm:$0xff]  ;;  %v3173_v25 = vld [vmem:[#allocation13 + $0x488] sm:$0xff]  ;;  %5978 = vmatprep.subr.bf16.mxu0 %v5977_v36  ;;  %v3220_v54 = vld [vmem:[#allocation13 + $0x600] sm:$0xff] }
 0x222   :  { %v1950_v9 = vrot.slane %v1949_v51, 1  ;;  %v3206_v7 = vld [vmem:[#allocation13 + $0x590] sm:$0xff]  ;;  %v3236_v33 = vld [vmem:[#allocation13 + $0x680] sm:$0xff]  ;;  %v3269_v35 = vld [vmem:[#allocation13 + $0x788] sm:$0xff] }
 0x223   :  { %v2126_v45 = vrot.slane %v2125_v22, 1  ;;  %v6019_v30 = vpack.c.bf16 %v3206_v7, %v3190_v63  ;;  %v5991_v5 = vpack.c.bf16 %v3236_v33, %v3220_v54  ;;  %v3222_v13 = vld [vmem:[#allocation13 + $0x610] sm:$0xff]  ;;  %v3255_v59 = vld [vmem:[#allocation13 + $0x718] sm:$0xff]  ;;  %v3252_v17 = vld [vmem:[#allocation13 + $0x700] sm:$0xff] }
 0x224   :  { %v1951_v18 = vmax.f32 %v1949_v51, %v1950_v9  ;;  %v3159_v51 = vld [vmem:[#allocation13 + $0x418] sm:$0xff]  ;;  %v5979_v9 = vpack.c.bf16 %v3140_v39, %v3124_v19  ;;  %v3238_v37 = vld [vmem:[#allocation13 + $0x690] sm:$0xff]  ;;  %v3033_v48 = vld [vmem:[#allocation13 + $0x28] sm:$0xff] }
 0x225   :  { %v2127_v52 = vmax.f32 %v2125_v22, %v2126_v45  ;;  %v3175_v22 = vld [vmem:[#allocation13 + $0x498] sm:$0xff]  ;;  %v6011_v45 = vpack.c.bf16 %v3142_v4, %v3126_v44  ;;  %v6023_v10 = vpack.c.bf16 %v3238_v37, %v3222_v13  ;;  %v3254_v57 = vld [vmem:[#allocation13 + $0x710] sm:$0xff]  ;;  %v3049_v24 = vld [vmem:[#allocation13 + $0xa8] sm:$0xff] }
 0x226   :  { %v6013_v38 = vpack.c.bf16 %v3175_v22, %v3159_v51  ;;  %5980 = vmatpush1.bf16.msra.mxu0 %v5979_v9  ;;  %v3271_v49 = vld [vmem:[#allocation13 + $0x798] sm:$0xff]  ;;  %v3270_v27 = vld [vmem:[#allocation13 + $0x790] sm:$0xff]  ;;  %v6029_v23 = vpack.c.bf16 %v3049_v24, %v3033_v48  ;;  %v4036_v61 = vld [vmem:[%s7763_s4] sm:$0x3] }
 0x227   :  { %v2449_v56 = vsel %vm880_vm0, %v2127_v52, %v1951_v18  ;;  %v5981_v18 = vpack.c.bf16 %v3173_v25, %v3157_v62  ;;  %v3156_v52 = vld [vmem:[#allocation13 + $0x400] sm:$0xff]  ;;  %v6025_v20 = vpack.c.bf16 %v3271_v49, %v3255_v59  ;;  %v6027_v11 = vpack.c.bf16 %v3270_v27, %v3254_v57  ;;  %v3051_v19 = vld [vmem:[#allocation13 + $0xb8] sm:$0xff]  ;;  %4039 = vperm.xlu0 %6490, %v4036_v61   ;;  %v3034_v43 = vld [vmem:[#allocation13 + $0x30] sm:$0xff] }
 0x228   :  { %3022 = vmatmul.mubr.f32.vlgmr.msra.gmra.mrb[6].mxu1 %v2449_v56  ;;  %v3172_v56 = vld [vmem:[#allocation13 + $0x480] sm:$0xff]  ;;  %v3065_v63 = vld [vmem:[#allocation13 + $0x128] sm:$0xff]  ;;  %v3082_v54 = vld [vmem:[#allocation13 + $0x1b0] sm:$0xff] }
 0x229   :  { %6000 = vmatpush1.bf16.msra.mxu1 %v5999_v8  ;;  %v5983_v3 = vpack.c.bf16 %v3172_v56, %v3156_v52  ;;  %5982 = vmatprep.subr.bf16.mxu0 %v5981_v18  ;;  %v3081_v7 = vld [vmem:[#allocation13 + $0x1a8] sm:$0xff]  ;;  %v3080_v14 = vld [vmem:[#allocation13 + $0x1a0] sm:$0xff]  ;;  %v3115_v13 = vld [vmem:[#allocation13 + $0x2b8] sm:$0xff] }
 0x22a   :  { %6002 = vmatprep.subr.bf16.mxu1 %v6001_v15  ;;  %v3239_v15 = vld [vmem:[#allocation13 + $0x698] sm:$0xff]  ;;  %v3097_v33 = vld [vmem:[#allocation13 + $0x228] sm:$0xff]  ;;  %v3098_v49 = vld [vmem:[#allocation13 + $0x230] sm:$0xff] }
 0x22b   :  { %5984 = vmatpush1.bf16.msra.mxu0 %v5983_v3  ;;  %v6021_v28 = vpack.c.bf16 %v3239_v15, %v3223_v58  ;;  %v6033_v58 = vpack.c.bf16 %v3081_v7, %v3065_v63  ;;  %v3066_v15 = vld [vmem:[#allocation13 + $0x130] sm:$0xff]  ;;  %v3147_v57 = vld [vmem:[#allocation13 + $0x3b8] sm:$0xff]  ;;  %v3128_v48 = vld [vmem:[#allocation13 + $0x320] sm:$0xff] }
 0x22c   :  { %5986 = vmatprep.subr.bf16.mxu0 %v5985_v60  ;;  %v3048_v60 = vld [vmem:[#allocation13 + $0xa0] sm:$0xff]  ;;  %v3195_v61 = vld [vmem:[#allocation13 + $0x538] sm:$0xff]  ;;  %v3241_v63 = vld [vmem:[#allocation13 + $0x6a8] sm:$0xff] }
 0x22d   :  { %6004 = vmatpush1.bf16.msra.mxu1 %v6003_v55  ;;  %v3253_v55 = vld [vmem:[#allocation13 + $0x708] sm:$0xff]  ;;  %v3144_v24 = vld [vmem:[#allocation13 + $0x3a0] sm:$0xff]  ;;  %v3227_v7 = vld [vmem:[#allocation13 + $0x638] sm:$0xff] }
 0x22e   :  { %6006 = vmatprep.subr.bf16.mxu1 %v6005_v0  ;;  %v3268_v0 = vld [vmem:[#allocation13 + $0x780] sm:$0xff] }
 0x22f   :  { %5988 = vmatpush1.bf16.msra.mxu0 %v5987_v42  ;;  %v5995_v53 = vpack.c.bf16 %v3268_v0, %v3252_v17  ;;  %v3067_v42 = vld [vmem:[#allocation13 + $0x138] sm:$0xff]  ;;  %v3114_v17 = vld [vmem:[#allocation13 + $0x2b0] sm:$0xff]  ;;  %v3129_v0 = vld [vmem:[#allocation13 + $0x328] sm:$0xff] }
 0x230   :  { %5990 = vmatprep.subr.bf16.mxu0 %v5989_v6 }
 0x231   :  { %6008 = vmatpush1.bf16.msra.mxu1 %v6007_v2  ;;  %v3035_v2 = vld [vmem:[#allocation13 + $0x38] sm:$0xff] }
 0x232   :  { %6010 = vmatprep.subr.bf16.mxu1 %v6009_v47  ;;  %v6735_v47 = vmov 0.0   ;;  %v6061_v44 = vpack.c.bf16 %v3051_v19, %v3035_v2  ;;  %v3146_v19 = vld [vmem:[#allocation13 + $0x3b0] sm:$0xff] }
 0x233   :  { %5992 = vmatpush1.bf16.msra.mxu0 %v5991_v5  ;;  %3432 = vmatprep.mubr.f32.mxu0 %v6735_v47  ;;  %v3099_v5 = vld [vmem:[#allocation13 + $0x238] sm:$0xff] }
 0x234   :  { %3503 = vmatprep.mubr.f32.mxu1 %v6735_v47 }
 0x235   :  { %6012 = vmatpush1.bf16.msra.mxu1 %v6011_v45 }
 0x236   :  { %6014 = vmatprep.subr.bf16.mxu1 %v6013_v38 }
 0x239   :  { %6016 = vmatpush1.bf16.msra.mxu1 %v6015_v31  ;;  %v3032_v31 = vld [vmem:[#allocation13 + $0x20] sm:$0xff] }
 0x23a   :  { %6018 = vmatprep.subr.bf16.mxu1 %v6017_v50  ;;  %v3050_v50 = vld [vmem:[#allocation13 + $0xb0] sm:$0xff] }
 0x23d   :  { %6020 = vmatpush1.bf16.msra.mxu1 %v6019_v30  ;;  %v3083_v30 = vld [vmem:[#allocation13 + $0x1b8] sm:$0xff] }
 0x23e   :  { %6022 = vmatprep.subr.bf16.mxu1 %v6021_v28  ;;  %v6065_v6 = vpack.c.bf16 %v3083_v30, %v3067_v42  ;;  %v3113_v28 = vld [vmem:[#allocation13 + $0x2a8] sm:$0xff]  ;;  %v3243_v42 = vld [vmem:[#allocation13 + $0x6b8] sm:$0xff] }
 0x23f   :  { %v6037_v59 = vpack.c.bf16 %v3113_v28, %v3097_v33  ;;  %v3259_v33 = vld [vmem:[#allocation13 + $0x738] sm:$0xff] }
 0x240   :  { %v3275_v28 = vld [vmem:[#allocation13 + $0x7b8] sm:$0xff] }
 0x241   :  { %6024 = vmatpush1.bf16.msra.mxu1 %v6023_v10  ;;  %v6067_v10 = vpack.c.bf16 %v3082_v54, %v3066_v15  ;;  %v3257_v15 = vld [vmem:[#allocation13 + $0x728] sm:$0xff] }
 0x242   :  { %6026 = vmatprep.subr.bf16.mxu1 %v6025_v20  ;;  %v3145_v20 = vld [vmem:[#allocation13 + $0x3a8] sm:$0xff] }
 0x243   :  { %v6041_v2 = vpack.c.bf16 %v3145_v20, %v3129_v0  ;;  %v3273_v54 = vld [vmem:[#allocation13 + $0x7a8] sm:$0xff]  ;;  %v3039_v0 = vld [vmem:[#allocation13 + $0x58] sm:$0xff] }
 0x244   :  { %v3055_v20 = vld [vmem:[#allocation13 + $0xd8] sm:$0xff] }
 0x245   :  { %6028 = vmatpush1.bf16.msra.mxu1 %v6027_v11  ;;  %v6071_v11 = vpack.c.bf16 %v3114_v17, %v3098_v49  ;;  %v3037_v49 = vld [vmem:[#allocation13 + $0x48] sm:$0xff] }
 0x246   :  { %6062 = vmatprep.subr.bf16.mxu1 %v6061_v44  ;;  %v3177_v44 = vld [vmem:[#allocation13 + $0x4a8] sm:$0xff] }
 0x247   :  { %v3053_v17 = vld [vmem:[#allocation13 + $0xc8] sm:$0xff] }
 0x24a   :  { %v5251_v34 = vpop.f32.mrb[2].mxu0 }
 0x24b   :  { %v5252_v26 = vpop.f32.mrb[3].mxu0 }
 0x24c   :  { %v5253_v46 = vadd.f32 %v5252_v26, %v5251_v34  ;;  %v6031_v26 = vpack.c.bf16 %v3048_v60, %v3032_v31 }
 0x24e   :  { %v2674_v8 = vadd.f32 %v5253_v46, %v7604_v21  ;;  %v5993_v21 = vpack.c.bf16 %v3269_v35, %v3253_v55  ;;  %v6063_v46 = vpack.c.bf16 %v3050_v50, %v3034_v43  ;;  %v3096_v55 = vld [vmem:[#allocation13 + $0x220] sm:$0xff]  ;;  %v3210_v43 = vld [vmem:[#allocation13 + $0x5b0] sm:$0xff]  ;;  %v3225_v50 = vld [vmem:[#allocation13 + $0x628] sm:$0xff] }
 0x24f   :  { %v3112_v35 = vld [vmem:[#allocation13 + $0x2a0] sm:$0xff] }
 0x250   :  { %5994 = vmatprep.subr.bf16.mxu0 %v5993_v21  ;;  %v6069_v21 = vpack.c.bf16 %v3115_v13, %v3099_v5  ;;  %v6039_v27 = vpack.c.bf16 %v3112_v35, %v3096_v55  ;;  %v6057_v55 = vpack.c.bf16 %v3273_v54, %v3257_v15  ;;  %v6089_v35 = vpack.c.bf16 %v3275_v28, %v3259_v33  ;;  %v3167_v15 = vld [vmem:[#allocation13 + $0x458] sm:$0xff] }
 0x251   :  { %5996 = vmatpush1.bf16.msra.mxu0 %v5995_v53  ;;  %v3131_v53 = vld [vmem:[#allocation13 + $0x338] sm:$0xff] }
 0x252   :  { %6030 = vmatprep.subr.bf16.mxu0 %v6029_v23  ;;  %v3130_v23 = vld [vmem:[#allocation13 + $0x330] sm:$0xff]  ;;  %v3183_v54 = vld [vmem:[#allocation13 + $0x4d8] sm:$0xff] }
 0x26a   :  { %v5286_v36 = vpop.f32.mrb[2].mxu1 }
 0x26b   :  { %v5287_v39 = vpop.f32.mrb[3].mxu1 }
 0x26c   :  { %v5288_v4 = vadd.f32 %v5287_v39, %v5286_v36  ;;  %v6073_v36 = vpack.c.bf16 %v3147_v57, %v3131_v53  ;;  %v3161_v39 = vld [vmem:[#allocation13 + $0x428] sm:$0xff] }
 0x26e   :  { %v2744_v62 = vadd.f32 %v5288_v4, %v2674_v8  ;;  %v3064_v8 = vld [vmem:[#allocation13 + $0x120] sm:$0xff]  ;;  %v3163_v4 = vld [vmem:[#allocation13 + $0x438] sm:$0xff] }
 0x26f   :  { %v6035_v37 = vpack.c.bf16 %v3080_v14, %v3064_v8  ;;  %v6053_v8 = vpack.c.bf16 %v3241_v63, %v3225_v50  ;;  %v6085_v14 = vpack.c.bf16 %v3243_v42, %v3227_v7  ;;  %v3135_v50 = vld [vmem:[#allocation13 + $0x358] sm:$0xff] }
 0x270   :  { %v3151_v63 = vld [vmem:[#allocation13 + $0x3d8] sm:$0xff] }
 0x298   :  { %v5321_v25 = vpop.f32.mrb[4].mxu0 }
 0x299   :  { %v5322_v51 = vpop.f32.mrb[5].mxu0 }
 0x29a   :  { %v5323_v22 = vadd.f32 %v5322_v51, %v5321_v25  ;;  %v6043_v25 = vpack.c.bf16 %v3144_v24, %v3128_v48  ;;  %v6075_v51 = vpack.c.bf16 %v3146_v19, %v3130_v23  ;;  %v6093_v48 = vpack.c.bf16 %v3053_v17, %v3037_v49  ;;  %v3069_v23 = vld [vmem:[#allocation13 + $0x148] sm:$0xff]  ;;  %v3199_v49 = vld [vmem:[#allocation13 + $0x558] sm:$0xff] }
 0x29b   :  { %v6125_v24 = vpack.c.bf16 %v3055_v20, %v3039_v0  ;;  %v3085_v19 = vld [vmem:[#allocation13 + $0x1c8] sm:$0xff]  ;;  %v3215_v17 = vld [vmem:[#allocation13 + $0x5d8] sm:$0xff] }
 0x29c   :  { %v2814_v9 = vadd.f32 %v5323_v22, %v2744_v62  ;;  %v3179_v62 = vld [vmem:[#allocation13 + $0x4b8] sm:$0xff]  ;;  %v3160_v22 = vld [vmem:[#allocation13 + $0x420] sm:$0xff] }
 0x2b7   :  { %v5356_v45 = vpop.f32.mrb[4].mxu1 }
 0x2b8   :  { %v5357_v18 = vpop.f32.mrb[5].mxu1 }
 0x2b9   :  { %v5358_v52 = vadd.f32 %v5357_v18, %v5356_v45  ;;  %v6045_v45 = vpack.c.bf16 %v3177_v44, %v3161_v39  ;;  %v6077_v18 = vpack.c.bf16 %v3179_v62, %v3163_v4  ;;  %v3071_v39 = vld [vmem:[#allocation13 + $0x158] sm:$0xff] }
 0x2ba   :  { %v3087_v44 = vld [vmem:[#allocation13 + $0x1d8] sm:$0xff] }
 0x2bb   :  { %v2884_v56 = vadd.f32 %v5358_v52, %v2814_v9  ;;  %v3176_v9 = vld [vmem:[#allocation13 + $0x4a0] sm:$0xff]  ;;  %v3162_v52 = vld [vmem:[#allocation13 + $0x430] sm:$0xff] }
 0x2bc   :  { %v6047_v40 = vpack.c.bf16 %v3176_v9, %v3160_v22  ;;  %v6097_v22 = vpack.c.bf16 %v3085_v19, %v3069_v23  ;;  %v6129_v9 = vpack.c.bf16 %v3087_v44, %v3071_v39  ;;  %v3231_v23 = vld [vmem:[#allocation13 + $0x658] sm:$0xff] }
 0x2bd   :  { %v3247_v19 = vld [vmem:[#allocation13 + $0x6d8] sm:$0xff] }
 0x2e1   :  { %v5391_v1 = vpop.f32.mrb[6].mxu0 }
 0x2e2   :  { %v5392_v38 = vpop.f32.mrb[7].mxu0 }
 0x2e3   :  { %v5393_v32 = vadd.f32 %v5392_v38, %v5391_v1  ;;  %v3193_v1 = vld [vmem:[#allocation13 + $0x528] sm:$0xff] }
 0x2e4   :  { %v3209_v38 = vld [vmem:[#allocation13 + $0x5a8] sm:$0xff] }
 0x2e5   :  { %v2954_v16 = vadd.f32 %v5393_v32, %v2884_v56  ;;  %v3178_v56 = vld [vmem:[#allocation13 + $0x4b0] sm:$0xff]  ;;  %v3211_v32 = vld [vmem:[#allocation13 + $0x5b8] sm:$0xff]  ;;  %v6049_v31 = vpack.c.bf16 %v3209_v38, %v3193_v1 }
 0x2e6   :  { %v6081_v60 = vpack.c.bf16 %v3211_v32, %v3195_v61  ;;  %v3103_v1 = vld [vmem:[#allocation13 + $0x258] sm:$0xff] }
 0x2e7   :  { %v3119_v38 = vld [vmem:[#allocation13 + $0x2d8] sm:$0xff] }
 0x2fb   :  { %v5426_v12 = vpop.f32.mrb[6].mxu1 }
 0x2fc   :  { %v5427_v3 = vpop.f32.mrb[7].mxu1 }
 0x2fd   :  { %v5428_v41 = vadd.f32 %v5427_v3, %v5426_v12  ;;  %v3192_v12 = vld [vmem:[#allocation13 + $0x520] sm:$0xff] }
 0x2fe   :  { %v3208_v3 = vld [vmem:[#allocation13 + $0x5a0] sm:$0xff] }
 0x2ff   :  { %v3024_v34 = vadd.f32 %v5428_v41, %v2954_v16  ;;  %v6079_v16 = vpack.c.bf16 %v3178_v56, %v3162_v52  ;;  %v3194_v41 = vld [vmem:[#allocation13 + $0x530] sm:$0xff]  ;;  %v6051_v30 = vpack.c.bf16 %v3208_v3, %v3192_v12  ;;  %v3101_v52 = vld [vmem:[#allocation13 + $0x248] sm:$0xff]  ;;  %v6133_v3 = vpack.c.bf16 %v3119_v38, %v3103_v1 }
 0x300   :  { %v3117_v56 = vld [vmem:[#allocation13 + $0x2c8] sm:$0xff] }
 0x301   :  { %v7612_v29 = vmax.f32 %v3024_v34, 0.0  ;;  %v6083_v34 = vpack.c.bf16 %v3210_v43, %v3194_v41  ;;  %v6101_v12 = vpack.c.bf16 %v3117_v56, %v3101_v52  ;;  %v3133_v41 = vld [vmem:[#allocation13 + $0x348] sm:$0xff]  ;;  %v3263_v52 = vld [vmem:[#allocation13 + $0x758] sm:$0xff] }
 0x302   :  { %v3149_v43 = vld [vmem:[#allocation13 + $0x3c8] sm:$0xff]  ;;  %v3279_v56 = vld [vmem:[#allocation13 + $0x7d8] sm:$0xff] }
 0x303   :  { %3433 = vmatmul.mubr.f32.vlgmr.msra.gmra.mrb[8].mxu0 %v7612_v29  ;;  %3504 = vmatmul.mubr.f32.vlgmr.msra.gmra.mrb[8].mxu1 %v7612_v29 }
 0x304   :  { %6032 = vmatpush1.bf16.msra.mxu0 %v6031_v26  ;;  %6064 = vmatpush1.bf16.msra.mxu1 %v6063_v46  ;;  %v3224_v26 = vld [vmem:[#allocation13 + $0x620] sm:$0xff] }
 0x305   :  { %6034 = vmatprep.subr.bf16.mxu0 %v6033_v58  ;;  %6066 = vmatprep.subr.bf16.mxu1 %v6065_v6  ;;  %v3240_v46 = vld [vmem:[#allocation13 + $0x6a0] sm:$0xff]  ;;  %v3226_v58 = vld [vmem:[#allocation13 + $0x630] sm:$0xff] }
 0x306   :  { %3574 = vmatprep.mubr.f32.mxu0 %v6735_v47  ;;  %3645 = vmatprep.mubr.f32.mxu1 %v6735_v47  ;;  %v3242_v6 = vld [vmem:[#allocation13 + $0x6b0] sm:$0xff]  ;;  %v6055_v5 = vpack.c.bf16 %v3240_v46, %v3224_v26  ;;  %v6105_v26 = vpack.c.bf16 %v3149_v43, %v3133_v41  ;;  %v6137_v46 = vpack.c.bf16 %v3151_v63, %v3135_v50  ;;  %v3043_v41 = vld [vmem:[#allocation13 + $0x78] sm:$0xff] }
 0x307   :  { %v6087_v13 = vpack.c.bf16 %v3242_v6, %v3226_v58  ;;  %v3165_v58 = vld [vmem:[#allocation13 + $0x448] sm:$0xff]  ;;  %v3059_v43 = vld [vmem:[#allocation13 + $0xf8] sm:$0xff] }
 0x308   :  { %6036 = vmatpush1.bf16.msra.mxu0 %v6035_v37  ;;  %6068 = vmatpush1.bf16.msra.mxu1 %v6067_v10  ;;  %v3256_v37 = vld [vmem:[#allocation13 + $0x720] sm:$0xff]  ;;  %v3181_v6 = vld [vmem:[#allocation13 + $0x4c8] sm:$0xff] }
 0x309   :  { %6038 = vmatprep.subr.bf16.mxu0 %v6037_v59  ;;  %6070 = vmatprep.subr.bf16.mxu1 %v6069_v21  ;;  %v3272_v10 = vld [vmem:[#allocation13 + $0x7a0] sm:$0xff]  ;;  %v3258_v59 = vld [vmem:[#allocation13 + $0x730] sm:$0xff] }
 0x30a   :  { %v3274_v21 = vld [vmem:[#allocation13 + $0x7b0] sm:$0xff]  ;;  %v6059_v53 = vpack.c.bf16 %v3272_v10, %v3256_v37  ;;  %v6109_v37 = vpack.c.bf16 %v3181_v6, %v3165_v58  ;;  %v6141_v10 = vpack.c.bf16 %v3183_v54, %v3167_v15  ;;  %v3075_v58 = vld [vmem:[#allocation13 + $0x178] sm:$0xff] }
 0x30b   :  { %v6091_v57 = vpack.c.bf16 %v3274_v21, %v3258_v59  ;;  %v3197_v59 = vld [vmem:[#allocation13 + $0x548] sm:$0xff]  ;;  %v3091_v6 = vld [vmem:[#allocation13 + $0x1f8] sm:$0xff] }
 0x30c   :  { %6040 = vmatpush1.bf16.msra.mxu0 %v6039_v27  ;;  %6072 = vmatpush1.bf16.msra.mxu1 %v6071_v11  ;;  %v3036_v27 = vld [vmem:[#allocation13 + $0x40] sm:$0xff]  ;;  %v3213_v21 = vld [vmem:[#allocation13 + $0x5c8] sm:$0xff] }
 0x30d   :  { %6042 = vmatprep.subr.bf16.mxu0 %v6041_v2  ;;  %6074 = vmatprep.subr.bf16.mxu1 %v6073_v36  ;;  %v3052_v11 = vld [vmem:[#allocation13 + $0xc0] sm:$0xff]  ;;  %v3038_v2 = vld [vmem:[#allocation13 + $0x50] sm:$0xff] }
 0x30e   :  { %v3054_v36 = vld [vmem:[#allocation13 + $0xd0] sm:$0xff]  ;;  %v6095_v4 = vpack.c.bf16 %v3052_v11, %v3036_v27  ;;  %v6113_v27 = vpack.c.bf16 %v3213_v21, %v3197_v59  ;;  %v6145_v11 = vpack.c.bf16 %v3215_v17, %v3199_v49  ;;  %v3107_v59 = vld [vmem:[#allocation13 + $0x278] sm:$0xff] }
 0x30f   :  { %v6127_v62 = vpack.c.bf16 %v3054_v36, %v3038_v2  ;;  %v3229_v2 = vld [vmem:[#allocation13 + $0x648] sm:$0xff]  ;;  %v3123_v21 = vld [vmem:[#allocation13 + $0x2f8] sm:$0xff] }
 0x310   :  { %6044 = vmatpush1.bf16.msra.mxu0 %v6043_v25  ;;  %6076 = vmatpush1.bf16.msra.mxu1 %v6075_v51  ;;  %v3068_v25 = vld [vmem:[#allocation13 + $0x140] sm:$0xff]  ;;  %v3245_v36 = vld [vmem:[#allocation13 + $0x6c8] sm:$0xff] }
 0x311   :  { %6046 = vmatprep.subr.bf16.mxu0 %v6045_v45  ;;  %6078 = vmatprep.subr.bf16.mxu1 %v6077_v18  ;;  %v3084_v51 = vld [vmem:[#allocation13 + $0x1c0] sm:$0xff]  ;;  %v3070_v45 = vld [vmem:[#allocation13 + $0x150] sm:$0xff] }
 0x312   :  { %v3086_v18 = vld [vmem:[#allocation13 + $0x1d0] sm:$0xff]  ;;  %v6099_v61 = vpack.c.bf16 %v3084_v51, %v3068_v25  ;;  %v6117_v25 = vpack.c.bf16 %v3245_v36, %v3229_v2  ;;  %v6149_v51 = vpack.c.bf16 %v3247_v19, %v3231_v23  ;;  %v3139_v2 = vld [vmem:[#allocation13 + $0x378] sm:$0xff] }
 0x313   :  { %v6131_v32 = vpack.c.bf16 %v3086_v18, %v3070_v45  ;;  %v3261_v45 = vld [vmem:[#allocation13 + $0x748] sm:$0xff]  ;;  %v3155_v36 = vld [vmem:[#allocation13 + $0x3f8] sm:$0xff] }
 0x314   :  { %6048 = vmatpush1.bf16.msra.mxu0 %v6047_v40  ;;  %6080 = vmatpush1.bf16.msra.mxu1 %v6079_v16  ;;  %v3100_v40 = vld [vmem:[#allocation13 + $0x240] sm:$0xff]  ;;  %v3277_v18 = vld [vmem:[#allocation13 + $0x7c8] sm:$0xff] }
 0x315   :  { %6050 = vmatprep.subr.bf16.mxu0 %v6049_v31  ;;  %6082 = vmatprep.subr.bf16.mxu1 %v6081_v60  ;;  %v3116_v16 = vld [vmem:[#allocation13 + $0x2c0] sm:$0xff]  ;;  %v3102_v31 = vld [vmem:[#allocation13 + $0x250] sm:$0xff] }
 0x316   :  { %v3118_v60 = vld [vmem:[#allocation13 + $0x2d0] sm:$0xff]  ;;  %v6103_v7 = vpack.c.bf16 %v3116_v16, %v3100_v40  ;;  %v6121_v40 = vpack.c.bf16 %v3277_v18, %v3261_v45  ;;  %v6153_v16 = vpack.c.bf16 %v3279_v56, %v3263_v52  ;;  %v3171_v45 = vld [vmem:[#allocation13 + $0x478] sm:$0xff]  ;;  %v3168_v56 = vld [vmem:[#allocation13 + $0x460] sm:$0xff] }
 0x317   :  { %v6135_v42 = vpack.c.bf16 %v3118_v60, %v3102_v31  ;;  %v3041_v31 = vld [vmem:[#allocation13 + $0x68] sm:$0xff]  ;;  %v3187_v18 = vld [vmem:[#allocation13 + $0x4f8] sm:$0xff] }
 0x318   :  { %6052 = vmatpush1.bf16.msra.mxu0 %v6051_v30  ;;  %6084 = vmatpush1.bf16.msra.mxu1 %v6083_v34  ;;  %v3132_v30 = vld [vmem:[#allocation13 + $0x340] sm:$0xff]  ;;  %v3057_v60 = vld [vmem:[#allocation13 + $0xe8] sm:$0xff] }
 0x319   :  { %6054 = vmatprep.subr.bf16.mxu0 %v6053_v8  ;;  %6086 = vmatprep.subr.bf16.mxu1 %v6085_v14  ;;  %v3148_v34 = vld [vmem:[#allocation13 + $0x3c0] sm:$0xff]  ;;  %v3134_v8 = vld [vmem:[#allocation13 + $0x350] sm:$0xff] }
 0x31a   :  { %v3150_v14 = vld [vmem:[#allocation13 + $0x3d0] sm:$0xff]  ;;  %v6107_v33 = vpack.c.bf16 %v3148_v34, %v3132_v30  ;;  %v6157_v30 = vpack.c.bf16 %v3057_v60, %v3041_v31  ;;  %v6189_v34 = vpack.c.bf16 %v3059_v43, %v3043_v41  ;;  %v3219_v31 = vld [vmem:[#allocation13 + $0x5f8] sm:$0xff]  ;;  %v3200_v43 = vld [vmem:[#allocation13 + $0x560] sm:$0xff] }
 0x31b   :  { %v6139_v28 = vpack.c.bf16 %v3150_v14, %v3134_v8  ;;  %v3073_v8 = vld [vmem:[#allocation13 + $0x168] sm:$0xff] }
 0x31c   :  { %6056 = vmatpush1.bf16.msra.mxu0 %v6055_v5  ;;  %6088 = vmatpush1.bf16.msra.mxu1 %v6087_v13  ;;  %v3164_v5 = vld [vmem:[#allocation13 + $0x440] sm:$0xff]  ;;  %v3089_v14 = vld [vmem:[#allocation13 + $0x1e8] sm:$0xff] }
 0x31d   :  { %6058 = vmatprep.subr.bf16.mxu0 %v6057_v55  ;;  %6090 = vmatprep.subr.bf16.mxu1 %v6089_v35  ;;  %v3180_v13 = vld [vmem:[#allocation13 + $0x4c0] sm:$0xff]  ;;  %v3166_v55 = vld [vmem:[#allocation13 + $0x450] sm:$0xff] }
 0x31e   :  { %v3182_v35 = vld [vmem:[#allocation13 + $0x4d0] sm:$0xff]  ;;  %v6111_v0 = vpack.c.bf16 %v3180_v13, %v3164_v5  ;;  %v6161_v5 = vpack.c.bf16 %v3089_v14, %v3073_v8  ;;  %v6193_v13 = vpack.c.bf16 %v3091_v6, %v3075_v58  ;;  %v3251_v8 = vld [vmem:[#allocation13 + $0x6f8] sm:$0xff]  ;;  %v3232_v6 = vld [vmem:[#allocation13 + $0x660] sm:$0xff] }
 0x31f   :  { %v6143_v20 = vpack.c.bf16 %v3182_v35, %v3166_v55  ;;  %v3105_v55 = vld [vmem:[#allocation13 + $0x268] sm:$0xff] }
 0x320   :  { %6060 = vmatpush1.bf16.msra.mxu0 %v6059_v53  ;;  %6092 = vmatpush1.bf16.msra.mxu1 %v6091_v57  ;;  %v3196_v53 = vld [vmem:[#allocation13 + $0x540] sm:$0xff]  ;;  %v3121_v35 = vld [vmem:[#allocation13 + $0x2e8] sm:$0xff] }
 0x321   :  { %6094 = vmatprep.subr.bf16.mxu0 %v6093_v48  ;;  %6126 = vmatprep.subr.bf16.mxu1 %v6125_v24  ;;  %v3212_v57 = vld [vmem:[#allocation13 + $0x5c0] sm:$0xff]  ;;  %v3198_v48 = vld [vmem:[#allocation13 + $0x550] sm:$0xff] }
 0x322   :  { %v3214_v24 = vld [vmem:[#allocation13 + $0x5d0] sm:$0xff]  ;;  %v6115_v39 = vpack.c.bf16 %v3212_v57, %v3196_v53  ;;  %v6165_v53 = vpack.c.bf16 %v3121_v35, %v3105_v55  ;;  %v6197_v57 = vpack.c.bf16 %v3123_v21, %v3107_v59  ;;  %v3283_v55 = vld [vmem:[#allocation13 + $0x7f8] sm:$0xff]  ;;  %v3264_v21 = vld [vmem:[#allocation13 + $0x760] sm:$0xff] }
 0x323   :  { %3575 = vmatmul.mubr.f32.vlgmr.msra.gmra.mrb[10].mxu0 %v7612_v29  ;;  %3646 = vmatmul.mubr.f32.vlgmr.msra.gmra.mrb[10].mxu1 %v7612_v29  ;;  %v6147_v44 = vpack.c.bf16 %v3214_v24, %v3198_v48  ;;  %v3137_v48 = vld [vmem:[#allocation13 + $0x368] sm:$0xff] }
 0x324   :  { %6096 = vmatpush1.bf16.msra.mxu0 %v6095_v4  ;;  %6128 = vmatpush1.bf16.msra.mxu1 %v6127_v62  ;;  %v3228_v4 = vld [vmem:[#allocation13 + $0x640] sm:$0xff]  ;;  %v3153_v24 = vld [vmem:[#allocation13 + $0x3e8] sm:$0xff] }
 0x325   :  { %6098 = vmatprep.subr.bf16.mxu0 %v6097_v22  ;;  %6130 = vmatprep.subr.bf16.mxu1 %v6129_v9  ;;  %v3244_v62 = vld [vmem:[#allocation13 + $0x6c0] sm:$0xff]  ;;  %v3230_v22 = vld [vmem:[#allocation13 + $0x650] sm:$0xff] }
 0x326   :  { %3716 = vmatprep.mubr.f32.mxu0 %v6735_v47  ;;  %3787 = vmatprep.mubr.f32.mxu1 %v6735_v47  ;;  %v3246_v9 = vld [vmem:[#allocation13 + $0x6d0] sm:$0xff]  ;;  %v6119_v1 = vpack.c.bf16 %v3244_v62, %v3228_v4  ;;  %v6169_v4 = vpack.c.bf16 %v3153_v24, %v3137_v48  ;;  %v6201_v62 = vpack.c.bf16 %v3155_v36, %v3139_v2  ;;  %v3284_v2 = vld [vmem:[%s7767_s8] sm:$0xff] }
 0x327   :  { %v6151_v38 = vpack.c.bf16 %v3246_v9, %v3230_v22  ;;  %v3169_v22 = vld [vmem:[#allocation13 + $0x468] sm:$0xff] }
 0x328   :  { %6100 = vmatpush1.bf16.msra.mxu0 %v6099_v61  ;;  %6132 = vmatpush1.bf16.msra.mxu1 %v6131_v32  ;;  %v3260_v61 = vld [vmem:[#allocation13 + $0x740] sm:$0xff]  ;;  %v3185_v9 = vld [vmem:[#allocation13 + $0x4e8] sm:$0xff] }
 0x329   :  { %6102 = vmatprep.subr.bf16.mxu0 %v6101_v12  ;;  %6134 = vmatprep.subr.bf16.mxu1 %v6133_v3  ;;  %v3276_v32 = vld [vmem:[#allocation13 + $0x7c0] sm:$0xff]  ;;  %v3262_v12 = vld [vmem:[#allocation13 + $0x750] sm:$0xff] }
 0x32a   :  { %v3278_v3 = vld [vmem:[#allocation13 + $0x7d0] sm:$0xff]  ;;  %v6123_v50 = vpack.c.bf16 %v3276_v32, %v3260_v61  ;;  %v6205_v61 = vpack.c.bf16 %v3187_v18, %v3171_v45 }
 0x32b   :  { %v6155_v63 = vpack.c.bf16 %v3278_v3, %v3262_v12  ;;  %v3170_v32 = vld [vmem:[#allocation13 + $0x470] sm:$0xff]  ;;  %v3217_v12 = vld [vmem:[#allocation13 + $0x5e8] sm:$0xff]  ;;  %v3203_v3 = vld [vmem:[#allocation13 + $0x578] sm:$0xff] }
 0x32c   :  { %6104 = vmatpush1.bf16.msra.mxu0 %v6103_v7  ;;  %6136 = vmatpush1.bf16.msra.mxu1 %v6135_v42  ;;  %v3040_v7 = vld [vmem:[#allocation13 + $0x60] sm:$0xff] }
 0x32d   :  { %6106 = vmatprep.subr.bf16.mxu0 %v6105_v26  ;;  %6138 = vmatprep.subr.bf16.mxu1 %v6137_v46  ;;  %v3056_v42 = vld [vmem:[#allocation13 + $0xe0] sm:$0xff]  ;;  %v3042_v26 = vld [vmem:[#allocation13 + $0x70] sm:$0xff] }
 0x32e   :  { %v3058_v46 = vld [vmem:[#allocation13 + $0xf0] sm:$0xff]  ;;  %v6159_v15 = vpack.c.bf16 %v3056_v42, %v3040_v7  ;;  %v6209_v7 = vpack.c.bf16 %v3219_v31, %v3203_v3 }
 0x32f   :  { %v6191_v54 = vpack.c.bf16 %v3058_v46, %v3042_v26  ;;  %v3202_v42 = vld [vmem:[#allocation13 + $0x570] sm:$0xff]  ;;  %v3249_v26 = vld [vmem:[#allocation13 + $0x6e8] sm:$0xff]  ;;  %v3235_v46 = vld [vmem:[#allocation13 + $0x678] sm:$0xff] }
 0x330   :  { %6108 = vmatpush1.bf16.msra.mxu0 %v6107_v33  ;;  %6140 = vmatpush1.bf16.msra.mxu1 %v6139_v28  ;;  %v3072_v33 = vld [vmem:[#allocation13 + $0x160] sm:$0xff] }
 0x331   :  { %6110 = vmatprep.subr.bf16.mxu0 %v6109_v37  ;;  %6142 = vmatprep.subr.bf16.mxu1 %v6141_v10  ;;  %v3088_v28 = vld [vmem:[#allocation13 + $0x1e0] sm:$0xff]  ;;  %v3074_v37 = vld [vmem:[#allocation13 + $0x170] sm:$0xff] }
 0x332   :  { %v3090_v10 = vld [vmem:[#allocation13 + $0x1f0] sm:$0xff]  ;;  %v6163_v49 = vpack.c.bf16 %v3088_v28, %v3072_v33  ;;  %v6213_v33 = vpack.c.bf16 %v3251_v8, %v3235_v46 }
 0x333   :  { %v6195_v17 = vpack.c.bf16 %v3090_v10, %v3074_v37  ;;  %v3234_v28 = vld [vmem:[#allocation13 + $0x670] sm:$0xff]  ;;  %v3281_v37 = vld [vmem:[#allocation13 + $0x7e8] sm:$0xff]  ;;  %v3267_v10 = vld [vmem:[#allocation13 + $0x778] sm:$0xff] }
 0x334   :  { %6112 = vmatpush1.bf16.msra.mxu0 %v6111_v0  ;;  %6144 = vmatpush1.bf16.msra.mxu1 %v6143_v20  ;;  %v3104_v0 = vld [vmem:[#allocation13 + $0x260] sm:$0xff] }
 0x335   :  { %6114 = vmatprep.subr.bf16.mxu0 %v6113_v27  ;;  %6146 = vmatprep.subr.bf16.mxu1 %v6145_v11  ;;  %v3120_v20 = vld [vmem:[#allocation13 + $0x2e0] sm:$0xff]  ;;  %v3106_v27 = vld [vmem:[#allocation13 + $0x270] sm:$0xff] }
 0x336   :  { %v3122_v11 = vld [vmem:[#allocation13 + $0x2f0] sm:$0xff]  ;;  %v6167_v23 = vpack.c.bf16 %v3120_v20, %v3104_v0  ;;  %v3280_v0 = vld [vmem:[#allocation13 + $0x7e0] sm:$0xff] }
 0x337   :  { %v6199_v19 = vpack.c.bf16 %v3122_v11, %v3106_v27  ;;  %v3266_v20 = vld [vmem:[#allocation13 + $0x770] sm:$0xff]  ;;  %v7818_v11 = vld [vmem:[#allocation22_spill] sm:$0xff] }
 0x338   :  { %6116 = vmatpush1.bf16.msra.mxu0 %v6115_v39  ;;  %6148 = vmatpush1.bf16.msra.mxu1 %v6147_v44  ;;  %v3136_v39 = vld [vmem:[#allocation13 + $0x360] sm:$0xff]  ;;  %v3290_v48 = vsub.s32 0, %v7818_v11  ;;  %v3298_v24 = vsub.s32 2, %v7818_v11  ;;  %v3294_v36 = vsub.s32 1, %v7818_v11 }
 0x339   :  { %6118 = vmatprep.subr.bf16.mxu0 %v6117_v25  ;;  %6150 = vmatprep.subr.bf16.mxu1 %v6149_v51  ;;  %v3152_v44 = vld [vmem:[#allocation13 + $0x3e0] sm:$0xff]  ;;  %v3138_v25 = vld [vmem:[#allocation13 + $0x370] sm:$0xff] }
 0x33a   :  { %v3154_v51 = vld [vmem:[#allocation13 + $0x3f0] sm:$0xff]  ;;  %v6171_v52 = vpack.c.bf16 %v3152_v44, %v3136_v39  ;;  %v3299_v39 = vrot.slane %v3284_v2, %v3298_v24 }
 0x33c   :  { %6120 = vmatpush1.bf16.msra.mxu0 %v6119_v1  ;;  %6152 = vmatpush1.bf16.msra.mxu1 %v6151_v38  ;;  %v3184_v1 = vld [vmem:[#allocation13 + $0x4e0] sm:$0xff]  ;;  %v6173_v38 = vpack.c.bf16 %v3185_v9, %v3169_v22 }
 0x33d   :  { %6122 = vmatprep.subr.bf16.mxu0 %v6121_v40  ;;  %6154 = vmatprep.subr.bf16.mxu1 %v6153_v16  ;;  %v3186_v40 = vld [vmem:[#allocation13 + $0x4f0] sm:$0xff]  ;;  %v3201_v16 = vld [vmem:[#allocation13 + $0x568] sm:$0xff]  ;;  %v6175_v60 = vpack.c.bf16 %v3184_v1, %v3168_v56 }
 0x33e   :  { %v6207_v41 = vpack.c.bf16 %v3186_v40, %v3170_v32 }
 0x340   :  { %6124 = vmatpush1.bf16.msra.mxu0 %v6123_v50  ;;  %6156 = vmatpush1.bf16.msra.mxu1 %v6155_v63  ;;  %v3216_v50 = vld [vmem:[#allocation13 + $0x5e0] sm:$0xff]  ;;  %v6177_v63 = vpack.c.bf16 %v3217_v12, %v3201_v16 }
 0x341   :  { %6158 = vmatprep.subr.bf16.mxu0 %v6157_v30  ;;  %6190 = vmatprep.subr.bf16.mxu1 %v6189_v34  ;;  %v3218_v30 = vld [vmem:[#allocation13 + $0x5f0] sm:$0xff]  ;;  %v3233_v34 = vld [vmem:[#allocation13 + $0x668] sm:$0xff]  ;;  %v6179_v14 = vpack.c.bf16 %v3216_v50, %v3200_v43  ;;  %v7645_v43 = vpop.permute.xlu0 %4039  ;;  %v3310_v50 = vsub.s32 5, %v7818_v11 }
 0x342   :  { %v6211_v58 = vpack.c.bf16 %v3218_v30, %v3202_v42 }
 0x343   :  { %3717 = vmatmul.mubr.f32.vlgmr.msra.gmra.mrb[12].mxu0 %v7612_v29  ;;  %3788 = vmatmul.mubr.f32.vlgmr.msra.gmra.mrb[12].mxu1 %v7612_v29 }
 0x344   :  { %6160 = vmatpush1.bf16.msra.mxu0 %v6159_v15  ;;  %6192 = vmatpush1.bf16.msra.mxu1 %v6191_v54  ;;  %v3248_v15 = vld [vmem:[#allocation13 + $0x6e0] sm:$0xff]  ;;  %v6181_v54 = vpack.c.bf16 %v3249_v26, %v3233_v34 }
 0x345   :  { %6162 = vmatprep.subr.bf16.mxu0 %v6161_v5  ;;  %6194 = vmatprep.subr.bf16.mxu1 %v6193_v13  ;;  %v3250_v5 = vld [vmem:[#allocation13 + $0x6f0] sm:$0xff]  ;;  %v3265_v13 = vld [vmem:[#allocation13 + $0x768] sm:$0xff]  ;;  %v6183_v35 = vpack.c.bf16 %v3248_v15, %v3232_v6 }
 0x346   :  { %3858 = vmatprep.mubr.f32.mxu0 %v6735_v47  ;;  %3929 = vmatprep.mubr.f32.mxu1 %v6735_v47  ;;  %v6203_v47 = vpack.c.bf16 %v3154_v51, %v3138_v25  ;;  %v6215_v59 = vpack.c.bf16 %v3250_v5, %v3234_v28 }
 0x348   :  { %6164 = vmatpush1.bf16.msra.mxu0 %v6163_v49  ;;  %6196 = vmatpush1.bf16.msra.mxu1 %v6195_v17  ;;  %v6185_v49 = vpack.c.bf16 %v3281_v37, %v3265_v13  ;;  %v6217_v17 = vpack.c.bf16 %v3283_v55, %v3267_v10 }
 0x349   :  { %6166 = vmatprep.subr.bf16.mxu0 %v6165_v53  ;;  %6198 = vmatprep.subr.bf16.mxu1 %v6197_v57  ;;  %v3282_v53 = vld [vmem:[#allocation13 + $0x7f0] sm:$0xff]  ;;  %v6187_v57 = vpack.c.bf16 %v3280_v0, %v3264_v21 }
 0x34a   :  { %v6219_v27 = vpack.c.bf16 %v3282_v53, %v3266_v20 }
 0x34c   :  { %6168 = vmatpush1.bf16.msra.mxu0 %v6167_v23  ;;  %6200 = vmatpush1.bf16.msra.mxu1 %v6199_v19  ;;  %v3302_v23 = vsub.s32 3, %v7818_v11  ;;  %v3291_v19 = vrot.slane %v3284_v2, %v3290_v48 }
 0x34d   :  { %6170 = vmatprep.subr.bf16.mxu0 %v6169_v4  ;;  %6202 = vmatprep.subr.bf16.mxu1 %v6201_v62 }
 0x34e   :  { %v3303_v44 = vrot.slane %v3284_v2, %v3302_v23 }
 0x350   :  { %6172 = vmatpush1.bf16.msra.mxu0 %v6171_v52  ;;  %6204 = vmatpush1.bf16.msra.mxu1 %v6203_v47 }
 0x351   :  { %6174 = vmatprep.subr.bf16.mxu0 %v6173_v38  ;;  %6206 = vmatprep.subr.bf16.mxu1 %v6205_v61 }
 0x354   :  { %6176 = vmatpush1.bf16.msra.mxu0 %v6175_v60  ;;  %6208 = vmatpush1.bf16.msra.mxu1 %v6207_v41  ;;  %v3306_v60 = vsub.s32 4, %v7818_v11  ;;  %v3314_v41 = vsub.s32 6, %v7818_v11 }
 0x355   :  { %6178 = vmatprep.subr.bf16.mxu0 %v6177_v63  ;;  %6210 = vmatprep.subr.bf16.mxu1 %v6209_v7  ;;  %v3318_v63 = vsub.s32 7, %v7818_v11 }
 0x356   :  { %v3307_v34 = vrot.slane %v3284_v2, %v3306_v60  ;;  %v3315_v26 = vrot.slane %v3284_v2, %v3314_v41 }
 0x358   :  { %6180 = vmatpush1.bf16.msra.mxu0 %v6179_v14  ;;  %6212 = vmatpush1.bf16.msra.mxu1 %v6211_v58  ;;  %v3311_v14 = vrot.slane %v3284_v2, %v3310_v50  ;;  %v3319_v58 = vrot.slane %v3284_v2, %v3318_v63 }
 0x359   :  { %6182 = vmatprep.subr.bf16.mxu0 %v6181_v54  ;;  %6214 = vmatprep.subr.bf16.mxu1 %v6213_v33 }
 0x35c   :  { %6184 = vmatpush1.bf16.msra.mxu0 %v6183_v35  ;;  %6216 = vmatpush1.bf16.msra.mxu1 %v6215_v59 }
 0x35d   :  { %6186 = vmatprep.subr.bf16.mxu0 %v6185_v49  ;;  %6218 = vmatprep.subr.bf16.mxu1 %v6217_v17  ;;  %v7819_v49 = vld [vmem:[#allocation23_spill] sm:$0xff] }
 0x360   :  { %6188 = vmatpush1.bf16.msra.mxu0 %v6187_v57  ;;  %6220 = vmatpush1.bf16.msra.mxu1 %v6219_v27 }
 0x363   :  { %3859 = vmatmul.mubr.f32.vlgmr.msra.gmra.mrb[14].mxu0 %v7612_v29  ;;  %3930 = vmatmul.mubr.f32.vlgmr.msra.gmra.mrb[14].mxu1 %v7612_v29  ;;  %v3295_v29 = vrot.slane %v3284_v2, %v3294_v36  ;;  %v4032_v2 = vld [vmem:[#allocation2] sm:$0xff] }
 0x3d6   :  { %v3434_v4 = vpop.f32.mrb[8].mxu0  ;;  %v3505_v62 = vpop.f32.mrb[8].mxu1 }
 0x3d7   :  { %v3435_v25 = vadd.f32 %v3434_v4, %v3291_v19  ;;  %v3506_v51 = vadd.f32 %v3505_v62, %v3299_v39  ;;  %v3436_v22 = vpop.f32.mrb[9].mxu0  ;;  %v3507_v9 = vpop.f32.mrb[9].mxu1 }
 0x3d8   :  { %v3437_v45 = vadd.f32 %v3436_v22, %v3295_v29  ;;  %v3508_v18 = vadd.f32 %v3507_v9, %v3303_v44 }
 0x3d9   :  { %v5129_v52 = vmul.f32 -1.442695, %v3435_v25  ;;  %v5131_v47 = vmul.f32 -1.442695, %v3506_v51 }
 0x3da   :  { %v5130_v56 = vmul.f32 -1.442695, %v3437_v45  ;;  %v5132_v1 = vmul.f32 -1.442695, %v3508_v18  ;;  %v3285_v45 = vld [vmem:[%s7767_s8 + $0x8] sm:$0xff] }
 0x3db   :  { %6491 = vpow2.f32 %v5129_v52 }
 0x3dc   :  { %6493 = vpow2.f32 %v5131_v47 }
 0x3dd   :  { %6495 = vpow2.f32 %v5130_v56  ;;  %v3323_v56 = vrot.slane %v3285_v45, %v3290_v48 }
 0x3de   :  { %6497 = vpow2.f32 %v5132_v1  ;;  %v3331_v1 = vrot.slane %v3285_v45, %v3298_v24 }
 0x3e5   :  { %v6492_v38 = vpop.eup %6491 }
 0x3e6   :  { %v6494_v61 = vpop.eup %6493  ;;  %v3984_v32 = vadd.f32 1.0, %v6492_v38 }
 0x3e7   :  { %v6496_v40 = vpop.eup %6495  ;;  %v3986_v16 = vadd.f32 1.0, %v6494_v61 }
 0x3e8   :  { %v6498_v12 = vpop.eup %6497  ;;  %6499 = vrcp.f32 %v3984_v32  ;;  %v3985_v3 = vadd.f32 1.0, %v6496_v40  ;;  %v3327_v32 = vrot.slane %v3285_v45, %v3294_v36  ;;  %v3335_v40 = vrot.slane %v3285_v45, %v3302_v23 }
 0x3e9   :  { %6501 = vrcp.f32 %v3986_v16  ;;  %v3987_v31 = vadd.f32 1.0, %v6498_v12 }
 0x3ea   :  { %6503 = vrcp.f32 %v3985_v3 }
 0x3eb   :  { %6505 = vrcp.f32 %v3987_v31 }
 0x3f2   :  { %v6500_v7 = vpop.eup %6499 }
 0x3f3   :  { %v6502_v42 = vpop.eup %6501  ;;  %v4042_v30 = vmul.f32 %v6500_v7, %v7645_v43 }
 0x3f4   :  { %v6504_v46 = vpop.eup %6503  ;;  %v4044_v8 = vmul.f32 %v6502_v42, %v7645_v43 }
 0x3f5   :  { %v6506_v6 = vpop.eup %6505  ;;  %v4043_v15 = vmul.f32 %v6504_v46, %v7645_v43 }
 0x3f6   :  { %v4045_v54 = vmul.f32 %v6506_v6, %v7645_v43  ;;  %v3576_v33 = vpop.f32.mrb[10].mxu0  ;;  %v3647_v28 = vpop.f32.mrb[10].mxu1 }
 0x3f7   :  { %v4074_v5 = vcombine.low %v4042_v30, %v4043_v15  ;;  %v3577_v13 = vadd.f32 %v3576_v33, %v3307_v34  ;;  %v3648_v37 = vadd.f32 %v3647_v28, %v3315_v26  ;;  %v3578_v10 = vpop.f32.mrb[11].mxu0  ;;  %v3649_v55 = vpop.f32.mrb[11].mxu1 }
 0x3f8   :  { %v4075_v35 = vcombine.low %v4044_v8, %v4045_v54  ;;  %v3579_v59 = vadd.f32 %v3578_v10, %v3311_v14  ;;  %v3650_v21 = vadd.f32 %v3649_v55, %v3319_v58  ;;  %v4033_v54 = vld [vmem:[#allocation2 + $0x8] sm:$0xff] }
 0x3f9   :  { %v4082_v17 = vrot.slane %v4074_v5, %v7819_v49  ;;  %v5133_v0 = vmul.f32 -1.442695, %v3577_v13  ;;  %v5135_v20 = vmul.f32 -1.442695, %v3648_v37 }
 0x3fa   :  { %v4089_v53 = vrot.slane %v4075_v35, %v7819_v49  ;;  %v5134_v57 = vmul.f32 -1.442695, %v3579_v59  ;;  %v5136_v27 = vmul.f32 -1.442695, %v3650_v21 }
 0x3fb   :  { %6507 = vpow2.f32 %v5133_v0 }
 0x3fc   :  { %v4090_v19 = vcombine.low %v4082_v17, %v4089_v53  ;;  %6509 = vpow2.f32 %v5135_v20  ;;  %v3339_v53 = vrot.slane %v3285_v45, %v3306_v60 }
 0x3fd   :  { %6511 = vpow2.f32 %v5134_v57  ;;  %v3347_v57 = vrot.slane %v3285_v45, %v3314_v41 }
 0x3fe   :  { %v4146_v39 = vadd.f32 %v4090_v19, %v4032_v2  ;;  %6513 = vpow2.f32 %v5136_v27  ;;  %v3343_v19 = vrot.slane %v3285_v45, %v3310_v50 }
 0x400   :  { %4150 = vst [vmem:[#allocation2] sm:$0xff] %v4146_v39  ;;  %v3351_v39 = vrot.slane %v3285_v45, %v3318_v63 }
 0x405   :  { %v6508_v29 = vpop.eup %6507 }
 0x406   :  { %v6510_v44 = vpop.eup %6509  ;;  %v3988_v4 = vadd.f32 1.0, %v6508_v29 }
 0x407   :  { %v6512_v62 = vpop.eup %6511  ;;  %v3990_v25 = vadd.f32 1.0, %v6510_v44 }
 0x408   :  { %v6514_v51 = vpop.eup %6513  ;;  %6515 = vrcp.f32 %v3988_v4  ;;  %v3989_v22 = vadd.f32 1.0, %v6512_v62 }
 0x409   :  { %6517 = vrcp.f32 %v3990_v25  ;;  %v3991_v9 = vadd.f32 1.0, %v6514_v51 }
 0x40a   :  { %6519 = vrcp.f32 %v3989_v22 }
 0x40b   :  { %6521 = vrcp.f32 %v3991_v9 }
 0x412   :  { %v6516_v18 = vpop.eup %6515 }
 0x413   :  { %v6518_v52 = vpop.eup %6517  ;;  %v4046_v47 = vmul.f32 %v6516_v18, %v7645_v43 }
 0x414   :  { %v6520_v38 = vpop.eup %6519  ;;  %v4048_v61 = vmul.f32 %v6518_v52, %v7645_v43 }
 0x415   :  { %v6522_v16 = vpop.eup %6521  ;;  %v4047_v12 = vmul.f32 %v6520_v38, %v7645_v43  ;;  %v4034_v38 = vld [vmem:[#allocation2 + $0x10] sm:$0xff] }
 0x416   :  { %v4049_v3 = vmul.f32 %v6522_v16, %v7645_v43  ;;  %v3718_v31 = vpop.f32.mrb[12].mxu0  ;;  %v3789_v7 = vpop.f32.mrb[12].mxu1 }
 0x417   :  { %v4091_v48 = vcombine.low %v4046_v47, %v4047_v12  ;;  %v3719_v42 = vadd.f32 %v3718_v31, %v3323_v56  ;;  %v3790_v30 = vadd.f32 %v3789_v7, %v3331_v1  ;;  %v3720_v24 = vpop.f32.mrb[13].mxu0  ;;  %v3791_v34 = vpop.f32.mrb[13].mxu1 }
 0x418   :  { %v4092_v26 = vcombine.low %v4048_v61, %v4049_v3  ;;  %v3721_v46 = vadd.f32 %v3720_v24, %v3327_v32  ;;  %v3792_v8 = vadd.f32 %v3791_v34, %v3335_v40 }
 0x419   :  { %v4099_v36 = vrot.slane %v4091_v48, %v7819_v49  ;;  %v5137_v14 = vmul.f32 -1.442695, %v3719_v42  ;;  %v5139_v58 = vmul.f32 -1.442695, %v3790_v30 }
 0x41a   :  { %v4106_v23 = vrot.slane %v4092_v26, %v7819_v49  ;;  %v5138_v6 = vmul.f32 -1.442695, %v3721_v46  ;;  %v5140_v15 = vmul.f32 -1.442695, %v3792_v8 }
 0x41b   :  { %6523 = vpow2.f32 %v5137_v14 }
 0x41c   :  { %v4107_v33 = vcombine.low %v4099_v36, %v4106_v23  ;;  %6525 = vpow2.f32 %v5139_v58 }
 0x41d   :  { %6527 = vpow2.f32 %v5138_v6 }
 0x41e   :  { %v4147_v28 = vadd.f32 %v4107_v33, %v4033_v54  ;;  %6529 = vpow2.f32 %v5140_v15  ;;  %v4035_v54 = vld [vmem:[#allocation2 + $0x18] sm:$0xff] }
 0x420   :  { %4151 = vst [vmem:[#allocation2 + $0x8] sm:$0xff] %v4147_v28 }
 0x425   :  { %v6524_v5 = vpop.eup %6523 }
 0x426   :  { %v6526_v13 = vpop.eup %6525  ;;  %v3992_v37 = vadd.f32 1.0, %v6524_v5 }
 0x427   :  { %v6528_v10 = vpop.eup %6527  ;;  %v3994_v55 = vadd.f32 1.0, %v6526_v13 }
 0x428   :  { %v6530_v35 = vpop.eup %6529  ;;  %6531 = vrcp.f32 %v3992_v37  ;;  %v3993_v59 = vadd.f32 1.0, %v6528_v10 }
 0x429   :  { %6533 = vrcp.f32 %v3994_v55  ;;  %v3995_v21 = vadd.f32 1.0, %v6530_v35 }
 0x42a   :  { %6535 = vrcp.f32 %v3993_v59 }
 0x42b   :  { %6537 = vrcp.f32 %v3995_v21 }
 0x432   :  { %v6532_v17 = vpop.eup %6531 }
 0x433   :  { %v6534_v0 = vpop.eup %6533  ;;  %v4050_v20 = vmul.f32 %v6532_v17, %v7645_v43 }
 0x434   :  { %v6536_v27 = vpop.eup %6535  ;;  %v4052_v2 = vmul.f32 %v6534_v0, %v7645_v43 }
 0x435   :  { %v6538_v29 = vpop.eup %6537  ;;  %v4051_v44 = vmul.f32 %v6536_v27, %v7645_v43 }
 0x436   :  { %v4053_v4 = vmul.f32 %v6538_v29, %v7645_v43  ;;  %v3860_v62 = vpop.f32.mrb[14].mxu0  ;;  %v3931_v25 = vpop.f32.mrb[14].mxu1 }
 0x437   :  { %v4108_v60 = vcombine.low %v4050_v20, %v4051_v44  ;;  %v3861_v51 = vadd.f32 %v3860_v62, %v3339_v53  ;;  %v3932_v22 = vadd.f32 %v3931_v25, %v3347_v57  ;;  %v3862_v41 = vpop.f32.mrb[15].mxu0  ;;  %v3933_v9 = vpop.f32.mrb[15].mxu1 }
 0x438   :  { %v4109_v18 = vcombine.low %v4052_v2, %v4053_v4  ;;  %v3863_v52 = vadd.f32 %v3862_v41, %v3343_v19  ;;  %v3934_v47 = vadd.f32 %v3933_v9, %v3351_v39 }
 0x439   :  { %v4116_v50 = vrot.slane %v4108_v60, %v7819_v49  ;;  %v5141_v56 = vmul.f32 -1.442695, %v3861_v51  ;;  %v5143_v11 = vmul.f32 -1.442695, %v3932_v22 }
 0x43a   :  { %v4123_v63 = vrot.slane %v4109_v18, %v7819_v49  ;;  %v5142_v45 = vmul.f32 -1.442695, %v3863_v52  ;;  %v5144_v1 = vmul.f32 -1.442695, %v3934_v47 }
 0x43b   :  { %6539 = vpow2.f32 %v5141_v56 }
 0x43c   :  { %v4124_v61 = vcombine.low %v4116_v50, %v4123_v63  ;;  %6541 = vpow2.f32 %v5143_v11 }
 0x43d   :  { %6543 = vpow2.f32 %v5142_v45 }
 0x43e   :  { %v4148_v32 = vadd.f32 %v4124_v61, %v4034_v38  ;;  %6545 = vpow2.f32 %v5144_v1 }
 0x440   :  { %4152 = vst [vmem:[#allocation2 + $0x10] sm:$0xff] %v4148_v32 }
 0x445   :  { %v6540_v40 = vpop.eup %6539 }
 0x446   :  { %v6542_v16 = vpop.eup %6541  ;;  %v3996_v12 = vadd.f32 1.0, %v6540_v40 }
 0x447   :  { %v6544_v3 = vpop.eup %6543  ;;  %v3998_v31 = vadd.f32 1.0, %v6542_v16 }
 0x448   :  { %v6546_v7 = vpop.eup %6545  ;;  %6547 = vrcp.f32 %v3996_v12  ;;  %v3997_v48 = vadd.f32 1.0, %v6544_v3 }
 0x449   :  { %6549 = vrcp.f32 %v3998_v31  ;;  %v3999_v42 = vadd.f32 1.0, %v6546_v7 }
 0x44a   :  { %6551 = vrcp.f32 %v3997_v48 }
 0x44b   :  { %6553 = vrcp.f32 %v3999_v42 }
 0x452   :  { %v6548_v30 = vpop.eup %6547 }
 0x453   :  { %v6550_v24 = vpop.eup %6549  ;;  %v4054_v34 = vmul.f32 %v6548_v30, %v7645_v43 }
 0x454   :  { %v6552_v26 = vpop.eup %6551  ;;  %v4056_v46 = vmul.f32 %v6550_v24, %v7645_v43 }
 0x455   :  { %v6554_v8 = vpop.eup %6553  ;;  %v4055_v36 = vmul.f32 %v6552_v26, %v7645_v43 }
 0x456   :  { %v4057_v14 = vmul.f32 %v6554_v8, %v7645_v43 }
 0x457   :  { %v4125_v58 = vcombine.low %v4054_v34, %v4055_v36 }
 0x458   :  { %v4126_v23 = vcombine.low %v4056_v46, %v4057_v14 }
 0x459   :  { %v4133_v6 = vrot.slane %v4125_v58, %v7819_v49 }
 0x45a   :  { %v4140_v15 = vrot.slane %v4126_v23, %v7819_v49 }
 0x45c   :  { %v4141_v33 = vcombine.low %v4133_v6, %v4140_v15 }
 0x45e   :  { %v4149_v28 = vadd.f32 %v4141_v33, %v4035_v54 }
 0x460   :  { %4153 = vst [vmem:[#allocation2 + $0x18] sm:$0xff] %v4149_v28 }
 0x461 PF:  { %v4174_v5 = vld [vmem:[#allocation14 + $0x80] sm:$0xff]  ;;  %v4175_v13 = vld [vmem:[#allocation14 + $0x88] sm:$0xff]  ;;  %v4176_v20 = vld [vmem:[#allocation14 + $0x90] sm:$0xff]  ;;  %vm5069_vm4 = vcmask 1041408   ;;  %s6737_s27 = smov [#allocation16]  }
 0x462   :  { %v4158_v37 = vld [vmem:[#allocation14] sm:$0xff]  ;;  %v6221_v10 = vpack.c.bf16 %v4175_v13, %v4174_v5  ;;  %v4159_v55 = vld [vmem:[#allocation14 + $0x8] sm:$0xff]  ;;  %v4177_v49 = vld [vmem:[#allocation14 + $0x98] sm:$0xff]  ;;  %s5115_s29 = sshll.u32 %s6737_s27, 4  ;;  %s5116_s29 = int_to_ptr.vmem [resolvable:$true] %s5115_s29 }
 0x463   :  { %v4206_v35 = vld [vmem:[#allocation14 + $0x180] sm:$0xff]  ;;  %v4207_v59 = vld [vmem:[#allocation14 + $0x188] sm:$0xff]  ;;  %v6223_v21 = vpack.c.bf16 %v4159_v55, %v4158_v37  ;;  %v4160_v57 = vld [vmem:[#allocation14 + $0x10] sm:$0xff]  ;;  %v6225_v2 = vpack.c.bf16 %v4177_v49, %v4176_v20  ;;  %s6693_s1 = scalar_lea.vmem %s5116_s29, 32  ;;  %p6698_p8 = scmp.lt.s32.totalorder %s5116_s29, %s5116_s29 }
 0x464   :  { %v6253_v43 = vpack.c.bf16 %v4207_v59, %v4206_v35  ;;  %v4190_v17 = vld [vmem:[#allocation14 + $0x100] sm:$0xff]  ;;  %v4191_v0 = vld [vmem:[#allocation14 + $0x108] sm:$0xff]  ;;  %6222 = vmatprep.subr.bf16.mxu0 %v6221_v10  ;;  %v4161_v27 = vld [vmem:[#allocation14 + $0x18] sm:$0xff]  ;;  %p6694_p7 = scmp.ne.s32.totalorder %s5116_s29, %s6693_s1  ;;  %p6699_p9 = scmp.lt.s32.totalorder %s6693_s1, %s6693_s1 }
 0x465   :  { %v6255_v53 = vpack.c.bf16 %v4191_v0, %v4190_v17  ;;  %6224 = vmatpush3.bf16.msra.mxu0 %v6223_v21  ;;  %v6227_v19 = vpack.c.bf16 %v4161_v27, %v4160_v57  ;;  %v4208_v39 = vld [vmem:[#allocation14 + $0x190] sm:$0xff]  ;;  %v4209_v29 = vld [vmem:[#allocation14 + $0x198] sm:$0xff]  ;;  %v4178_v25 = vld [vmem:[#allocation14 + $0xa0] sm:$0xff] }
 0x466   :  { %6254 = vmatprep.subr.bf16.mxu1 %v6253_v43  ;;  %v4192_v44 = vld [vmem:[#allocation14 + $0x110] sm:$0xff]  ;;  %v6257_v4 = vpack.c.bf16 %v4209_v29, %v4208_v39  ;;  %v4193_v62 = vld [vmem:[#allocation14 + $0x118] sm:$0xff]  ;;  %v4179_v60 = vld [vmem:[#allocation14 + $0xa8] sm:$0xff]  ;;  %6226 = vmatprep.subr.bf16.mxu0 %v6225_v2  ;;  %p6700_p10 = por %p6699_p9, %p6698_p8 }
 0x467   :  { %6256 = vmatpush3.bf16.msra.mxu1 %v6255_v53  ;;  %v6259_v51 = vpack.c.bf16 %v4193_v62, %v4192_v44  ;;  %v6229_v22 = vpack.c.bf16 %v4179_v60, %v4178_v25  ;;  %v4162_v41 = vld [vmem:[#allocation14 + $0x20] sm:$0xff]  ;;  %v4163_v9 = vld [vmem:[#allocation14 + $0x28] sm:$0xff]  ;;  %v4180_v63 = vld [vmem:[#allocation14 + $0xb0] sm:$0xff] }
 0x468   :  { %v4210_v18 = vld [vmem:[#allocation14 + $0x1a0] sm:$0xff]  ;;  %6258 = vmatprep.subr.bf16.mxu1 %v6257_v4  ;;  %v4211_v52 = vld [vmem:[#allocation14 + $0x1a8] sm:$0xff]  ;;  %v6231_v56 = vpack.c.bf16 %v4163_v9, %v4162_v41  ;;  %v4181_v45 = vld [vmem:[#allocation14 + $0xb8] sm:$0xff]  ;;  %p6701_p11 = pnand %p6700_p10, %p6694_p7 }
 0x469   :  { %v4194_v47 = vld [vmem:[#allocation14 + $0x120] sm:$0xff]  ;;  %v4195_v50 = vld [vmem:[#allocation14 + $0x128] sm:$0xff]  ;;  %6228 = vmatpush3.bf16.msra.mxu0 %v6227_v19  ;;  %v6261_v11 = vpack.c.bf16 %v4211_v52, %v4210_v18  ;;  %v4164_v1 = vld [vmem:[#allocation14 + $0x30] sm:$0xff]  ;;  %v6233_v61 = vpack.c.bf16 %v4181_v45, %v4180_v63 }
 0x46a   :  { %6230 = vmatprep.subr.bf16.mxu0 %v6229_v22  ;;  %v6263_v38 = vpack.c.bf16 %v4195_v50, %v4194_v47  ;;  %v4165_v32 = vld [vmem:[#allocation14 + $0x38] sm:$0xff]  ;;  %v4212_v40 = vld [vmem:[#allocation14 + $0x1b0] sm:$0xff]  ;;  %v4182_v7 = vld [vmem:[#allocation14 + $0xc0] sm:$0xff] }
 0x46b   :  { %6260 = vmatpush3.bf16.msra.mxu1 %v6259_v51  ;;  %v4213_v16 = vld [vmem:[#allocation14 + $0x1b8] sm:$0xff]  ;;  %v4196_v3 = vld [vmem:[#allocation14 + $0x130] sm:$0xff]  ;;  %v4183_v48 = vld [vmem:[#allocation14 + $0xc8] sm:$0xff]  ;;  %v6235_v42 = vpack.c.bf16 %v4165_v32, %v4164_v1 }
 0x46c   :  { %6262 = vmatprep.subr.bf16.mxu1 %v6261_v11  ;;  %v6265_v12 = vpack.c.bf16 %v4213_v16, %v4212_v40  ;;  %v4197_v31 = vld [vmem:[#allocation14 + $0x138] sm:$0xff]  ;;  %v4214_v30 = vld [vmem:[#allocation14 + $0x1c0] sm:$0xff]  ;;  %v4215_v24 = vld [vmem:[#allocation14 + $0x1c8] sm:$0xff]  ;;  %v6237_v26 = vpack.c.bf16 %v4183_v48, %v4182_v7 }
 0x46d   :  { %6232 = vmatpush3.bf16.msra.mxu0 %v6231_v56  ;;  %v6267_v34 = vpack.c.bf16 %v4197_v31, %v4196_v3  ;;  %v4166_v46 = vld [vmem:[#allocation14 + $0x40] sm:$0xff]  ;;  %v4167_v8 = vld [vmem:[#allocation14 + $0x48] sm:$0xff]  ;;  %v6269_v14 = vpack.c.bf16 %v4215_v24, %v4214_v30  ;;  %v4184_v23 = vld [vmem:[#allocation14 + $0xd0] sm:$0xff] }
 0x46e   :  { %6234 = vmatprep.subr.bf16.mxu0 %v6233_v61  ;;  %v4198_v36 = vld [vmem:[#allocation14 + $0x140] sm:$0xff]  ;;  %v4199_v58 = vld [vmem:[#allocation14 + $0x148] sm:$0xff]  ;;  %v4185_v6 = vld [vmem:[#allocation14 + $0xd8] sm:$0xff]  ;;  %v6239_v33 = vpack.c.bf16 %v4167_v8, %v4166_v46 }
 0x46f   :  { %6264 = vmatpush3.bf16.msra.mxu1 %v6263_v38  ;;  %v4216_v15 = vld [vmem:[#allocation14 + $0x1d0] sm:$0xff]  ;;  %v4217_v54 = vld [vmem:[#allocation14 + $0x1d8] sm:$0xff]  ;;  %v6271_v28 = vpack.c.bf16 %v4199_v58, %v4198_v36  ;;  %v6241_v5 = vpack.c.bf16 %v4185_v6, %v4184_v23  ;;  %v4186_v59 = vld [vmem:[#allocation14 + $0xe0] sm:$0xff] }
 0x470   :  { %6266 = vmatprep.subr.bf16.mxu1 %v6265_v12  ;;  %v4168_v13 = vld [vmem:[#allocation14 + $0x50] sm:$0xff]  ;;  %v4169_v37 = vld [vmem:[#allocation14 + $0x58] sm:$0xff]  ;;  %v6273_v55 = vpack.c.bf16 %v4217_v54, %v4216_v15  ;;  %v4187_v21 = vld [vmem:[#allocation14 + $0xe8] sm:$0xff] }
 0x471   :  { %6236 = vmatpush3.bf16.msra.mxu0 %v6235_v42  ;;  %v4200_v10 = vld [vmem:[#allocation14 + $0x150] sm:$0xff]  ;;  %v4201_v35 = vld [vmem:[#allocation14 + $0x158] sm:$0xff]  ;;  %v4218_v43 = vld [vmem:[#allocation14 + $0x1e0] sm:$0xff]  ;;  %v6243_v0 = vpack.c.bf16 %v4169_v37, %v4168_v13  ;;  %v6245_v49 = vpack.c.bf16 %v4187_v21, %v4186_v59 }
 0x472   :  { %6238 = vmatprep.subr.bf16.mxu0 %v6237_v26  ;;  %v4219_v17 = vld [vmem:[#allocation14 + $0x1e8] sm:$0xff]  ;;  %v4170_v20 = vld [vmem:[#allocation14 + $0x60] sm:$0xff]  ;;  %v6275_v53 = vpack.c.bf16 %v4201_v35, %v4200_v10  ;;  %v4188_v29 = vld [vmem:[#allocation14 + $0xf0] sm:$0xff] }
 0x473   :  { %6268 = vmatpush3.bf16.msra.mxu1 %v6267_v34  ;;  %v4171_v57 = vld [vmem:[#allocation14 + $0x68] sm:$0xff]  ;;  %v4202_v27 = vld [vmem:[#allocation14 + $0x160] sm:$0xff]  ;;  %v6277_v19 = vpack.c.bf16 %v4219_v17, %v4218_v43  ;;  %v4189_v44 = vld [vmem:[#allocation14 + $0xf8] sm:$0xff] }
 0x474   :  { %6270 = vmatprep.subr.bf16.mxu1 %v6269_v14  ;;  %v4154_v2 = vld [vmem:[#allocation2] sm:$0xff]  ;;  %v4203_v39 = vld [vmem:[#allocation14 + $0x168] sm:$0xff]  ;;  %v4220_v60 = vld [vmem:[#allocation14 + $0x1f0] sm:$0xff]  ;;  %v6247_v22 = vpack.c.bf16 %v4171_v57, %v4170_v20  ;;  %v6249_v52 = vpack.c.bf16 %v4189_v44, %v4188_v29 }
 0x475   :  { %6240 = vmatpush3.bf16.msra.mxu0 %v6239_v33  ;;  %v7820_v4 = vld [vmem:[#allocation23_spill] sm:$0xff]  ;;  %v4425_v25 = vcombine.high %v4154_v2, %v4154_v2  ;;  %v4221_v51 = vld [vmem:[#allocation14 + $0x1f8] sm:$0xff]  ;;  %v6279_v18 = vpack.c.bf16 %v4203_v39, %v4202_v27  ;;  %v4238_v45 = vld [vmem:[#allocation14 + $0x280] sm:$0xff] }
 0x476   :  { %6242 = vmatprep.subr.bf16.mxu0 %v6241_v5  ;;  %v4432_v62 = vrot.slane %v4154_v2, %v7820_v4  ;;  %v4172_v47 = vld [vmem:[#allocation14 + $0x70] sm:$0xff]  ;;  %v4173_v50 = vld [vmem:[#allocation14 + $0x78] sm:$0xff]  ;;  %v6281_v11 = vpack.c.bf16 %v4221_v51, %v4220_v60  ;;  %v4239_v1 = vld [vmem:[#allocation14 + $0x288] sm:$0xff] }
 0x477   :  { %6272 = vmatpush3.bf16.msra.mxu1 %v6271_v28  ;;  %v4439_v9 = vrot.slane %v4425_v25, %v7820_v4  ;;  %v4204_v56 = vld [vmem:[#allocation14 + $0x170] sm:$0xff]  ;;  %v4205_v63 = vld [vmem:[#allocation14 + $0x178] sm:$0xff]  ;;  %v4270_v61 = vld [vmem:[#allocation14 + $0x380] sm:$0xff]  ;;  %v6251_v40 = vpack.c.bf16 %v4173_v50, %v4172_v47  ;;  %v6285_v12 = vpack.c.bf16 %v4239_v1, %v4238_v45 }
 0x478   :  { %6274 = vmatprep.subr.bf16.mxu1 %v6273_v55  ;;  %v4440_v41 = vcombine.high %v4432_v62, %v4432_v62  ;;  %v4271_v32 = vld [vmem:[#allocation14 + $0x388] sm:$0xff]  ;;  %v6283_v16 = vpack.c.bf16 %v4205_v63, %v4204_v56  ;;  %v4222_v3 = vld [vmem:[#allocation14 + $0x200] sm:$0xff]  ;;  %v4240_v30 = vld [vmem:[#allocation14 + $0x290] sm:$0xff] }
 0x479   :  { %6244 = vmatpush3.bf16.msra.mxu0 %v6243_v0  ;;  %v4441_v38 = vcombine.high %v4439_v9, %v4439_v9  ;;  %v4223_v31 = vld [vmem:[#allocation14 + $0x208] sm:$0xff]  ;;  %v4254_v7 = vld [vmem:[#allocation14 + $0x300] sm:$0xff]  ;;  %v6317_v48 = vpack.c.bf16 %v4271_v32, %v4270_v61  ;;  %v4241_v24 = vld [vmem:[#allocation14 + $0x298] sm:$0xff] }
 0x47a   :  { %6246 = vmatprep.subr.bf16.mxu0 %v6245_v49  ;;  %4573 = vmatprep.mubr.f32.mxu0 %v4440_v41  ;;  %v4255_v42 = vld [vmem:[#allocation14 + $0x308] sm:$0xff]  ;;  %v4272_v34 = vld [vmem:[#allocation14 + $0x390] sm:$0xff]  ;;  %v4273_v26 = vld [vmem:[#allocation14 + $0x398] sm:$0xff]  ;;  %v6287_v46 = vpack.c.bf16 %v4223_v31, %v4222_v3  ;;  %v6289_v36 = vpack.c.bf16 %v4241_v24, %v4240_v30 }
 0x47b   :  { %6276 = vmatpush3.bf16.msra.mxu1 %v6275_v53  ;;  %4643 = vmatprep.mubr.f32.mxu1 %v4441_v38  ;;  %v6319_v8 = vpack.c.bf16 %v4255_v42, %v4254_v7  ;;  %v4224_v14 = vld [vmem:[#allocation14 + $0x210] sm:$0xff]  ;;  %v4225_v58 = vld [vmem:[#allocation14 + $0x218] sm:$0xff]  ;;  %v6321_v6 = vpack.c.bf16 %v4273_v26, %v4272_v34  ;;  %v4242_v54 = vld [vmem:[#allocation14 + $0x2a0] sm:$0xff] }
 0x47c   :  { %6278 = vmatprep.subr.bf16.mxu1 %v6277_v19  ;;  %v4256_v23 = vld [vmem:[#allocation14 + $0x310] sm:$0xff]  ;;  %v4257_v15 = vld [vmem:[#allocation14 + $0x318] sm:$0xff]  ;;  %v4243_v33 = vld [vmem:[#allocation14 + $0x2a8] sm:$0xff]  ;;  %v6291_v13 = vpack.c.bf16 %v4225_v58, %v4224_v14 }
 0x47d   :  { %6248 = vmatpush3.bf16.msra.mxu0 %v6247_v22  ;;  %v4274_v28 = vld [vmem:[#allocation14 + $0x3a0] sm:$0xff]  ;;  %v4275_v5 = vld [vmem:[#allocation14 + $0x3a8] sm:$0xff]  ;;  %v6323_v37 = vpack.c.bf16 %v4257_v15, %v4256_v23  ;;  %v6293_v10 = vpack.c.bf16 %v4243_v33, %v4242_v54  ;;  %v4244_v17 = vld [vmem:[#allocation14 + $0x2b0] sm:$0xff] }
 0x47e   :  { %6250 = vmatprep.subr.bf16.mxu0 %v6249_v52  ;;  %v4226_v55 = vld [vmem:[#allocation14 + $0x220] sm:$0xff]  ;;  %v4227_v35 = vld [vmem:[#allocation14 + $0x228] sm:$0xff]  ;;  %v6325_v21 = vpack.c.bf16 %v4275_v5, %v4274_v28  ;;  %v4245_v0 = vld [vmem:[#allocation14 + $0x2b8] sm:$0xff] }
 0x47f   :  { %6280 = vmatpush3.bf16.msra.mxu1 %v6279_v18  ;;  %v4258_v59 = vld [vmem:[#allocation14 + $0x320] sm:$0xff]  ;;  %v4259_v43 = vld [vmem:[#allocation14 + $0x328] sm:$0xff]  ;;  %v4276_v20 = vld [vmem:[#allocation14 + $0x3b0] sm:$0xff]  ;;  %v6295_v49 = vpack.c.bf16 %v4227_v35, %v4226_v55  ;;  %v6297_v27 = vpack.c.bf16 %v4245_v0, %v4244_v17 }
 0x480   :  { %6282 = vmatprep.subr.bf16.mxu1 %v6281_v11  ;;  %v4277_v53 = vld [vmem:[#allocation14 + $0x3b8] sm:$0xff]  ;;  %v6327_v57 = vpack.c.bf16 %v4259_v43, %v4258_v59  ;;  %v4228_v2 = vld [vmem:[#allocation14 + $0x230] sm:$0xff]  ;;  %v4247_v25 = vld [vmem:[#allocation14 + $0x2c8] sm:$0xff] }
 0x481   :  { %6252 = vmatpush3.bf16.msra.mxu0 %v6251_v40  ;;  %v4229_v19 = vld [vmem:[#allocation14 + $0x238] sm:$0xff]  ;;  %v4260_v39 = vld [vmem:[#allocation14 + $0x330] sm:$0xff]  ;;  %v6329_v29 = vpack.c.bf16 %v4277_v53, %v4276_v20  ;;  %v4278_v60 = vld [vmem:[#allocation14 + $0x3c0] sm:$0xff] }
 0x482   :  { %6286 = vmatprep.subr.bf16.mxu0 %v6285_v12  ;;  %v4261_v44 = vld [vmem:[#allocation14 + $0x338] sm:$0xff]  ;;  %v4279_v51 = vld [vmem:[#allocation14 + $0x3c8] sm:$0xff]  ;;  %v6299_v41 = vpack.c.bf16 %v4229_v19, %v4228_v2  ;;  %v4230_v50 = vld [vmem:[#allocation14 + $0x240] sm:$0xff] }
 0x483   :  { %6284 = vmatpush3.bf16.msra.mxu1 %v6283_v16  ;;  %v4155_v22 = vld [vmem:[#allocation2 + $0x8] sm:$0xff]  ;;  %v6331_v52 = vpack.c.bf16 %v4261_v44, %v4260_v39  ;;  %v4262_v11 = vld [vmem:[#allocation14 + $0x340] sm:$0xff]  ;;  %v6333_v63 = vpack.c.bf16 %v4279_v51, %v4278_v60  ;;  %v4248_v1 = vld [vmem:[#allocation14 + $0x2d0] sm:$0xff] }
 0x484   :  { %6318 = vmatprep.subr.bf16.mxu1 %v6317_v48  ;;  %4574 = vmatmul.mubr.f32.vlgmr.msra.gmra.mrb[0].mxu0 %v4432_v62  ;;  %v4246_v62 = vld [vmem:[#allocation14 + $0x2c0] sm:$0xff]  ;;  %v4442_v18 = vcombine.high %v4155_v22, %v4155_v22  ;;  %v4231_v56 = vld [vmem:[#allocation14 + $0x248] sm:$0xff]  ;;  %v4249_v38 = vld [vmem:[#allocation14 + $0x2d8] sm:$0xff] }
 0x485   :  { %6288 = vmatpush3.bf16.msra.mxu0 %v6287_v46  ;;  %v6301_v47 = vpack.c.bf16 %v4247_v25, %v4246_v62  ;;  %v4263_v45 = vld [vmem:[#allocation14 + $0x348] sm:$0xff]  ;;  %v4280_v40 = vld [vmem:[#allocation14 + $0x3d0] sm:$0xff]  ;;  %v4281_v16 = vld [vmem:[#allocation14 + $0x3d8] sm:$0xff]  ;;  %v6303_v12 = vpack.c.bf16 %v4231_v56, %v4230_v50  ;;  %v6305_v7 = vpack.c.bf16 %v4249_v38, %v4248_v1 }
 0x486   :  { %4644 = vmatmul.mubr.f32.vlgmr.msra.gmra.mrb[0].mxu1 %v4439_v9  ;;  %6290 = vmatprep.subr.bf16.mxu0 %v6289_v36  ;;  %v7703_v9 = vrot.slane %v4155_v22, %v7820_v4  ;;  %v7708_v32 = vrot.slane %v4442_v18, %v7820_v4  ;;  %v6335_v31 = vpack.c.bf16 %v4263_v45, %v4262_v11  ;;  %v4232_v48 = vld [vmem:[#allocation14 + $0x250] sm:$0xff]  ;;  %v4233_v42 = vld [vmem:[#allocation14 + $0x258] sm:$0xff]  ;;  %v4250_v26 = vld [vmem:[#allocation14 + $0x2e0] sm:$0xff] }
 0x487   :  { %6320 = vmatpush3.bf16.msra.mxu1 %v6319_v8  ;;  %v4264_v30 = vld [vmem:[#allocation14 + $0x350] sm:$0xff]  ;;  %v6337_v24 = vpack.c.bf16 %v4281_v16, %v4280_v40  ;;  %v4265_v34 = vld [vmem:[#allocation14 + $0x358] sm:$0xff]  ;;  %v4251_v46 = vld [vmem:[#allocation14 + $0x2e8] sm:$0xff]  ;;  %v6307_v14 = vpack.c.bf16 %v4233_v42, %v4232_v48 }
 0x488   :  { %6322 = vmatprep.subr.bf16.mxu1 %v6321_v6  ;;  %v4457_v61 = vcombine.high %v7703_v9, %v7703_v9  ;;  %v4458_v3 = vcombine.high %v7708_v32, %v7708_v32  ;;  %v4282_v8 = vld [vmem:[#allocation14 + $0x3e0] sm:$0xff]  ;;  %v4283_v36 = vld [vmem:[#allocation14 + $0x3e8] sm:$0xff]  ;;  %v6339_v58 = vpack.c.bf16 %v4265_v34, %v4264_v30  ;;  %v6309_v23 = vpack.c.bf16 %v4251_v46, %v4250_v26  ;;  %v4252_v5 = vld [vmem:[#allocation14 + $0x2f0] sm:$0xff] }
 0x489   :  { %6292 = vmatpush3.bf16.msra.mxu0 %v6291_v13  ;;  %v4234_v6 = vld [vmem:[#allocation14 + $0x260] sm:$0xff]  ;;  %v4235_v15 = vld [vmem:[#allocation14 + $0x268] sm:$0xff]  ;;  %v6341_v33 = vpack.c.bf16 %v4283_v36, %v4282_v8  ;;  %v4253_v13 = vld [vmem:[#allocation14 + $0x2f8] sm:$0xff] }
 0x48a   :  { %6294 = vmatprep.subr.bf16.mxu0 %v6293_v10  ;;  %4713 = vmatprep.mubr.f32.mxu0 %v4457_v61  ;;  %v4266_v54 = vld [vmem:[#allocation14 + $0x360] sm:$0xff]  ;;  %v4267_v28 = vld [vmem:[#allocation14 + $0x368] sm:$0xff]  ;;  %v4285_v10 = vld [vmem:[#allocation14 + $0x3f8] sm:$0xff]  ;;  %v6311_v55 = vpack.c.bf16 %v4235_v15, %v4234_v6  ;;  %v6313_v59 = vpack.c.bf16 %v4253_v13, %v4252_v5 }
 0x48b   :  { %6324 = vmatpush3.bf16.msra.mxu1 %v6323_v37  ;;  %4783 = vmatprep.mubr.f32.mxu1 %v4458_v3  ;;  %v4284_v37 = vld [vmem:[#allocation14 + $0x3f0] sm:$0xff]  ;;  %v6343_v35 = vpack.c.bf16 %v4267_v28, %v4266_v54  ;;  %v4237_v43 = vld [vmem:[#allocation14 + $0x278] sm:$0xff]  ;;  %v4302_v53 = vld [vmem:[#allocation14 + $0x480] sm:$0xff] }
 0x48c   :  { %6326 = vmatprep.subr.bf16.mxu1 %v6325_v21  ;;  %v4236_v21 = vld [vmem:[#allocation14 + $0x270] sm:$0xff]  ;;  %v6345_v0 = vpack.c.bf16 %v4285_v10, %v4284_v37  ;;  %v4269_v20 = vld [vmem:[#allocation14 + $0x378] sm:$0xff]  ;;  %v4286_v19 = vld [vmem:[#allocation14 + $0x400] sm:$0xff] }
 0x48d   :  { %6296 = vmatpush3.bf16.msra.mxu0 %v6295_v49  ;;  %v4268_v17 = vld [vmem:[#allocation14 + $0x370] sm:$0xff]  ;;  %v4303_v49 = vld [vmem:[#allocation14 + $0x488] sm:$0xff]  ;;  %v6315_v2 = vpack.c.bf16 %v4237_v43, %v4236_v21  ;;  %v4318_v62 = vld [vmem:[#allocation14 + $0x500] sm:$0xff] }
 0x48e   :  { %6298 = vmatprep.subr.bf16.mxu0 %v6297_v27  ;;  %v4335_v27 = vld [vmem:[#allocation14 + $0x588] sm:$0xff]  ;;  %v6347_v39 = vpack.c.bf16 %v4269_v20, %v4268_v17  ;;  %v4304_v51 = vld [vmem:[#allocation14 + $0x490] sm:$0xff]  ;;  %v4305_v22 = vld [vmem:[#allocation14 + $0x498] sm:$0xff] }
 0x48f   :  { %6328 = vmatpush3.bf16.msra.mxu1 %v6327_v57  ;;  %v4334_v57 = vld [vmem:[#allocation14 + $0x580] sm:$0xff]  ;;  %v4287_v44 = vld [vmem:[#allocation14 + $0x408] sm:$0xff]  ;;  %v4337_v18 = vld [vmem:[#allocation14 + $0x598] sm:$0xff]  ;;  %v6353_v56 = vpack.c.bf16 %v4305_v22, %v4304_v51 }
 0x490   :  { %6330 = vmatprep.subr.bf16.mxu1 %v6329_v29  ;;  %v6349_v29 = vpack.c.bf16 %v4303_v49, %v4302_v53  ;;  %v4319_v25 = vld [vmem:[#allocation14 + $0x508] sm:$0xff]  ;;  %v6381_v60 = vpack.c.bf16 %v4335_v27, %v4334_v57  ;;  %v4156_v50 = vld [vmem:[#allocation2 + $0x10] sm:$0xff]  ;;  %v4321_v40 = vld [vmem:[#allocation14 + $0x518] sm:$0xff] }
 0x491   :  { %6300 = vmatpush3.bf16.msra.mxu0 %v6299_v41  ;;  %v4336_v41 = vld [vmem:[#allocation14 + $0x590] sm:$0xff]  ;;  %v7713_v1 = vrot.slane %v4156_v50, %v7820_v4  ;;  %v4459_v38 = vcombine.high %v4156_v50, %v4156_v50  ;;  %v4306_v16 = vld [vmem:[#allocation14 + $0x4a0] sm:$0xff]  ;;  %v4291_v26 = vld [vmem:[#allocation14 + $0x428] sm:$0xff] }
 0x492   :  { %6302 = vmatprep.subr.bf16.mxu0 %v6301_v47  ;;  %v6383_v47 = vpack.c.bf16 %v4319_v25, %v4318_v62  ;;  %v4288_v11 = vld [vmem:[#allocation14 + $0x410] sm:$0xff]  ;;  %v6385_v61 = vpack.c.bf16 %v4337_v18, %v4336_v41  ;;  %v4338_v3 = vld [vmem:[#allocation14 + $0x5a0] sm:$0xff]  ;;  %v4323_v36 = vld [vmem:[#allocation14 + $0x528] sm:$0xff] }
 0x493   :  { %6332 = vmatpush3.bf16.msra.mxu1 %v6331_v52  ;;  %v6351_v52 = vpack.c.bf16 %v4287_v44, %v4286_v19  ;;  %v4320_v45 = vld [vmem:[#allocation14 + $0x510] sm:$0xff]  ;;  %v7719_v48 = vrot.slane %v4459_v38, %v7820_v4  ;;  %v4290_v34 = vld [vmem:[#allocation14 + $0x420] sm:$0xff]  ;;  %v4341_v6 = vld [vmem:[#allocation14 + $0x5b8] sm:$0xff] }
 0x494   :  { %6334 = vmatprep.subr.bf16.mxu1 %v6333_v63  ;;  %v4289_v63 = vld [vmem:[#allocation14 + $0x418] sm:$0xff]  ;;  %v6387_v30 = vpack.c.bf16 %v4321_v40, %v4320_v45  ;;  %v4322_v46 = vld [vmem:[#allocation14 + $0x520] sm:$0xff]  ;;  %v4324_v5 = vld [vmem:[#allocation14 + $0x530] sm:$0xff] }
 0x495   :  { %6304 = vmatpush3.bf16.msra.mxu0 %v6303_v12  ;;  %v4307_v12 = vld [vmem:[#allocation14 + $0x4a8] sm:$0xff]  ;;  %v6355_v42 = vpack.c.bf16 %v4289_v63, %v4288_v11  ;;  %v6391_v15 = vpack.c.bf16 %v4323_v36, %v4322_v46  ;;  %v4293_v28 = vld [vmem:[#allocation14 + $0x438] sm:$0xff]  ;;  %v4310_v10 = vld [vmem:[#allocation14 + $0x4c0] sm:$0xff] }
 0x496   :  { %6306 = vmatprep.subr.bf16.mxu0 %v6305_v7  ;;  %v4474_v7 = vcombine.high %v7713_v1, %v7713_v1  ;;  %v4325_v37 = vld [vmem:[#allocation14 + $0x538] sm:$0xff]  ;;  %v4295_v20 = vld [vmem:[#allocation14 + $0x448] sm:$0xff]  ;;  %v4326_v53 = vld [vmem:[#allocation14 + $0x540] sm:$0xff] }
 0x497   :  { %6336 = vmatpush3.bf16.msra.mxu1 %v6335_v31  ;;  %v4339_v31 = vld [vmem:[#allocation14 + $0x5a8] sm:$0xff]  ;;  %v6395_v43 = vpack.c.bf16 %v4325_v37, %v4324_v5  ;;  %v4312_v27 = vld [vmem:[#allocation14 + $0x4d0] sm:$0xff]  ;;  %v4329_v41 = vld [vmem:[#allocation14 + $0x558] sm:$0xff] }
 0x498   :  { %6338 = vmatprep.subr.bf16.mxu1 %v6337_v24  ;;  %v6357_v24 = vpack.c.bf16 %v4307_v12, %v4306_v16  ;;  %v6389_v8 = vpack.c.bf16 %v4339_v31, %v4338_v3  ;;  %v4327_v57 = vld [vmem:[#allocation14 + $0x548] sm:$0xff]  ;;  %v4344_v19 = vld [vmem:[#allocation14 + $0x5d0] sm:$0xff]  ;;  %v4314_v18 = vld [vmem:[#allocation14 + $0x4e0] sm:$0xff] }
 0x499   :  { %6308 = vmatpush3.bf16.msra.mxu0 %v6307_v14  ;;  %v4308_v14 = vld [vmem:[#allocation14 + $0x4b0] sm:$0xff]  ;;  %v6399_v44 = vpack.c.bf16 %v4327_v57, %v4326_v53  ;;  %v4347_v50 = vld [vmem:[#allocation14 + $0x5e8] sm:$0xff]  ;;  %v4298_v45 = vld [vmem:[#allocation14 + $0x460] sm:$0xff] }
 0x49a   :  { %6310 = vmatprep.subr.bf16.mxu0 %v6309_v23  ;;  %v4340_v23 = vld [vmem:[#allocation14 + $0x5b0] sm:$0xff]  ;;  %v4299_v38 = vld [vmem:[#allocation14 + $0x468] sm:$0xff]  ;;  %v4317_v3 = vld [vmem:[#allocation14 + $0x4f8] sm:$0xff] }
 0x49b   :  { %6340 = vmatpush3.bf16.msra.mxu1 %v6339_v58  ;;  %v4309_v58 = vld [vmem:[#allocation14 + $0x4b8] sm:$0xff]  ;;  %v6393_v13 = vpack.c.bf16 %v4341_v6, %v4340_v23  ;;  %v4296_v25 = vld [vmem:[#allocation14 + $0x450] sm:$0xff]  ;;  %v4331_v16 = vld [vmem:[#allocation14 + $0x568] sm:$0xff] }
 0x49c   :  { %6342 = vmatprep.subr.bf16.mxu1 %v6341_v33  ;;  %v6361_v54 = vpack.c.bf16 %v4309_v58, %v4308_v14  ;;  %v4292_v33 = vld [vmem:[#allocation14 + $0x430] sm:$0xff]  ;;  %v4301_v46 = vld [vmem:[#allocation14 + $0x478] sm:$0xff]  ;;  %v4366_v14 = vld [vmem:[#allocation14 + $0x680] sm:$0xff] }
 0x49d   :  { %6312 = vmatpush3.bf16.msra.mxu0 %v6311_v55  ;;  %v4311_v55 = vld [vmem:[#allocation14 + $0x4c8] sm:$0xff]  ;;  %v6363_v21 = vpack.c.bf16 %v4293_v28, %v4292_v33  ;;  %v4328_v51 = vld [vmem:[#allocation14 + $0x550] sm:$0xff]  ;;  %v4333_v36 = vld [vmem:[#allocation14 + $0x578] sm:$0xff] }
 0x49e   :  { %6314 = vmatprep.subr.bf16.mxu0 %v6313_v59  ;;  %v4343_v59 = vld [vmem:[#allocation14 + $0x5c8] sm:$0xff]  ;;  %v6365_v17 = vpack.c.bf16 %v4311_v55, %v4310_v10  ;;  %v6403_v11 = vpack.c.bf16 %v4329_v41, %v4328_v51  ;;  %v4316_v12 = vld [vmem:[#allocation14 + $0x4f0] sm:$0xff]  ;;  %v4398_v23 = vld [vmem:[#allocation14 + $0x780] sm:$0xff] }
 0x49f   :  { %6344 = vmatpush3.bf16.msra.mxu1 %v6343_v35  ;;  %v4342_v35 = vld [vmem:[#allocation14 + $0x5c0] sm:$0xff]  ;;  %v4348_v31 = vld [vmem:[#allocation14 + $0x5f0] sm:$0xff]  ;;  %v4367_v58 = vld [vmem:[#allocation14 + $0x688] sm:$0xff] }
 0x4a0   :  { %6346 = vmatprep.subr.bf16.mxu1 %v6345_v0  ;;  %v4294_v0 = vld [vmem:[#allocation14 + $0x440] sm:$0xff]  ;;  %v6397_v49 = vpack.c.bf16 %v4343_v59, %v4342_v35  ;;  %v4399_v6 = vld [vmem:[#allocation14 + $0x788] sm:$0xff]  ;;  %v6413_v33 = vpack.c.bf16 %v4367_v58, %v4366_v14  ;;  %v4368_v55 = vld [vmem:[#allocation14 + $0x690] sm:$0xff] }
 0x4a1   :  { %6316 = vmatpush3.bf16.msra.mxu0 %v6315_v2  ;;  %v4313_v2 = vld [vmem:[#allocation14 + $0x4d8] sm:$0xff]  ;;  %v4350_v28 = vld [vmem:[#allocation14 + $0x600] sm:$0xff]  ;;  %v4351_v5 = vld [vmem:[#allocation14 + $0x608] sm:$0xff]  ;;  %v6445_v37 = vpack.c.bf16 %v4399_v6, %v4398_v23 }
 0x4a2   :  { %6350 = vmatprep.subr.bf16.mxu0 %v6349_v29  ;;  %v6367_v29 = vpack.c.bf16 %v4295_v20, %v4294_v0  ;;  %v6369_v62 = vpack.c.bf16 %v4313_v2, %v4312_v27  ;;  %v4383_v10 = vld [vmem:[#allocation14 + $0x708] sm:$0xff]  ;;  %v4369_v35 = vld [vmem:[#allocation14 + $0x698] sm:$0xff]  ;;  %v6415_v0 = vpack.c.bf16 %v4351_v5, %v4350_v28  ;;  %v4384_v27 = vld [vmem:[#allocation14 + $0x710] sm:$0xff] }
 0x4a3   :  { %6348 = vmatpush3.bf16.msra.mxu1 %v6347_v39  ;;  %v4345_v39 = vld [vmem:[#allocation14 + $0x5d8] sm:$0xff]  ;;  %v6417_v53 = vpack.c.bf16 %v4369_v35, %v4368_v55  ;;  %v4354_v41 = vld [vmem:[#allocation14 + $0x620] sm:$0xff]  ;;  %v4391_v14 = vld [vmem:[#allocation14 + $0x748] sm:$0xff] }
 0x4a4   :  { %6382 = vmatprep.subr.bf16.mxu1 %v6381_v60  ;;  %4714 = vmatmul.mubr.f32.vlgmr.msra.gmra.mrb[2].mxu0 %v7703_v9  ;;  %v4475_v9 = vcombine.high %v7719_v48, %v7719_v48  ;;  %v4297_v60 = vld [vmem:[#allocation14 + $0x458] sm:$0xff]  ;;  %v6401_v22 = vpack.c.bf16 %v4345_v39, %v4344_v19  ;;  %v4370_v39 = vld [vmem:[#allocation14 + $0x6a0] sm:$0xff]  ;;  %v4376_v58 = vld [vmem:[#allocation14 + $0x6d0] sm:$0xff] }
 0x4a5   :  { %6352 = vmatpush3.bf16.msra.mxu0 %v6351_v52  ;;  %4853 = vmatprep.mubr.f32.mxu0 %v4474_v7  ;;  %v4315_v52 = vld [vmem:[#allocation14 + $0x4e8] sm:$0xff]  ;;  %v4349_v7 = vld [vmem:[#allocation14 + $0x5f8] sm:$0xff]  ;;  %v4408_v6 = vld [vmem:[#allocation14 + $0x7d0] sm:$0xff] }
 0x4a6   :  { %4784 = vmatmul.mubr.f32.vlgmr.msra.gmra.mrb[2].mxu1 %v7708_v32  ;;  %6354 = vmatprep.subr.bf16.mxu0 %v6353_v56  ;;  %v6359_v32 = vpack.c.bf16 %v4291_v26, %v4290_v34  ;;  %v6371_v56 = vpack.c.bf16 %v4297_v60, %v4296_v25  ;;  %v6373_v63 = vpack.c.bf16 %v4315_v52, %v4314_v18  ;;  %v4300_v26 = vld [vmem:[#allocation14 + $0x470] sm:$0xff]  ;;  %v4353_v57 = vld [vmem:[#allocation14 + $0x618] sm:$0xff]  ;;  %v4355_v18 = vld [vmem:[#allocation14 + $0x628] sm:$0xff] }
 0x4a7   :  { %6384 = vmatpush3.bf16.msra.mxu1 %v6383_v47  ;;  %4923 = vmatprep.mubr.f32.mxu1 %v4475_v9  ;;  %v4346_v47 = vld [vmem:[#allocation14 + $0x5e0] sm:$0xff]  ;;  %v6377_v34 = vpack.c.bf16 %v4317_v3, %v4316_v12  ;;  %v4332_v9 = vld [vmem:[#allocation14 + $0x570] sm:$0xff]  ;;  %v4385_v19 = vld [vmem:[#allocation14 + $0x718] sm:$0xff] }
 0x4a8   :  { %6386 = vmatprep.subr.bf16.mxu1 %v6385_v61  ;;  %v4330_v61 = vld [vmem:[#allocation14 + $0x560] sm:$0xff]  ;;  %v6405_v40 = vpack.c.bf16 %v4347_v50, %v4346_v47  ;;  %v6451_v51 = vpack.c.bf16 %v4385_v19, %v4384_v27  ;;  %v4387_v50 = vld [vmem:[#allocation14 + $0x728] sm:$0xff]  ;;  %v4389_v3 = vld [vmem:[#allocation14 + $0x738] sm:$0xff] }
 0x4a9   :  { %6356 = vmatpush3.bf16.msra.mxu0 %v6355_v42  ;;  %v6375_v42 = vpack.c.bf16 %v4299_v38, %v4298_v45  ;;  %v4386_v52 = vld [vmem:[#allocation14 + $0x720] sm:$0xff]  ;;  %v6423_v45 = vpack.c.bf16 %v4355_v18, %v4354_v41  ;;  %v4377_v23 = vld [vmem:[#allocation14 + $0x6d8] sm:$0xff]  ;;  %v4360_v28 = vld [vmem:[#allocation14 + $0x650] sm:$0xff] }
 0x4aa   :  { %6358 = vmatprep.subr.bf16.mxu0 %v6357_v24  ;;  %v6407_v24 = vpack.c.bf16 %v4331_v16, %v4330_v61  ;;  %v4356_v61 = vld [vmem:[#allocation14 + $0x630] sm:$0xff]  ;;  %v4361_v5 = vld [vmem:[#allocation14 + $0x658] sm:$0xff]  ;;  %v4378_v55 = vld [vmem:[#allocation14 + $0x6e0] sm:$0xff] }
 0x4ab   :  { %6388 = vmatpush3.bf16.msra.mxu1 %v6387_v30  ;;  %v4157_v30 = vld [vmem:[#allocation2 + $0x18] sm:$0xff]  ;;  %v4388_v16 = vld [vmem:[#allocation14 + $0x730] sm:$0xff]  ;;  %v4379_v35 = vld [vmem:[#allocation14 + $0x6e8] sm:$0xff] }
 0x4ac   :  { %6390 = vmatprep.subr.bf16.mxu1 %v6389_v8  ;;  %v6409_v8 = vpack.c.bf16 %v4349_v7, %v4348_v31  ;;  %v7725_v59 = vrot.slane %v4157_v30, %v7820_v4  ;;  %v4374_v31 = vld [vmem:[#allocation14 + $0x6c0] sm:$0xff]  ;;  %v4375_v7 = vld [vmem:[#allocation14 + $0x6c8] sm:$0xff]  ;;  %v4396_v18 = vld [vmem:[#allocation14 + $0x770] sm:$0xff] }
 0x4ad   :  { %6360 = vmatpush3.bf16.msra.mxu0 %v6359_v32  ;;  %v4476_v32 = vcombine.high %v4157_v30, %v4157_v30  ;;  %v4407_v30 = vld [vmem:[#allocation14 + $0x7c8] sm:$0xff]  ;;  %v4394_v27 = vld [vmem:[#allocation14 + $0x760] sm:$0xff] }
 0x4ae   :  { %6362 = vmatprep.subr.bf16.mxu0 %v6361_v54  ;;  %v6411_v54 = vpack.c.bf16 %v4333_v36, %v4332_v9  ;;  %v4359_v9 = vld [vmem:[#allocation14 + $0x648] sm:$0xff] }
 0x4af   :  { %6392 = vmatpush3.bf16.msra.mxu1 %v6391_v15  ;;  %v6379_v15 = vpack.c.bf16 %v4301_v46, %v4300_v26  ;;  %v6429_v26 = vpack.c.bf16 %v4375_v7, %v4374_v31  ;;  %v4358_v46 = vld [vmem:[#allocation14 + $0x640] sm:$0xff]  ;;  %v4395_v19 = vld [vmem:[#allocation14 + $0x768] sm:$0xff] }
 0x4b0   :  { %6394 = vmatprep.subr.bf16.mxu1 %v6393_v13  ;;  %v4382_v13 = vld [vmem:[#allocation14 + $0x700] sm:$0xff] }
 0x4b1   :  { %6364 = vmatpush3.bf16.msra.mxu0 %v6363_v21  ;;  %v4400_v21 = vld [vmem:[#allocation14 + $0x790] sm:$0xff]  ;;  %v6447_v20 = vpack.c.bf16 %v4383_v10, %v4382_v13  ;;  %v4393_v10 = vld [vmem:[#allocation14 + $0x758] sm:$0xff] }
 0x4b2   :  { %6366 = vmatprep.subr.bf16.mxu0 %v6365_v17  ;;  %v7728_v17 = vrot.slane %v4476_v32, %v7820_v4  ;;  %v4402_v4 = vld [vmem:[#allocation14 + $0x7a0] sm:$0xff]  ;;  %v4409_v32 = vld [vmem:[#allocation14 + $0x7d8] sm:$0xff]  ;;  %v4392_v13 = vld [vmem:[#allocation14 + $0x750] sm:$0xff] }
 0x4b3   :  { %6396 = vmatpush3.bf16.msra.mxu1 %v6395_v43  ;;  %v4401_v43 = vld [vmem:[#allocation14 + $0x798] sm:$0xff] }
 0x4b4   :  { %6398 = vmatprep.subr.bf16.mxu1 %v6397_v49  ;;  %v4352_v49 = vld [vmem:[#allocation14 + $0x610] sm:$0xff]  ;;  %v6449_v2 = vpack.c.bf16 %v4401_v43, %v4400_v21  ;;  %v4492_v25 = vcombine.high %v7728_v17, %v7728_v17  ;;  %v4410_v21 = vld [vmem:[#allocation14 + $0x7e0] sm:$0xff]  ;;  %v4411_v43 = vld [vmem:[#allocation14 + $0x7e8] sm:$0xff] }
 0x4b5   :  { %6368 = vmatpush3.bf16.msra.mxu0 %v6367_v29  ;;  %v4371_v29 = vld [vmem:[#allocation14 + $0x6a8] sm:$0xff]  ;;  %v6419_v60 = vpack.c.bf16 %v4353_v57, %v4352_v49  ;;  %v4362_v49 = vld [vmem:[#allocation14 + $0x660] sm:$0xff] }
 0x4b6   :  { %6370 = vmatprep.subr.bf16.mxu0 %v6369_v62  ;;  %v4403_v62 = vld [vmem:[#allocation14 + $0x7a8] sm:$0xff] }
 0x4b7   :  { %6400 = vmatpush3.bf16.msra.mxu1 %v6399_v44  ;;  %v4491_v44 = vcombine.high %v7725_v59, %v7725_v59  ;;  %v6453_v47 = vpack.c.bf16 %v4403_v62, %v4402_v4  ;;  %v4363_v57 = vld [vmem:[#allocation14 + $0x668] sm:$0xff]  ;;  %v4413_v4 = vld [vmem:[#allocation14 + $0x7f8] sm:$0xff] }
 0x4b8   :  { %6402 = vmatprep.subr.bf16.mxu1 %v6401_v22  ;;  %v6421_v22 = vpack.c.bf16 %v4371_v29, %v4370_v39  ;;  %v4380_v39 = vld [vmem:[#allocation14 + $0x6f0] sm:$0xff]  ;;  %v4381_v29 = vld [vmem:[#allocation14 + $0x6f8] sm:$0xff]  ;;  %v6439_v62 = vpack.c.bf16 %v4363_v57, %v4362_v49 }
 0x4b9   :  { %6372 = vmatpush3.bf16.msra.mxu0 %v6371_v56  ;;  %v4373_v56 = vld [vmem:[#allocation14 + $0x6b8] sm:$0xff] }
 0x4ba   :  { %6374 = vmatprep.subr.bf16.mxu0 %v6373_v63  ;;  %v4405_v63 = vld [vmem:[#allocation14 + $0x7b8] sm:$0xff] }
 0x4bb   :  { %6404 = vmatpush3.bf16.msra.mxu1 %v6403_v11  ;;  %v4404_v11 = vld [vmem:[#allocation14 + $0x7b0] sm:$0xff] }
 0x4bc   :  { %6406 = vmatprep.subr.bf16.mxu1 %v6405_v40  ;;  %v4357_v40 = vld [vmem:[#allocation14 + $0x638] sm:$0xff]  ;;  %v6457_v12 = vpack.c.bf16 %v4405_v63, %v4404_v11 }
 0x4bd   :  { %6376 = vmatpush3.bf16.msra.mxu0 %v6375_v42  ;;  %v4406_v42 = vld [vmem:[#allocation14 + $0x7c0] sm:$0xff] }
 0x4be   :  { %6378 = vmatprep.subr.bf16.mxu0 %v6377_v34  ;;  %v6459_v34 = vpack.c.bf16 %v4389_v3, %v4388_v16  ;;  %v6461_v36 = vpack.c.bf16 %v4407_v30, %v4406_v42 }
 0x4bf   :  { %6408 = vmatpush3.bf16.msra.mxu1 %v6407_v24  ;;  %v6427_v24 = vpack.c.bf16 %v4357_v40, %v4356_v61 }
 0x4c0   :  { %6410 = vmatprep.subr.bf16.mxu1 %v6409_v8  ;;  %v4390_v8 = vld [vmem:[#allocation14 + $0x740] sm:$0xff] }
 0x4c1   :  { %6380 = vmatpush3.bf16.msra.mxu0 %v6379_v15  ;;  %v6431_v15 = vpack.c.bf16 %v4359_v9, %v4358_v46 }
 0x4c2   :  { %6414 = vmatprep.subr.bf16.mxu0 %v6413_v33  ;;  %v6433_v33 = vpack.c.bf16 %v4377_v23, %v4376_v58 }
 0x4c3   :  { %6412 = vmatpush3.bf16.msra.mxu1 %v6411_v54  ;;  %v6463_v54 = vpack.c.bf16 %v4391_v14, %v4390_v8 }
 0x4c4   :  { %6446 = vmatprep.subr.bf16.mxu1 %v6445_v37  ;;  %4854 = vmatmul.mubr.f32.vlgmr.msra.gmra.mrb[4].mxu0 %v7713_v1  ;;  %v4372_v1 = vld [vmem:[#allocation14 + $0x6b0] sm:$0xff]  ;;  %v6465_v37 = vpack.c.bf16 %v4409_v32, %v4408_v6 }
 0x4c5   :  { %6416 = vmatpush3.bf16.msra.mxu0 %v6415_v0  ;;  %4993 = vmatprep.mubr.f32.mxu0 %v4491_v44  ;;  %v6425_v38 = vpack.c.bf16 %v4373_v56, %v4372_v1  ;;  %v6435_v0 = vpack.c.bf16 %v4361_v5, %v4360_v28  ;;  %v4412_v44 = vld [vmem:[#allocation14 + $0x7f0] sm:$0xff]  ;;  %v5145_v56 = vld [vmem:[%s7769_s10] ss:$0 sm:$0xff] }
 0x4c6   :  { %4924 = vmatmul.mubr.f32.vlgmr.msra.gmra.mrb[4].mxu1 %v7719_v48  ;;  %6418 = vmatprep.subr.bf16.mxu0 %v6417_v53  ;;  %v6455_v48 = vpack.c.bf16 %v4387_v50, %v4386_v52  ;;  %v6437_v53 = vpack.c.bf16 %v4379_v35, %v4378_v55  ;;  %v6473_v41 = vpack.c.bf16 %v4413_v4, %v4412_v44  ;;  %v4397_v52 = vld [vmem:[#allocation14 + $0x778] sm:$0xff]  ;;  %v5146_v44 = vld [vmem:[%s7770_s11] ss:$0 sm:$0xff] }
 0x4c7   :  { %6448 = vmatpush3.bf16.msra.mxu1 %v6447_v20  ;;  %5063 = vmatprep.mubr.f32.mxu1 %v4492_v25  ;;  %v6467_v20 = vpack.c.bf16 %v4393_v10, %v4392_v13  ;;  %v6471_v25 = vpack.c.bf16 %v4395_v19, %v4394_v27  ;;  %v6475_v50 = vpack.c.bf16 %v4397_v52, %v4396_v18 }
 0x4c8   :  { %6450 = vmatprep.subr.bf16.mxu1 %v6449_v2  ;;  %v6469_v2 = vpack.c.bf16 %v4411_v43, %v4410_v21 }
 0x4c9   :  { %6420 = vmatpush3.bf16.msra.mxu0 %v6419_v60  ;;  %v6441_v60 = vpack.c.bf16 %v4381_v29, %v4380_v39 }
 0x4ca   :  { %6422 = vmatprep.subr.bf16.mxu0 %v6421_v22  ;;  %v4365_v22 = vld [vmem:[#allocation14 + $0x678] sm:$0xff] }
 0x4cb   :  { %6452 = vmatpush3.bf16.msra.mxu1 %v6451_v51  ;;  %v4364_v51 = vld [vmem:[#allocation14 + $0x670] sm:$0xff] }
 0x4cc   :  { %6454 = vmatprep.subr.bf16.mxu1 %v6453_v47  ;;  %v6443_v47 = vpack.c.bf16 %v4365_v22, %v4364_v51 }
 0x4cd   :  { %6424 = vmatpush3.bf16.msra.mxu0 %v6423_v45 }
 0x4ce   :  { %6426 = vmatprep.subr.bf16.mxu0 %v6425_v38 }
 0x4cf   :  { %6456 = vmatpush3.bf16.msra.mxu1 %v6455_v48 }
 0x4d0   :  { %6458 = vmatprep.subr.bf16.mxu1 %v6457_v12 }
 0x4d1   :  { %6428 = vmatpush3.bf16.msra.mxu0 %v6427_v24 }
 0x4d2   :  { %6430 = vmatprep.subr.bf16.mxu0 %v6429_v26 }
 0x4d3   :  { %6460 = vmatpush3.bf16.msra.mxu1 %v6459_v34 }
 0x4d4   :  { %6462 = vmatprep.subr.bf16.mxu1 %v6461_v36 }
 0x4d5   :  { %6432 = vmatpush3.bf16.msra.mxu0 %v6431_v15 }
 0x4d6   :  { %6434 = vmatprep.subr.bf16.mxu0 %v6433_v33 }
 0x4d7   :  { %6464 = vmatpush3.bf16.msra.mxu1 %v6463_v54 }
 0x4d8   :  { %6466 = vmatprep.subr.bf16.mxu1 %v6465_v37 }
 0x4d9   :  { %6436 = vmatpush3.bf16.msra.mxu0 %v6435_v0 }
 0x4da   :  { %6438 = vmatprep.subr.bf16.mxu0 %v6437_v53 }
 0x4db   :  { %6468 = vmatpush3.bf16.msra.mxu1 %v6467_v20 }
 0x4dc   :  { %6470 = vmatprep.subr.bf16.mxu1 %v6469_v2 }
 0x4dd   :  { %6440 = vmatpush3.bf16.msra.mxu0 %v6439_v62 }
 0x4de   :  { %6442 = vmatprep.subr.bf16.mxu0 %v6441_v60 }
 0x4df   :  { %6472 = vmatpush3.bf16.msra.mxu1 %v6471_v25  ;;  %v5147_v25 = vld [vmem:[%s7771_s12] ss:$0 sm:$0xff] }
 0x4e0   :  { %6474 = vmatprep.subr.bf16.mxu1 %v6473_v41 }
 0x4e1   :  { %6444 = vmatpush3.bf16.msra.mxu0 %v6443_v47 }
 0x4e3   :  { %6476 = vmatpush3.bf16.msra.mxu1 %v6475_v50 }
 0x4e4   :  { %4994 = vmatmul.mubr.f32.vlgmr.msra.gmra.mrb[6].mxu0 %v7725_v59 }
 0x4e6   :  { %5064 = vmatmul.mubr.f32.vlgmr.msra.gmra.mrb[6].mxu1 %v7728_v17 }
 0x557   :  { %v5461_v1 = vpop.f32.mrb[0].mxu0 }
 0x558   :  { %v5462_v11 = vpop.f32.mrb[1].mxu0 }
 0x559   :  { %v5496_v63 = vpop.f32.mrb[0].mxu1  ;;  %v5463_v45 = vadd.f32 %v5462_v11, %v5461_v1 }
 0x55a   :  { %v5497_v48 = vpop.f32.mrb[1].mxu1 }
 0x55b   :  { %v5498_v38 = vadd.f32 %v5497_v48, %v5496_v63  ;;  %v4576_v61 = vadd.f32 %v5463_v45, %v5145_v56 }
 0x55d   :  { %v4646_v40 = vadd.f32 %v5498_v38, %v4576_v61 }
 0x577   :  { %v5531_v16 = vpop.f32.mrb[2].mxu0 }
 0x578   :  { %v5532_v12 = vpop.f32.mrb[3].mxu0 }
 0x579   :  { %v5566_v3 = vpop.f32.mrb[2].mxu1  ;;  %v5533_v31 = vadd.f32 %v5532_v12, %v5531_v16 }
 0x57a   :  { %v5567_v7 = vpop.f32.mrb[3].mxu1 }
 0x57b   :  { %v5568_v59 = vadd.f32 %v5567_v7, %v5566_v3  ;;  %v4716_v42 = vadd.f32 %v5533_v31, %v4646_v40 }
 0x57d   :  { %v4786_v17 = vadd.f32 %v5568_v59, %v4716_v42 }
 0x597   :  { %v5601_v30 = vpop.f32.mrb[4].mxu0 }
 0x598   :  { %v5602_v24 = vpop.f32.mrb[5].mxu0 }
 0x599   :  { %v5636_v34 = vpop.f32.mrb[4].mxu1  ;;  %v5603_v26 = vadd.f32 %v5602_v24, %v5601_v30 }
 0x59a   :  { %v5637_v46 = vpop.f32.mrb[5].mxu1 }
 0x59b   :  { %v5638_v9 = vadd.f32 %v5637_v46, %v5636_v34  ;;  %v4856_v8 = vadd.f32 %v5603_v26, %v4786_v17 }
 0x59d   :  { %v4926_v36 = vadd.f32 %v5638_v9, %v4856_v8 }
 0x5b7   :  { %v5671_v14 = vpop.f32.mrb[6].mxu0 }
 0x5b8   :  { %v5672_v58 = vpop.f32.mrb[7].mxu0 }
 0x5b9   :  { %v5706_v23 = vpop.f32.mrb[6].mxu1  ;;  %v5673_v6 = vadd.f32 %v5672_v58, %v5671_v14 }
 0x5ba   :  { %v5707_v32 = vpop.f32.mrb[7].mxu1 }
 0x5bb   :  { %v5708_v15 = vadd.f32 %v5707_v32, %v5706_v23  ;;  %v4996_v54 = vadd.f32 %v5673_v6, %v4926_v36 }
 0x5bd   :  { %v5066_v33 = vadd.f32 %v5708_v15, %v4996_v54 }
 0x5bf   :  { %v5070_v28 = vsel %vm5069_vm4, %v5066_v33, 0.0 }
 0x5c0   :  { %v5071_v5 = vrot.slane %v5070_v28, 4 }
 0x5c2   :  { %v5072_v13 = vadd.f32 %v5071_v5, %v5070_v28 }
 0x5c4   :  { %v5073_v37 = vrot.slane %v5072_v13, 2 }
 0x5c6   :  { %v5074_v10 = vadd.f32 %v5073_v37, %v5072_v13 }
 0x5c8   :  { %v5075_v55 = vrot.slane %v5074_v10, 1 }
 0x5ca   :  { %v5076_v35 = vadd.f32 %v5075_v55, %v5074_v10 }
 0x5cc   :  { %v5078_v21 = vmul.f32 0.5, %v5076_v35 }
 0x5ce   :  { %v5079_v43 = vsub.f32 %v5066_v33, %v5078_v21 }
 0x5d0   :  { %v5080_v0 = vmul.f32 %v5079_v43, %v5079_v43  ;;  %v5096_v4 = vmul.f32 %v5146_v44, %v5079_v43 }
 0x5d2   :  { %v5081_v20 = vsel %vm5069_vm4, %v5080_v0, 0.0 }
 0x5d3   :  { %v5082_v53 = vrot.slane %v5081_v20, 4 }
 0x5d5   :  { %v5083_v49 = vadd.f32 %v5082_v53, %v5081_v20 }
 0x5d7   :  { %v5084_v57 = vrot.slane %v5083_v49, 2 }
 0x5d9   :  { %v5085_v27 = vadd.f32 %v5084_v57, %v5083_v49 }
 0x5db   :  { %v5086_v2 = vrot.slane %v5085_v27, 1 }
 0x5dd   :  { %v5087_v19 = vadd.f32 %v5086_v2, %v5085_v27 }
 0x5df   :  { %v5088_v39 = vmul.f32 0.5, %v5087_v19 }
 0x5e1   :  { %v5097_v29 = vadd.f32 1e-05, %v5088_v39 }
 0x5e3   :  { %6559 = vrsqrt.f32 %v5097_v29 }
 0x5ed   :  { %v6560_v62 = vpop.eup %6559 }
 0x5ee   :  { %v5099_v60 = vmul.f32 %v6560_v62, %v5096_v4 }
 0x5f0   :  { %v5107_v51 = vadd.f32 %v5147_v25, %v5099_v60 }
 0x5f2   :  { %5108 = vst [vmem:[#allocation16] sm:$0x3] %v5107_v51 }
 0x5f3   :  { %6704 = shalt.err (!%p6701_p11)
}
 0x5f4   :  { %s6705_s30 = scalar_lea.hbm %s7772_s13, 32 }
 0x5f5   :  { %p6706_p12 = scmp.ne.s32.totalorder %s7772_s13, %s6705_s30  ;;  %p6709_p13 = scmp.lt.u32.totalorder %s6705_s30, %s7772_s13 }
 0x5f7   :  { %p6711_p0 = pnand %p6709_p13, %p6706_p12 }
 0x5f9   :  { %6714 = shalt.err (!%p6711_p0)
}
 0x5fa   :  { %5118 = dma.vmem_to_hbm [thread:$0]  %s5116_s29, 32, %s7772_s13, [#allocation7]  }
 0x5fb   :  { %6723 = dma.done.wait [#allocation7], 32  }
 0x5fc   :  { %6724 = vsyncadd [#allocation7], 4294967264 }
 0x5fd   :  { %5122 = vsyncpa [#allocation6], 1 }
 0x5fe   :  { %5123 = vsyncpa [#allocation9], 1 }
 0x5ff   :  { %5124 = vsyncpa [#allocation12], 1 }
 0x600   :  { %5125 = vsyncpa [#allocation15], 1 }
 0x601   :  { %5126 = vsyncpa [#allocation7], 1 }

</bundles_post_ra>
